<compile_context>
chip_gen: v6e
topology: v6e:2x2x1
jax: 0.10.0
libtpu: 0.0.40
codegen_flags: <defaults>
</compile_context>

<pallas_src>
import jax
import jax.numpy as jnp
from jax.experimental import pallas as pl
from jax.experimental.pallas import tpu as pltpu

# Small hyper-parameters consistent with the module (d_model must divide n_head; the torch
# defaults d_model=64 / n_head=3 would not even construct).
INPUT_DIM = 4
NUM_CLASSES = 10
SEQLEN = 8           # torch "sequencelength" (dim 1 of x) -> attention batch axis
D_MODEL = 32
N_HEAD = 4
N_LAYERS = 2
D_INNER = 64
ATTN_BATCH = 8       # per-group torch batch (dim 0 of x) -> attention sequence axis
NUM_GROUPS = 4       # independent groups processed by the grid in one call
HEAD_DIM = D_MODEL // N_HEAD
C_PAD = 128          # lane-dense class dimension inside the kernel
EPS = 1e-5           # torch LayerNorm default


def _layernorm(x, gamma, beta):
    mu = jnp.mean(x, axis=-1, keepdims=True)
    xc = x - mu
    var = jnp.mean(xc * xc, axis=-1, keepdims=True)
    return xc * jax.lax.rsqrt(var + EPS) * gamma + beta


def transformer_kernel(x_ref, w_in_ref, b_in_ref,
                       wqkv_ref, bqkv_ref, wo_ref, bo_ref,
                       w1_ref, b1_ref, w2_ref, b2_ref,
                       g1_ref, be1_ref, g2_ref, be2_ref,
                       gf_ref, bef_ref,
                       wout_ref, bout_ref,
                       out_ref, ctx_scratch):
    # x_ref: (M, Din) for one group; rows ordered n-major: row = n * L + l
    #   n in [0, SEQLEN)     = attention batch index
    #   l in [0, ATTN_BATCH) = attention sequence index (a sample of the group)
    N, L, D = SEQLEN, ATTN_BATCH, D_MODEL
    M = N * L

    # --- input Linear + ReLU ---
    h = jnp.maximum(
        jnp.dot(x_ref[...], w_in_ref[...], preferred_element_type=jnp.float32)
        + b_in_ref[...], 0.0)

    # --- TransformerEncoder: n_layers post-norm encoder layers (dropout = identity) ---
    for layer in range(N_LAYERS):
        # fused QKV projection; Q columns already carry the 1/sqrt(head_dim) scale
        qkv = (jnp.dot(h, wqkv_ref[layer], preferred_element_type=jnp.float32)
               + bqkv_ref[layer])
        qkv3 = qkv.reshape(N, L, 3 * D)

        # multi-head self-attention over the L axis, batched over N; each head's output is
        # written to the VMEM scratch at a static lane offset (no concatenate).
        for hd in range(N_HEAD):
            o = hd * HEAD_DIM
            qh = qkv3[:, :, o:o + HEAD_DIM]
            kh = qkv3[:, :, D + o:D + o + HEAD_DIM]
            vh = qkv3[:, :, 2 * D + o:2 * D + o + HEAD_DIM]
            s = jnp.einsum('nid,njd->nij', qh, kh,
                           preferred_element_type=jnp.float32)
            s = s - jnp.max(s, axis=-1, keepdims=True)
            p = jnp.exp(s)
            p = p / jnp.sum(p, axis=-1, keepdims=True)
            ctx_scratch[:, :, o:o + HEAD_DIM] = jnp.einsum(
                'nij,njd->nid', p, vh, preferred_element_type=jnp.float32)

        ctx = ctx_scratch[...].reshape(M, D)
        attn_out = (jnp.dot(ctx, wo_ref[layer], preferred_element_type=jnp.float32)
                    + bo_ref[layer])
        h = _layernorm(h + attn_out, g1_ref[layer], be1_ref[layer])

        ff = jnp.maximum(
            jnp.dot(h, w1_ref[layer], preferred_element_type=jnp.float32)
            + b1_ref[layer], 0.0)
        ff = (jnp.dot(ff, w2_ref[layer], preferred_element_type=jnp.float32)
              + b2_ref[layer])
        h = _layernorm(h + ff, g2_ref[layer], be2_ref[layer])

    # --- final encoder LayerNorm ---
    h = _layernorm(h, gf_ref[...], bef_ref[...])

    # --- Flatten(torch dims 1,2) + ReLU + classifier Linear as ONE batched contraction ---
    # logits[l, c] = sum_{n,d} relu(h)[n, l, d] * Wout[n, d, c] + bout[c]
    hr3 = jnp.maximum(h, 0.0).reshape(N, L, D)
    logits = jnp.sum(
        jnp.einsum('nld,ndc->nlc', hr3, wout_ref[...],
                   preferred_element_type=jnp.float32),
        axis=0) + bout_ref[...]

    # mask lane-padded classes, then stable log_softmax over the real classes
    class_id = jax.lax.broadcasted_iota(jnp.int32, (L, C_PAD), 1)
    logits = jnp.where(class_id < NUM_CLASSES, logits, -1e30)
    m = jnp.max(logits, axis=-1, keepdims=True)
    z = logits - m
    lse = jnp.log(jnp.sum(jnp.exp(z), axis=-1, keepdims=True))
    out_ref[...] = z - lse


def init_params(key):
    ks = jax.random.split(key, 16)

    def nrm(k, shape, s=0.1):
        return s * jax.random.normal(k, shape, dtype=jnp.float32)

    # attention scale folded into the Q weights/bias at init (if porting torch weights,
    # multiply W_q and b_q by 1/sqrt(HEAD_DIM) here the same way).
    scale = 1.0 / (HEAD_DIM ** 0.5)
    wq = nrm(ks[2], (N_LAYERS, D_MODEL, D_MODEL)) * scale
    wk = nrm(ks[3], (N_LAYERS, D_MODEL, D_MODEL))
    wv = nrm(ks[4], (N_LAYERS, D_MODEL, D_MODEL))
    bq = nrm(ks[5], (N_LAYERS, 1, D_MODEL)) * scale
    bk = nrm(ks[6], (N_LAYERS, 1, D_MODEL))
    bv = nrm(ks[7], (N_LAYERS, 1, D_MODEL))

    # classifier Linear(d_model*sequencelength, num_classes) stored as
    # (SEQLEN, D_MODEL, C_PAD) with the class dim zero-padded to 128 lanes.
    wout = nrm(ks[14], (SEQLEN, D_MODEL, NUM_CLASSES))
    wout = jnp.pad(wout, ((0, 0), (0, 0), (0, C_PAD - NUM_CLASSES)))
    bout = jnp.pad(nrm(ks[15], (1, NUM_CLASSES)), ((0, 0), (0, C_PAD - NUM_CLASSES)))

    return {
        'w_in': nrm(ks[0], (INPUT_DIM, D_MODEL)),
        'b_in': nrm(ks[1], (1, D_MODEL)),
        'wqkv': jnp.concatenate([wq, wk, wv], axis=-1),   # (n_layers, D, 3D)
        'bqkv': jnp.concatenate([bq, bk, bv], axis=-1),   # (n_layers, 1, 3D)
        'wo': nrm(ks[8], (N_LAYERS, D_MODEL, D_MODEL)),
        'bo': nrm(ks[9], (N_LAYERS, 1, D_MODEL)),
        'w1': nrm(ks[10], (N_LAYERS, D_MODEL, D_INNER)),
        'b1': nrm(ks[11], (N_LAYERS, 1, D_INNER)),
        'w2': nrm(ks[12], (N_LAYERS, D_INNER, D_MODEL)),
        'b2': nrm(ks[13], (N_LAYERS, 1, D_MODEL)),
        'g1': jnp.ones((N_LAYERS, 1, D_MODEL), jnp.float32),
        'be1': jnp.zeros((N_LAYERS, 1, D_MODEL), jnp.float32),
        'g2': jnp.ones((N_LAYERS, 1, D_MODEL), jnp.float32),
        'be2': jnp.zeros((N_LAYERS, 1, D_MODEL), jnp.float32),
        'gf': jnp.ones((1, D_MODEL), jnp.float32),
        'bef': jnp.zeros((1, D_MODEL), jnp.float32),
        'wout': wout,
        'bout': bout,
    }


def transformer_forward(x, params):
    """x: (B_total, SEQLEN, INPUT_DIM).  Every consecutive group of ATTN_BATCH samples forms
    one independent forward call of the torch module (its batch_first=False encoder attends
    across exactly that group)."""
    B_total = x.shape[0]
    assert B_total % ATTN_BATCH == 0, "batch must be a multiple of ATTN_BATCH"
    G = B_total // ATTN_BATCH
    M = SEQLEN * ATTN_BATCH

    # kernel row layout inside a group: row = n * ATTN_BATCH + l  (n = seq idx, l = sample idx)
    xg = (x.astype(jnp.float32)
           .reshape(G, ATTN_BATCH, SEQLEN, INPUT_DIM)
           .transpose(0, 2, 1, 3)
           .reshape(G, M, INPUT_DIM))

    weight_args = (
        params['w_in'], params['b_in'],
        params['wqkv'], params['bqkv'], params['wo'], params['bo'],
        params['w1'], params['b1'], params['w2'], params['b2'],
        params['g1'], params['be1'], params['g2'], params['be2'],
        params['gf'], params['bef'],
        params['wout'], params['bout'])

    def _wspec(a):
        # whole-array block, constant index_map -> weight stays VMEM-resident across the grid
        return pl.BlockSpec(a.shape, lambda g, _nd=a.ndim: (0,) * _nd)

    in_specs = ([pl.BlockSpec((None, M, INPUT_DIM), lambda g: (g, 0, 0))]
                + [_wspec(a) for a in weight_args])

    out = pl.pallas_call(
        transformer_kernel,
        grid=(G,),
        out_shape=jax.ShapeDtypeStruct((G, ATTN_BATCH, C_PAD), jnp.float32),
        in_specs=in_specs,
        out_specs=pl.BlockSpec((None, ATTN_BATCH, C_PAD), lambda g: (g, 0, 0)),
        scratch_shapes=[pltpu.VMEM((SEQLEN, ATTN_BATCH, D_MODEL), jnp.float32)],
        compiler_params=pltpu.CompilerParams(
            dimension_semantics=("parallel",)),
    )(xg, *weight_args)

    return out.reshape(B_total, C_PAD)[:, :NUM_CLASSES]


if __name__ == "__main__":
    key = jax.random.PRNGKey(0)
    kx, kp = jax.random.split(key)
    B_TOTAL = NUM_GROUPS * ATTN_BATCH
    x = jax.random.normal(kx, (B_TOTAL, SEQLEN, INPUT_DIM), dtype=jnp.float32)
    params = init_params(kp)

    logprobs = jax.jit(lambda xx: transformer_forward(xx, params))(x)
    jax.block_until_ready(logprobs)

    assert logprobs.shape == (B_TOTAL, NUM_CLASSES)
    assert bool(jnp.all(jnp.isfinite(logprobs)))
    # rows of exp(log_softmax) must sum to 1
    row_sums = jnp.sum(jnp.exp(logprobs), axis=-1)
    assert bool(jnp.all(jnp.abs(row_sums - 1.0) < 1e-4))
    print("KERNEL_OK")
</pallas_src>

<mosaic_0001>
module attributes {stable_mosaic.version = 11 : i64} {
  func.func @transformer_kernel(%arg0: i32, %arg1: memref<1x64x4xf32, #tpu.memory_space<vmem>>, %arg2: memref<4x32xf32, #tpu.memory_space<vmem>>, %arg3: memref<1x32xf32, #tpu.memory_space<vmem>>, %arg4: memref<2x32x96xf32, #tpu.memory_space<vmem>>, %arg5: memref<2x1x96xf32, #tpu.memory_space<vmem>>, %arg6: memref<2x32x32xf32, #tpu.memory_space<vmem>>, %arg7: memref<2x1x32xf32, #tpu.memory_space<vmem>>, %arg8: memref<2x32x64xf32, #tpu.memory_space<vmem>>, %arg9: memref<2x1x64xf32, #tpu.memory_space<vmem>>, %arg10: memref<2x64x32xf32, #tpu.memory_space<vmem>>, %arg11: memref<2x1x32xf32, #tpu.memory_space<vmem>>, %arg12: memref<2x1x32xf32, #tpu.memory_space<vmem>>, %arg13: memref<2x1x32xf32, #tpu.memory_space<vmem>>, %arg14: memref<2x1x32xf32, #tpu.memory_space<vmem>>, %arg15: memref<2x1x32xf32, #tpu.memory_space<vmem>>, %arg16: memref<1x32xf32, #tpu.memory_space<vmem>>, %arg17: memref<1x32xf32, #tpu.memory_space<vmem>>, %arg18: memref<8x32x128xf32, #tpu.memory_space<vmem>>, %arg19: memref<1x128xf32, #tpu.memory_space<vmem>>, %arg20: memref<1x8x128xf32, #tpu.memory_space<vmem>>, %arg21: memref<8x8x32xf32, #tpu.memory_space<vmem>>) attributes {dimension_semantics = [#tpu.dimension_semantics<parallel>], iteration_bounds = array<i64: 4>, scalar_prefetch = 0 : i64, scratch_operands = 1 : i64, tpu.core_type = #tpu.core_type<tc>, window_params = [{transform_indices = @transform_0, window_bounds = array<i64: 1, 64, 4>}, {pipeline_mode = #tpu.pipeline_mode<synchronous>, transform_indices = @transform_1, window_bounds = array<i64: 4, 32>}, {pipeline_mode = #tpu.pipeline_mode<synchronous>, transform_indices = @transform_2, window_bounds = array<i64: 1, 32>}, {pipeline_mode = #tpu.pipeline_mode<synchronous>, transform_indices = @transform_3, window_bounds = array<i64: 2, 32, 96>}, {pipeline_mode = #tpu.pipeline_mode<synchronous>, transform_indices = @transform_4, window_bounds = array<i64: 2, 1, 96>}, {pipeline_mode = #tpu.pipeline_mode<synchronous>, transform_indices = @transform_5, window_bounds = array<i64: 2, 32, 32>}, {pipeline_mode = #tpu.pipeline_mode<synchronous>, transform_indices = @transform_6, window_bounds = array<i64: 2, 1, 32>}, {pipeline_mode = #tpu.pipeline_mode<synchronous>, transform_indices = @transform_7, window_bounds = array<i64: 2, 32, 64>}, {pipeline_mode = #tpu.pipeline_mode<synchronous>, transform_indices = @transform_8, window_bounds = array<i64: 2, 1, 64>}, {pipeline_mode = #tpu.pipeline_mode<synchronous>, transform_indices = @transform_9, window_bounds = array<i64: 2, 64, 32>}, {pipeline_mode = #tpu.pipeline_mode<synchronous>, transform_indices = @transform_10, window_bounds = array<i64: 2, 1, 32>}, {pipeline_mode = #tpu.pipeline_mode<synchronous>, transform_indices = @transform_11, window_bounds = array<i64: 2, 1, 32>}, {pipeline_mode = #tpu.pipeline_mode<synchronous>, transform_indices = @transform_12, window_bounds = array<i64: 2, 1, 32>}, {pipeline_mode = #tpu.pipeline_mode<synchronous>, transform_indices = @transform_13, window_bounds = array<i64: 2, 1, 32>}, {pipeline_mode = #tpu.pipeline_mode<synchronous>, transform_indices = @transform_14, window_bounds = array<i64: 2, 1, 32>}, {pipeline_mode = #tpu.pipeline_mode<synchronous>, transform_indices = @transform_15, window_bounds = array<i64: 1, 32>}, {pipeline_mode = #tpu.pipeline_mode<synchronous>, transform_indices = @transform_16, window_bounds = array<i64: 1, 32>}, {pipeline_mode = #tpu.pipeline_mode<synchronous>, transform_indices = @transform_17, window_bounds = array<i64: 8, 32, 128>}, {pipeline_mode = #tpu.pipeline_mode<synchronous>, transform_indices = @transform_18, window_bounds = array<i64: 1, 128>}, {transform_indices = @transform_19, window_bounds = array<i64: 1, 8, 128>}]} {
    %c0 = arith.constant 0 : index
    %c0_0 = arith.constant 0 : index
    %c0_1 = arith.constant 0 : index
    %0 = vector.load %arg1[%c0, %c0_0, %c0_1] : memref<1x64x4xf32, #tpu.memory_space<vmem>>, vector<1x64x4xf32>
    %1 = vector.shape_cast %0 : vector<1x64x4xf32> to vector<64x4xf32>
    %c0_2 = arith.constant 0 : index
    %c0_3 = arith.constant 0 : index
    %2 = vector.load %arg2[%c0_2, %c0_3] : memref<4x32xf32, #tpu.memory_space<vmem>>, vector<4x32xf32>
    %cst = arith.constant dense<0.000000e+00> : vector<64x32xf32>
    %3 = tpu.matmul %1, %2, %cst {dimension_numbers = #tpu.dot_dimension_numbers<[1], [0], [0], [1], [0, 0, 1, 1], [], []>} : vector<64x4xf32>, vector<4x32xf32>, vector<64x32xf32> -> vector<64x32xf32>
    %c0_4 = arith.constant 0 : index
    %c0_5 = arith.constant 0 : index
    %4 = vector.load %arg3[%c0_4, %c0_5] : memref<1x32xf32, #tpu.memory_space<vmem>>, vector<1x32xf32>
    %5 = vector.broadcast %4 : vector<1x32xf32> to vector<64x32xf32>
    %6 = arith.addf %3, %5 : vector<64x32xf32>
    %cst_6 = arith.constant 0.000000e+00 : f32
    %7 = vector.broadcast %cst_6 : f32 to vector<64x32xf32>
    %8 = arith.maximumf %6, %7 : vector<64x32xf32>
    %c0_7 = arith.constant 0 : index
    %c0_8 = arith.constant 0 : index
    %c0_9 = arith.constant 0 : index
    %9 = vector.load %arg4[%c0_7, %c0_8, %c0_9] : memref<2x32x96xf32, #tpu.memory_space<vmem>>, vector<1x32x96xf32>
    %10 = vector.shape_cast %9 : vector<1x32x96xf32> to vector<32x96xf32>
    %cst_10 = arith.constant dense<0.000000e+00> : vector<64x96xf32>
    %11 = tpu.matmul %8, %10, %cst_10 {dimension_numbers = #tpu.dot_dimension_numbers<[1], [0], [0], [1], [0, 0, 1, 1], [], []>} : vector<64x32xf32>, vector<32x96xf32>, vector<64x96xf32> -> vector<64x96xf32>
    %c0_11 = arith.constant 0 : index
    %c0_12 = arith.constant 0 : index
    %c0_13 = arith.constant 0 : index
    %12 = vector.load %arg5[%c0_11, %c0_12, %c0_13] : memref<2x1x96xf32, #tpu.memory_space<vmem>>, vector<1x1x96xf32>
    %13 = vector.shape_cast %12 : vector<1x1x96xf32> to vector<1x96xf32>
    %14 = vector.broadcast %13 : vector<1x96xf32> to vector<64x96xf32>
    %15 = arith.addf %11, %14 : vector<64x96xf32>
    %16 = vector.shape_cast %15 : vector<64x96xf32> to vector<8x8x96xf32>
    %17 = vector.extract_strided_slice %16 {offsets = [0, 0, 0], sizes = [8, 8, 8], strides = [1, 1, 1]} : vector<8x8x96xf32> to vector<8x8x8xf32>
    %18 = vector.extract_strided_slice %16 {offsets = [0, 0, 32], sizes = [8, 8, 8], strides = [1, 1, 1]} : vector<8x8x96xf32> to vector<8x8x8xf32>
    %19 = vector.extract_strided_slice %16 {offsets = [0, 0, 64], sizes = [8, 8, 8], strides = [1, 1, 1]} : vector<8x8x96xf32> to vector<8x8x8xf32>
    "tpu.trace_start"() <{level = 10 : i32, message = "nid,njd->nij"}> : () -> ()
    %cst_14 = arith.constant dense<0.000000e+00> : vector<8x8x8xf32>
    %20 = tpu.matmul %17, %18, %cst_14 {dimension_numbers = #tpu.dot_dimension_numbers<[2], [2], [1], [1], [0, 0, 0, 1, 1, 1], [0], [0]>} : vector<8x8x8xf32>, vector<8x8x8xf32>, vector<8x8x8xf32> -> vector<8x8x8xf32>
    "tpu.trace_stop"() : () -> ()
    %cst_15 = arith.constant dense<0xFF800000> : vector<8x8xf32>
    %21 = vector.multi_reduction <maximumf>, %20, %cst_15 [2] : vector<8x8x8xf32> to vector<8x8xf32>
    %22 = vector.shape_cast %21 : vector<8x8xf32> to vector<8x8x1xf32>
    %23 = vector.broadcast %22 : vector<8x8x1xf32> to vector<8x8x8xf32>
    %24 = arith.subf %20, %23 : vector<8x8x8xf32>
    %25 = math.exp %24 : vector<8x8x8xf32>
    %cst_16 = arith.constant dense<0.000000e+00> : vector<8x8xf32>
    %26 = vector.multi_reduction <add>, %25, %cst_16 [2] : vector<8x8x8xf32> to vector<8x8xf32>
    %27 = vector.shape_cast %26 : vector<8x8xf32> to vector<8x8x1xf32>
    %28 = vector.broadcast %27 : vector<8x8x1xf32> to vector<8x8x8xf32>
    %29 = arith.divf %25, %28 : vector<8x8x8xf32>
    "tpu.trace_start"() <{level = 10 : i32, message = "nij,njd->nid"}> : () -> ()
    %cst_17 = arith.constant dense<0.000000e+00> : vector<8x8x8xf32>
    %30 = tpu.matmul %29, %19, %cst_17 {dimension_numbers = #tpu.dot_dimension_numbers<[2], [1], [1], [2], [0, 0, 0, 1, 1, 2], [0], [0]>} : vector<8x8x8xf32>, vector<8x8x8xf32>, vector<8x8x8xf32> -> vector<8x8x8xf32>
    "tpu.trace_stop"() : () -> ()
    %c0_18 = arith.constant 0 : index
    %c0_19 = arith.constant 0 : index
    %c0_20 = arith.constant 0 : index
    %31 = vector.load %arg21[%c0_18, %c0_19, %c0_20] : memref<8x8x32xf32, #tpu.memory_space<vmem>>, vector<8x8x8xf32>
    tpu.vector_store %arg21[%c0_18, %c0_19, %c0_20], %30 {strides = array<i32>} : memref<8x8x32xf32, #tpu.memory_space<vmem>>, vector<8x8x8xf32>,
    %32 = vector.extract_strided_slice %16 {offsets = [0, 0, 8], sizes = [8, 8, 8], strides = [1, 1, 1]} : vector<8x8x96xf32> to vector<8x8x8xf32>
    %33 = vector.extract_strided_slice %16 {offsets = [0, 0, 40], sizes = [8, 8, 8], strides = [1, 1, 1]} : vector<8x8x96xf32> to vector<8x8x8xf32>
    %34 = vector.extract_strided_slice %16 {offsets = [0, 0, 72], sizes = [8, 8, 8], strides = [1, 1, 1]} : vector<8x8x96xf32> to vector<8x8x8xf32>
    "tpu.trace_start"() <{level = 10 : i32, message = "nid,njd->nij"}> : () -> ()
    %cst_21 = arith.constant dense<0.000000e+00> : vector<8x8x8xf32>
    %35 = tpu.matmul %32, %33, %cst_21 {dimension_numbers = #tpu.dot_dimension_numbers<[2], [2], [1], [1], [0, 0, 0, 1, 1, 1], [0], [0]>} : vector<8x8x8xf32>, vector<8x8x8xf32>, vector<8x8x8xf32> -> vector<8x8x8xf32>
    "tpu.trace_stop"() : () -> ()
    %cst_22 = arith.constant dense<0xFF800000> : vector<8x8xf32>
    %36 = vector.multi_reduction <maximumf>, %35, %cst_22 [2] : vector<8x8x8xf32> to vector<8x8xf32>
    %37 = vector.shape_cast %36 : vector<8x8xf32> to vector<8x8x1xf32>
    %38 = vector.broadcast %37 : vector<8x8x1xf32> to vector<8x8x8xf32>
    %39 = arith.subf %35, %38 : vector<8x8x8xf32>
    %40 = math.exp %39 : vector<8x8x8xf32>
    %cst_23 = arith.constant dense<0.000000e+00> : vector<8x8xf32>
    %41 = vector.multi_reduction <add>, %40, %cst_23 [2] : vector<8x8x8xf32> to vector<8x8xf32>
    %42 = vector.shape_cast %41 : vector<8x8xf32> to vector<8x8x1xf32>
    %43 = vector.broadcast %42 : vector<8x8x1xf32> to vector<8x8x8xf32>
    %44 = arith.divf %40, %43 : vector<8x8x8xf32>
    "tpu.trace_start"() <{level = 10 : i32, message = "nij,njd->nid"}> : () -> ()
    %cst_24 = arith.constant dense<0.000000e+00> : vector<8x8x8xf32>
    %45 = tpu.matmul %44, %34, %cst_24 {dimension_numbers = #tpu.dot_dimension_numbers<[2], [1], [1], [2], [0, 0, 0, 1, 1, 2], [0], [0]>} : vector<8x8x8xf32>, vector<8x8x8xf32>, vector<8x8x8xf32> -> vector<8x8x8xf32>
    "tpu.trace_stop"() : () -> ()
    %c0_25 = arith.constant 0 : index
    %c0_26 = arith.constant 0 : index
    %c8 = arith.constant 8 : index
    %46 = vector.load %arg21[%c0_25, %c0_26, %c8] : memref<8x8x32xf32, #tpu.memory_space<vmem>>, vector<8x8x8xf32>
    tpu.vector_store %arg21[%c0_25, %c0_26, %c8], %45 {strides = array<i32>} : memref<8x8x32xf32, #tpu.memory_space<vmem>>, vector<8x8x8xf32>,
    %47 = vector.extract_strided_slice %16 {offsets = [0, 0, 16], sizes = [8, 8, 8], strides = [1, 1, 1]} : vector<8x8x96xf32> to vector<8x8x8xf32>
    %48 = vector.extract_strided_slice %16 {offsets = [0, 0, 48], sizes = [8, 8, 8], strides = [1, 1, 1]} : vector<8x8x96xf32> to vector<8x8x8xf32>
    %49 = vector.extract_strided_slice %16 {offsets = [0, 0, 80], sizes = [8, 8, 8], strides = [1, 1, 1]} : vector<8x8x96xf32> to vector<8x8x8xf32>
    "tpu.trace_start"() <{level = 10 : i32, message = "nid,njd->nij"}> : () -> ()
    %cst_27 = arith.constant dense<0.000000e+00> : vector<8x8x8xf32>
    %50 = tpu.matmul %47, %48, %cst_27 {dimension_numbers = #tpu.dot_dimension_numbers<[2], [2], [1], [1], [0, 0, 0, 1, 1, 1], [0], [0]>} : vector<8x8x8xf32>, vector<8x8x8xf32>, vector<8x8x8xf32> -> vector<8x8x8xf32>
    "tpu.trace_stop"() : () -> ()
    %cst_28 = arith.constant dense<0xFF800000> : vector<8x8xf32>
    %51 = vector.multi_reduction <maximumf>, %50, %cst_28 [2] : vector<8x8x8xf32> to vector<8x8xf32>
    %52 = vector.shape_cast %51 : vector<8x8xf32> to vector<8x8x1xf32>
    %53 = vector.broadcast %52 : vector<8x8x1xf32> to vector<8x8x8xf32>
    %54 = arith.subf %50, %53 : vector<8x8x8xf32>
    %55 = math.exp %54 : vector<8x8x8xf32>
    %cst_29 = arith.constant dense<0.000000e+00> : vector<8x8xf32>
    %56 = vector.multi_reduction <add>, %55, %cst_29 [2] : vector<8x8x8xf32> to vector<8x8xf32>
    %57 = vector.shape_cast %56 : vector<8x8xf32> to vector<8x8x1xf32>
    %58 = vector.broadcast %57 : vector<8x8x1xf32> to vector<8x8x8xf32>
    %59 = arith.divf %55, %58 : vector<8x8x8xf32>
    "tpu.trace_start"() <{level = 10 : i32, message = "nij,njd->nid"}> : () -> ()
    %cst_30 = arith.constant dense<0.000000e+00> : vector<8x8x8xf32>
    %60 = tpu.matmul %59, %49, %cst_30 {dimension_numbers = #tpu.dot_dimension_numbers<[2], [1], [1], [2], [0, 0, 0, 1, 1, 2], [0], [0]>} : vector<8x8x8xf32>, vector<8x8x8xf32>, vector<8x8x8xf32> -> vector<8x8x8xf32>
    "tpu.trace_stop"() : () -> ()
    %c0_31 = arith.constant 0 : index
    %c0_32 = arith.constant 0 : index
    %c16 = arith.constant 16 : index
    %61 = vector.load %arg21[%c0_31, %c0_32, %c16] : memref<8x8x32xf32, #tpu.memory_space<vmem>>, vector<8x8x8xf32>
    tpu.vector_store %arg21[%c0_31, %c0_32, %c16], %60 {strides = array<i32>} : memref<8x8x32xf32, #tpu.memory_space<vmem>>, vector<8x8x8xf32>,
    %62 = vector.extract_strided_slice %16 {offsets = [0, 0, 24], sizes = [8, 8, 8], strides = [1, 1, 1]} : vector<8x8x96xf32> to vector<8x8x8xf32>
    %63 = vector.extract_strided_slice %16 {offsets = [0, 0, 56], sizes = [8, 8, 8], strides = [1, 1, 1]} : vector<8x8x96xf32> to vector<8x8x8xf32>
    %64 = vector.extract_strided_slice %16 {offsets = [0, 0, 88], sizes = [8, 8, 8], strides = [1, 1, 1]} : vector<8x8x96xf32> to vector<8x8x8xf32>
    "tpu.trace_start"() <{level = 10 : i32, message = "nid,njd->nij"}> : () -> ()
    %cst_33 = arith.constant dense<0.000000e+00> : vector<8x8x8xf32>
    %65 = tpu.matmul %62, %63, %cst_33 {dimension_numbers = #tpu.dot_dimension_numbers<[2], [2], [1], [1], [0, 0, 0, 1, 1, 1], [0], [0]>} : vector<8x8x8xf32>, vector<8x8x8xf32>, vector<8x8x8xf32> -> vector<8x8x8xf32>
    "tpu.trace_stop"() : () -> ()
    %cst_34 = arith.constant dense<0xFF800000> : vector<8x8xf32>
    %66 = vector.multi_reduction <maximumf>, %65, %cst_34 [2] : vector<8x8x8xf32> to vector<8x8xf32>
    %67 = vector.shape_cast %66 : vector<8x8xf32> to vector<8x8x1xf32>
    %68 = vector.broadcast %67 : vector<8x8x1xf32> to vector<8x8x8xf32>
    %69 = arith.subf %65, %68 : vector<8x8x8xf32>
    %70 = math.exp %69 : vector<8x8x8xf32>
    %cst_35 = arith.constant dense<0.000000e+00> : vector<8x8xf32>
    %71 = vector.multi_reduction <add>, %70, %cst_35 [2] : vector<8x8x8xf32> to vector<8x8xf32>
    %72 = vector.shape_cast %71 : vector<8x8xf32> to vector<8x8x1xf32>
    %73 = vector.broadcast %72 : vector<8x8x1xf32> to vector<8x8x8xf32>
    %74 = arith.divf %70, %73 : vector<8x8x8xf32>
    "tpu.trace_start"() <{level = 10 : i32, message = "nij,njd->nid"}> : () -> ()
    %cst_36 = arith.constant dense<0.000000e+00> : vector<8x8x8xf32>
    %75 = tpu.matmul %74, %64, %cst_36 {dimension_numbers = #tpu.dot_dimension_numbers<[2], [1], [1], [2], [0, 0, 0, 1, 1, 2], [0], [0]>} : vector<8x8x8xf32>, vector<8x8x8xf32>, vector<8x8x8xf32> -> vector<8x8x8xf32>
    "tpu.trace_stop"() : () -> ()
    %c0_37 = arith.constant 0 : index
    %c0_38 = arith.constant 0 : index
    %c24 = arith.constant 24 : index
    %76 = vector.load %arg21[%c0_37, %c0_38, %c24] : memref<8x8x32xf32, #tpu.memory_space<vmem>>, vector<8x8x8xf32>
    tpu.vector_store %arg21[%c0_37, %c0_38, %c24], %75 {strides = array<i32>} : memref<8x8x32xf32, #tpu.memory_space<vmem>>, vector<8x8x8xf32>,
    %c0_39 = arith.constant 0 : index
    %c0_40 = arith.constant 0 : index
    %c0_41 = arith.constant 0 : index
    %77 = vector.load %arg21[%c0_39, %c0_40, %c0_41] : memref<8x8x32xf32, #tpu.memory_space<vmem>>, vector<8x8x32xf32>
    %78 = vector.shape_cast %77 : vector<8x8x32xf32> to vector<64x32xf32>
    %c0_42 = arith.constant 0 : index
    %c0_43 = arith.constant 0 : index
    %c0_44 = arith.constant 0 : index
    %79 = vector.load %arg6[%c0_42, %c0_43, %c0_44] : memref<2x32x32xf32, #tpu.memory_space<vmem>>, vector<1x32x32xf32>
    %80 = vector.shape_cast %79 : vector<1x32x32xf32> to vector<32x32xf32>
    %cst_45 = arith.constant dense<0.000000e+00> : vector<64x32xf32>
    %81 = tpu.matmul %78, %80, %cst_45 {dimension_numbers = #tpu.dot_dimension_numbers<[1], [0], [0], [1], [0, 0, 1, 1], [], []>} : vector<64x32xf32>, vector<32x32xf32>, vector<64x32xf32> -> vector<64x32xf32>
    %c0_46 = arith.constant 0 : index
    %c0_47 = arith.constant 0 : index
    %c0_48 = arith.constant 0 : index
    %82 = vector.load %arg7[%c0_46, %c0_47, %c0_48] : memref<2x1x32xf32, #tpu.memory_space<vmem>>, vector<1x1x32xf32>
    %83 = vector.shape_cast %82 : vector<1x1x32xf32> to vector<1x32xf32>
    %84 = vector.broadcast %83 : vector<1x32xf32> to vector<64x32xf32>
    %85 = arith.addf %81, %84 : vector<64x32xf32>
    %86 = arith.addf %8, %85 : vector<64x32xf32>
    %c0_49 = arith.constant 0 : index
    %c0_50 = arith.constant 0 : index
    %c0_51 = arith.constant 0 : index
    %87 = vector.load %arg12[%c0_49, %c0_50, %c0_51] : memref<2x1x32xf32, #tpu.memory_space<vmem>>, vector<1x1x32xf32>
    %88 = vector.shape_cast %87 : vector<1x1x32xf32> to vector<1x32xf32>
    %c0_52 = arith.constant 0 : index
    %c0_53 = arith.constant 0 : index
    %c0_54 = arith.constant 0 : index
    %89 = vector.load %arg13[%c0_52, %c0_53, %c0_54] : memref<2x1x32xf32, #tpu.memory_space<vmem>>, vector<1x1x32xf32>
    %90 = vector.shape_cast %89 : vector<1x1x32xf32> to vector<1x32xf32>
    %cst_55 = arith.constant dense<0.000000e+00> : vector<64xf32>
    %91 = vector.multi_reduction <add>, %86, %cst_55 [1] : vector<64x32xf32> to vector<64xf32>
    %92 = vector.shape_cast %91 : vector<64xf32> to vector<64x1xf32>
    %cst_56 = arith.constant 3.200000e+01 : f32
    %93 = vector.broadcast %cst_56 : f32 to vector<64x1xf32>
    %94 = arith.divf %92, %93 : vector<64x1xf32>
    %95 = vector.broadcast %94 : vector<64x1xf32> to vector<64x32xf32>
    %96 = arith.subf %86, %95 : vector<64x32xf32>
    %97 = arith.mulf %96, %96 : vector<64x32xf32>
    %cst_57 = arith.constant dense<0.000000e+00> : vector<64xf32>
    %98 = vector.multi_reduction <add>, %97, %cst_57 [1] : vector<64x32xf32> to vector<64xf32>
    %99 = vector.shape_cast %98 : vector<64xf32> to vector<64x1xf32>
    %cst_58 = arith.constant 3.200000e+01 : f32
    %100 = vector.broadcast %cst_58 : f32 to vector<64x1xf32>
    %101 = arith.divf %99, %100 : vector<64x1xf32>
    %cst_59 = arith.constant 9.99999974E-6 : f32
    %102 = vector.broadcast %cst_59 : f32 to vector<64x1xf32>
    %103 = arith.addf %101, %102 : vector<64x1xf32>
    %104 = math.rsqrt %103 : vector<64x1xf32>
    %105 = vector.broadcast %104 : vector<64x1xf32> to vector<64x32xf32>
    %106 = arith.mulf %96, %105 : vector<64x32xf32>
    %107 = vector.broadcast %88 : vector<1x32xf32> to vector<64x32xf32>
    %108 = arith.mulf %106, %107 : vector<64x32xf32>
    %109 = vector.broadcast %90 : vector<1x32xf32> to vector<64x32xf32>
    %110 = arith.addf %108, %109 : vector<64x32xf32>
    %c0_60 = arith.constant 0 : index
    %c0_61 = arith.constant 0 : index
    %c0_62 = arith.constant 0 : index
    %111 = vector.load %arg8[%c0_60, %c0_61, %c0_62] : memref<2x32x64xf32, #tpu.memory_space<vmem>>, vector<1x32x64xf32>
    %112 = vector.shape_cast %111 : vector<1x32x64xf32> to vector<32x64xf32>
    %cst_63 = arith.constant dense<0.000000e+00> : vector<64x64xf32>
    %113 = tpu.matmul %110, %112, %cst_63 {dimension_numbers = #tpu.dot_dimension_numbers<[1], [0], [0], [1], [0, 0, 1, 1], [], []>} : vector<64x32xf32>, vector<32x64xf32>, vector<64x64xf32> -> vector<64x64xf32>
    %c0_64 = arith.constant 0 : index
    %c0_65 = arith.constant 0 : index
    %c0_66 = arith.constant 0 : index
    %114 = vector.load %arg9[%c0_64, %c0_65, %c0_66] : memref<2x1x64xf32, #tpu.memory_space<vmem>>, vector<1x1x64xf32>
    %115 = vector.shape_cast %114 : vector<1x1x64xf32> to vector<1x64xf32>
    %116 = vector.broadcast %115 : vector<1x64xf32> to vector<64x64xf32>
    %117 = arith.addf %113, %116 : vector<64x64xf32>
    %cst_67 = arith.constant 0.000000e+00 : f32
    %118 = vector.broadcast %cst_67 : f32 to vector<64x64xf32>
    %119 = arith.maximumf %117, %118 : vector<64x64xf32>
    %c0_68 = arith.constant 0 : index
    %c0_69 = arith.constant 0 : index
    %c0_70 = arith.constant 0 : index
    %120 = vector.load %arg10[%c0_68, %c0_69, %c0_70] : memref<2x64x32xf32, #tpu.memory_space<vmem>>, vector<1x64x32xf32>
    %121 = vector.shape_cast %120 : vector<1x64x32xf32> to vector<64x32xf32>
    %cst_71 = arith.constant dense<0.000000e+00> : vector<64x32xf32>
    %122 = tpu.matmul %119, %121, %cst_71 {dimension_numbers = #tpu.dot_dimension_numbers<[1], [0], [0], [1], [0, 0, 1, 1], [], []>} : vector<64x64xf32>, vector<64x32xf32>, vector<64x32xf32> -> vector<64x32xf32>
    %c0_72 = arith.constant 0 : index
    %c0_73 = arith.constant 0 : index
    %c0_74 = arith.constant 0 : index
    %123 = vector.load %arg11[%c0_72, %c0_73, %c0_74] : memref<2x1x32xf32, #tpu.memory_space<vmem>>, vector<1x1x32xf32>
    %124 = vector.shape_cast %123 : vector<1x1x32xf32> to vector<1x32xf32>
    %125 = vector.broadcast %124 : vector<1x32xf32> to vector<64x32xf32>
    %126 = arith.addf %122, %125 : vector<64x32xf32>
    %127 = arith.addf %110, %126 : vector<64x32xf32>
    %c0_75 = arith.constant 0 : index
    %c0_76 = arith.constant 0 : index
    %c0_77 = arith.constant 0 : index
    %128 = vector.load %arg14[%c0_75, %c0_76, %c0_77] : memref<2x1x32xf32, #tpu.memory_space<vmem>>, vector<1x1x32xf32>
    %129 = vector.shape_cast %128 : vector<1x1x32xf32> to vector<1x32xf32>
    %c0_78 = arith.constant 0 : index
    %c0_79 = arith.constant 0 : index
    %c0_80 = arith.constant 0 : index
    %130 = vector.load %arg15[%c0_78, %c0_79, %c0_80] : memref<2x1x32xf32, #tpu.memory_space<vmem>>, vector<1x1x32xf32>
    %131 = vector.shape_cast %130 : vector<1x1x32xf32> to vector<1x32xf32>
    %cst_81 = arith.constant dense<0.000000e+00> : vector<64xf32>
    %132 = vector.multi_reduction <add>, %127, %cst_81 [1] : vector<64x32xf32> to vector<64xf32>
    %133 = vector.shape_cast %132 : vector<64xf32> to vector<64x1xf32>
    %cst_82 = arith.constant 3.200000e+01 : f32
    %134 = vector.broadcast %cst_82 : f32 to vector<64x1xf32>
    %135 = arith.divf %133, %134 : vector<64x1xf32>
    %136 = vector.broadcast %135 : vector<64x1xf32> to vector<64x32xf32>
    %137 = arith.subf %127, %136 : vector<64x32xf32>
    %138 = arith.mulf %137, %137 : vector<64x32xf32>
    %cst_83 = arith.constant dense<0.000000e+00> : vector<64xf32>
    %139 = vector.multi_reduction <add>, %138, %cst_83 [1] : vector<64x32xf32> to vector<64xf32>
    %140 = vector.shape_cast %139 : vector<64xf32> to vector<64x1xf32>
    %cst_84 = arith.constant 3.200000e+01 : f32
    %141 = vector.broadcast %cst_84 : f32 to vector<64x1xf32>
    %142 = arith.divf %140, %141 : vector<64x1xf32>
    %cst_85 = arith.constant 9.99999974E-6 : f32
    %143 = vector.broadcast %cst_85 : f32 to vector<64x1xf32>
    %144 = arith.addf %142, %143 : vector<64x1xf32>
    %145 = math.rsqrt %144 : vector<64x1xf32>
    %146 = vector.broadcast %145 : vector<64x1xf32> to vector<64x32xf32>
    %147 = arith.mulf %137, %146 : vector<64x32xf32>
    %148 = vector.broadcast %129 : vector<1x32xf32> to vector<64x32xf32>
    %149 = arith.mulf %147, %148 : vector<64x32xf32>
    %150 = vector.broadcast %131 : vector<1x32xf32> to vector<64x32xf32>
    %151 = arith.addf %149, %150 : vector<64x32xf32>
    %c1 = arith.constant 1 : index
    %c0_86 = arith.constant 0 : index
    %c0_87 = arith.constant 0 : index
    %152 = vector.load %arg4[%c1, %c0_86, %c0_87] : memref<2x32x96xf32, #tpu.memory_space<vmem>>, vector<1x32x96xf32>
    %153 = vector.shape_cast %152 : vector<1x32x96xf32> to vector<32x96xf32>
    %cst_88 = arith.constant dense<0.000000e+00> : vector<64x96xf32>
    %154 = tpu.matmul %151, %153, %cst_88 {dimension_numbers = #tpu.dot_dimension_numbers<[1], [0], [0], [1], [0, 0, 1, 1], [], []>} : vector<64x32xf32>, vector<32x96xf32>, vector<64x96xf32> -> vector<64x96xf32>
    %c1_89 = arith.constant 1 : index
    %c0_90 = arith.constant 0 : index
    %c0_91 = arith.constant 0 : index
    %155 = vector.load %arg5[%c1_89, %c0_90, %c0_91] : memref<2x1x96xf32, #tpu.memory_space<vmem>>, vector<1x1x96xf32>
    %156 = vector.shape_cast %155 : vector<1x1x96xf32> to vector<1x96xf32>
    %157 = vector.broadcast %156 : vector<1x96xf32> to vector<64x96xf32>
    %158 = arith.addf %154, %157 : vector<64x96xf32>
    %159 = vector.shape_cast %158 : vector<64x96xf32> to vector<8x8x96xf32>
    %160 = vector.extract_strided_slice %159 {offsets = [0, 0, 0], sizes = [8, 8, 8], strides = [1, 1, 1]} : vector<8x8x96xf32> to vector<8x8x8xf32>
    %161 = vector.extract_strided_slice %159 {offsets = [0, 0, 32], sizes = [8, 8, 8], strides = [1, 1, 1]} : vector<8x8x96xf32> to vector<8x8x8xf32>
    %162 = vector.extract_strided_slice %159 {offsets = [0, 0, 64], sizes = [8, 8, 8], strides = [1, 1, 1]} : vector<8x8x96xf32> to vector<8x8x8xf32>
    "tpu.trace_start"() <{level = 10 : i32, message = "nid,njd->nij"}> : () -> ()
    %cst_92 = arith.constant dense<0.000000e+00> : vector<8x8x8xf32>
    %163 = tpu.matmul %160, %161, %cst_92 {dimension_numbers = #tpu.dot_dimension_numbers<[2], [2], [1], [1], [0, 0, 0, 1, 1, 1], [0], [0]>} : vector<8x8x8xf32>, vector<8x8x8xf32>, vector<8x8x8xf32> -> vector<8x8x8xf32>
    "tpu.trace_stop"() : () -> ()
    %cst_93 = arith.constant dense<0xFF800000> : vector<8x8xf32>
    %164 = vector.multi_reduction <maximumf>, %163, %cst_93 [2] : vector<8x8x8xf32> to vector<8x8xf32>
    %165 = vector.shape_cast %164 : vector<8x8xf32> to vector<8x8x1xf32>
    %166 = vector.broadcast %165 : vector<8x8x1xf32> to vector<8x8x8xf32>
    %167 = arith.subf %163, %166 : vector<8x8x8xf32>
    %168 = math.exp %167 : vector<8x8x8xf32>
    %cst_94 = arith.constant dense<0.000000e+00> : vector<8x8xf32>
    %169 = vector.multi_reduction <add>, %168, %cst_94 [2] : vector<8x8x8xf32> to vector<8x8xf32>
    %170 = vector.shape_cast %169 : vector<8x8xf32> to vector<8x8x1xf32>
    %171 = vector.broadcast %170 : vector<8x8x1xf32> to vector<8x8x8xf32>
    %172 = arith.divf %168, %171 : vector<8x8x8xf32>
    "tpu.trace_start"() <{level = 10 : i32, message = "nij,njd->nid"}> : () -> ()
    %cst_95 = arith.constant dense<0.000000e+00> : vector<8x8x8xf32>
    %173 = tpu.matmul %172, %162, %cst_95 {dimension_numbers = #tpu.dot_dimension_numbers<[2], [1], [1], [2], [0, 0, 0, 1, 1, 2], [0], [0]>} : vector<8x8x8xf32>, vector<8x8x8xf32>, vector<8x8x8xf32> -> vector<8x8x8xf32>
    "tpu.trace_stop"() : () -> ()
    %c0_96 = arith.constant 0 : index
    %c0_97 = arith.constant 0 : index
    %c0_98 = arith.constant 0 : index
    %174 = vector.load %arg21[%c0_96, %c0_97, %c0_98] : memref<8x8x32xf32, #tpu.memory_space<vmem>>, vector<8x8x8xf32>
    tpu.vector_store %arg21[%c0_96, %c0_97, %c0_98], %173 {strides = array<i32>} : memref<8x8x32xf32, #tpu.memory_space<vmem>>, vector<8x8x8xf32>,
    %175 = vector.extract_strided_slice %159 {offsets = [0, 0, 8], sizes = [8, 8, 8], strides = [1, 1, 1]} : vector<8x8x96xf32> to vector<8x8x8xf32>
    %176 = vector.extract_strided_slice %159 {offsets = [0, 0, 40], sizes = [8, 8, 8], strides = [1, 1, 1]} : vector<8x8x96xf32> to vector<8x8x8xf32>
    %177 = vector.extract_strided_slice %159 {offsets = [0, 0, 72], sizes = [8, 8, 8], strides = [1, 1, 1]} : vector<8x8x96xf32> to vector<8x8x8xf32>
    "tpu.trace_start"() <{level = 10 : i32, message = "nid,njd->nij"}> : () -> ()
    %cst_99 = arith.constant dense<0.000000e+00> : vector<8x8x8xf32>
    %178 = tpu.matmul %175, %176, %cst_99 {dimension_numbers = #tpu.dot_dimension_numbers<[2], [2], [1], [1], [0, 0, 0, 1, 1, 1], [0], [0]>} : vector<8x8x8xf32>, vector<8x8x8xf32>, vector<8x8x8xf32> -> vector<8x8x8xf32>
    "tpu.trace_stop"() : () -> ()
    %cst_100 = arith.constant dense<0xFF800000> : vector<8x8xf32>
    %179 = vector.multi_reduction <maximumf>, %178, %cst_100 [2] : vector<8x8x8xf32> to vector<8x8xf32>
    %180 = vector.shape_cast %179 : vector<8x8xf32> to vector<8x8x1xf32>
    %181 = vector.broadcast %180 : vector<8x8x1xf32> to vector<8x8x8xf32>
    %182 = arith.subf %178, %181 : vector<8x8x8xf32>
    %183 = math.exp %182 : vector<8x8x8xf32>
    %cst_101 = arith.constant dense<0.000000e+00> : vector<8x8xf32>
    %184 = vector.multi_reduction <add>, %183, %cst_101 [2] : vector<8x8x8xf32> to vector<8x8xf32>
    %185 = vector.shape_cast %184 : vector<8x8xf32> to vector<8x8x1xf32>
    %186 = vector.broadcast %185 : vector<8x8x1xf32> to vector<8x8x8xf32>
    %187 = arith.divf %183, %186 : vector<8x8x8xf32>
    "tpu.trace_start"() <{level = 10 : i32, message = "nij,njd->nid"}> : () -> ()
    %cst_102 = arith.constant dense<0.000000e+00> : vector<8x8x8xf32>
    %188 = tpu.matmul %187, %177, %cst_102 {dimension_numbers = #tpu.dot_dimension_numbers<[2], [1], [1], [2], [0, 0, 0, 1, 1, 2], [0], [0]>} : vector<8x8x8xf32>, vector<8x8x8xf32>, vector<8x8x8xf32> -> vector<8x8x8xf32>
    "tpu.trace_stop"() : () -> ()
    %c0_103 = arith.constant 0 : index
    %c0_104 = arith.constant 0 : index
    %c8_105 = arith.constant 8 : index
    %189 = vector.load %arg21[%c0_103, %c0_104, %c8_105] : memref<8x8x32xf32, #tpu.memory_space<vmem>>, vector<8x8x8xf32>
    tpu.vector_store %arg21[%c0_103, %c0_104, %c8_105], %188 {strides = array<i32>} : memref<8x8x32xf32, #tpu.memory_space<vmem>>, vector<8x8x8xf32>,
    %190 = vector.extract_strided_slice %159 {offsets = [0, 0, 16], sizes = [8, 8, 8], strides = [1, 1, 1]} : vector<8x8x96xf32> to vector<8x8x8xf32>
    %191 = vector.extract_strided_slice %159 {offsets = [0, 0, 48], sizes = [8, 8, 8], strides = [1, 1, 1]} : vector<8x8x96xf32> to vector<8x8x8xf32>
    %192 = vector.extract_strided_slice %159 {offsets = [0, 0, 80], sizes = [8, 8, 8], strides = [1, 1, 1]} : vector<8x8x96xf32> to vector<8x8x8xf32>
    "tpu.trace_start"() <{level = 10 : i32, message = "nid,njd->nij"}> : () -> ()
    %cst_106 = arith.constant dense<0.000000e+00> : vector<8x8x8xf32>
    %193 = tpu.matmul %190, %191, %cst_106 {dimension_numbers = #tpu.dot_dimension_numbers<[2], [2], [1], [1], [0, 0, 0, 1, 1, 1], [0], [0]>} : vector<8x8x8xf32>, vector<8x8x8xf32>, vector<8x8x8xf32> -> vector<8x8x8xf32>
    "tpu.trace_stop"() : () -> ()
    %cst_107 = arith.constant dense<0xFF800000> : vector<8x8xf32>
    %194 = vector.multi_reduction <maximumf>, %193, %cst_107 [2] : vector<8x8x8xf32> to vector<8x8xf32>
    %195 = vector.shape_cast %194 : vector<8x8xf32> to vector<8x8x1xf32>
    %196 = vector.broadcast %195 : vector<8x8x1xf32> to vector<8x8x8xf32>
    %197 = arith.subf %193, %196 : vector<8x8x8xf32>
    %198 = math.exp %197 : vector<8x8x8xf32>
    %cst_108 = arith.constant dense<0.000000e+00> : vector<8x8xf32>
    %199 = vector.multi_reduction <add>, %198, %cst_108 [2] : vector<8x8x8xf32> to vector<8x8xf32>
    %200 = vector.shape_cast %199 : vector<8x8xf32> to vector<8x8x1xf32>
    %201 = vector.broadcast %200 : vector<8x8x1xf32> to vector<8x8x8xf32>
    %202 = arith.divf %198, %201 : vector<8x8x8xf32>
    "tpu.trace_start"() <{level = 10 : i32, message = "nij,njd->nid"}> : () -> ()
    %cst_109 = arith.constant dense<0.000000e+00> : vector<8x8x8xf32>
    %203 = tpu.matmul %202, %192, %cst_109 {dimension_numbers = #tpu.dot_dimension_numbers<[2], [1], [1], [2], [0, 0, 0, 1, 1, 2], [0], [0]>} : vector<8x8x8xf32>, vector<8x8x8xf32>, vector<8x8x8xf32> -> vector<8x8x8xf32>
    "tpu.trace_stop"() : () -> ()
    %c0_110 = arith.constant 0 : index
    %c0_111 = arith.constant 0 : index
    %c16_112 = arith.constant 16 : index
    %204 = vector.load %arg21[%c0_110, %c0_111, %c16_112] : memref<8x8x32xf32, #tpu.memory_space<vmem>>, vector<8x8x8xf32>
    tpu.vector_store %arg21[%c0_110, %c0_111, %c16_112], %203 {strides = array<i32>} : memref<8x8x32xf32, #tpu.memory_space<vmem>>, vector<8x8x8xf32>,
    %205 = vector.extract_strided_slice %159 {offsets = [0, 0, 24], sizes = [8, 8, 8], strides = [1, 1, 1]} : vector<8x8x96xf32> to vector<8x8x8xf32>
    %206 = vector.extract_strided_slice %159 {offsets = [0, 0, 56], sizes = [8, 8, 8], strides = [1, 1, 1]} : vector<8x8x96xf32> to vector<8x8x8xf32>
    %207 = vector.extract_strided_slice %159 {offsets = [0, 0, 88], sizes = [8, 8, 8], strides = [1, 1, 1]} : vector<8x8x96xf32> to vector<8x8x8xf32>
    "tpu.trace_start"() <{level = 10 : i32, message = "nid,njd->nij"}> : () -> ()
    %cst_113 = arith.constant dense<0.000000e+00> : vector<8x8x8xf32>
    %208 = tpu.matmul %205, %206, %cst_113 {dimension_numbers = #tpu.dot_dimension_numbers<[2], [2], [1], [1], [0, 0, 0, 1, 1, 1], [0], [0]>} : vector<8x8x8xf32>, vector<8x8x8xf32>, vector<8x8x8xf32> -> vector<8x8x8xf32>
    "tpu.trace_stop"() : () -> ()
    %cst_114 = arith.constant dense<0xFF800000> : vector<8x8xf32>
    %209 = vector.multi_reduction <maximumf>, %208, %cst_114 [2] : vector<8x8x8xf32> to vector<8x8xf32>
    %210 = vector.shape_cast %209 : vector<8x8xf32> to vector<8x8x1xf32>
    %211 = vector.broadcast %210 : vector<8x8x1xf32> to vector<8x8x8xf32>
    %212 = arith.subf %208, %211 : vector<8x8x8xf32>
    %213 = math.exp %212 : vector<8x8x8xf32>
    %cst_115 = arith.constant dense<0.000000e+00> : vector<8x8xf32>
    %214 = vector.multi_reduction <add>, %213, %cst_115 [2] : vector<8x8x8xf32> to vector<8x8xf32>
    %215 = vector.shape_cast %214 : vector<8x8xf32> to vector<8x8x1xf32>
    %216 = vector.broadcast %215 : vector<8x8x1xf32> to vector<8x8x8xf32>
    %217 = arith.divf %213, %216 : vector<8x8x8xf32>
    "tpu.trace_start"() <{level = 10 : i32, message = "nij,njd->nid"}> : () -> ()
    %cst_116 = arith.constant dense<0.000000e+00> : vector<8x8x8xf32>
    %218 = tpu.matmul %217, %207, %cst_116 {dimension_numbers = #tpu.dot_dimension_numbers<[2], [1], [1], [2], [0, 0, 0, 1, 1, 2], [0], [0]>} : vector<8x8x8xf32>, vector<8x8x8xf32>, vector<8x8x8xf32> -> vector<8x8x8xf32>
    "tpu.trace_stop"() : () -> ()
    %c0_117 = arith.constant 0 : index
    %c0_118 = arith.constant 0 : index
    %c24_119 = arith.constant 24 : index
    %219 = vector.load %arg21[%c0_117, %c0_118, %c24_119] : memref<8x8x32xf32, #tpu.memory_space<vmem>>, vector<8x8x8xf32>
    tpu.vector_store %arg21[%c0_117, %c0_118, %c24_119], %218 {strides = array<i32>} : memref<8x8x32xf32, #tpu.memory_space<vmem>>, vector<8x8x8xf32>,
    %c0_120 = arith.constant 0 : index
    %c0_121 = arith.constant 0 : index
    %c0_122 = arith.constant 0 : index
    %220 = vector.load %arg21[%c0_120, %c0_121, %c0_122] : memref<8x8x32xf32, #tpu.memory_space<vmem>>, vector<8x8x32xf32>
    %221 = vector.shape_cast %220 : vector<8x8x32xf32> to vector<64x32xf32>
    %c1_123 = arith.constant 1 : index
    %c0_124 = arith.constant 0 : index
    %c0_125 = arith.constant 0 : index
    %222 = vector.load %arg6[%c1_123, %c0_124, %c0_125] : memref<2x32x32xf32, #tpu.memory_space<vmem>>, vector<1x32x32xf32>
    %223 = vector.shape_cast %222 : vector<1x32x32xf32> to vector<32x32xf32>
    %cst_126 = arith.constant dense<0.000000e+00> : vector<64x32xf32>
    %224 = tpu.matmul %221, %223, %cst_126 {dimension_numbers = #tpu.dot_dimension_numbers<[1], [0], [0], [1], [0, 0, 1, 1], [], []>} : vector<64x32xf32>, vector<32x32xf32>, vector<64x32xf32> -> vector<64x32xf32>
    %c1_127 = arith.constant 1 : index
    %c0_128 = arith.constant 0 : index
    %c0_129 = arith.constant 0 : index
    %225 = vector.load %arg7[%c1_127, %c0_128, %c0_129] : memref<2x1x32xf32, #tpu.memory_space<vmem>>, vector<1x1x32xf32>
    %226 = vector.shape_cast %225 : vector<1x1x32xf32> to vector<1x32xf32>
    %227 = vector.broadcast %226 : vector<1x32xf32> to vector<64x32xf32>
    %228 = arith.addf %224, %227 : vector<64x32xf32>
    %229 = arith.addf %151, %228 : vector<64x32xf32>
    %c1_130 = arith.constant 1 : index
    %c0_131 = arith.constant 0 : index
    %c0_132 = arith.constant 0 : index
    %230 = vector.load %arg12[%c1_130, %c0_131, %c0_132] : memref<2x1x32xf32, #tpu.memory_space<vmem>>, vector<1x1x32xf32>
    %231 = vector.shape_cast %230 : vector<1x1x32xf32> to vector<1x32xf32>
    %c1_133 = arith.constant 1 : index
    %c0_134 = arith.constant 0 : index
    %c0_135 = arith.constant 0 : index
    %232 = vector.load %arg13[%c1_133, %c0_134, %c0_135] : memref<2x1x32xf32, #tpu.memory_space<vmem>>, vector<1x1x32xf32>
    %233 = vector.shape_cast %232 : vector<1x1x32xf32> to vector<1x32xf32>
    %cst_136 = arith.constant dense<0.000000e+00> : vector<64xf32>
    %234 = vector.multi_reduction <add>, %229, %cst_136 [1] : vector<64x32xf32> to vector<64xf32>
    %235 = vector.shape_cast %234 : vector<64xf32> to vector<64x1xf32>
    %cst_137 = arith.constant 3.200000e+01 : f32
    %236 = vector.broadcast %cst_137 : f32 to vector<64x1xf32>
    %237 = arith.divf %235, %236 : vector<64x1xf32>
    %238 = vector.broadcast %237 : vector<64x1xf32> to vector<64x32xf32>
    %239 = arith.subf %229, %238 : vector<64x32xf32>
    %240 = arith.mulf %239, %239 : vector<64x32xf32>
    %cst_138 = arith.constant dense<0.000000e+00> : vector<64xf32>
    %241 = vector.multi_reduction <add>, %240, %cst_138 [1] : vector<64x32xf32> to vector<64xf32>
    %242 = vector.shape_cast %241 : vector<64xf32> to vector<64x1xf32>
    %cst_139 = arith.constant 3.200000e+01 : f32
    %243 = vector.broadcast %cst_139 : f32 to vector<64x1xf32>
    %244 = arith.divf %242, %243 : vector<64x1xf32>
    %cst_140 = arith.constant 9.99999974E-6 : f32
    %245 = vector.broadcast %cst_140 : f32 to vector<64x1xf32>
    %246 = arith.addf %244, %245 : vector<64x1xf32>
    %247 = math.rsqrt %246 : vector<64x1xf32>
    %248 = vector.broadcast %247 : vector<64x1xf32> to vector<64x32xf32>
    %249 = arith.mulf %239, %248 : vector<64x32xf32>
    %250 = vector.broadcast %231 : vector<1x32xf32> to vector<64x32xf32>
    %251 = arith.mulf %249, %250 : vector<64x32xf32>
    %252 = vector.broadcast %233 : vector<1x32xf32> to vector<64x32xf32>
    %253 = arith.addf %251, %252 : vector<64x32xf32>
    %c1_141 = arith.constant 1 : index
    %c0_142 = arith.constant 0 : index
    %c0_143 = arith.constant 0 : index
    %254 = vector.load %arg8[%c1_141, %c0_142, %c0_143] : memref<2x32x64xf32, #tpu.memory_space<vmem>>, vector<1x32x64xf32>
    %255 = vector.shape_cast %254 : vector<1x32x64xf32> to vector<32x64xf32>
    %cst_144 = arith.constant dense<0.000000e+00> : vector<64x64xf32>
    %256 = tpu.matmul %253, %255, %cst_144 {dimension_numbers = #tpu.dot_dimension_numbers<[1], [0], [0], [1], [0, 0, 1, 1], [], []>} : vector<64x32xf32>, vector<32x64xf32>, vector<64x64xf32> -> vector<64x64xf32>
    %c1_145 = arith.constant 1 : index
    %c0_146 = arith.constant 0 : index
    %c0_147 = arith.constant 0 : index
    %257 = vector.load %arg9[%c1_145, %c0_146, %c0_147] : memref<2x1x64xf32, #tpu.memory_space<vmem>>, vector<1x1x64xf32>
    %258 = vector.shape_cast %257 : vector<1x1x64xf32> to vector<1x64xf32>
    %259 = vector.broadcast %258 : vector<1x64xf32> to vector<64x64xf32>
    %260 = arith.addf %256, %259 : vector<64x64xf32>
    %cst_148 = arith.constant 0.000000e+00 : f32
    %261 = vector.broadcast %cst_148 : f32 to vector<64x64xf32>
    %262 = arith.maximumf %260, %261 : vector<64x64xf32>
    %c1_149 = arith.constant 1 : index
    %c0_150 = arith.constant 0 : index
    %c0_151 = arith.constant 0 : index
    %263 = vector.load %arg10[%c1_149, %c0_150, %c0_151] : memref<2x64x32xf32, #tpu.memory_space<vmem>>, vector<1x64x32xf32>
    %264 = vector.shape_cast %263 : vector<1x64x32xf32> to vector<64x32xf32>
    %cst_152 = arith.constant dense<0.000000e+00> : vector<64x32xf32>
    %265 = tpu.matmul %262, %264, %cst_152 {dimension_numbers = #tpu.dot_dimension_numbers<[1], [0], [0], [1], [0, 0, 1, 1], [], []>} : vector<64x64xf32>, vector<64x32xf32>, vector<64x32xf32> -> vector<64x32xf32>
    %c1_153 = arith.constant 1 : index
    %c0_154 = arith.constant 0 : index
    %c0_155 = arith.constant 0 : index
    %266 = vector.load %arg11[%c1_153, %c0_154, %c0_155] : memref<2x1x32xf32, #tpu.memory_space<vmem>>, vector<1x1x32xf32>
    %267 = vector.shape_cast %266 : vector<1x1x32xf32> to vector<1x32xf32>
    %268 = vector.broadcast %267 : vector<1x32xf32> to vector<64x32xf32>
    %269 = arith.addf %265, %268 : vector<64x32xf32>
    %270 = arith.addf %253, %269 : vector<64x32xf32>
    %c1_156 = arith.constant 1 : index
    %c0_157 = arith.constant 0 : index
    %c0_158 = arith.constant 0 : index
    %271 = vector.load %arg14[%c1_156, %c0_157, %c0_158] : memref<2x1x32xf32, #tpu.memory_space<vmem>>, vector<1x1x32xf32>
    %272 = vector.shape_cast %271 : vector<1x1x32xf32> to vector<1x32xf32>
    %c1_159 = arith.constant 1 : index
    %c0_160 = arith.constant 0 : index
    %c0_161 = arith.constant 0 : index
    %273 = vector.load %arg15[%c1_159, %c0_160, %c0_161] : memref<2x1x32xf32, #tpu.memory_space<vmem>>, vector<1x1x32xf32>
    %274 = vector.shape_cast %273 : vector<1x1x32xf32> to vector<1x32xf32>
    %cst_162 = arith.constant dense<0.000000e+00> : vector<64xf32>
    %275 = vector.multi_reduction <add>, %270, %cst_162 [1] : vector<64x32xf32> to vector<64xf32>
    %276 = vector.shape_cast %275 : vector<64xf32> to vector<64x1xf32>
    %cst_163 = arith.constant 3.200000e+01 : f32
    %277 = vector.broadcast %cst_163 : f32 to vector<64x1xf32>
    %278 = arith.divf %276, %277 : vector<64x1xf32>
    %279 = vector.broadcast %278 : vector<64x1xf32> to vector<64x32xf32>
    %280 = arith.subf %270, %279 : vector<64x32xf32>
    %281 = arith.mulf %280, %280 : vector<64x32xf32>
    %cst_164 = arith.constant dense<0.000000e+00> : vector<64xf32>
    %282 = vector.multi_reduction <add>, %281, %cst_164 [1] : vector<64x32xf32> to vector<64xf32>
    %283 = vector.shape_cast %282 : vector<64xf32> to vector<64x1xf32>
    %cst_165 = arith.constant 3.200000e+01 : f32
    %284 = vector.broadcast %cst_165 : f32 to vector<64x1xf32>
    %285 = arith.divf %283, %284 : vector<64x1xf32>
    %cst_166 = arith.constant 9.99999974E-6 : f32
    %286 = vector.broadcast %cst_166 : f32 to vector<64x1xf32>
    %287 = arith.addf %285, %286 : vector<64x1xf32>
    %288 = math.rsqrt %287 : vector<64x1xf32>
    %289 = vector.broadcast %288 : vector<64x1xf32> to vector<64x32xf32>
    %290 = arith.mulf %280, %289 : vector<64x32xf32>
    %291 = vector.broadcast %272 : vector<1x32xf32> to vector<64x32xf32>
    %292 = arith.mulf %290, %291 : vector<64x32xf32>
    %293 = vector.broadcast %274 : vector<1x32xf32> to vector<64x32xf32>
    %294 = arith.addf %292, %293 : vector<64x32xf32>
    %c0_167 = arith.constant 0 : index
    %c0_168 = arith.constant 0 : index
    %295 = vector.load %arg16[%c0_167, %c0_168] : memref<1x32xf32, #tpu.memory_space<vmem>>, vector<1x32xf32>
    %c0_169 = arith.constant 0 : index
    %c0_170 = arith.constant 0 : index
    %296 = vector.load %arg17[%c0_169, %c0_170] : memref<1x32xf32, #tpu.memory_space<vmem>>, vector<1x32xf32>
    %cst_171 = arith.constant dense<0.000000e+00> : vector<64xf32>
    %297 = vector.multi_reduction <add>, %294, %cst_171 [1] : vector<64x32xf32> to vector<64xf32>
    %298 = vector.shape_cast %297 : vector<64xf32> to vector<64x1xf32>
    %cst_172 = arith.constant 3.200000e+01 : f32
    %299 = vector.broadcast %cst_172 : f32 to vector<64x1xf32>
    %300 = arith.divf %298, %299 : vector<64x1xf32>
    %301 = vector.broadcast %300 : vector<64x1xf32> to vector<64x32xf32>
    %302 = arith.subf %294, %301 : vector<64x32xf32>
    %303 = arith.mulf %302, %302 : vector<64x32xf32>
    %cst_173 = arith.constant dense<0.000000e+00> : vector<64xf32>
    %304 = vector.multi_reduction <add>, %303, %cst_173 [1] : vector<64x32xf32> to vector<64xf32>
    %305 = vector.shape_cast %304 : vector<64xf32> to vector<64x1xf32>
    %cst_174 = arith.constant 3.200000e+01 : f32
    %306 = vector.broadcast %cst_174 : f32 to vector<64x1xf32>
    %307 = arith.divf %305, %306 : vector<64x1xf32>
    %cst_175 = arith.constant 9.99999974E-6 : f32
    %308 = vector.broadcast %cst_175 : f32 to vector<64x1xf32>
    %309 = arith.addf %307, %308 : vector<64x1xf32>
    %310 = math.rsqrt %309 : vector<64x1xf32>
    %311 = vector.broadcast %310 : vector<64x1xf32> to vector<64x32xf32>
    %312 = arith.mulf %302, %311 : vector<64x32xf32>
    %313 = vector.broadcast %295 : vector<1x32xf32> to vector<64x32xf32>
    %314 = arith.mulf %312, %313 : vector<64x32xf32>
    %315 = vector.broadcast %296 : vector<1x32xf32> to vector<64x32xf32>
    %316 = arith.addf %314, %315 : vector<64x32xf32>
    %cst_176 = arith.constant 0.000000e+00 : f32
    %317 = vector.broadcast %cst_176 : f32 to vector<64x32xf32>
    %318 = arith.maximumf %316, %317 : vector<64x32xf32>
    %319 = vector.shape_cast %318 : vector<64x32xf32> to vector<8x8x32xf32>
    %c0_177 = arith.constant 0 : index
    %c0_178 = arith.constant 0 : index
    %c0_179 = arith.constant 0 : index
    %320 = vector.load %arg18[%c0_177, %c0_178, %c0_179] : memref<8x32x128xf32, #tpu.memory_space<vmem>>, vector<8x32x128xf32>
    "tpu.trace_start"() <{level = 10 : i32, message = "nld,ndc->nlc"}> : () -> ()
    %cst_180 = arith.constant dense<0.000000e+00> : vector<8x8x128xf32>
    %321 = tpu.matmul %319, %320, %cst_180 {dimension_numbers = #tpu.dot_dimension_numbers<[2], [1], [1], [2], [0, 0, 0, 1, 1, 2], [0], [0]>} : vector<8x8x32xf32>, vector<8x32x128xf32>, vector<8x8x128xf32> -> vector<8x8x128xf32>
    "tpu.trace_stop"() : () -> ()
    %cst_181 = arith.constant dense<0.000000e+00> : vector<8x128xf32>
    %322 = vector.multi_reduction <add>, %321, %cst_181 [0] : vector<8x8x128xf32> to vector<8x128xf32>
    %c0_182 = arith.constant 0 : index
    %c0_183 = arith.constant 0 : index
    %323 = vector.load %arg19[%c0_182, %c0_183] : memref<1x128xf32, #tpu.memory_space<vmem>>, vector<1x128xf32>
    %324 = vector.broadcast %323 : vector<1x128xf32> to vector<8x128xf32>
    %325 = arith.addf %322, %324 : vector<8x128xf32>
    %326 = tpu.iota {dimensions = array<i32: 1>} : vector<8x128xi32>
    %c10_i32 = arith.constant 10 : i32
    %327 = vector.broadcast %c10_i32 : i32 to vector<8x128xi32>
    %328 = arith.cmpi slt, %326, %327 : vector<8x128xi32>
    %cst_184 = arith.constant -1.000000e+30 : f32
    %329 = vector.broadcast %cst_184 : f32 to vector<8x128xf32>
    %330 = arith.select %328, %325, %329 : vector<8x128xi1>, vector<8x128xf32>
    %cst_185 = arith.constant dense<0xFF800000> : vector<8xf32>
    %331 = vector.multi_reduction <maximumf>, %330, %cst_185 [1] : vector<8x128xf32> to vector<8xf32>
    %332 = vector.shape_cast %331 : vector<8xf32> to vector<8x1xf32>
    %333 = vector.broadcast %332 : vector<8x1xf32> to vector<8x128xf32>
    %334 = arith.subf %330, %333 : vector<8x128xf32>
    %335 = math.exp %334 : vector<8x128xf32>
    %cst_186 = arith.constant dense<0.000000e+00> : vector<8xf32>
    %336 = vector.multi_reduction <add>, %335, %cst_186 [1] : vector<8x128xf32> to vector<8xf32>
    %337 = vector.shape_cast %336 : vector<8xf32> to vector<8x1xf32>
    %338 = math.log %337 : vector<8x1xf32>
    %339 = vector.broadcast %338 : vector<8x1xf32> to vector<8x128xf32>
    %340 = arith.subf %334, %339 : vector<8x128xf32>
    %c0_187 = arith.constant 0 : index
    %c0_188 = arith.constant 0 : index
    %c0_189 = arith.constant 0 : index
    %341 = vector.load %arg20[%c0_187, %c0_188, %c0_189] : memref<1x8x128xf32, #tpu.memory_space<vmem>>, vector<1x8x128xf32>
    %342 = vector.shape_cast %341 : vector<1x8x128xf32> to vector<8x128xf32>
    %343 = vector.shape_cast %340 : vector<8x128xf32> to vector<1x8x128xf32>
    tpu.vector_store %arg20[%c0_187, %c0_188, %c0_189], %343 {strides = array<i32>} : memref<1x8x128xf32, #tpu.memory_space<vmem>>, vector<1x8x128xf32>,
    return
  }
  func.func @transform_0(%arg0: i32) -> (i32, i32, i32) {
    %c0_i32 = arith.constant 0 : i32
    %c0_i32_0 = arith.constant 0 : i32
    %c0_i32_1 = arith.constant 0 : i32
    return %arg0, %c0_i32, %c0_i32_0 : i32, i32, i32
  }
  func.func @transform_1(%arg0: i32) -> (i32, i32) {
    %c0_i32 = arith.constant 0 : i32
    %c0_i32_0 = arith.constant 0 : i32
    %c0_i32_1 = arith.constant 0 : i32
    return %c0_i32, %c0_i32_0 : i32, i32
  }
  func.func @transform_2(%arg0: i32) -> (i32, i32) {
    %c0_i32 = arith.constant 0 : i32
    %c0_i32_0 = arith.constant 0 : i32
    %c0_i32_1 = arith.constant 0 : i32
    return %c0_i32, %c0_i32_0 : i32, i32
  }
  func.func @transform_3(%arg0: i32) -> (i32, i32, i32) {
    %c0_i32 = arith.constant 0 : i32
    %c0_i32_0 = arith.constant 0 : i32
    %c0_i32_1 = arith.constant 0 : i32
    %c0_i32_2 = arith.constant 0 : i32
    return %c0_i32, %c0_i32_0, %c0_i32_1 : i32, i32, i32
  }
  func.func @transform_4(%arg0: i32) -> (i32, i32, i32) {
    %c0_i32 = arith.constant 0 : i32
    %c0_i32_0 = arith.constant 0 : i32
    %c0_i32_1 = arith.constant 0 : i32
    %c0_i32_2 = arith.constant 0 : i32
    return %c0_i32, %c0_i32_0, %c0_i32_1 : i32, i32, i32
  }
  func.func @transform_5(%arg0: i32) -> (i32, i32, i32) {
    %c0_i32 = arith.constant 0 : i32
    %c0_i32_0 = arith.constant 0 : i32
    %c0_i32_1 = arith.constant 0 : i32
    %c0_i32_2 = arith.constant 0 : i32
    return %c0_i32, %c0_i32_0, %c0_i32_1 : i32, i32, i32
  }
  func.func @transform_6(%arg0: i32) -> (i32, i32, i32) {
    %c0_i32 = arith.constant 0 : i32
    %c0_i32_0 = arith.constant 0 : i32
    %c0_i32_1 = arith.constant 0 : i32
    %c0_i32_2 = arith.constant 0 : i32
    return %c0_i32, %c0_i32_0, %c0_i32_1 : i32, i32, i32
  }
  func.func @transform_7(%arg0: i32) -> (i32, i32, i32) {
    %c0_i32 = arith.constant 0 : i32
    %c0_i32_0 = arith.constant 0 : i32
    %c0_i32_1 = arith.constant 0 : i32
    %c0_i32_2 = arith.constant 0 : i32
    return %c0_i32, %c0_i32_0, %c0_i32_1 : i32, i32, i32
  }
  func.func @transform_8(%arg0: i32) -> (i32, i32, i32) {
    %c0_i32 = arith.constant 0 : i32
    %c0_i32_0 = arith.constant 0 : i32
    %c0_i32_1 = arith.constant 0 : i32
    %c0_i32_2 = arith.constant 0 : i32
    return %c0_i32, %c0_i32_0, %c0_i32_1 : i32, i32, i32
  }
  func.func @transform_9(%arg0: i32) -> (i32, i32, i32) {
    %c0_i32 = arith.constant 0 : i32
    %c0_i32_0 = arith.constant 0 : i32
    %c0_i32_1 = arith.constant 0 : i32
    %c0_i32_2 = arith.constant 0 : i32
    return %c0_i32, %c0_i32_0, %c0_i32_1 : i32, i32, i32
  }
  func.func @transform_10(%arg0: i32) -> (i32, i32, i32) {
    %c0_i32 = arith.constant 0 : i32
    %c0_i32_0 = arith.constant 0 : i32
    %c0_i32_1 = arith.constant 0 : i32
    %c0_i32_2 = arith.constant 0 : i32
    return %c0_i32, %c0_i32_0, %c0_i32_1 : i32, i32, i32
  }
  func.func @transform_11(%arg0: i32) -> (i32, i32, i32) {
    %c0_i32 = arith.constant 0 : i32
    %c0_i32_0 = arith.constant 0 : i32
    %c0_i32_1 = arith.constant 0 : i32
    %c0_i32_2 = arith.constant 0 : i32
    return %c0_i32, %c0_i32_0, %c0_i32_1 : i32, i32, i32
  }
  func.func @transform_12(%arg0: i32) -> (i32, i32, i32) {
    %c0_i32 = arith.constant 0 : i32
    %c0_i32_0 = arith.constant 0 : i32
    %c0_i32_1 = arith.constant 0 : i32
    %c0_i32_2 = arith.constant 0 : i32
    return %c0_i32, %c0_i32_0, %c0_i32_1 : i32, i32, i32
  }
  func.func @transform_13(%arg0: i32) -> (i32, i32, i32) {
    %c0_i32 = arith.constant 0 : i32
    %c0_i32_0 = arith.constant 0 : i32
    %c0_i32_1 = arith.constant 0 : i32
    %c0_i32_2 = arith.constant 0 : i32
    return %c0_i32, %c0_i32_0, %c0_i32_1 : i32, i32, i32
  }
  func.func @transform_14(%arg0: i32) -> (i32, i32, i32) {
    %c0_i32 = arith.constant 0 : i32
    %c0_i32_0 = arith.constant 0 : i32
    %c0_i32_1 = arith.constant 0 : i32
    %c0_i32_2 = arith.constant 0 : i32
    return %c0_i32, %c0_i32_0, %c0_i32_1 : i32, i32, i32
  }
  func.func @transform_15(%arg0: i32) -> (i32, i32) {
    %c0_i32 = arith.constant 0 : i32
    %c0_i32_0 = arith.constant 0 : i32
    %c0_i32_1 = arith.constant 0 : i32
    return %c0_i32, %c0_i32_0 : i32, i32
  }
  func.func @transform_16(%arg0: i32) -> (i32, i32) {
    %c0_i32 = arith.constant 0 : i32
    %c0_i32_0 = arith.constant 0 : i32
    %c0_i32_1 = arith.constant 0 : i32
    return %c0_i32, %c0_i32_0 : i32, i32
  }
  func.func @transform_17(%arg0: i32) -> (i32, i32, i32) {
    %c0_i32 = arith.constant 0 : i32
    %c0_i32_0 = arith.constant 0 : i32
    %c0_i32_1 = arith.constant 0 : i32
    %c0_i32_2 = arith.constant 0 : i32
    return %c0_i32, %c0_i32_0, %c0_i32_1 : i32, i32, i32
  }
  func.func @transform_18(%arg0: i32) -> (i32, i32) {
    %c0_i32 = arith.constant 0 : i32
    %c0_i32_0 = arith.constant 0 : i32
    %c0_i32_1 = arith.constant 0 : i32
    return %c0_i32, %c0_i32_0 : i32, i32
  }
  func.func @transform_19(%arg0: i32) -> (i32, i32, i32) {
    %c0_i32 = arith.constant 0 : i32
    %c0_i32_0 = arith.constant 0 : i32
    %c0_i32_1 = arith.constant 0 : i32
    return %arg0, %c0_i32, %c0_i32_0 : i32, i32, i32
  }
}

</mosaic_0001>

<bundles_post_ra>
// kernel: _lambda_.1
= control target key start
LH: loop header
LB: loop body
LE: loop exit
PB: predicated region body
PF: predicated region fallthrough
CT: control target
= control target key end

     0   :  { %s18979_s0 = inlined_call_operand.vmem [shape: f32[4,64,4], index: 0, kind: input, shape index: {}]   ;;  %s18980_s1 = inlined_call_operand.vmem [shape: f32[4,32], index: 1, kind: input, shape index: {}]   ;;  %s18981_s2 = inlined_call_operand.vmem [shape: f32[1,32], index: 2, kind: input, shape index: {}]   ;;  %s18982_s3 = inlined_call_operand.vmem [shape: f32[2,32,96], index: 3, kind: input, shape index: {}]   ;;  %s18983_s4 = inlined_call_operand.vmem [shape: f32[2,1,96], index: 4, kind: input, shape index: {}]   ;;  %s18984_s5 = inlined_call_operand.vmem [shape: f32[2,32,32], index: 5, kind: input, shape index: {}]   ;;  %s18985_s6 = inlined_call_operand.vmem [shape: f32[2,1,32], index: 6, kind: input, shape index: {}]   ;;  %s18986_s7 = inlined_call_operand.hbm [shape: f32[2,32,64], index: 7, kind: input, shape index: {}]   ;;  %s18987_s8 = inlined_call_operand.vmem [shape: f32[2,1,64], index: 8, kind: input, shape index: {}]   ;;  %s18988_s9 = inlined_call_operand.vmem [shape: f32[2,64,32], index: 9, kind: input, shape index: {}]   ;;  %s18989_s10 = inlined_call_operand.vmem [shape: f32[2,1,32], index: 10, kind: input, shape index: {}]   ;;  %s18990_s11 = inlined_call_operand.vmem [shape: f32[2,1,32], index: 11, kind: input, shape index: {}, may-alias: {11,13}]   ;;  %s18991_s12 = inlined_call_operand.vmem [shape: f32[2,1,32], index: 12, kind: input, shape index: {}, may-alias: {12,14}]   ;;  %s18992_s13 = inlined_call_operand.vmem [shape: f32[2,1,32], index: 13, kind: input, shape index: {}, may-alias: {11,13}]   ;;  %s18993_s14 = inlined_call_operand.vmem [shape: f32[2,1,32], index: 14, kind: input, shape index: {}, may-alias: {12,14}]   ;;  %s18994_s15 = inlined_call_operand.vmem [shape: f32[1,32], index: 15, kind: input, shape index: {}]   ;;  %s18995_s16 = inlined_call_operand.vmem [shape: f32[1,32], index: 16, kind: input, shape index: {}]   ;;  %s18996_s17 = inlined_call_operand.vmem [shape: f32[8,32,128], index: 17, kind: input, shape index: {}]   ;;  %s18997_s18 = inlined_call_operand.vmem [shape: f32[1,128], index: 18, kind: input, shape index: {}]   ;;  %s18998_s19 = inlined_call_operand.vmem [shape: f32[4,8,128], index: 19, kind: output, shape index: {}]  }
   0x1   :  { %19022 = sst [smem:[#allocation6_spill]] %s18979_s0 }
   0x2   :  { %19023 = sst [smem:[#allocation7_spill]] %s18980_s1 }
   0x3   :  { %19024 = sst [smem:[#allocation8_spill]] %s18981_s2 }
   0x4   :  { %19025 = sst [smem:[#allocation9_spill]] %s18982_s3 }
   0x5   :  { %24 = vsyncpa [#allocation4], 0  ;;  %s16365_s0 = smov 0  }
   0x6 LB: > { %s14174_s30 = sadd.s32 4294967295, %s16244_s0   ;;  %p14176_p0 = scmp.ge.s32.totalorder %s16244_s0, 1  ;;  %s16244_s0 = sphi %s16365_s0, %s30_s0  }
   0x7   : > { %p465_p1 = scmp.lt.s32.totalorder %s16244_s0, 5  ;;  %s16246_s20 = smov [#allocation3]  }
   0x8   : > { %s495_s21 = sshll.u32 %s16246_s20, 4  ;;  %p15839_p3 = scmp.eq.s32.totalorder %s14174_s30, 0  ;;  %s496_s21 = int_to_ptr.vmem [resolvable:$true] %s495_s21 }
   0x9   : > { %p16373_p2 = pnand %p14176_p0, %p465_p1  ;;  %s16219_s22 = scalar_lea.vmem %s496_s21, 1024 }
   0xa   : > { %p16220_p7 = scmp.ne.s32.totalorder %s496_s21, %s16219_s22  ;;  %p16227_p10 = scmp.lt.s32.totalorder %s496_s21, %s496_s21 }
   0xb   : > { %p15835_p4 = pneg %p16373_p2  ;;  %p16228_p11 = scmp.lt.s32.totalorder %s16219_s22, %s16219_s22 }
   0xd   : > { %p15836_p5 = pnand %p15839_p3, %p15835_p4  ;;  %p16229_p12 = por %p16228_p11, %p16227_p10 }
   0xf   : > { %p16210_p6 = pneg %p15836_p5 }
  0x11   : > { %p16222_p8 = pnand %p16220_p7, %p16210_p6 }
  0x13   : > { %p16223_p9 = pneg %p16222_p8 }
  0x15   : > { %p16230_p13 = pnand %p16229_p12, %p16223_p9 }
  0x17   : > { %16233 = shalt.err (!%p16230_p13)
}
  0x18   : > { %s16247_s2 = smov 128   ;;  %s16248_s23 = smov 8  }
  0x19   : > { %15838 = dma.hbm_to_vmem [thread:$0]  (!%p15836_p5), %s18986_s7, 1024, %s496_s21, [#allocation4], %s16247_s2, %s16247_s2, %s16248_s23  }
  0x1a   : > { %552 = sbr.rel (%p16373_p2) target bundleno = 9122 (0x23a2), region = 96 }
  0x1f   : > { %16239 = dma.done.wait (%p15839_p3), [#allocation4], 1024  }
  0x20   : > { %16241 = vsyncadd (%p15839_p3), [#allocation4], 4294966272  ;;  %p607_p0 = scmp.lt.s32.totalorder %s14174_s30, 3  ;;  %vm657_vm0 = vcmask 1043456   ;;  %s19027_s28 = sld [smem:[#allocation6_spill]]  ;;  %vm632_vm1 = vcmask 31744  }
  0x21   : > { %s19028_s22 = sld [smem:[#allocation7_spill]]  ;;  %vm785_vm2 = vcmask 261120   ;;  %v16249_v38 = vmov 0.0   ;;  %vm16250_vm3 = vmmov 0   ;;  %v14194_v40 = vld [vmem:[%s18983_s4] ss:$0 sm:$0xff] }
  0x22   : > { %s19044_s30 = smov (!%p607_p0, %s14174_s30), 3  ;;  %s19029_s23 = sld [smem:[#allocation9_spill]]  ;;  %vm918_vm4 = vcmask 64512   ;;  %vm3588_vm5 = vcmask 130112   ;;  %vm4949_vm6 = vcmask 195712   ;;  %vm6310_vm7 = vcmask 261312  }
  0x23   : > { %s14503_s3 = sshll.u32 %s19044_s30, 6  ;;  %s19030_s21 = sld [smem:[#allocation8_spill]]  ;;  %vm6773_vm8 = vcmask 523264  }
  0x24   : > { %s16251_s2 = smov 96   ;;  %s16252_s24 = smov 64  }
  0x25   : > { %s16253_s25 = smov 88   ;;  %s19018_s26 = smov 56  }
  0x26   : > { %s611_s29 = scalar_lea.vmem %s19027_s28, %s14503_s3  ;;  %s16254_s3 = smov 120  }
  0x27   : > { %v624_v0 = vld [vmem:[%s19028_s22] sm:$0xf]  ;;  %v617_v2 = vld [vmem:[%s611_s29 + $0x8] sm:$0xff]  ;;  %v618_v3 = vld [vmem:[%s611_s29 + $0x10] sm:$0xff]  ;;  %s19016_s27 = smov 80   ;;  %s19014_s28 = smov 112  }
  0x28   : > { %v616_v1 = vld [vmem:[%s611_s29] sm:$0xff]  ;;  %14913 = vmatprep.subr.msk.mxu0 %vm657_vm0, %v624_v0  ;;  %v619_v4 = vld [vmem:[%s611_s29 + $0x18] sm:$0xff]  ;;  %v621_v6 = vld [vmem:[%s611_s29 + $0x28] sm:$0xff]  ;;  %s19010_s20 = smov 72   ;;  %s19008_s22 = smov 40  }
  0x29   : > { %14915 = vmatprep.mubr.msk.f32.mxu0 %vm632_vm1, %v616_v1  ;;  %14914 = vmatpush3.msk.msra.mxu0 %vm657_vm0, %v624_v0  ;;  %v620_v5 = vld [vmem:[%s611_s29 + $0x20] sm:$0xff]  ;;  %v622_v7 = vld [vmem:[%s611_s29 + $0x30] sm:$0xff]  ;;  %v623_v8 = vld [vmem:[%s611_s29 + $0x38] sm:$0xff]  ;;  %s19012_s29 = smov 48   ;;  %s19006_s1 = smov 8  }
  0x2a   : > { %14916 = vmatmul.mubr.msk.f32.vlgmr.msra.gmra.mxu0 %vm632_vm1, %v617_v2  ;;  %v777_v9 = vld [vmem:[%s19029_s23 + $0x18] sm:$0xff]  ;;  %v776_v10 = vld [vmem:[%s19029_s23 + $0x10] sm:$0xff]  ;;  %v775_v11 = vld [vmem:[%s19029_s23 + $0x8] sm:$0xff]  ;;  %14947 = vmatprep.subr.mxu0 %v16249_v38 }
  0x2b   : > { %14918 = vmatprep.mubr.msk.f32.mxu0 %vm632_vm1, %v618_v3  ;;  %14927 = vmatprep.subr.mxu1 %v777_v9  ;;  %v774_v12 = vld [vmem:[%s19029_s23] sm:$0xff] }
  0x2c   : > { %14928 = vmatpush3.msra.mxu1 %v777_v9  ;;  %v14184_v13 = vld [vmem:[%s19030_s21] ss:$0 sm:$0xff]  ;;  %s19002_s21 = smov 104  }
  0x2d   : > { %14929 = vmatprep.subr.mxu1 %v776_v10 }
  0x2e   : > { %14919 = vmatmul.mubr.msk.f32.gmra.mxu0 %vm632_vm1, %v619_v4  ;;  %14930 = vmatpush3.msra.mxu1 %v776_v10 }
  0x2f   : > { %14921 = vmatprep.mubr.msk.f32.mxu0 %vm632_vm1, %v620_v5  ;;  %14931 = vmatprep.subr.mxu1 %v775_v11 }
  0x30   : > { %14932 = vmatpush3.msra.mxu1 %v775_v11 }
  0x31   : > { %14933 = vmatprep.subr.mxu1 %v774_v12 }
  0x32   : > { %14922 = vmatmul.mubr.msk.f32.gmra.mxu0 %vm632_vm1, %v621_v6  ;;  %14934 = vmatpush3.msra.mxu1 %v774_v12 }
  0x33   : > { %14924 = vmatprep.mubr.msk.f32.mxu0 %vm632_vm1, %v622_v7  ;;  %14957 = vmatprep.subr.mxu1 %v16249_v38 }
  0x36   : > { %14925 = vmatmul.mubr.msk.f32.gmra.mxu0 %vm632_vm1, %v623_v8 }
  0x37   : > { %14949 = vmatprep.mubr.msk.f32.mxu0 %vm16250_vm3, %v16249_v38 }
  0xea   : > { %v14917_v14 = vpop.f32.mrf.mxu0 }
  0xeb   : > { %v16419_v15 = vadd.f32 %v14917_v14, %v14184_v13 }
  0xec   : > { %v727_v16 = vpop.f32.mrf.mxu0 }
  0xed   : > { %v16421_v17 = vadd.f32 %v14184_v13, %v727_v16  ;;  %v767_v20 = vmax.f32 %v16419_v15, 0.0 }
  0xee   : > { %v14920_v18 = vpop.f32.mrf.mxu0 }
  0xef   : > { %v766_v19 = vmax.f32 %v16421_v17, 0.0  ;;  %v16425_v21 = vadd.f32 %v14920_v18, %v14184_v13 }
  0xf0   : > { %v737_v22 = vpop.f32.mrf.mxu0 }
  0xf1   : > { %v16427_v23 = vadd.f32 %v14184_v13, %v737_v22  ;;  %14935 = vmatprep.mubr.msk.f32.mxu1 %vm785_vm2, %v766_v19  ;;  %v769_v26 = vmax.f32 %v16425_v21, 0.0 }
  0xf2   : > { %v14923_v24 = vpop.f32.mrf.mxu0  ;;  %14936 = vmatmul.mubr.msk.f32.vlgmr.msra.gmra.mxu1 %vm785_vm2, %v767_v20 }
  0xf3   : > { %v768_v25 = vmax.f32 %v16427_v23, 0.0  ;;  %v16437_v27 = vadd.f32 %v14923_v24, %v14184_v13 }
  0xf4   : > { %v747_v28 = vpop.f32.mrf.mxu0 }
  0xf5   : > { %v16439_v29 = vadd.f32 %v14184_v13, %v747_v28  ;;  %14938 = vmatprep.mubr.msk.f32.mxu1 %vm785_vm2, %v768_v25  ;;  %v771_v32 = vmax.f32 %v16437_v27, 0.0 }
  0xf6   : > { %v14926_v30 = vpop.f32.mrf.mxu0  ;;  %14939 = vmatmul.mubr.msk.f32.gmra.mxu1 %vm785_vm2, %v769_v26 }
  0xf7   : > { %v770_v31 = vmax.f32 %v16439_v29, 0.0  ;;  %v16449_v33 = vadd.f32 %v14926_v30, %v14184_v13 }
  0xf8   : > { %v757_v34 = vpop.f32.mrf.mxu0 }
  0xf9   : > { %v16451_v35 = vadd.f32 %v14184_v13, %v757_v34  ;;  %14941 = vmatprep.mubr.msk.f32.mxu1 %vm785_vm2, %v770_v31  ;;  %v19000_v37 = vmax.f32 %v16449_v33, 0.0 }
  0xfa   : > { %14942 = vmatmul.mubr.msk.f32.gmra.mxu1 %vm785_vm2, %v771_v32 }
  0xfb   : > { %v19001_v36 = vmax.f32 %v16451_v35, 0.0 }
  0xfd   : > { %14944 = vmatprep.mubr.msk.f32.mxu1 %vm785_vm2, %v19001_v36 }
  0xfe   : > { %14945 = vmatmul.mubr.msk.f32.gmra.mxu1 %vm785_vm2, %v19000_v37 }
  0xff   : > { %14959 = vmatprep.mubr.msk.f32.mxu1 %vm16250_vm3, %v16249_v38 }
 0x1b2   : > { %v14937_v39 = vpop.f32.mrf.mxu1 }
 0x1b3   : > { %v16480_v45 = vadd.f32 %v14937_v39, %v14194_v40 }
 0x1b4   : > { %v876_v41 = vpop.f32.mrf.mxu1 }
 0x1b5   : > { %v16476_v42 = vadd.f32 %v14194_v40, %v876_v41 }
 0x1b6   : > { %v14940_v43 = vpop.f32.mrf.mxu1 }
 0x1b7   : > { %916 = vrot.lane.b32.xlu0 %v16476_v42, %s16251_s2  ;;  %v16488_v49 = vadd.f32 %v14940_v43, %v14194_v40 }
 0x1b8   : > { %v886_v44 = vpop.f32.mrf.mxu1 }
 0x1b9   : > { %v16482_v46 = vadd.f32 %v14194_v40, %v886_v44 }
 0x1ba   : > { %v14943_v47 = vpop.f32.mrf.mxu1 }
 0x1bb   : > { %1071 = vrot.lane.b32.xlu1 %v16482_v46, %s16251_s2  ;;  %994 = vrot.lane.b32.xlu0 %v16480_v45, %s16251_s2  ;;  %v16496_v53 = vadd.f32 %v14943_v47, %v14194_v40 }
 0x1bc   : > { %v896_v48 = vpop.f32.mrf.mxu1 }
 0x1bd   : > { %v16490_v50 = vadd.f32 %v14194_v40, %v896_v48 }
 0x1be   : > { %v14946_v51 = vpop.f32.mrf.mxu1 }
 0x1bf   : > { %1148 = vrot.lane.b32.xlu1 %v16488_v49, %s16251_s2  ;;  %1225 = vrot.lane.b32.xlu0 %v16490_v50, %s16251_s2  ;;  %v16504_v55 = vadd.f32 %v14946_v51, %v14194_v40 }
 0x1c0   : > { %v906_v52 = vpop.f32.mrf.mxu1 }
 0x1c1   : > { %v16498_v54 = vadd.f32 %v14194_v40, %v906_v52 }
 0x1c3   : > { %1302 = vrot.lane.b32.xlu1 %v16496_v53, %s16251_s2  ;;  %1379 = vrot.lane.b32.xlu0 %v16498_v54, %s16251_s2 }
 0x1c7   : > { %1456 = vrot.lane.b32.xlu1 %v16504_v55, %s16251_s2 }
 0x1cb   : > { %1620 = vrot.lane.b32.xlu1 %v16476_v42, %s16252_s24 }
 0x229   : > { %v917_v56 = vpop.permute.xlu0 %916 }
 0x22a   : > { %14948 = vmatpush3.xpose.msk.msra.mxu0 %vm918_vm4, %v917_v56 }
 0x22b   : > { %14952 = vmatprep.subr.mxu0 %v16249_v38 }
 0x22d   : > { %v1072_v57 = vpop.permute.xlu1 %1071  ;;  %14950 = vmatmul.mubr.msk.f32.vlgmr.msra.gmra.mxu0 %vm918_vm4, %v16476_v42  ;;  %v995_v58 = vpop.permute.xlu0 %994 }
 0x22e   : > { %14953 = vmatpush3.xpose.msk.msra.mxu0 %vm918_vm4, %v995_v58  ;;  %14958 = vmatpush3.xpose.msk.msra.mxu1 %vm918_vm4, %v1072_v57 }
 0x22f   : > { %14954 = vmatprep.mubr.msk.f32.mxu0 %vm16250_vm3, %v16249_v38  ;;  %14967 = vmatprep.subr.mxu1 %v16249_v38 }
 0x230   : > { %14962 = vmatprep.subr.mxu0 %v16249_v38 }
 0x231   : > { %14960 = vmatmul.mubr.msk.f32.vlgmr.msra.gmra.mxu1 %vm918_vm4, %v16482_v46  ;;  %v1149_v59 = vpop.permute.xlu1 %1148  ;;  %14955 = vmatmul.mubr.msk.f32.vlgmr.msra.gmra.mxu0 %vm918_vm4, %v16480_v45  ;;  %v1226_v60 = vpop.permute.xlu0 %1225 }
 0x232   : > { %14963 = vmatpush3.xpose.msk.msra.mxu0 %vm918_vm4, %v1149_v59  ;;  %14968 = vmatpush3.xpose.msk.msra.mxu1 %vm918_vm4, %v1226_v60 }
 0x233   : > { %14964 = vmatprep.mubr.msk.f32.mxu0 %vm16250_vm3, %v16249_v38  ;;  %14969 = vmatprep.mubr.msk.f32.mxu1 %vm16250_vm3, %v16249_v38 }
 0x234   : > { %14972 = vmatprep.subr.mxu0 %v16249_v38  ;;  %14977 = vmatprep.subr.mxu1 %v16249_v38 }
 0x235   : > { %v1303_v61 = vpop.permute.xlu1 %1302  ;;  %14965 = vmatmul.mubr.msk.f32.vlgmr.msra.gmra.mxu0 %vm918_vm4, %v16488_v49  ;;  %14970 = vmatmul.mubr.msk.f32.vlgmr.msra.gmra.mxu1 %vm918_vm4, %v16490_v50  ;;  %v1380_v62 = vpop.permute.xlu0 %1379 }
 0x236   : > { %14973 = vmatpush3.xpose.msk.msra.mxu0 %vm918_vm4, %v1303_v61  ;;  %14978 = vmatpush3.xpose.msk.msra.mxu1 %vm918_vm4, %v1380_v62 }
 0x237   : > { %14974 = vmatprep.mubr.msk.f32.mxu0 %vm16250_vm3, %v16249_v38  ;;  %14979 = vmatprep.mubr.msk.f32.mxu1 %vm16250_vm3, %v16249_v38 }
 0x238   : > { %14982 = vmatprep.subr.mxu0 %v16249_v38  ;;  %14987 = vmatprep.subr.mxu1 %v16249_v38 }
 0x239   : > { %v1457_v63 = vpop.permute.xlu1 %1456  ;;  %14975 = vmatmul.mubr.msk.f32.vlgmr.msra.gmra.mxu0 %vm918_vm4, %v16496_v53  ;;  %14980 = vmatmul.mubr.msk.f32.vlgmr.msra.gmra.mxu1 %vm918_vm4, %v16498_v54 }
 0x23a   : > { %14983 = vmatpush3.xpose.msk.msra.mxu0 %vm918_vm4, %v1457_v63  ;;  %14984 = vmatprep.mubr.msk.f32.mxu0 %vm16250_vm3, %v16249_v38 }
 0x23b   : > { %14992 = vmatprep.subr.mxu0 %v16249_v38  ;;  %14989 = vmatprep.mubr.msk.f32.mxu1 %vm16250_vm3, %v16249_v38 }
 0x23d   : > { %v1621_v0 = vpop.permute.xlu1 %1620  ;;  %14985 = vmatmul.mubr.msk.f32.vlgmr.msra.gmra.mxu0 %vm918_vm4, %v16504_v55 }
 0x23e   : > { %14988 = vmatpush3.msra.mxu1 %v1621_v0  ;;  %14994 = vmatprep.mubr.msk.f32.mxu0 %vm16250_vm3, %v16249_v38 }
 0x23f   : > { %14997 = vmatprep.subr.mxu1 %v16249_v38 }
 0x2ed   : > { %v989_v1 = vpop.f32.mrf.mxu0 }
 0x2ee   : > { %v1532_v2 = vsel %vm918_vm4, %v989_v1, -inf }
 0x2ef   : > { %1533 = vmax.xlane.f32.xlu0 %v1532_v2  ;;  %v14951_v3 = vpop.f32.mrf.mxu0 }
 0x2f1   : > { %v1066_v4 = vpop.f32.mrf.mxu0  ;;  %v1143_v5 = vpop.f32.mrf.mxu1 }
 0x2f2   : > { %v1538_v6 = vsel %vm918_vm4, %v1143_v5, -inf  ;;  %v1535_v7 = vsel %vm918_vm4, %v1066_v4, -inf }
 0x2f3   : > { %v14961_v8 = vpop.f32.mrf.mxu1  ;;  %1539 = vmax.xlane.f32.xlu0 %v1538_v6  ;;  %1536 = vmax.xlane.f32.xlu1 %v1535_v7  ;;  %v14956_v9 = vpop.f32.mrf.mxu0 }
 0x2f5   : > { %v1220_v10 = vpop.f32.mrf.mxu0  ;;  %v1297_v11 = vpop.f32.mrf.mxu1 }
 0x2f6   : > { %v1541_v12 = vsel %vm918_vm4, %v1220_v10, -inf  ;;  %v1544_v13 = vsel %vm918_vm4, %v1297_v11, -inf }
 0x2f7   : > { %1542 = vmax.xlane.f32.xlu0 %v1541_v12  ;;  %v14966_v14 = vpop.f32.mrf.mxu0  ;;  %1545 = vmax.xlane.f32.xlu1 %v1544_v13  ;;  %v14971_v16 = vpop.f32.mrf.mxu1 }
 0x2f9   : > { %v1374_v18 = vpop.f32.mrf.mxu0  ;;  %v1451_v22 = vpop.f32.mrf.mxu1 }
 0x2fa   : > { %v1547_v24 = vsel %vm918_vm4, %v1374_v18, -inf  ;;  %v1550_v28 = vsel %vm918_vm4, %v1451_v22, -inf }
 0x2fb   : > { %1548 = vmax.xlane.f32.xlu0 %v1547_v24  ;;  %v14976_v30 = vpop.f32.mrf.mxu0  ;;  %1551 = vmax.xlane.f32.xlu1 %v1550_v28  ;;  %v14981_v34 = vpop.f32.mrf.mxu1 }
 0x2fd   : > { %v1528_v39 = vpop.f32.mrf.mxu0 }
 0x2fe   : > { %v1553_v40 = vsel %vm918_vm4, %v1528_v39, -inf }
 0x2ff   : > { %1554 = vmax.xlane.f32.xlu0 %v1553_v40  ;;  %v14986_v41 = vpop.f32.mrf.mxu0 }
 0x30c   : > { %1772 = vrot.lane.b32.xlu1 %v16482_v46, %s16252_s24 }
 0x310   : > { %1848 = vrot.lane.b32.xlu1 %v16488_v49, %s16252_s24 }
 0x314   : > { %2000 = vrot.lane.b32.xlu1 %v16496_v53, %s16252_s24 }
 0x315   : > { %1696 = vrot.lane.b32.xlu0 %v16480_v45, %s16252_s24 }
 0x318   : > { %2152 = vrot.lane.b32.xlu1 %v16504_v55, %s16252_s24 }
 0x319   : > { %1924 = vrot.lane.b32.xlu0 %v16490_v50, %s16252_s24 }
 0x31c   : > { %2316 = vrot.lane.b32.xlu1 %v16480_v45, %s16253_s25 }
 0x31d   : > { %2076 = vrot.lane.b32.xlu0 %v16498_v54, %s16252_s24 }
 0x320   : > { %2314 = vrot.lane.b32.xlu1 %v16480_v45, %s16254_s3 }
 0x321   : > { %2238 = vrot.lane.b32.xlu0 %v16476_v42, %s16253_s25 }
 0x324   : > { %2472 = vrot.lane.b32.xlu1 %v16488_v49, %s16253_s25 }
 0x325   : > { %2236 = vrot.lane.b32.xlu0 %v16476_v42, %s16254_s3 }
 0x328   : > { %2470 = vrot.lane.b32.xlu1 %v16488_v49, %s16254_s3 }
 0x329   : > { %2394 = vrot.lane.b32.xlu0 %v16482_v46, %s16253_s25 }
 0x32d   : > { %2392 = vrot.lane.b32.xlu0 %v16482_v46, %s16254_s3 }
 0x378   : > { %v1534_v43 = vpop.xlane.xlu0 %1533 }
 0x379   : > { %v1556_v44 = vsub.f32 %v989_v1, %v1534_v43 }
 0x37b   : > { %v1564_v47 = vmul.f32 1.442695, %v1556_v44 }
 0x37c   : > { %v1537_v48 = vpop.xlane.xlu1 %1536  ;;  %v1540_v51 = vpop.xlane.xlu0 %1539 }
 0x37d   : > { %15868 = vpow2.f32 %v1564_v47  ;;  %v1557_v52 = vsub.f32 %v1066_v4, %v1537_v48  ;;  %v1558_v56 = vsub.f32 %v1143_v5, %v1540_v51 }
 0x37f   : > { %v1566_v57 = vmul.f32 1.442695, %v1557_v52  ;;  %v1568_v58 = vmul.f32 1.442695, %v1558_v56 }
 0x380   : > { %v1546_v59 = vpop.xlane.xlu1 %1545  ;;  %v1543_v60 = vpop.xlane.xlu0 %1542 }
 0x381   : > { %15870 = vpow2.f32 %v1566_v57  ;;  %v1560_v61 = vsub.f32 %v1297_v11, %v1546_v59  ;;  %v1559_v62 = vsub.f32 %v1220_v10, %v1543_v60 }
 0x382   : > { %15872 = vpow2.f32 %v1568_v58 }
 0x383   : > { %v1572_v63 = vmul.f32 1.442695, %v1560_v61  ;;  %v1570_v0 = vmul.f32 1.442695, %v1559_v62 }
 0x384   : > { %v1552_v2 = vpop.xlane.xlu1 %1551  ;;  %v1549_v3 = vpop.xlane.xlu0 %1548 }
 0x385   : > { %15874 = vpow2.f32 %v1572_v63  ;;  %v1562_v1 = vsub.f32 %v1451_v22, %v1552_v2  ;;  %v1561_v6 = vsub.f32 %v1374_v18, %v1549_v3 }
 0x386   : > { %15876 = vpow2.f32 %v1570_v0 }
 0x387   : > { %v1576_v7 = vmul.f32 1.442695, %v1562_v1  ;;  %v1574_v8 = vmul.f32 1.442695, %v1561_v6 }
 0x388   : > { %v1555_v4 = vpop.xlane.xlu0 %1554  ;;  %v1773_v47 = vpop.permute.xlu1 %1772 }
 0x389   : > { %15878 = vpow2.f32 %v1576_v7  ;;  %v1563_v5 = vsub.f32 %v1528_v39, %v1555_v4 }
 0x38a   : > { %v16597_v9 = vpop.eup %15868  ;;  %15880 = vpow2.f32 %v1574_v8 }
 0x38b   : > { %v1578_v12 = vmul.f32 1.442695, %v1563_v5  ;;  %v1580_v10 = vsel %vm918_vm4, %v16597_v9, 0.0 }
 0x38c   : > { %1581 = vadd.xlane.f32.xlu1 %v1580_v10  ;;  %v1697_v11 = vpop.permute.xlu0 %1696  ;;  %v1849_v48 = vpop.permute.xlu1 %1848 }
 0x38d   : > { %15882 = vpow2.f32 %v1578_v12  ;;  %14993 = vmatpush3.msra.mxu0 %v1697_v11 }
 0x38e   : > { %v16601_v13 = vpop.eup %15870  ;;  %15002 = vmatprep.subr.mxu0 %v16249_v38 }
 0x38f   : > { %v16604_v14 = vpop.eup %15872  ;;  %v1583_v16 = vsel %vm918_vm4, %v16601_v13, 0.0 }
 0x390   : > { %1584 = vadd.xlane.f32.xlu0 %v1583_v16  ;;  %v1586_v18 = vsel %vm918_vm4, %v16604_v14, 0.0  ;;  %v2001_v51 = vpop.permute.xlu1 %2000  ;;  %v1925_v52 = vpop.permute.xlu0 %1924 }
 0x391   : > { %1587 = vadd.xlane.f32.xlu1 %v1586_v18 }
 0x392   : > { %v16610_v22 = vpop.eup %15874 }
 0x393   : > { %v16612_v24 = vpop.eup %15876  ;;  %v1592_v28 = vsel %vm918_vm4, %v16610_v22, 0.0 }
 0x394   : > { %v1589_v30 = vsel %vm918_vm4, %v16612_v24, 0.0  ;;  %v16648_v56 = vpop.permute.xlu1 %2152  ;;  %v2077_v57 = vpop.permute.xlu0 %2076 }
 0x395   : > { %1593 = vadd.xlane.f32.xlu1 %v1592_v28  ;;  %1590 = vadd.xlane.f32.xlu0 %v1589_v30 }
 0x396   : > { %v16618_v34 = vpop.eup %15878 }
 0x397   : > { %v16620_v39 = vpop.eup %15880  ;;  %v1598_v40 = vsel %vm918_vm4, %v16618_v34, 0.0 }
 0x398   : > { %v1595_v41 = vsel %vm918_vm4, %v16620_v39, 0.0  ;;  %v16650_v58 = vpop.permute.xlu1 %2316  ;;  %v16652_v59 = vpop.permute.xlu0 %2238 }
 0x399   : > { %1599 = vadd.xlane.f32.xlu1 %v1598_v40  ;;  %1596 = vadd.xlane.f32.xlu0 %v1595_v41 }
 0x39a   : > { %v16626_v43 = vpop.eup %15882 }
 0x39b   : > { %v1601_v44 = vsel %vm918_vm4, %v16626_v43, 0.0 }
 0x39c   : > { %v16654_v60 = vpop.permute.xlu1 %2314  ;;  %v16656_v61 = vpop.permute.xlu0 %2236 }
 0x39d   : > { %1602 = vadd.xlane.f32.xlu0 %v1601_v44 }
 0x3a0   : > { %v16658_v62 = vpop.permute.xlu1 %2472  ;;  %v16660_v63 = vpop.permute.xlu0 %2394 }
 0x3a4   : > { %v16662_v0 = vpop.permute.xlu1 %2470  ;;  %v16664_v2 = vpop.permute.xlu0 %2392 }
 0x3aa   : > { %2628 = vrot.lane.b32.xlu1 %v16496_v53, %s16253_s25 }
 0x3ae   : > { %2626 = vrot.lane.b32.xlu1 %v16496_v53, %s16254_s3 }
 0x3b2   : > { %2784 = vrot.lane.b32.xlu1 %v16504_v55, %s16253_s25 }
 0x3b3   : > { %2550 = vrot.lane.b32.xlu0 %v16490_v50, %s16253_s25 }
 0x3b6   : > { %2782 = vrot.lane.b32.xlu1 %v16504_v55, %s16254_s3 }
 0x3b7   : > { %2548 = vrot.lane.b32.xlu0 %v16490_v50, %s16254_s3 }
 0x3ba   : > { %2948 = vrot.lane.b32.xlu1 %v16476_v42, %s19018_s26 }
 0x3bb   : > { %2706 = vrot.lane.b32.xlu0 %v16498_v54, %s16253_s25 }
 0x3bf   : > { %2704 = vrot.lane.b32.xlu0 %v16498_v54, %s16254_s3 }
 0x415   : > { %v1582_v3 = vpop.xlane.xlu1 %1581 }
 0x416   : > { %15884 = vrcp.f32 %v1582_v3 }
 0x419   : > { %v1585_v1 = vpop.xlane.xlu0 %1584 }
 0x41a   : > { %v1588_v6 = vpop.xlane.xlu1 %1587  ;;  %15886 = vrcp.f32 %v1585_v1 }
 0x41b   : > { %15888 = vrcp.f32 %v1588_v6 }
 0x41e   : > { %v1594_v7 = vpop.xlane.xlu1 %1593  ;;  %v1591_v8 = vpop.xlane.xlu0 %1590 }
 0x41f   : > { %15890 = vrcp.f32 %v1594_v7 }
 0x420   : > { %15892 = vrcp.f32 %v1591_v8 }
 0x422   : > { %v1600_v4 = vpop.xlane.xlu1 %1599  ;;  %v1597_v5 = vpop.xlane.xlu0 %1596 }
 0x423   : > { %v15885_v12 = vpop.eup %15884  ;;  %15894 = vrcp.f32 %v1600_v4 }
 0x424   : > { %15896 = vrcp.f32 %v1597_v5  ;;  %v1605_v10 = vmul.f32 %v15885_v12, %v16597_v9 }
 0x426   : > { %v1603_v11 = vpop.xlane.xlu0 %1602  ;;  %14990 = vmatmul.mubr.msk.f32.vlgmr.msra.gmra.mxu1 %vm918_vm4, %v1605_v10  ;;  %v2629_v40 = vpop.permute.xlu1 %2628 }
 0x427   : > { %v15887_v16 = vpop.eup %15886  ;;  %15898 = vrcp.f32 %v1603_v11  ;;  %14998 = vmatpush3.msra.mxu1 %v1773_v47  ;;  %14999 = vmatprep.mubr.msk.f32.mxu1 %vm16250_vm3, %v16249_v38 }
 0x428   : > { %v15889_v18 = vpop.eup %15888  ;;  %15007 = vmatprep.subr.mxu1 %v16249_v38  ;;  %v1607_v28 = vmul.f32 %v15887_v16, %v16601_v13 }
 0x429   : > { %v1609_v30 = vmul.f32 %v15889_v18, %v16604_v14 }
 0x42a   : > { %14995 = vmatmul.mubr.msk.f32.vlgmr.msra.gmra.mxu0 %vm918_vm4, %v1607_v28  ;;  %v2551_v47 = vpop.permute.xlu0 %2550 }
 0x42b   : > { %15000 = vmatmul.mubr.msk.f32.vlgmr.msra.gmra.mxu1 %vm918_vm4, %v1609_v30  ;;  %15003 = vmatpush3.msra.mxu0 %v1849_v48 }
 0x42c   : > { %v15891_v9 = vpop.eup %15890  ;;  %15008 = vmatpush3.msra.mxu1 %v1925_v52  ;;  %15009 = vmatprep.mubr.msk.f32.mxu1 %vm16250_vm3, %v16249_v38  ;;  %v2627_v52 = vpop.permute.xlu1 %2626 }
 0x42d   : > { %v15893_v41 = vpop.eup %15892  ;;  %15004 = vmatprep.mubr.msk.f32.mxu0 %vm16250_vm3, %v16249_v38  ;;  %15012 = vmatprep.subr.mxu0 %v16249_v38  ;;  %v1613_v13 = vmul.f32 %v15891_v9, %v16610_v22 }
 0x42e   : > { %15017 = vmatprep.subr.mxu1 %v16249_v38  ;;  %v1611_v14 = vmul.f32 %v15893_v41, %v16612_v24 }
 0x42f   : > { %15010 = vmatmul.mubr.msk.f32.vlgmr.msra.gmra.mxu1 %vm918_vm4, %v1613_v13 }
 0x430   : > { %v15895_v44 = vpop.eup %15894  ;;  %15005 = vmatmul.mubr.msk.f32.vlgmr.msra.gmra.mxu0 %vm918_vm4, %v1611_v14  ;;  %15018 = vmatpush3.msra.mxu1 %v2077_v57 }
 0x431   : > { %v15897_v48 = vpop.eup %15896  ;;  %15013 = vmatpush3.msra.mxu0 %v2001_v51  ;;  %15014 = vmatprep.mubr.msk.f32.mxu0 %vm16250_vm3, %v16249_v38  ;;  %v1617_v3 = vmul.f32 %v15895_v44, %v16618_v34  ;;  %v2549_v51 = vpop.permute.xlu0 %2548 }
 0x432   : > { %15019 = vmatprep.mubr.msk.f32.mxu1 %vm16250_vm3, %v16249_v38  ;;  %15022 = vmatprep.subr.mxu0 %v16249_v38  ;;  %v1615_v22 = vmul.f32 %v15897_v48, %v16620_v39  ;;  %v2785_v39 = vpop.permute.xlu1 %2784 }
 0x433   : > { %15027 = vmatprep.subr.mxu1 %v16249_v38  ;;  %15020 = vmatmul.mubr.msk.f32.vlgmr.msra.gmra.mxu1 %vm918_vm4, %v1617_v3 }
 0x434   : > { %v15899_v24 = vpop.eup %15898  ;;  %15015 = vmatmul.mubr.msk.f32.vlgmr.msra.gmra.mxu0 %vm918_vm4, %v1615_v22  ;;  %15028 = vmatpush3.xpose.msk.msra.mxu1 %vm918_vm4, %v16652_v59 }
 0x435   : > { %15023 = vmatpush3.msra.mxu0 %v16648_v56  ;;  %15024 = vmatprep.mubr.msk.f32.mxu0 %vm16250_vm3, %v16249_v38  ;;  %v1619_v34 = vmul.f32 %v15899_v24, %v16626_v43  ;;  %v2707_v43 = vpop.permute.xlu0 %2706 }
 0x436   : > { %15029 = vmatprep.mubr.msk.f32.mxu1 %vm16250_vm3, %v16249_v38  ;;  %15032 = vmatprep.subr.mxu0 %v16249_v38  ;;  %v2783_v56 = vpop.permute.xlu1 %2782 }
 0x437   : > { %15037 = vmatprep.subr.mxu1 %v16249_v38  ;;  %15030 = vmatmul.mubr.msk.f32.vlgmr.msra.gmra.mxu1 %vm918_vm4, %v16656_v61 }
 0x438   : > { %15025 = vmatmul.mubr.msk.f32.vlgmr.msra.gmra.mxu0 %vm918_vm4, %v1619_v34  ;;  %15038 = vmatpush3.xpose.msk.msra.mxu1 %vm918_vm4, %v16660_v63 }
 0x439   : > { %15033 = vmatpush3.xpose.msk.msra.mxu0 %vm918_vm4, %v16650_v58  ;;  %15034 = vmatprep.mubr.msk.f32.mxu0 %vm16250_vm3, %v16249_v38  ;;  %v2705_v57 = vpop.permute.xlu0 %2704 }
 0x43a   : > { %15039 = vmatprep.mubr.msk.f32.mxu1 %vm16250_vm3, %v16249_v38  ;;  %15042 = vmatprep.subr.mxu0 %v16249_v38  ;;  %v2949_v58 = vpop.permute.xlu1 %2948 }
 0x43b   : > { %15047 = vmatprep.subr.mxu1 %v16249_v38  ;;  %15040 = vmatmul.mubr.msk.f32.vlgmr.msra.gmra.mxu1 %vm918_vm4, %v16664_v2 }
 0x43c   : > { %15035 = vmatmul.mubr.msk.f32.vlgmr.msra.gmra.mxu0 %vm918_vm4, %v16654_v60  ;;  %15048 = vmatpush3.xpose.msk.msra.mxu1 %vm918_vm4, %v2551_v47 }
 0x43d   : > { %15043 = vmatpush3.xpose.msk.msra.mxu0 %vm918_vm4, %v16658_v62  ;;  %15044 = vmatprep.mubr.msk.f32.mxu0 %vm16250_vm3, %v16249_v38 }
 0x43e   : > { %15049 = vmatprep.mubr.msk.f32.mxu1 %vm16250_vm3, %v16249_v38  ;;  %15052 = vmatprep.subr.mxu0 %v16249_v38 }
 0x43f   : > { %15057 = vmatprep.subr.mxu1 %v16249_v38  ;;  %15050 = vmatmul.mubr.msk.f32.vlgmr.msra.gmra.mxu1 %vm918_vm4, %v2549_v51 }
 0x440   : > { %15045 = vmatmul.mubr.msk.f32.vlgmr.msra.gmra.mxu0 %vm918_vm4, %v16662_v0  ;;  %15058 = vmatpush3.xpose.msk.msra.mxu1 %vm918_vm4, %v2707_v43 }
 0x441   : > { %15053 = vmatpush3.xpose.msk.msra.mxu0 %vm918_vm4, %v2629_v40  ;;  %15054 = vmatprep.mubr.msk.f32.mxu0 %vm16250_vm3, %v16249_v38 }
 0x442   : > { %15059 = vmatprep.mubr.msk.f32.mxu1 %vm16250_vm3, %v16249_v38  ;;  %15062 = vmatprep.subr.mxu0 %v16249_v38 }
 0x443   : > { %15067 = vmatprep.subr.mxu1 %v16249_v38  ;;  %15060 = vmatmul.mubr.msk.f32.vlgmr.msra.gmra.mxu1 %vm918_vm4, %v2705_v57 }
 0x444   : > { %15055 = vmatmul.mubr.msk.f32.vlgmr.msra.gmra.mxu0 %vm918_vm4, %v2627_v52  ;;  %15068 = vmatpush3.msra.mxu1 %v2949_v58 }
 0x445   : > { %15063 = vmatpush3.xpose.msk.msra.mxu0 %vm918_vm4, %v2785_v39  ;;  %15064 = vmatprep.mubr.msk.f32.mxu0 %vm16250_vm3, %v16249_v38 }
 0x446   : > { %15072 = vmatprep.subr.mxu0 %v16249_v38  ;;  %15069 = vmatprep.mubr.msk.f32.mxu1 %vm16250_vm3, %v16249_v38 }
 0x447   : > { %15077 = vmatprep.subr.mxu1 %v16249_v38 }
 0x448   : > { %15065 = vmatmul.mubr.msk.f32.vlgmr.msra.gmra.mxu0 %vm918_vm4, %v2783_v56 }
 0x449   : > { %15074 = vmatprep.mubr.msk.f32.mxu0 %vm16250_vm3, %v16249_v38 }
 0x4e6   : > { %v1692_v59 = vpop.f32.mrf.mxu1 }
 0x4e7   : > { %2228 = vst.msk [vmem:[#allocation2] sm:$0xff] %vm918_vm4, %v1692_v59 }
 0x4e8   : > { %v14991_v60 = vpop.f32.mrf.mxu1 }
 0x4ea   : > { %v1768_v61 = vpop.f32.mrf.mxu0 }
 0x4eb   : > { %2229 = vst.msk [vmem:[#allocation2 + $0x8] sm:$0xff] %vm918_vm4, %v1768_v61  ;;  %v1844_v62 = vpop.f32.mrf.mxu1 }
 0x4ec   : > { %2230 = vst.msk [vmem:[#allocation2 + $0x10] sm:$0xff] %vm918_vm4, %v1844_v62  ;;  %v14996_v63 = vpop.f32.mrf.mxu0 }
 0x4ed   : > { %v15001_v0 = vpop.f32.mrf.mxu1 }
 0x4ef   : > { %v1996_v2 = vpop.f32.mrf.mxu1 }
 0x4f0   : > { %v1920_v1 = vpop.f32.mrf.mxu0  ;;  %2232 = vst.msk [vmem:[#allocation2 + $0x20] sm:$0xff] %vm918_vm4, %v1996_v2 }
 0x4f1   : > { %2231 = vst.msk [vmem:[#allocation2 + $0x18] sm:$0xff] %vm918_vm4, %v1920_v1  ;;  %v15011_v6 = vpop.f32.mrf.mxu1 }
 0x4f2   : > { %v15006_v7 = vpop.f32.mrf.mxu0 }
 0x4f3   : > { %v2148_v8 = vpop.f32.mrf.mxu1 }
 0x4f4   : > { %v2072_v4 = vpop.f32.mrf.mxu0  ;;  %2234 = vst.msk [vmem:[#allocation2 + $0x30] sm:$0xff] %vm918_vm4, %v2148_v8 }
 0x4f5   : > { %2233 = vst.msk [vmem:[#allocation2 + $0x28] sm:$0xff] %vm918_vm4, %v2072_v4  ;;  %v15021_v5 = vpop.f32.mrf.mxu1 }
 0x4f6   : > { %v15016_v12 = vpop.f32.mrf.mxu0 }
 0x4f7   : > { %v2310_v10 = vpop.f32.mrf.mxu1 }
 0x4f8   : > { %v2224_v11 = vpop.f32.mrf.mxu0  ;;  %v2860_v16 = vsel %vm918_vm4, %v2310_v10, -inf }
 0x4f9   : > { %2235 = vst.msk [vmem:[#allocation2 + $0x38] sm:$0xff] %vm918_vm4, %v2224_v11  ;;  %2861 = vmax.xlane.f32.xlu0 %v2860_v16  ;;  %v15031_v18 = vpop.f32.mrf.mxu1 }
 0x4fa   : > { %v15026_v28 = vpop.f32.mrf.mxu0 }
 0x4fb   : > { %v2466_v30 = vpop.f32.mrf.mxu1 }
 0x4fc   : > { %v2388_v40 = vpop.f32.mrf.mxu0  ;;  %v2866_v9 = vsel %vm918_vm4, %v2466_v30, -inf }
 0x4fd   : > { %2867 = vmax.xlane.f32.xlu0 %v2866_v9  ;;  %v15041_v41 = vpop.f32.mrf.mxu1  ;;  %v2863_v13 = vsel %vm918_vm4, %v2388_v40, -inf }
 0x4fe   : > { %2864 = vmax.xlane.f32.xlu1 %v2863_v13  ;;  %v15036_v14 = vpop.f32.mrf.mxu0 }
 0x4ff   : > { %v2622_v44 = vpop.f32.mrf.mxu1 }
 0x500   : > { %v2544_v47 = vpop.f32.mrf.mxu0  ;;  %v2872_v48 = vsel %vm918_vm4, %v2622_v44, -inf }
 0x501   : > { %v2869_v52 = vsel %vm918_vm4, %v2544_v47, -inf  ;;  %v15051_v3 = vpop.f32.mrf.mxu1 }
 0x502   : > { %2870 = vmax.xlane.f32.xlu0 %v2869_v52  ;;  %v15046_v22 = vpop.f32.mrf.mxu0  ;;  %2873 = vmax.xlane.f32.xlu1 %v2872_v48 }
 0x503   : > { %v2778_v24 = vpop.f32.mrf.mxu1 }
 0x504   : > { %v2700_v34 = vpop.f32.mrf.mxu0  ;;  %v2878_v51 = vsel %vm918_vm4, %v2778_v24, -inf }
 0x505   : > { %v2875_v39 = vsel %vm918_vm4, %v2700_v34, -inf  ;;  %v15061_v43 = vpop.f32.mrf.mxu1 }
 0x506   : > { %2876 = vmax.xlane.f32.xlu0 %v2875_v39  ;;  %v15056_v56 = vpop.f32.mrf.mxu0  ;;  %2879 = vmax.xlane.f32.xlu1 %v2878_v51 }
 0x508   : > { %v2856_v57 = vpop.f32.mrf.mxu0 }
 0x509   : > { %v2881_v58 = vsel %vm918_vm4, %v2856_v57, -inf }
 0x50a   : > { %2882 = vmax.xlane.f32.xlu0 %v2881_v58  ;;  %v15066_v59 = vpop.f32.mrf.mxu0 }
 0x517   : > { %3100 = vrot.lane.b32.xlu1 %v16482_v46, %s19018_s26 }
 0x51b   : > { %3176 = vrot.lane.b32.xlu1 %v16488_v49, %s19018_s26 }
 0x51f   : > { %3328 = vrot.lane.b32.xlu1 %v16496_v53, %s19018_s26 }
 0x520   : > { %3024 = vrot.lane.b32.xlu0 %v16480_v45, %s19018_s26 }
 0x523   : > { %3480 = vrot.lane.b32.xlu1 %v16504_v55, %s19018_s26 }
 0x524   : > { %3252 = vrot.lane.b32.xlu0 %v16490_v50, %s19018_s26 }
 0x527   : > { %3677 = vrot.lane.b32.xlu1 %v16480_v45, %s19016_s27 }
 0x528   : > { %3404 = vrot.lane.b32.xlu0 %v16498_v54, %s19018_s26  ;;  %s19037_s26 = smov 72  }
 0x52b   : > { %3675 = vrot.lane.b32.xlu1 %v16480_v45, %s19014_s28 }
 0x52c   : > { %3599 = vrot.lane.b32.xlu0 %v16476_v42, %s19016_s27 }
 0x52f   : > { %3833 = vrot.lane.b32.xlu1 %v16488_v49, %s19016_s27 }
 0x530   : > { %3597 = vrot.lane.b32.xlu0 %v16476_v42, %s19014_s28 }
 0x533   : > { %3831 = vrot.lane.b32.xlu1 %v16488_v49, %s19014_s28 }
 0x534   : > { %3755 = vrot.lane.b32.xlu0 %v16482_v46, %s19016_s27 }
 0x538   : > { %3753 = vrot.lane.b32.xlu0 %v16482_v46, %s19014_s28 }
 0x582   : > { %v2862_v60 = vpop.xlane.xlu0 %2861 }
 0x583   : > { %v2884_v61 = vsub.f32 %v2310_v10, %v2862_v60 }
 0x585   : > { %v2892_v62 = vmul.f32 1.442695, %v2884_v61 }
 0x586   : > { %v2868_v63 = vpop.xlane.xlu0 %2867 }
 0x587   : > { %15900 = vpow2.f32 %v2892_v62  ;;  %v2865_v0 = vpop.xlane.xlu1 %2864  ;;  %v2886_v2 = vsub.f32 %v2466_v30, %v2868_v63 }
 0x588   : > { %v2885_v1 = vsub.f32 %v2388_v40, %v2865_v0 }
 0x589   : > { %v2896_v6 = vmul.f32 1.442695, %v2886_v2 }
 0x58a   : > { %v2894_v7 = vmul.f32 1.442695, %v2885_v1 }
 0x58b   : > { %15902 = vpow2.f32 %v2896_v6  ;;  %v2874_v8 = vpop.xlane.xlu1 %2873  ;;  %v2871_v4 = vpop.xlane.xlu0 %2870 }
 0x58c   : > { %15904 = vpow2.f32 %v2894_v7  ;;  %v2888_v5 = vsub.f32 %v2622_v44, %v2874_v8  ;;  %v2887_v12 = vsub.f32 %v2544_v47, %v2871_v4 }
 0x58e   : > { %v2900_v11 = vmul.f32 1.442695, %v2888_v5  ;;  %v2898_v16 = vmul.f32 1.442695, %v2887_v12 }
 0x58f   : > { %v2880_v18 = vpop.xlane.xlu1 %2879  ;;  %v2877_v28 = vpop.xlane.xlu0 %2876 }
 0x590   : > { %15906 = vpow2.f32 %v2900_v11  ;;  %v2890_v10 = vsub.f32 %v2778_v24, %v2880_v18  ;;  %v2889_v9 = vsub.f32 %v2700_v34, %v2877_v28 }
 0x591   : > { %15908 = vpow2.f32 %v2898_v16 }
 0x592   : > { %v2904_v41 = vmul.f32 1.442695, %v2890_v10  ;;  %v2902_v13 = vmul.f32 1.442695, %v2889_v9 }
 0x593   : > { %v2883_v30 = vpop.xlane.xlu0 %2882  ;;  %v3101_v62 = vpop.permute.xlu1 %3100 }
 0x594   : > { %v16800_v40 = vpop.eup %15900  ;;  %15910 = vpow2.f32 %v2904_v41  ;;  %v2891_v14 = vsub.f32 %v2856_v57, %v2883_v30 }
 0x595   : > { %15912 = vpow2.f32 %v2902_v13  ;;  %v2908_v44 = vsel %vm918_vm4, %v16800_v40, 0.0 }
 0x596   : > { %v2906_v47 = vmul.f32 1.442695, %v2891_v14  ;;  %2909 = vadd.xlane.f32.xlu1 %v2908_v44 }
 0x597   : > { %v3025_v48 = vpop.permute.xlu0 %3024  ;;  %v3177_v63 = vpop.permute.xlu1 %3176 }
 0x598   : > { %v16804_v52 = vpop.eup %15902  ;;  %15914 = vpow2.f32 %v2906_v47  ;;  %15073 = vmatpush3.msra.mxu0 %v3025_v48 }
 0x599   : > { %v16806_v3 = vpop.eup %15904  ;;  %v2914_v22 = vsel %vm918_vm4, %v16804_v52, 0.0  ;;  %15082 = vmatprep.subr.mxu0 %v16249_v38 }
 0x59a   : > { %v2911_v24 = vsel %vm918_vm4, %v16806_v3, 0.0  ;;  %2915 = vadd.xlane.f32.xlu1 %v2914_v22 }
 0x59b   : > { %2912 = vadd.xlane.f32.xlu0 %v2911_v24  ;;  %v3329_v0 = vpop.permute.xlu1 %3328  ;;  %v3253_v2 = vpop.permute.xlu0 %3252 }
 0x59d   : > { %v16813_v34 = vpop.eup %15906 }
 0x59e   : > { %v16815_v51 = vpop.eup %15908  ;;  %v2920_v39 = vsel %vm918_vm4, %v16813_v34, 0.0 }
 0x59f   : > { %2921 = vadd.xlane.f32.xlu1 %v2920_v39  ;;  %v2917_v43 = vsel %vm918_vm4, %v16815_v51, 0.0  ;;  %v16851_v1 = vpop.permute.xlu1 %3480  ;;  %v3405_v6 = vpop.permute.xlu0 %3404 }
 0x5a0   : > { %2918 = vadd.xlane.f32.xlu0 %v2917_v43 }
 0x5a1   : > { %v16821_v56 = vpop.eup %15910 }
 0x5a2   : > { %v16823_v57 = vpop.eup %15912  ;;  %v2926_v58 = vsel %vm918_vm4, %v16821_v56, 0.0 }
 0x5a3   : > { %2927 = vadd.xlane.f32.xlu1 %v2926_v58  ;;  %v2923_v59 = vsel %vm918_vm4, %v16823_v57, 0.0  ;;  %v16853_v7 = vpop.permute.xlu1 %3677  ;;  %v3600_v8 = vpop.permute.xlu0 %3599 }
 0x5a4   : > { %2924 = vadd.xlane.f32.xlu0 %v2923_v59 }
 0x5a5   : > { %v16829_v60 = vpop.eup %15914 }
 0x5a6   : > { %v2929_v61 = vsel %vm918_vm4, %v16829_v60, 0.0 }
 0x5a7   : > { %v16855_v4 = vpop.permute.xlu1 %3675  ;;  %v16857_v5 = vpop.permute.xlu0 %3597 }
 0x5a8   : > { %2930 = vadd.xlane.f32.xlu0 %v2929_v61 }
 0x5ab   : > { %v16859_v12 = vpop.permute.xlu1 %3833  ;;  %v16861_v11 = vpop.permute.xlu0 %3755 }
 0x5af   : > { %v16863_v16 = vpop.permute.xlu1 %3831  ;;  %v16865_v28 = vpop.permute.xlu0 %3753 }
 0x5b4   : > { %3989 = vrot.lane.b32.xlu1 %v16496_v53, %s19016_s27 }
 0x5b8   : > { %3987 = vrot.lane.b32.xlu1 %v16496_v53, %s19014_s28 }
 0x5bc   : > { %4145 = vrot.lane.b32.xlu1 %v16504_v55, %s19016_s27 }
 0x5be   : > { %3911 = vrot.lane.b32.xlu0 %v16490_v50, %s19016_s27 }
 0x5c0   : > { %4143 = vrot.lane.b32.xlu1 %v16504_v55, %s19014_s28 }
 0x5c2   : > { %3909 = vrot.lane.b32.xlu0 %v16490_v50, %s19014_s28 }
 0x5c4   : > { %4309 = vrot.lane.b32.xlu1 %v16476_v42, %s19012_s29 }
 0x5c6   : > { %4067 = vrot.lane.b32.xlu0 %v16498_v54, %s19016_s27  ;;  %s19038_s27 = smov 104  }
 0x5ca   : > { %4065 = vrot.lane.b32.xlu0 %v16498_v54, %s19014_s28  ;;  %s19040_s28 = smov 8  }
 0x61f   : > { %v2910_v18 = vpop.xlane.xlu1 %2909 }
 0x620   : > { %15916 = vrcp.f32 %v2910_v18 }
 0x623   : > { %v2916_v10 = vpop.xlane.xlu1 %2915 }
 0x624   : > { %15918 = vrcp.f32 %v2916_v10  ;;  %v2913_v9 = vpop.xlane.xlu0 %2912 }
 0x625   : > { %15920 = vrcp.f32 %v2913_v9 }
 0x628   : > { %v2922_v41 = vpop.xlane.xlu1 %2921 }
 0x629   : > { %15922 = vrcp.f32 %v2922_v41  ;;  %v2919_v13 = vpop.xlane.xlu0 %2918 }
 0x62a   : > { %15924 = vrcp.f32 %v2919_v13 }
 0x62c   : > { %v2928_v30 = vpop.xlane.xlu1 %2927 }
 0x62d   : > { %v15917_v14 = vpop.eup %15916  ;;  %15926 = vrcp.f32 %v2928_v30  ;;  %v2925_v44 = vpop.xlane.xlu0 %2924 }
 0x62e   : > { %15928 = vrcp.f32 %v2925_v44  ;;  %v2933_v47 = vmul.f32 %v15917_v14, %v16800_v40 }
 0x630   : > { %15070 = vmatmul.mubr.msk.f32.vlgmr.msra.gmra.mxu1 %vm918_vm4, %v2933_v47  ;;  %v3990_v58 = vpop.permute.xlu1 %3989 }
 0x631   : > { %v15919_v48 = vpop.eup %15918  ;;  %v2931_v22 = vpop.xlane.xlu0 %2930  ;;  %15078 = vmatpush3.msra.mxu1 %v3101_v62  ;;  %15079 = vmatprep.mubr.msk.f32.mxu1 %vm16250_vm3, %v16249_v38 }
 0x632   : > { %v15921_v24 = vpop.eup %15920  ;;  %15930 = vrcp.f32 %v2931_v22  ;;  %15087 = vmatprep.subr.mxu1 %v16249_v38  ;;  %v2937_v39 = vmul.f32 %v15919_v48, %v16804_v52 }
 0x633   : > { %v2935_v43 = vmul.f32 %v15921_v24, %v16806_v3 }
 0x634   : > { %15080 = vmatmul.mubr.msk.f32.vlgmr.msra.gmra.mxu1 %vm918_vm4, %v2937_v39 }
 0x635   : > { %15075 = vmatmul.mubr.msk.f32.vlgmr.msra.gmra.mxu0 %vm918_vm4, %v2935_v43  ;;  %15088 = vmatpush3.msra.mxu1 %v3253_v2  ;;  %v3912_v62 = vpop.permute.xlu0 %3911  ;;  %v3988_v2 = vpop.permute.xlu1 %3987 }
 0x636   : > { %v15923_v40 = vpop.eup %15922  ;;  %15083 = vmatpush3.msra.mxu0 %v3177_v63  ;;  %15089 = vmatprep.mubr.msk.f32.mxu1 %vm16250_vm3, %v16249_v38 }
 0x637   : > { %v15925_v59 = vpop.eup %15924  ;;  %15084 = vmatprep.mubr.msk.f32.mxu0 %vm16250_vm3, %v16249_v38  ;;  %15092 = vmatprep.subr.mxu0 %v16249_v38  ;;  %v2941_v52 = vmul.f32 %v15923_v40, %v16813_v34 }
 0x638   : > { %15097 = vmatprep.subr.mxu1 %v16249_v38  ;;  %v2939_v3 = vmul.f32 %v15925_v59, %v16815_v51 }
 0x639   : > { %15090 = vmatmul.mubr.msk.f32.vlgmr.msra.gmra.mxu1 %vm918_vm4, %v2941_v52 }
 0x63a   : > { %v15927_v61 = vpop.eup %15926  ;;  %15085 = vmatmul.mubr.msk.f32.vlgmr.msra.gmra.mxu0 %vm918_vm4, %v2939_v3  ;;  %15098 = vmatpush3.msra.mxu1 %v3405_v6 }
 0x63b   : > { %v15929_v63 = vpop.eup %15928  ;;  %15093 = vmatpush3.msra.mxu0 %v3329_v0  ;;  %15094 = vmatprep.mubr.msk.f32.mxu0 %vm16250_vm3, %v16249_v38  ;;  %v2945_v18 = vmul.f32 %v15927_v61, %v16821_v56  ;;  %v3910_v56 = vpop.permute.xlu0 %3909 }
 0x63c   : > { %15099 = vmatprep.mubr.msk.f32.mxu1 %vm16250_vm3, %v16249_v38  ;;  %15102 = vmatprep.subr.mxu0 %v16249_v38  ;;  %v2943_v34 = vmul.f32 %v15929_v63, %v16823_v57  ;;  %v4146_v0 = vpop.permute.xlu1 %4145 }
 0x63d   : > { %15107 = vmatprep.subr.mxu1 %v16249_v38  ;;  %15100 = vmatmul.mubr.msk.f32.vlgmr.msra.gmra.mxu1 %vm918_vm4, %v2945_v18 }
 0x63e   : > { %15095 = vmatmul.mubr.msk.f32.vlgmr.msra.gmra.mxu0 %vm918_vm4, %v2943_v34  ;;  %15108 = vmatpush3.xpose.msk.msra.mxu1 %vm918_vm4, %v3600_v8 }
 0x63f   : > { %v15931_v51 = vpop.eup %15930  ;;  %15103 = vmatpush3.msra.mxu0 %v16851_v1  ;;  %15104 = vmatprep.mubr.msk.f32.mxu0 %vm16250_vm3, %v16249_v38 }
 0x640   : > { %15109 = vmatprep.mubr.msk.f32.mxu1 %vm16250_vm3, %v16249_v38  ;;  %15112 = vmatprep.subr.mxu0 %v16249_v38  ;;  %v2947_v57 = vmul.f32 %v15931_v51, %v16829_v60  ;;  %v4068_v60 = vpop.permute.xlu0 %4067  ;;  %v4144_v1 = vpop.permute.xlu1 %4143 }
 0x641   : > { %15117 = vmatprep.subr.mxu1 %v16249_v38  ;;  %15110 = vmatmul.mubr.msk.f32.vlgmr.msra.gmra.mxu1 %vm918_vm4, %v16857_v5 }
 0x642   : > { %15105 = vmatmul.mubr.msk.f32.vlgmr.msra.gmra.mxu0 %vm918_vm4, %v2947_v57  ;;  %15118 = vmatpush3.xpose.msk.msra.mxu1 %vm918_vm4, %v16861_v11 }
 0x643   : > { %15113 = vmatpush3.xpose.msk.msra.mxu0 %vm918_vm4, %v16853_v7  ;;  %15114 = vmatprep.mubr.msk.f32.mxu0 %vm16250_vm3, %v16249_v38 }
 0x644   : > { %15119 = vmatprep.mubr.msk.f32.mxu1 %vm16250_vm3, %v16249_v38  ;;  %15122 = vmatprep.subr.mxu0 %v16249_v38  ;;  %v4066_v6 = vpop.permute.xlu0 %4065  ;;  %v4310_v7 = vpop.permute.xlu1 %4309 }
 0x645   : > { %15127 = vmatprep.subr.mxu1 %v16249_v38  ;;  %15120 = vmatmul.mubr.msk.f32.vlgmr.msra.gmra.mxu1 %vm918_vm4, %v16865_v28 }
 0x646   : > { %15115 = vmatmul.mubr.msk.f32.vlgmr.msra.gmra.mxu0 %vm918_vm4, %v16855_v4  ;;  %15128 = vmatpush3.xpose.msk.msra.mxu1 %vm918_vm4, %v3912_v62 }
 0x647   : > { %15123 = vmatpush3.xpose.msk.msra.mxu0 %vm918_vm4, %v16859_v12  ;;  %15124 = vmatprep.mubr.msk.f32.mxu0 %vm16250_vm3, %v16249_v38 }
 0x648   : > { %15129 = vmatprep.mubr.msk.f32.mxu1 %vm16250_vm3, %v16249_v38  ;;  %15132 = vmatprep.subr.mxu0 %v16249_v38 }
 0x649   : > { %15137 = vmatprep.subr.mxu1 %v16249_v38  ;;  %15130 = vmatmul.mubr.msk.f32.vlgmr.msra.gmra.mxu1 %vm918_vm4, %v3910_v56 }
 0x64a   : > { %15125 = vmatmul.mubr.msk.f32.vlgmr.msra.gmra.mxu0 %vm918_vm4, %v16863_v16  ;;  %15138 = vmatpush3.xpose.msk.msra.mxu1 %vm918_vm4, %v4068_v60 }
 0x64b   : > { %15133 = vmatpush3.xpose.msk.msra.mxu0 %vm918_vm4, %v3990_v58  ;;  %15134 = vmatprep.mubr.msk.f32.mxu0 %vm16250_vm3, %v16249_v38 }
 0x64c   : > { %15139 = vmatprep.mubr.msk.f32.mxu1 %vm16250_vm3, %v16249_v38  ;;  %15142 = vmatprep.subr.mxu0 %v16249_v38 }
 0x64d   : > { %15147 = vmatprep.subr.mxu1 %v16249_v38  ;;  %15140 = vmatmul.mubr.msk.f32.vlgmr.msra.gmra.mxu1 %vm918_vm4, %v4066_v6 }
 0x64e   : > { %15135 = vmatmul.mubr.msk.f32.vlgmr.msra.gmra.mxu0 %vm918_vm4, %v3988_v2  ;;  %15148 = vmatpush3.msra.mxu1 %v4310_v7 }
 0x64f   : > { %15143 = vmatpush3.xpose.msk.msra.mxu0 %vm918_vm4, %v4146_v0  ;;  %15144 = vmatprep.mubr.msk.f32.mxu0 %vm16250_vm3, %v16249_v38 }
 0x650   : > { %15152 = vmatprep.subr.mxu0 %v16249_v38  ;;  %15149 = vmatprep.mubr.msk.f32.mxu1 %vm16250_vm3, %v16249_v38 }
 0x651   : > { %15157 = vmatprep.subr.mxu1 %v16249_v38 }
 0x652   : > { %15145 = vmatmul.mubr.msk.f32.vlgmr.msra.gmra.mxu0 %vm918_vm4, %v4144_v1 }
 0x653   : > { %15154 = vmatprep.mubr.msk.f32.mxu0 %vm16250_vm3, %v16249_v38 }
 0x6f0   : > { %v16954_v8 = vpop.f32.mrf.mxu1 }
 0x6f2   : > { %v15071_v4 = vpop.f32.mrf.mxu1 }
 0x6f4   : > { %v16956_v5 = vpop.f32.mrf.mxu1 }
 0x6f5   : > { %v16958_v12 = vpop.f32.mrf.mxu0 }
 0x6f6   : > { %v15081_v11 = vpop.f32.mrf.mxu1 }
 0x6f7   : > { %v15076_v16 = vpop.f32.mrf.mxu0 }
 0x6f9   : > { %v16960_v28 = vpop.f32.mrf.mxu1 }
 0x6fa   : > { %v16962_v10 = vpop.f32.mrf.mxu0 }
 0x6fb   : > { %v15091_v9 = vpop.f32.mrf.mxu1 }
 0x6fc   : > { %v15086_v41 = vpop.f32.mrf.mxu0 }
 0x6fd   : > { %v16964_v13 = vpop.f32.mrf.mxu1 }
 0x6fe   : > { %v16966_v30 = vpop.f32.mrf.mxu0 }
 0x6ff   : > { %v15101_v14 = vpop.f32.mrf.mxu1 }
 0x700   : > { %v15096_v44 = vpop.f32.mrf.mxu0 }
 0x701   : > { %v3671_v47 = vpop.f32.mrf.mxu1 }
 0x702   : > { %v16968_v48 = vpop.f32.mrf.mxu0  ;;  %v4221_v22 = vsel %vm918_vm4, %v3671_v47, -inf }
 0x703   : > { %4222 = vmax.xlane.f32.xlu0 %v4221_v22  ;;  %v15111_v24 = vpop.f32.mrf.mxu1 }
 0x704   : > { %v15106_v39 = vpop.f32.mrf.mxu0 }
 0x705   : > { %v3827_v43 = vpop.f32.mrf.mxu1 }
 0x706   : > { %v3749_v58 = vpop.f32.mrf.mxu0  ;;  %v4227_v40 = vsel %vm918_vm4, %v3827_v43, -inf }
 0x707   : > { %4228 = vmax.xlane.f32.xlu0 %v4227_v40  ;;  %v15121_v59 = vpop.f32.mrf.mxu1  ;;  %v4224_v52 = vsel %vm918_vm4, %v3749_v58, -inf }
 0x708   : > { %4225 = vmax.xlane.f32.xlu1 %v4224_v52  ;;  %v15116_v3 = vpop.f32.mrf.mxu0 }
 0x709   : > { %v3983_v61 = vpop.f32.mrf.mxu1 }
 0x70a   : > { %v3905_v62 = vpop.f32.mrf.mxu0  ;;  %v4233_v63 = vsel %vm918_vm4, %v3983_v61, -inf }
 0x70b   : > { %v4230_v2 = vsel %vm918_vm4, %v3905_v62, -inf  ;;  %v15131_v18 = vpop.f32.mrf.mxu1 }
 0x70c   : > { %4231 = vmax.xlane.f32.xlu0 %v4230_v2  ;;  %v15126_v34 = vpop.f32.mrf.mxu0  ;;  %4234 = vmax.xlane.f32.xlu1 %v4233_v63 }
 0x70d   : > { %v4139_v51 = vpop.f32.mrf.mxu1 }
 0x70e   : > { %v4061_v56 = vpop.f32.mrf.mxu0  ;;  %v4239_v57 = vsel %vm918_vm4, %v4139_v51, -inf }
 0x70f   : > { %v4236_v0 = vsel %vm918_vm4, %v4061_v56, -inf  ;;  %v15141_v60 = vpop.f32.mrf.mxu1 }
 0x710   : > { %4237 = vmax.xlane.f32.xlu0 %v4236_v0  ;;  %v15136_v1 = vpop.f32.mrf.mxu0  ;;  %4240 = vmax.xlane.f32.xlu1 %v4239_v57 }
 0x712   : > { %v4217_v6 = vpop.f32.mrf.mxu0 }
 0x713   : > { %v4242_v7 = vsel %vm918_vm4, %v4217_v6, -inf }
 0x714   : > { %4243 = vmax.xlane.f32.xlu0 %v4242_v7  ;;  %v15146_v4 = vpop.f32.mrf.mxu0 }
 0x721   : > { %4461 = vrot.lane.b32.xlu1 %v16482_v46, %s19012_s29 }
 0x725   : > { %4537 = vrot.lane.b32.xlu1 %v16488_v49, %s19012_s29 }
 0x729   : > { %4689 = vrot.lane.b32.xlu1 %v16496_v53, %s19012_s29 }
 0x72a   : > { %4385 = vrot.lane.b32.xlu0 %v16480_v45, %s19012_s29 }
 0x72d   : > { %4841 = vrot.lane.b32.xlu1 %v16504_v55, %s19012_s29 }
 0x72e   : > { %4613 = vrot.lane.b32.xlu0 %v16490_v50, %s19012_s29 }
 0x731   : > { %5038 = vrot.lane.b32.xlu1 %v16480_v45, %s19010_s20 }
 0x732   : > { %4765 = vrot.lane.b32.xlu0 %v16498_v54, %s19012_s29  ;;  %s19041_s29 = smov 16  }
 0x735   : > { %5036 = vrot.lane.b32.xlu1 %v16480_v45, %s19002_s21 }
 0x736   : > { %4960 = vrot.lane.b32.xlu0 %v16476_v42, %s19010_s20 }
 0x739   : > { %5194 = vrot.lane.b32.xlu1 %v16488_v49, %s19010_s20 }
 0x73a   : > { %4958 = vrot.lane.b32.xlu0 %v16476_v42, %s19002_s21 }
 0x73d   : > { %5192 = vrot.lane.b32.xlu1 %v16488_v49, %s19002_s21 }
 0x73e   : > { %5116 = vrot.lane.b32.xlu0 %v16482_v46, %s19010_s20 }
 0x742   : > { %5114 = vrot.lane.b32.xlu0 %v16482_v46, %s19002_s21 }
 0x78c   : > { %v4223_v11 = vpop.xlane.xlu0 %4222 }
 0x78d   : > { %v4245_v16 = vsub.f32 %v3671_v47, %v4223_v11 }
 0x78f   : > { %v4253_v9 = vmul.f32 1.442695, %v4245_v16 }
 0x790   : > { %v4229_v41 = vpop.xlane.xlu0 %4228 }
 0x791   : > { %15932 = vpow2.f32 %v4253_v9  ;;  %v4226_v14 = vpop.xlane.xlu1 %4225  ;;  %v4247_v44 = vsub.f32 %v3827_v43, %v4229_v41 }
 0x792   : > { %v4246_v22 = vsub.f32 %v3749_v58, %v4226_v14 }
 0x793   : > { %v4257_v24 = vmul.f32 1.442695, %v4247_v44 }
 0x794   : > { %v4255_v39 = vmul.f32 1.442695, %v4246_v22 }
 0x795   : > { %15934 = vpow2.f32 %v4257_v24  ;;  %v4235_v40 = vpop.xlane.xlu1 %4234  ;;  %v4232_v59 = vpop.xlane.xlu0 %4231 }
 0x796   : > { %15936 = vpow2.f32 %v4255_v39  ;;  %v4249_v52 = vsub.f32 %v3983_v61, %v4235_v40  ;;  %v4248_v3 = vsub.f32 %v3905_v62, %v4232_v59 }
 0x798   : > { %v4261_v63 = vmul.f32 1.442695, %v4249_v52  ;;  %v4259_v2 = vmul.f32 1.442695, %v4248_v3 }
 0x799   : > { %v4241_v18 = vpop.xlane.xlu1 %4240  ;;  %v4238_v34 = vpop.xlane.xlu0 %4237 }
 0x79a   : > { %15938 = vpow2.f32 %v4261_v63  ;;  %v4251_v47 = vsub.f32 %v4139_v51, %v4241_v18  ;;  %v4250_v57 = vsub.f32 %v4061_v56, %v4238_v34 }
 0x79b   : > { %15940 = vpow2.f32 %v4259_v2 }
 0x79c   : > { %v4265_v0 = vmul.f32 1.442695, %v4251_v47  ;;  %v4263_v60 = vmul.f32 1.442695, %v4250_v57 }
 0x79d   : > { %v4244_v43 = vpop.xlane.xlu0 %4243  ;;  %v4462_v59 = vpop.permute.xlu1 %4461 }
 0x79e   : > { %v17008_v58 = vpop.eup %15932  ;;  %15942 = vpow2.f32 %v4265_v0  ;;  %v4252_v1 = vsub.f32 %v4217_v6, %v4244_v43 }
 0x79f   : > { %15944 = vpow2.f32 %v4263_v60  ;;  %v4269_v61 = vsel %vm918_vm4, %v17008_v58, 0.0 }
 0x7a0   : > { %v4267_v62 = vmul.f32 1.442695, %v4252_v1  ;;  %4270 = vadd.xlane.f32.xlu1 %v4269_v61 }
 0x7a1   : > { %v4386_v7 = vpop.permute.xlu0 %4385  ;;  %v4538_v52 = vpop.permute.xlu1 %4537 }
 0x7a2   : > { %v17012_v4 = vpop.eup %15934  ;;  %15946 = vpow2.f32 %v4267_v62  ;;  %15153 = vmatpush3.msra.mxu0 %v4386_v7 }
 0x7a3   : > { %v17014_v51 = vpop.eup %15936  ;;  %v4275_v56 = vsel %vm918_vm4, %v17012_v4, 0.0  ;;  %15162 = vmatprep.subr.mxu0 %v16249_v38 }
 0x7a4   : > { %v4272_v6 = vsel %vm918_vm4, %v17014_v51, 0.0  ;;  %4276 = vadd.xlane.f32.xlu1 %v4275_v56 }
 0x7a5   : > { %4273 = vadd.xlane.f32.xlu0 %v4272_v6  ;;  %v4690_v3 = vpop.permute.xlu1 %4689  ;;  %v4614_v63 = vpop.permute.xlu0 %4613 }
 0x7a7   : > { %v17021_v11 = vpop.eup %15938 }
 0x7a8   : > { %v17023_v16 = vpop.eup %15940  ;;  %v4281_v9 = vsel %vm918_vm4, %v17021_v11, 0.0 }
 0x7a9   : > { %4282 = vadd.xlane.f32.xlu1 %v4281_v9  ;;  %v4278_v41 = vsel %vm918_vm4, %v17023_v16, 0.0  ;;  %v17057_v2 = vpop.permute.xlu1 %4841  ;;  %v4766_v18 = vpop.permute.xlu0 %4765 }
 0x7aa   : > { %4279 = vadd.xlane.f32.xlu0 %v4278_v41 }
 0x7ab   : > { %v17029_v14 = vpop.eup %15942 }
 0x7ac   : > { %v17031_v44 = vpop.eup %15944  ;;  %v4287_v22 = vsel %vm918_vm4, %v17029_v14, 0.0 }
 0x7ad   : > { %4288 = vadd.xlane.f32.xlu1 %v4287_v22  ;;  %v4284_v24 = vsel %vm918_vm4, %v17031_v44, 0.0  ;;  %v17059_v34 = vpop.permute.xlu1 %5038  ;;  %v4961_v47 = vpop.permute.xlu0 %4960 }
 0x7ae   : > { %4285 = vadd.xlane.f32.xlu0 %v4284_v24 }
 0x7af   : > { %v17037_v39 = vpop.eup %15946 }
 0x7b0   : > { %v4290_v40 = vsel %vm918_vm4, %v17037_v39, 0.0 }
 0x7b1   : > { %v17061_v57 = vpop.permute.xlu1 %5036  ;;  %v17063_v0 = vpop.permute.xlu0 %4958 }
 0x7b2   : > { %4291 = vadd.xlane.f32.xlu0 %v4290_v40 }
 0x7b5   : > { %v17065_v60 = vpop.permute.xlu1 %5194  ;;  %v17067_v43 = vpop.permute.xlu0 %5116 }
 0x7b9   : > { %v17069_v1 = vpop.permute.xlu1 %5192  ;;  %v17071_v62 = vpop.permute.xlu0 %5114 }
 0x7be   : > { %5350 = vrot.lane.b32.xlu1 %v16496_v53, %s19010_s20 }
 0x7c2   : > { %5348 = vrot.lane.b32.xlu1 %v16496_v53, %s19002_s21 }
 0x7c6   : > { %5506 = vrot.lane.b32.xlu1 %v16504_v55, %s19010_s20 }
 0x7c8   : > { %5272 = vrot.lane.b32.xlu0 %v16490_v50, %s19010_s20 }
 0x7ca   : > { %5504 = vrot.lane.b32.xlu1 %v16504_v55, %s19002_s21 }
 0x7cc   : > { %5270 = vrot.lane.b32.xlu0 %v16490_v50, %s19002_s21 }
 0x7d0   : > { %5428 = vrot.lane.b32.xlu0 %v16498_v54, %s19010_s20 }
 0x7d4   : > { %5426 = vrot.lane.b32.xlu0 %v16498_v54, %s19002_s21  ;;  %s19004_s21 = smov 16  }
 0x829   : > { %v4271_v61 = vpop.xlane.xlu1 %4270 }
 0x82a   : > { %15948 = vrcp.f32 %v4271_v61 }
 0x82d   : > { %v4277_v7 = vpop.xlane.xlu1 %4276 }
 0x82e   : > { %15950 = vrcp.f32 %v4277_v7  ;;  %v4274_v56 = vpop.xlane.xlu0 %4273 }
 0x82f   : > { %15952 = vrcp.f32 %v4274_v56 }
 0x832   : > { %v4283_v6 = vpop.xlane.xlu1 %4282 }
 0x833   : > { %15954 = vrcp.f32 %v4283_v6  ;;  %v4280_v9 = vpop.xlane.xlu0 %4279 }
 0x834   : > { %15956 = vrcp.f32 %v4280_v9 }
 0x836   : > { %v4289_v41 = vpop.xlane.xlu1 %4288 }
 0x837   : > { %v15949_v22 = vpop.eup %15948  ;;  %15958 = vrcp.f32 %v4289_v41  ;;  %v4286_v24 = vpop.xlane.xlu0 %4285 }
 0x838   : > { %15960 = vrcp.f32 %v4286_v24  ;;  %v4294_v40 = vmul.f32 %v15949_v22, %v17008_v58 }
 0x83a   : > { %15150 = vmatmul.mubr.msk.f32.vlgmr.msra.gmra.mxu1 %vm918_vm4, %v4294_v40 }
 0x83b   : > { %v15951_v37 = vpop.eup %15950  ;;  %v4292_v36 = vpop.xlane.xlu0 %4291  ;;  %15158 = vmatpush3.msra.mxu1 %v4462_v59  ;;  %15159 = vmatprep.mubr.msk.f32.mxu1 %vm16250_vm3, %v16249_v38 }
 0x83c   : > { %v15953_v61 = vpop.eup %15952  ;;  %15962 = vrcp.f32 %v4292_v36  ;;  %15167 = vmatprep.subr.mxu1 %v16249_v38  ;;  %v4298_v7 = vmul.f32 %v15951_v37, %v17012_v4 }
 0x83d   : > { %v4296_v56 = vmul.f32 %v15953_v61, %v17014_v51 }
 0x83e   : > { %15160 = vmatmul.mubr.msk.f32.vlgmr.msra.gmra.mxu1 %vm918_vm4, %v4298_v7 }
 0x83f   : > { %15155 = vmatmul.mubr.msk.f32.vlgmr.msra.gmra.mxu0 %vm918_vm4, %v4296_v56  ;;  %15168 = vmatpush3.msra.mxu1 %v4614_v63  ;;  %v5273_v51 = vpop.permute.xlu0 %5272 }
 0x840   : > { %v15955_v58 = vpop.eup %15954  ;;  %15163 = vmatpush3.msra.mxu0 %v4538_v52  ;;  %15169 = vmatprep.mubr.msk.f32.mxu1 %vm16250_vm3, %v16249_v38 }
 0x841   : > { %v15957_v59 = vpop.eup %15956  ;;  %15164 = vmatprep.mubr.msk.f32.mxu0 %vm16250_vm3, %v16249_v38  ;;  %15172 = vmatprep.subr.mxu0 %v16249_v38  ;;  %v4302_v36 = vmul.f32 %v15955_v58, %v17021_v11 }
 0x842   : > { %15177 = vmatprep.subr.mxu1 %v16249_v38  ;;  %v4300_v37 = vmul.f32 %v15957_v59, %v17023_v16 }
 0x843   : > { %15170 = vmatmul.mubr.msk.f32.vlgmr.msra.gmra.mxu1 %vm918_vm4, %v4302_v36 }
 0x844   : > { %v15959_v4 = vpop.eup %15958  ;;  %15165 = vmatmul.mubr.msk.f32.vlgmr.msra.gmra.mxu0 %vm918_vm4, %v4300_v37  ;;  %15178 = vmatpush3.msra.mxu1 %v4766_v18 }
 0x845   : > { %v15961_v52 = vpop.eup %15960  ;;  %15173 = vmatpush3.msra.mxu0 %v4690_v3  ;;  %15174 = vmatprep.mubr.msk.f32.mxu0 %vm16250_vm3, %v16249_v38  ;;  %v4306_v63 = vmul.f32 %v15959_v4, %v17029_v14  ;;  %v5351_v3 = vpop.permute.xlu1 %5350 }
 0x846   : > { %15179 = vmatprep.mubr.msk.f32.mxu1 %vm16250_vm3, %v16249_v38  ;;  %15182 = vmatprep.subr.mxu0 %v16249_v38  ;;  %v4304_v11 = vmul.f32 %v15961_v52, %v17031_v44  ;;  %v5271_v14 = vpop.permute.xlu0 %5270 }
 0x847   : > { %15187 = vmatprep.subr.mxu1 %v16249_v38  ;;  %15180 = vmatmul.mubr.msk.f32.vlgmr.msra.gmra.mxu1 %vm918_vm4, %v4306_v63 }
 0x848   : > { %15175 = vmatmul.mubr.msk.f32.vlgmr.msra.gmra.mxu0 %vm918_vm4, %v4304_v11  ;;  %15188 = vmatpush3.xpose.msk.msra.mxu1 %vm918_vm4, %v4961_v47 }
 0x849   : > { %v15963_v16 = vpop.eup %15962  ;;  %15183 = vmatpush3.msra.mxu0 %v17057_v2  ;;  %15184 = vmatprep.mubr.msk.f32.mxu0 %vm16250_vm3, %v16249_v38 }
 0x84a   : > { %15189 = vmatprep.mubr.msk.f32.mxu1 %vm16250_vm3, %v16249_v38  ;;  %15192 = vmatprep.subr.mxu0 %v16249_v38  ;;  %v4308_v44 = vmul.f32 %v15963_v16, %v17037_v39  ;;  %v5349_v39 = vpop.permute.xlu1 %5348  ;;  %v5429_v2 = vpop.permute.xlu0 %5428 }
 0x84b   : > { %15197 = vmatprep.subr.mxu1 %v16249_v38  ;;  %15190 = vmatmul.mubr.msk.f32.vlgmr.msra.gmra.mxu1 %vm918_vm4, %v17063_v0 }
 0x84c   : > { %15185 = vmatmul.mubr.msk.f32.vlgmr.msra.gmra.mxu0 %vm918_vm4, %v4308_v44  ;;  %15198 = vmatpush3.xpose.msk.msra.mxu1 %vm918_vm4, %v17067_v43 }
 0x84d   : > { %15193 = vmatpush3.xpose.msk.msra.mxu0 %vm918_vm4, %v17059_v34  ;;  %15194 = vmatprep.mubr.msk.f32.mxu0 %vm16250_vm3, %v16249_v38 }
 0x84e   : > { %15199 = vmatprep.mubr.msk.f32.mxu1 %vm16250_vm3, %v16249_v38  ;;  %15202 = vmatprep.subr.mxu0 %v16249_v38  ;;  %v5507_v18 = vpop.permute.xlu1 %5506  ;;  %v5427_v34 = vpop.permute.xlu0 %5426 }
 0x84f   : > { %15207 = vmatprep.subr.mxu1 %v16249_v38  ;;  %15200 = vmatmul.mubr.msk.f32.vlgmr.msra.gmra.mxu1 %vm918_vm4, %v17071_v62 }
 0x850   : > { %15195 = vmatmul.mubr.msk.f32.vlgmr.msra.gmra.mxu0 %vm918_vm4, %v17061_v57  ;;  %15208 = vmatpush3.xpose.msk.msra.mxu1 %vm918_vm4, %v5273_v51 }
 0x851   : > { %15203 = vmatpush3.xpose.msk.msra.mxu0 %vm918_vm4, %v17065_v60  ;;  %15204 = vmatprep.mubr.msk.f32.mxu0 %vm16250_vm3, %v16249_v38 }
 0x852   : > { %15209 = vmatprep.mubr.msk.f32.mxu1 %vm16250_vm3, %v16249_v38  ;;  %15212 = vmatprep.subr.mxu0 %v16249_v38  ;;  %v5505_v47 = vpop.permute.xlu1 %5504 }
 0x853   : > { %15217 = vmatprep.subr.mxu1 %v16249_v38  ;;  %15210 = vmatmul.mubr.msk.f32.vlgmr.msra.gmra.mxu1 %vm918_vm4, %v5271_v14 }
 0x854   : > { %15205 = vmatmul.mubr.msk.f32.vlgmr.msra.gmra.mxu0 %vm918_vm4, %v17069_v1  ;;  %15218 = vmatpush3.xpose.msk.msra.mxu1 %vm918_vm4, %v5429_v2 }
 0x855   : > { %15213 = vmatpush3.xpose.msk.msra.mxu0 %vm918_vm4, %v5351_v3  ;;  %15214 = vmatprep.mubr.msk.f32.mxu0 %vm16250_vm3, %v16249_v38 }
 0x856   : > { %15219 = vmatprep.mubr.msk.f32.mxu1 %vm16250_vm3, %v16249_v38  ;;  %15222 = vmatprep.subr.mxu0 %v16249_v38 }
 0x857   : > { %15220 = vmatmul.mubr.msk.f32.vlgmr.msra.gmra.mxu1 %vm918_vm4, %v5427_v34  ;;  %15227 = vmatprep.subr.mxu1 %v16249_v38 }
 0x858   : > { %15215 = vmatmul.mubr.msk.f32.vlgmr.msra.gmra.mxu0 %vm918_vm4, %v5349_v39  ;;  %15229 = vmatprep.mubr.msk.f32.mxu1 %vm16250_vm3, %v16249_v38 }
 0x859   : > { %15223 = vmatpush3.xpose.msk.msra.mxu0 %vm918_vm4, %v5507_v18  ;;  %15224 = vmatprep.mubr.msk.f32.mxu0 %vm16250_vm3, %v16249_v38 }
 0x85a   : > { %15232 = vmatprep.subr.mxu0 %v16249_v38 }
 0x85c   : > { %15225 = vmatmul.mubr.msk.f32.vlgmr.msra.gmra.mxu0 %vm918_vm4, %v5505_v47 }
 0x85d   : > { %15234 = vmatprep.mubr.msk.f32.mxu0 %vm16250_vm3, %v16249_v38 }
 0x8fa   : > { %v17159_v57 = vpop.f32.mrf.mxu1 }
 0x8fc   : > { %v15151_v0 = vpop.f32.mrf.mxu1 }
 0x8fe   : > { %v17161_v60 = vpop.f32.mrf.mxu1 }
 0x8ff   : > { %v17163_v43 = vpop.f32.mrf.mxu0 }
 0x900   : > { %v15161_v1 = vpop.f32.mrf.mxu1 }
 0x901   : > { %v15156_v62 = vpop.f32.mrf.mxu0 }
 0x903   : > { %v17165_v6 = vpop.f32.mrf.mxu1 }
 0x904   : > { %v17167_v9 = vpop.f32.mrf.mxu0 }
 0x905   : > { %v15171_v41 = vpop.f32.mrf.mxu1 }
 0x906   : > { %v15166_v22 = vpop.f32.mrf.mxu0 }
 0x907   : > { %v17169_v24 = vpop.f32.mrf.mxu1 }
 0x908   : > { %v17171_v40 = vpop.f32.mrf.mxu0 }
 0x909   : > { %v15181_v61 = vpop.f32.mrf.mxu1 }
 0x90a   : > { %v15176_v7 = vpop.f32.mrf.mxu0 }
 0x90b   : > { %v5032_v56 = vpop.f32.mrf.mxu1 }
 0x90c   : > { %v17173_v58 = vpop.f32.mrf.mxu0  ;;  %v5582_v59 = vsel %vm918_vm4, %v5032_v56, -inf }
 0x90d   : > { %5583 = vmax.xlane.f32.xlu0 %v5582_v59  ;;  %v15191_v36 = vpop.f32.mrf.mxu1 }
 0x90e   : > { %v15186_v37 = vpop.f32.mrf.mxu0 }
 0x90f   : > { %v5188_v4 = vpop.f32.mrf.mxu1 }
 0x910   : > { %v5110_v51 = vpop.f32.mrf.mxu0  ;;  %v5588_v52 = vsel %vm918_vm4, %v5188_v4, -inf }
 0x911   : > { %5589 = vmax.xlane.f32.xlu0 %v5588_v52  ;;  %v15201_v63 = vpop.f32.mrf.mxu1  ;;  %v5585_v11 = vsel %vm918_vm4, %v5110_v51, -inf }
 0x912   : > { %5586 = vmax.xlane.f32.xlu1 %v5585_v11  ;;  %v15196_v16 = vpop.f32.mrf.mxu0 }
 0x913   : > { %v5344_v3 = vpop.f32.mrf.mxu1 }
 0x914   : > { %v5266_v14 = vpop.f32.mrf.mxu0  ;;  %v5594_v44 = vsel %vm918_vm4, %v5344_v3, -inf }
 0x915   : > { %v5591_v39 = vsel %vm918_vm4, %v5266_v14, -inf  ;;  %v15211_v2 = vpop.f32.mrf.mxu1 }
 0x916   : > { %5592 = vmax.xlane.f32.xlu0 %v5591_v39  ;;  %v15206_v18 = vpop.f32.mrf.mxu0  ;;  %5595 = vmax.xlane.f32.xlu1 %v5594_v44 }
 0x917   : > { %v5500_v34 = vpop.f32.mrf.mxu1 }
 0x918   : > { %v5422_v47 = vpop.f32.mrf.mxu0  ;;  %v5600_v0 = vsel %vm918_vm4, %v5500_v34, -inf }
 0x919   : > { %v5597_v1 = vsel %vm918_vm4, %v5422_v47, -inf  ;;  %v15221_v62 = vpop.f32.mrf.mxu1 }
 0x91a   : > { %5598 = vmax.xlane.f32.xlu0 %v5597_v1  ;;  %v15216_v41 = vpop.f32.mrf.mxu0  ;;  %5601 = vmax.xlane.f32.xlu1 %v5600_v0 }
 0x91c   : > { %v5578_v22 = vpop.f32.mrf.mxu0 }
 0x91d   : > { %v5603_v61 = vsel %vm918_vm4, %v5578_v22, -inf }
 0x91e   : > { %5604 = vmax.xlane.f32.xlu0 %v5603_v61  ;;  %v15226_v7 = vpop.f32.mrf.mxu0 }
 0x92b   : > { %5670 = vrot.lane.b32.xlu1 %v16476_v42, %s19008_s22 }
 0x92f   : > { %5822 = vrot.lane.b32.xlu1 %v16482_v46, %s19008_s22 }
 0x933   : > { %5898 = vrot.lane.b32.xlu1 %v16488_v49, %s19008_s22 }
 0x934   : > { %5746 = vrot.lane.b32.xlu0 %v16480_v45, %s19008_s22 }
 0x937   : > { %6050 = vrot.lane.b32.xlu1 %v16496_v53, %s19008_s22 }
 0x938   : > { %5974 = vrot.lane.b32.xlu0 %v16490_v50, %s19008_s22 }
 0x996   : > { %v5584_v59 = vpop.xlane.xlu0 %5583 }
 0x997   : > { %v5606_v36 = vsub.f32 %v5032_v56, %v5584_v59 }
 0x999   : > { %v5614_v37 = vmul.f32 1.442695, %v5606_v36 }
 0x99a   : > { %v5590_v52 = vpop.xlane.xlu0 %5589 }
 0x99b   : > { %15964 = vpow2.f32 %v5614_v37  ;;  %v5587_v42 = vpop.xlane.xlu1 %5586  ;;  %v5608_v63 = vsub.f32 %v5188_v4, %v5590_v52 }
 0x99c   : > { %v5607_v46 = vsub.f32 %v5110_v51, %v5587_v42 }
 0x99d   : > { %v5618_v11 = vmul.f32 1.442695, %v5608_v63 }
 0x99e   : > { %v5616_v16 = vmul.f32 1.442695, %v5607_v46 }
 0x99f   : > { %15966 = vpow2.f32 %v5618_v11  ;;  %v5596_v49 = vpop.xlane.xlu1 %5595  ;;  %v5593_v44 = vpop.xlane.xlu0 %5592 }
 0x9a0   : > { %15968 = vpow2.f32 %v5616_v16  ;;  %v5610_v45 = vsub.f32 %v5344_v3, %v5596_v49  ;;  %v5609_v39 = vsub.f32 %v5266_v14, %v5593_v44 }
 0x9a2   : > { %v5622_v53 = vmul.f32 1.442695, %v5610_v45  ;;  %v5620_v2 = vmul.f32 1.442695, %v5609_v39 }
 0x9a3   : > { %v5602_v18 = vpop.xlane.xlu1 %5601  ;;  %v5599_v50 = vpop.xlane.xlu0 %5598 }
 0x9a4   : > { %15970 = vpow2.f32 %v5622_v53  ;;  %v5612_v56 = vsub.f32 %v5500_v34, %v5602_v18  ;;  %v5611_v0 = vsub.f32 %v5422_v47, %v5599_v50 }
 0x9a5   : > { %15972 = vpow2.f32 %v5620_v2 }
 0x9a6   : > { %v5626_v1 = vmul.f32 1.442695, %v5612_v56  ;;  %v5624_v62 = vmul.f32 1.442695, %v5611_v0 }
 0x9a7   : > { %v5671_v4 = vpop.permute.xlu1 %5670  ;;  %v5605_v51 = vpop.xlane.xlu0 %5604 }
 0x9a8   : > { %v17195_v41 = vpop.eup %15964  ;;  %15974 = vpow2.f32 %v5626_v1  ;;  %v5613_v61 = vsub.f32 %v5578_v22, %v5605_v51  ;;  %15228 = vmatpush3.msra.mxu1 %v5671_v4 }
 0x9a9   : > { %15976 = vpow2.f32 %v5624_v62  ;;  %v5630_v3 = vsel %vm918_vm4, %v17195_v41, 0.0  ;;  %15237 = vmatprep.subr.mxu1 %v16249_v38 }
 0x9aa   : > { %v5628_v14 = vmul.f32 1.442695, %v5613_v61  ;;  %5631 = vadd.xlane.f32.xlu1 %v5630_v3 }
 0x9ab   : > { %v5747_v34 = vpop.permute.xlu0 %5746 }
 0x9ac   : > { %v17200_v47 = vpop.eup %15966  ;;  %15978 = vpow2.f32 %v5628_v14  ;;  %15233 = vmatpush3.msra.mxu0 %v5747_v34 }
 0x9ad   : > { %v17202_v7 = vpop.eup %15968  ;;  %v5636_v59 = vsel %vm918_vm4, %v17200_v47, 0.0  ;;  %15242 = vmatprep.subr.mxu0 %v16249_v38 }
 0x9ae   : > { %v5633_v22 = vsel %vm918_vm4, %v17202_v7, 0.0  ;;  %5637 = vadd.xlane.f32.xlu1 %v5636_v59 }
 0x9af   : > { %5634 = vadd.xlane.f32.xlu0 %v5633_v22 }
 0x9b1   : > { %v17209_v36 = vpop.eup %15970 }
 0x9b2   : > { %v17211_v37 = vpop.eup %15972  ;;  %v5642_v52 = vsel %vm918_vm4, %v17209_v36, 0.0 }
 0x9b3   : > { %5643 = vadd.xlane.f32.xlu1 %v5642_v52  ;;  %v5639_v42 = vsel %vm918_vm4, %v17211_v37, 0.0 }
 0x9b4   : > { %5640 = vadd.xlane.f32.xlu0 %v5639_v42 }
 0x9b5   : > { %v17217_v63 = vpop.eup %15974 }
 0x9b6   : > { %v17219_v46 = vpop.eup %15976  ;;  %v5648_v11 = vsel %vm918_vm4, %v17217_v63, 0.0 }
 0x9b7   : > { %5649 = vadd.xlane.f32.xlu1 %v5648_v11  ;;  %v5645_v16 = vsel %vm918_vm4, %v17219_v46, 0.0 }
 0x9b8   : > { %5646 = vadd.xlane.f32.xlu0 %v5645_v16  ;;  %v6330_v16 = vld [vmem:[%s18984_s5 + $0x18] sm:$0xff] }
 0x9b9   : > { %v17225_v49 = vpop.eup %15978 }
 0x9ba   : > { %v5651_v44 = vsel %vm918_vm4, %v17225_v49, 0.0 }
 0x9bc   : > { %5652 = vadd.xlane.f32.xlu0 %v5651_v44  ;;  %v6328_v44 = vld [vmem:[%s18984_s5 + $0x8] sm:$0xff] }
 0x9c8   : > { %6202 = vrot.lane.b32.xlu1 %v16504_v55, %s19008_s22 }
 0x9cc   : > { %3566 = vrot.lane.b32.xlu1 %v16958_v12, %s19006_s1  ;;  %v5975_v12 = vpop.permute.xlu0 %5974 }
 0x9d0   : > { %4927 = vrot.lane.b32.xlu1 %v17163_v43, %s19004_s21 }
 0x9d2   : > { %6126 = vrot.lane.b32.xlu0 %v16498_v54, %s19008_s22  ;;  %v5823_v54 = vpop.permute.xlu1 %5822  ;;  %s14183_s22 = sshll.u32 %s19044_s30, 3 }
 0x9d4   : > { %3570 = vrot.lane.b32.xlu1 %v16962_v10, %s19006_s1 }
 0x9d6   : > { %3564 = vrot.lane.b32.xlu0 %v16954_v8, %s19006_s1  ;;  %v5899_v55 = vpop.permute.xlu1 %5898 }
 0x9d8   : > { %4931 = vrot.lane.b32.xlu1 %v17167_v9, %s19004_s21 }
 0x9da   : > { %4925 = vrot.lane.b32.xlu0 %v17159_v57, %s19004_s21  ;;  %v6051_v8 = vpop.permute.xlu1 %6050 }
 0x9dc   : > { %3574 = vrot.lane.b32.xlu1 %v16966_v30, %s19006_s1 }
 0x9de   : > { %3568 = vrot.lane.b32.xlu0 %v16956_v5, %s19006_s1 }
 0x9e0   : > { %4935 = vrot.lane.b32.xlu1 %v17171_v40, %s19004_s21 }
 0x9e2   : > { %4929 = vrot.lane.b32.xlu0 %v17161_v60, %s19004_s21 }
 0x9e4   : > { %3578 = vrot.lane.b32.xlu1 %v16968_v48, %s19006_s1 }
 0x9e6   : > { %3572 = vrot.lane.b32.xlu0 %v16960_v28, %s19006_s1 }
 0x9e8   : > { %4939 = vrot.lane.b32.xlu1 %v17173_v58, %s19004_s21 }
 0x9ea   : > { %4933 = vrot.lane.b32.xlu0 %v17165_v6, %s19004_s21 }
 0x9ee   : > { %3576 = vrot.lane.b32.xlu0 %v16964_v13, %s19006_s1 }
 0x9f2   : > { %4937 = vrot.lane.b32.xlu0 %v17169_v24, %s19004_s21  ;;  %s19020_s21 = smov 24  }
 0xa33   : > { %v5632_v5 = vpop.xlane.xlu1 %5631 }
 0xa34   : > { %15980 = vrcp.f32 %v5632_v5 }
 0xa37   : > { %v5638_v10 = vpop.xlane.xlu1 %5637 }
 0xa38   : > { %15982 = vrcp.f32 %v5638_v10  ;;  %v5635_v28 = vpop.xlane.xlu0 %5634 }
 0xa39   : > { %15984 = vrcp.f32 %v5635_v28 }
 0xa3c   : > { %v5644_v30 = vpop.xlane.xlu1 %5643 }
 0xa3d   : > { %15986 = vrcp.f32 %v5644_v30  ;;  %v5641_v48 = vpop.xlane.xlu0 %5640 }
 0xa3e   : > { %15988 = vrcp.f32 %v5641_v48 }
 0xa40   : > { %v5650_v57 = vpop.xlane.xlu1 %5649 }
 0xa41   : > { %v15981_v60 = vpop.eup %15980  ;;  %15990 = vrcp.f32 %v5650_v57  ;;  %v5647_v13 = vpop.xlane.xlu0 %5646 }
 0xa42   : > { %15992 = vrcp.f32 %v5647_v13  ;;  %v5655_v43 = vmul.f32 %v15981_v60, %v17195_v41 }
 0xa44   : > { %v6203_v6 = vpop.permute.xlu1 %6202  ;;  %15230 = vmatmul.mubr.msk.f32.vlgmr.msra.gmra.mxu1 %vm918_vm4, %v5655_v43 }
 0xa45   : > { %v15983_v9 = vpop.eup %15982  ;;  %v5653_v24 = vpop.xlane.xlu0 %5652  ;;  %15238 = vmatpush3.msra.mxu1 %v5823_v54  ;;  %15239 = vmatprep.mubr.msk.f32.mxu1 %vm16250_vm3, %v16249_v38  ;;  %v6327_v54 = vld [vmem:[%s18984_s5] sm:$0xff] }
 0xa46   : > { %v15985_v40 = vpop.eup %15984  ;;  %15994 = vrcp.f32 %v5653_v24  ;;  %15247 = vmatprep.subr.mxu1 %v16249_v38  ;;  %v5659_v58 = vmul.f32 %v15983_v9, %v17200_v47 }
 0xa47   : > { %v5657_v45 = vmul.f32 %v15985_v40, %v17202_v7 }
 0xa48   : > { %v3567_v39 = vpop.permute.xlu1 %3566  ;;  %15240 = vmatmul.mubr.msk.f32.vlgmr.msra.gmra.mxu1 %vm918_vm4, %v5659_v58 }
 0xa49   : > { %3590 = vst.msk [vmem:[#allocation2 + $0x8] sm:$0xff] %vm3588_vm5, %v3567_v39  ;;  %v6127_v53 = vpop.permute.xlu0 %6126  ;;  %15235 = vmatmul.mubr.msk.f32.vlgmr.msra.gmra.mxu0 %vm918_vm4, %v5657_v45  ;;  %15248 = vmatpush3.msra.mxu1 %v5975_v12 }
 0xa4a   : > { %v15987_v2 = vpop.eup %15986  ;;  %15243 = vmatpush3.msra.mxu0 %v5899_v55  ;;  %15249 = vmatprep.mubr.msk.f32.mxu1 %vm16250_vm3, %v16249_v38 }
 0xa4b   : > { %v15989_v18 = vpop.eup %15988  ;;  %15244 = vmatprep.mubr.msk.f32.mxu0 %vm16250_vm3, %v16249_v38  ;;  %15252 = vmatprep.subr.mxu0 %v16249_v38  ;;  %v5663_v50 = vmul.f32 %v15987_v2, %v17209_v36 }
 0xa4c   : > { %v4928_v56 = vpop.permute.xlu1 %4927  ;;  %15257 = vmatprep.subr.mxu1 %v16249_v38  ;;  %v5661_v0 = vmul.f32 %v15989_v18, %v17211_v37 }
 0xa4d   : > { %4951 = vst.msk [vmem:[#allocation2 + $0x8] sm:$0xff] %vm4949_vm6, %v4928_v56  ;;  %v3565_v1 = vpop.permute.xlu0 %3564  ;;  %15250 = vmatmul.mubr.msk.f32.vlgmr.msra.gmra.mxu1 %vm918_vm4, %v5663_v50 }
 0xa4e   : > { %v15991_v62 = vpop.eup %15990  ;;  %3589 = vst.msk [vmem:[#allocation2] sm:$0xff] %vm3588_vm5, %v3565_v1  ;;  %15245 = vmatmul.mubr.msk.f32.vlgmr.msra.gmra.mxu0 %vm918_vm4, %v5661_v0  ;;  %15258 = vmatpush3.msra.mxu1 %v6127_v53 }
 0xa4f   : > { %v15993_v4 = vpop.eup %15992  ;;  %15253 = vmatpush3.msra.mxu0 %v6051_v8  ;;  %15254 = vmatprep.mubr.msk.f32.mxu0 %vm16250_vm3, %v16249_v38  ;;  %v5667_v51 = vmul.f32 %v15991_v62, %v17217_v63 }
 0xa50   : > { %v3571_v41 = vpop.permute.xlu1 %3570  ;;  %15259 = vmatprep.mubr.msk.f32.mxu1 %vm16250_vm3, %v16249_v38  ;;  %15262 = vmatprep.subr.mxu0 %v16249_v38  ;;  %v5665_v61 = vmul.f32 %v15993_v4, %v17219_v46 }
 0xa51   : > { %3592 = vst.msk [vmem:[#allocation2 + $0x18] sm:$0xff] %vm3588_vm5, %v3571_v41  ;;  %v4926_v3 = vpop.permute.xlu0 %4925  ;;  %15260 = vmatmul.mubr.msk.f32.vlgmr.msra.gmra.mxu1 %vm918_vm4, %v5667_v51  ;;  %15267 = vmatprep.subr.mxu1 %v6330_v16 }
 0xa52   : > { %4950 = vst.msk [vmem:[#allocation2] sm:$0xff] %vm4949_vm6, %v4926_v3  ;;  %15255 = vmatmul.mubr.msk.f32.vlgmr.msra.gmra.mxu0 %vm918_vm4, %v5665_v61  ;;  %15268 = vmatpush3.msra.mxu1 %v6330_v16 }
 0xa53   : > { %v15995_v14 = vpop.eup %15994  ;;  %15263 = vmatpush3.msra.mxu0 %v6203_v6  ;;  %15264 = vmatprep.mubr.msk.f32.mxu0 %vm16250_vm3, %v16249_v38 }
 0xa54   : > { %v4932_v34 = vpop.permute.xlu1 %4931  ;;  %v5669_v47 = vmul.f32 %v15995_v14, %v17225_v49  ;;  %v6329_v49 = vld [vmem:[%s18984_s5 + $0x10] sm:$0xff]  ;;  %v14299_v14 = vld [vmem:[%s18985_s6] ss:$0 sm:$0xff] }
 0xa55   : > { %4953 = vst.msk [vmem:[#allocation2 + $0x18] sm:$0xff] %vm4949_vm6, %v4932_v34  ;;  %v3569_v7 = vpop.permute.xlu0 %3568  ;;  %15269 = vmatprep.subr.mxu1 %v6329_v49 }
 0xa56   : > { %3591 = vst.msk [vmem:[#allocation2 + $0x10] sm:$0xff] %vm3588_vm5, %v3569_v7  ;;  %15265 = vmatmul.mubr.msk.f32.vlgmr.msra.gmra.mxu0 %vm918_vm4, %v5669_v47  ;;  %15270 = vmatpush3.msra.mxu1 %v6329_v49 }
 0xa57   : > { %15271 = vmatprep.subr.mxu1 %v6328_v44 }
 0xa58   : > { %v3575_v59 = vpop.permute.xlu1 %3574  ;;  %15272 = vmatpush3.msra.mxu1 %v6328_v44 }
 0xa59   : > { %3594 = vst.msk [vmem:[#allocation2 + $0x28] sm:$0xff] %vm3588_vm5, %v3575_v59  ;;  %v4930_v22 = vpop.permute.xlu0 %4929  ;;  %15273 = vmatprep.subr.mxu1 %v6327_v54 }
 0xa5a   : > { %4952 = vst.msk [vmem:[#allocation2 + $0x10] sm:$0xff] %vm4949_vm6, %v4930_v22  ;;  %15274 = vmatpush3.msra.mxu1 %v6327_v54 }
 0xa5c   : > { %v4936_v36 = vpop.permute.xlu1 %4935 }
 0xa5d   : > { %4955 = vst.msk [vmem:[#allocation2 + $0x28] sm:$0xff] %vm4949_vm6, %v4936_v36  ;;  %v3573_v37 = vpop.permute.xlu0 %3572 }
 0xa5e   : > { %3593 = vst.msk [vmem:[#allocation2 + $0x20] sm:$0xff] %vm3588_vm5, %v3573_v37 }
 0xa60   : > { %v3579_v52 = vpop.permute.xlu1 %3578 }
 0xa61   : > { %3596 = vst.msk [vmem:[#allocation2 + $0x38] sm:$0xff] %vm3588_vm5, %v3579_v52  ;;  %v4934_v42 = vpop.permute.xlu0 %4933 }
 0xa62   : > { %4954 = vst.msk [vmem:[#allocation2 + $0x20] sm:$0xff] %vm4949_vm6, %v4934_v42 }
 0xa64   : > { %v4940_v63 = vpop.permute.xlu1 %4939 }
 0xa65   : > { %4957 = vst.msk [vmem:[#allocation2 + $0x38] sm:$0xff] %vm4949_vm6, %v4940_v63  ;;  %v3577_v46 = vpop.permute.xlu0 %3576 }
 0xa66   : > { %3595 = vst.msk [vmem:[#allocation2 + $0x30] sm:$0xff] %vm3588_vm5, %v3577_v46 }
 0xa69   : > { %v4938_v11 = vpop.permute.xlu0 %4937 }
 0xa6a   : > { %4956 = vst.msk [vmem:[#allocation2 + $0x30] sm:$0xff] %vm4949_vm6, %v4938_v11 }
 0xb04   : > { %v5742_v55 = vpop.f32.mrf.mxu1 }
 0xb05   : > { %6286 = vrot.lane.b32.xlu0 %v5742_v55, %s19020_s21 }
 0xb06   : > { %v15231_v8 = vpop.f32.mrf.mxu1 }
 0xb08   : > { %v5894_v5 = vpop.f32.mrf.mxu1 }
 0xb09   : > { %v5818_v12 = vpop.f32.mrf.mxu0  ;;  %6290 = vrot.lane.b32.xlu0 %v5894_v5, %s19020_s21 }
 0xb0a   : > { %6288 = vrot.lane.b32.xlu1 %v5818_v12, %s19020_s21  ;;  %v15241_v10 = vpop.f32.mrf.mxu1 }
 0xb0b   : > { %v15236_v28 = vpop.f32.mrf.mxu0 }
 0xb0c   : > { %v19032_v28 = vmax.f32 %v16449_v33, 0.0 }
 0xb0d   : > { %v6046_v30 = vpop.f32.mrf.mxu1 }
 0xb0e   : > { %v5970_v48 = vpop.f32.mrf.mxu0  ;;  %6294 = vrot.lane.b32.xlu0 %v6046_v30, %s19020_s21 }
 0xb0f   : > { %6292 = vrot.lane.b32.xlu1 %v5970_v48, %s19020_s21  ;;  %v15251_v57 = vpop.f32.mrf.mxu1 }
 0xb10   : > { %v15246_v60 = vpop.f32.mrf.mxu0 }
 0xb11   : > { %v6198_v13 = vpop.f32.mrf.mxu1 }
 0xb12   : > { %v6122_v43 = vpop.f32.mrf.mxu0  ;;  %6298 = vrot.lane.b32.xlu0 %v6198_v13, %s19020_s21 }
 0xb13   : > { %6296 = vrot.lane.b32.xlu1 %v6122_v43, %s19020_s21  ;;  %v15261_v6 = vpop.f32.mrf.mxu1 }
 0xb14   : > { %v15256_v9 = vpop.f32.mrf.mxu0 }
 0xb16   : > { %v6274_v24 = vpop.f32.mrf.mxu0 }
 0xb17   : > { %6300 = vrot.lane.b32.xlu1 %v6274_v24, %s19020_s21  ;;  %s19039_s21 = smov 40  }
 0xb18   : > { %v15266_v40 = vpop.f32.mrf.mxu0 }
 0xb77   : > { %v6287_v58 = vpop.permute.xlu0 %6286 }
 0xb78   : > { %6311 = vst.msk [vmem:[#allocation2] sm:$0xff] %vm6310_vm7, %v6287_v58 }
 0xb7b   : > { %v6291_v45 = vpop.permute.xlu0 %6290 }
 0xb7c   : > { %v6289_v39 = vpop.permute.xlu1 %6288  ;;  %6313 = vst.msk [vmem:[#allocation2 + $0x10] sm:$0xff] %vm6310_vm7, %v6291_v45 }
 0xb7d   : > { %6312 = vst.msk [vmem:[#allocation2 + $0x8] sm:$0xff] %vm6310_vm7, %v6289_v39 }
 0xb7f   : > { %v6319_v53 = vld [vmem:[#allocation2] sm:$0xff] }
 0xb80   : > { %v6295_v2 = vpop.permute.xlu0 %6294  ;;  %15275 = vmatprep.mubr.msk.f32.mxu1 %vm785_vm2, %v6319_v53 }
 0xb81   : > { %v6293_v18 = vpop.permute.xlu1 %6292  ;;  %6315 = vst.msk [vmem:[#allocation2 + $0x20] sm:$0xff] %vm6310_vm7, %v6295_v2 }
 0xb82   : > { %6314 = vst.msk [vmem:[#allocation2 + $0x18] sm:$0xff] %vm6310_vm7, %v6293_v18 }
 0xb83   : > { %v6321_v50 = vld [vmem:[#allocation2 + $0x10] sm:$0xff] }
 0xb84   : > { %v6299_v56 = vpop.permute.xlu0 %6298  ;;  %v6320_v0 = vld [vmem:[#allocation2 + $0x8] sm:$0xff] }
 0xb85   : > { %v6297_v1 = vpop.permute.xlu1 %6296  ;;  %6317 = vst.msk [vmem:[#allocation2 + $0x30] sm:$0xff] %vm6310_vm7, %v6299_v56  ;;  %15276 = vmatmul.mubr.msk.f32.vlgmr.msra.gmra.mxu1 %vm785_vm2, %v6320_v0 }
 0xb86   : > { %6316 = vst.msk [vmem:[#allocation2 + $0x28] sm:$0xff] %vm6310_vm7, %v6297_v1  ;;  %15278 = vmatprep.mubr.msk.f32.mxu1 %vm785_vm2, %v6321_v50 }
 0xb88   : > { %v6323_v62 = vld [vmem:[#allocation2 + $0x20] sm:$0xff] }
 0xb89   : > { %v6301_v4 = vpop.permute.xlu1 %6300  ;;  %v6322_v51 = vld [vmem:[#allocation2 + $0x18] sm:$0xff] }
 0xb8a   : > { %6318 = vst.msk [vmem:[#allocation2 + $0x38] sm:$0xff] %vm6310_vm7, %v6301_v4  ;;  %15279 = vmatmul.mubr.msk.f32.gmra.mxu1 %vm785_vm2, %v6322_v51 }
 0xb8b   : > { %15281 = vmatprep.mubr.msk.f32.mxu1 %vm785_vm2, %v6323_v62 }
 0xb8c   : > { %v6325_v41 = vld [vmem:[#allocation2 + $0x30] sm:$0xff] }
 0xb8d   : > { %v6324_v61 = vld [vmem:[#allocation2 + $0x28] sm:$0xff] }
 0xb8e   : > { %15282 = vmatmul.mubr.msk.f32.gmra.mxu1 %vm785_vm2, %v6324_v61 }
 0xb8f   : > { %15284 = vmatprep.mubr.msk.f32.mxu1 %vm785_vm2, %v6325_v41 }
 0xb91   : > { %v6326_v3 = vld [vmem:[#allocation2 + $0x38] sm:$0xff] }
 0xb92   : > { %15285 = vmatmul.mubr.msk.f32.gmra.mxu1 %vm785_vm2, %v6326_v3 }
 0xc45   : > { %v15277_v34 = vpop.f32.mrf.mxu1 }
 0xc46   : > { %v6434_v47 = vadd.f32 %v15277_v34, %v14299_v14 }
 0xc47   : > { %v6428_v7 = vpop.f32.mrf.mxu1 }
 0xc48   : > { %v6468_v59 = vadd.f32 %v6434_v47, %v767_v20  ;;  %v6429_v22 = vadd.f32 %v14299_v14, %v6428_v7 }
 0xc4a   : > { %v6467_v36 = vadd.f32 %v6429_v22, %v766_v19  ;;  %v15280_v37 = vpop.f32.mrf.mxu1  ;;  %v6480_v52 = vsel %vm785_vm2, %v6468_v59, 0.0 }
 0xc4b   : > { %6481 = vadd.xlane.f32.xlu1 %v6480_v52  ;;  %v6444_v42 = vadd.f32 %v15280_v37, %v14299_v14 }
 0xc4c   : > { %v6438_v63 = vpop.f32.mrf.mxu1  ;;  %v6477_v46 = vsel %vm785_vm2, %v6467_v36, 0.0 }
 0xc4d   : > { %v6439_v11 = vadd.f32 %v14299_v14, %v6438_v63  ;;  %6478 = vadd.xlane.f32.xlu0 %v6477_v46  ;;  %v6470_v15 = vadd.f32 %v6444_v42, %v769_v26  ;;  %v19031_v26 = vmax.f32 %v16451_v35, 0.0 }
 0xc4e   : > { %v15283_v16 = vpop.f32.mrf.mxu1 }
 0xc4f   : > { %v6469_v49 = vadd.f32 %v6439_v11, %v768_v25  ;;  %v6454_v17 = vadd.f32 %v15283_v16, %v14299_v14  ;;  %v6486_v5 = vsel %vm785_vm2, %v6470_v15, 0.0  ;;  %v6613_v11 = vld [vmem:[#allocation3 + $0x18] sm:$0xff]  ;;  %v6612_v16 = vld [vmem:[#allocation3 + $0x10] sm:$0xff] }
 0xc50   : > { %v6448_v20 = vpop.f32.mrf.mxu1  ;;  %15287 = vmatprep.subr.mxu0 %v6613_v11 }
 0xc51   : > { %v6449_v19 = vadd.f32 %v14299_v14, %v6448_v20  ;;  %v6483_v44 = vsel %vm785_vm2, %v6469_v49, 0.0  ;;  %v6472_v23 = vadd.f32 %v6454_v17, %v771_v32  ;;  %15288 = vmatpush3.msra.mxu0 %v6613_v11  ;;  %v6765_v20 = vld [vmem:[%s18988_s9 + $0x38] sm:$0xff]  ;;  %v6764_v17 = vld [vmem:[%s18988_s9 + $0x30] sm:$0xff] }
 0xc52   : > { %6484 = vadd.xlane.f32.xlu0 %v6483_v44  ;;  %v15286_v54 = vpop.f32.mrf.mxu1  ;;  %15289 = vmatprep.subr.mxu0 %v6612_v16  ;;  %v6762_v44 = vld [vmem:[%s18988_s9 + $0x20] sm:$0xff] }
 0xc53   : > { %v6471_v55 = vadd.f32 %v6449_v19, %v770_v31  ;;  %v6464_v25 = vadd.f32 %v15286_v54, %v14299_v14  ;;  %v6492_v29 = vsel %vm785_vm2, %v6472_v23, 0.0  ;;  %15290 = vmatpush3.msra.mxu0 %v6612_v16  ;;  %15307 = vmatprep.subr.mxu1 %v6765_v20  ;;  %v6763_v19 = vld [vmem:[%s18988_s9 + $0x28] sm:$0xff] }
 0xc54   : > { %v6458_v8 = vpop.f32.mrf.mxu1  ;;  %15308 = vmatpush3.msra.mxu1 %v6765_v20  ;;  %v6761_v20 = vld [vmem:[%s18988_s9 + $0x18] sm:$0xff] }
 0xc55   : > { %v6459_v12 = vadd.f32 %v14299_v14, %v6458_v8  ;;  %v6489_v21 = vsel %vm785_vm2, %v6471_v55, 0.0  ;;  %v6474_v30 = vadd.f32 %v6464_v25, %v19032_v28  ;;  %15309 = vmatprep.subr.mxu1 %v6764_v17 }
 0xc56   : > { %6487 = vadd.xlane.f32.xlu0 %v6486_v5  ;;  %6490 = vadd.xlane.f32.xlu1 %v6489_v21 }
 0xc57   : > { %v6473_v10 = vadd.f32 %v6459_v12, %v19031_v26  ;;  %v6498_v27 = vsel %vm785_vm2, %v6474_v30, 0.0  ;;  %15310 = vmatpush3.msra.mxu1 %v6764_v17  ;;  %v6759_v17 = vld [vmem:[%s18988_s9 + $0x8] sm:$0xff] }
 0xc58   : > { %15311 = vmatprep.subr.mxu1 %v6763_v19 }
 0xc59   : > { %v6495_v31 = vsel %vm785_vm2, %v6473_v10, 0.0  ;;  %15312 = vmatpush3.msra.mxu1 %v6763_v19  ;;  %v6758_v19 = vld [vmem:[%s18988_s9] sm:$0xff] }
 0xc5a   : > { %6493 = vadd.xlane.f32.xlu0 %v6492_v29  ;;  %6496 = vadd.xlane.f32.xlu1 %v6495_v31 }
 0xc5b   : > { %15313 = vmatprep.subr.mxu1 %v6762_v44 }
 0xc5c   : > { %15314 = vmatpush3.msra.mxu1 %v6762_v44  ;;  %v14310_v44 = vld [vmem:[%s18987_s8] ss:$0 sm:$0xff] }
 0xc5d   : > { %15315 = vmatprep.subr.mxu1 %v6761_v20 }
 0xc5e   : > { %6499 = vadd.xlane.f32.xlu0 %v6498_v27  ;;  %15316 = vmatpush3.msra.mxu1 %v6761_v20 }
 0xcd4   : > { %v6482_v32 = vpop.xlane.xlu1 %6481 }
 0xcd5   : > { %v6503_v48 = vmul.f32 0.03125, %v6482_v32 }
 0xcd6   : > { %v6479_v57 = vpop.xlane.xlu0 %6478 }
 0xcd7   : > { %v17376_v60 = vsub.f32 %v6468_v59, %v6503_v48  ;;  %v6502_v13 = vmul.f32 0.03125, %v6479_v57 }
 0xcd9   : > { %v17378_v35 = vsub.f32 %v6467_v36, %v6502_v13  ;;  %v6519_v33 = vmul.f32 %v17376_v60, %v17376_v60 }
 0xcdb   : > { %v6485_v43 = vpop.xlane.xlu0 %6484  ;;  %v6529_v6 = vsel %vm785_vm2, %v6519_v33, 0.0  ;;  %v6518_v9 = vmul.f32 %v17378_v35, %v17378_v35 }
 0xcdc   : > { %v6504_v24 = vmul.f32 0.03125, %v6485_v43  ;;  %6530 = vadd.xlane.f32.xlu0 %v6529_v6 }
 0xcdd   : > { %v6526_v40 = vsel %vm785_vm2, %v6518_v9, 0.0 }
 0xcde   : > { %v17386_v58 = vsub.f32 %v6469_v49, %v6504_v24  ;;  %6527 = vadd.xlane.f32.xlu1 %v6526_v40  ;;  %v6611_v49 = vld [vmem:[#allocation3 + $0x8] sm:$0xff]  ;;  %v14308_v24 = vld [vmem:[%s18990_s11] ss:$0 sm:$0xff] }
 0xcdf   : > { %v6491_v45 = vpop.xlane.xlu1 %6490  ;;  %v6488_v39 = vpop.xlane.xlu0 %6487  ;;  %15291 = vmatprep.subr.mxu0 %v6611_v49 }
 0xce0   : > { %v6506_v53 = vmul.f32 0.03125, %v6491_v45  ;;  %v6505_v2 = vmul.f32 0.03125, %v6488_v39  ;;  %v6520_v18 = vmul.f32 %v17386_v58, %v17386_v58  ;;  %15292 = vmatpush3.msra.mxu0 %v6611_v49 }
 0xce2   : > { %v17390_v50 = vsub.f32 %v6471_v55, %v6506_v53  ;;  %v17392_v56 = vsub.f32 %v6470_v15, %v6505_v2  ;;  %v6532_v0 = vsel %vm785_vm2, %v6520_v18, 0.0  ;;  %v6610_v15 = vld [vmem:[#allocation3] sm:$0xff] }
 0xce3   : > { %v6497_v1 = vpop.xlane.xlu1 %6496  ;;  %6533 = vadd.xlane.f32.xlu1 %v6532_v0  ;;  %v6494_v62 = vpop.xlane.xlu0 %6493  ;;  %15293 = vmatprep.subr.mxu0 %v6610_v15  ;;  %v14309_v0 = vld [vmem:[%s18991_s12] ss:$0 sm:$0xff] }
 0xce4   : > { %v6508_v4 = vmul.f32 0.03125, %v6497_v1  ;;  %v6507_v51 = vmul.f32 0.03125, %v6494_v62  ;;  %v6522_v41 = vmul.f32 %v17390_v50, %v17390_v50  ;;  %v6521_v61 = vmul.f32 %v17392_v56, %v17392_v56  ;;  %15294 = vmatpush3.msra.mxu0 %v6610_v15 }
 0xce6   : > { %v17399_v3 = vsub.f32 %v6473_v10, %v6508_v4  ;;  %v17401_v14 = vsub.f32 %v6472_v23, %v6507_v51  ;;  %v6538_v34 = vsel %vm785_vm2, %v6522_v41, 0.0  ;;  %v6535_v47 = vsel %vm785_vm2, %v6521_v61, 0.0 }
 0xce7   : > { %6539 = vadd.xlane.f32.xlu1 %v6538_v34  ;;  %6536 = vadd.xlane.f32.xlu0 %v6535_v47  ;;  %v6500_v7 = vpop.xlane.xlu0 %6499 }
 0xce8   : > { %v6509_v59 = vmul.f32 0.03125, %v6500_v7  ;;  %v6524_v22 = vmul.f32 %v17399_v3, %v17399_v3  ;;  %v6523_v36 = vmul.f32 %v17401_v14, %v17401_v14 }
 0xcea   : > { %v17409_v37 = vsub.f32 %v6474_v30, %v6509_v59  ;;  %v6544_v52 = vsel %vm785_vm2, %v6524_v22, 0.0  ;;  %v6541_v42 = vsel %vm785_vm2, %v6523_v36, 0.0 }
 0xceb   : > { %6545 = vadd.xlane.f32.xlu1 %v6544_v52  ;;  %6542 = vadd.xlane.f32.xlu0 %v6541_v42 }
 0xcec   : > { %v6525_v63 = vmul.f32 %v17409_v37, %v17409_v37 }
 0xcee   : > { %v6547_v46 = vsel %vm785_vm2, %v6525_v63, 0.0 }
 0xcef   : > { %6548 = vadd.xlane.f32.xlu0 %v6547_v46 }
 0xd65   : > { %v6531_v54 = vpop.xlane.xlu0 %6530 }
 0xd66   : > { %v6551_v55 = vmul.f32 0.03125, %v6531_v54 }
 0xd67   : > { %v6528_v8 = vpop.xlane.xlu1 %6527 }
 0xd68   : > { %v6559_v5 = vadd.f32 1e-05, %v6551_v55  ;;  %v6550_v23 = vmul.f32 0.03125, %v6528_v8 }
 0xd6a   : > { %15996 = vrsqrt.f32 %v6559_v5  ;;  %v6558_v25 = vadd.f32 1e-05, %v6550_v23 }
 0xd6c   : > { %15998 = vrsqrt.f32 %v6558_v25  ;;  %v6534_v12 = vpop.xlane.xlu1 %6533 }
 0xd6d   : > { %v6552_v21 = vmul.f32 0.03125, %v6534_v12 }
 0xd6f   : > { %v6560_v26 = vadd.f32 1e-05, %v6552_v21 }
 0xd70   : > { %v6540_v10 = vpop.xlane.xlu1 %6539  ;;  %v6537_v28 = vpop.xlane.xlu0 %6536 }
 0xd71   : > { %16000 = vrsqrt.f32 %v6560_v26  ;;  %v6554_v30 = vmul.f32 0.03125, %v6540_v10  ;;  %v6553_v29 = vmul.f32 0.03125, %v6537_v28 }
 0xd73   : > { %v6562_v31 = vadd.f32 1e-05, %v6554_v30  ;;  %v6561_v27 = vadd.f32 1e-05, %v6553_v29 }
 0xd74   : > { %v6546_v32 = vpop.xlane.xlu1 %6545  ;;  %v6543_v48 = vpop.xlane.xlu0 %6542 }
 0xd75   : > { %16002 = vrsqrt.f32 %v6562_v31  ;;  %v6556_v57 = vmul.f32 0.03125, %v6546_v32  ;;  %v6555_v13 = vmul.f32 0.03125, %v6543_v48 }
 0xd76   : > { %16004 = vrsqrt.f32 %v6561_v27 }
 0xd77   : > { %v15997_v33 = vpop.eup %15996  ;;  %v6564_v43 = vadd.f32 1e-05, %v6556_v57  ;;  %v6563_v6 = vadd.f32 1e-05, %v6555_v13 }
 0xd78   : > { %v6549_v9 = vpop.xlane.xlu0 %6548  ;;  %v6575_v40 = vmul.f32 %v15997_v33, %v17376_v60 }
 0xd79   : > { %v15999_v45 = vpop.eup %15998  ;;  %16006 = vrsqrt.f32 %v6564_v43  ;;  %v6557_v39 = vmul.f32 0.03125, %v6549_v9 }
 0xd7a   : > { %16008 = vrsqrt.f32 %v6563_v6  ;;  %v6574_v53 = vmul.f32 %v15999_v45, %v17378_v35  ;;  %v6589_v18 = vmul.f32 %v14308_v24, %v6575_v40  ;;  %v14319_v40 = vld [vmem:[%s18989_s10] ss:$0 sm:$0xff] }
 0xd7b   : > { %v6565_v2 = vadd.f32 1e-05, %v6557_v39 }
 0xd7c   : > { %v6588_v1 = vmul.f32 %v14308_v24, %v6574_v53  ;;  %v17438_v51 = vadd.f32 %v14309_v0, %v6589_v18 }
 0xd7d   : > { %16010 = vrsqrt.f32 %v6565_v2 }
 0xd7e   : > { %v16001_v62 = vpop.eup %16000  ;;  %v17436_v4 = vadd.f32 %v14309_v0, %v6588_v1 }
 0xd7f   : > { %v6576_v60 = vmul.f32 %v16001_v62, %v17386_v58 }
 0xd80   : > { %15295 = vmatprep.mubr.msk.f32.mxu0 %vm785_vm2, %v17436_v4 }
 0xd81   : > { %15296 = vmatmul.mubr.msk.f32.vlgmr.msra.gmra.mxu0 %vm785_vm2, %v17438_v51  ;;  %v6590_v35 = vmul.f32 %v14308_v24, %v6576_v60 }
 0xd82   : > { %v16003_v41 = vpop.eup %16002 }
 0xd83   : > { %v16005_v61 = vpop.eup %16004  ;;  %v17445_v34 = vadd.f32 %v14309_v0, %v6590_v35  ;;  %v6578_v47 = vmul.f32 %v16003_v41, %v17390_v50 }
 0xd84   : > { %v6577_v7 = vmul.f32 %v16005_v61, %v17392_v56 }
 0xd85   : > { %15298 = vmatprep.mubr.msk.f32.mxu0 %vm785_vm2, %v17445_v34  ;;  %v6592_v59 = vmul.f32 %v14308_v24, %v6578_v47 }
 0xd86   : > { %v16007_v58 = vpop.eup %16006  ;;  %v6591_v22 = vmul.f32 %v14308_v24, %v6577_v7 }
 0xd87   : > { %v16009_v36 = vpop.eup %16008  ;;  %v17451_v52 = vadd.f32 %v14309_v0, %v6592_v59  ;;  %v6580_v42 = vmul.f32 %v16007_v58, %v17399_v3 }
 0xd88   : > { %v17454_v63 = vadd.f32 %v14309_v0, %v6591_v22  ;;  %v6579_v46 = vmul.f32 %v16009_v36, %v17401_v14 }
 0xd89   : > { %v6594_v11 = vmul.f32 %v14308_v24, %v6580_v42 }
 0xd8a   : > { %v16011_v16 = vpop.eup %16010  ;;  %15299 = vmatmul.mubr.msk.f32.gmra.mxu0 %vm785_vm2, %v17454_v63  ;;  %v6593_v50 = vmul.f32 %v14308_v24, %v6579_v46 }
 0xd8b   : > { %15301 = vmatprep.mubr.msk.f32.mxu0 %vm785_vm2, %v17451_v52  ;;  %v17461_v56 = vadd.f32 %v14309_v0, %v6594_v11  ;;  %v6581_v49 = vmul.f32 %v16011_v16, %v17409_v37  ;;  %v6760_v37 = vld [vmem:[%s18988_s9 + $0x10] sm:$0xff] }
 0xd8c   : > { %v17464_v15 = vadd.f32 %v14309_v0, %v6593_v50  ;;  %15317 = vmatprep.subr.mxu1 %v6760_v37 }
 0xd8d   : > { %v6595_v3 = vmul.f32 %v14308_v24, %v6581_v49  ;;  %15318 = vmatpush3.msra.mxu1 %v6760_v37 }
 0xd8e   : > { %15302 = vmatmul.mubr.msk.f32.gmra.mxu0 %vm785_vm2, %v17464_v15  ;;  %15319 = vmatprep.subr.mxu1 %v6759_v17 }
 0xd8f   : > { %15304 = vmatprep.mubr.msk.f32.mxu0 %vm785_vm2, %v17461_v56  ;;  %v17470_v14 = vadd.f32 %v14309_v0, %v6595_v3  ;;  %15320 = vmatpush3.msra.mxu1 %v6759_v17 }
 0xd90   : > { %15321 = vmatprep.subr.mxu1 %v6758_v19 }
 0xd91   : > { %15322 = vmatpush3.msra.mxu1 %v6758_v19 }
 0xd92   : > { %15305 = vmatmul.mubr.msk.f32.gmra.mxu0 %vm785_vm2, %v17470_v14  ;;  %15355 = vmatprep.subr.mxu1 %v16249_v38 }
 0xe41   : > { %v15297_v54 = vpop.f32.mrf.mxu0 }
 0xe42   : > { %v6717_v55 = vadd.f32 %v15297_v54, %v14310_v44 }
 0xe43   : > { %v6711_v8 = vpop.f32.mrf.mxu0 }
 0xe44   : > { %v6712_v5 = vadd.f32 %v14310_v44, %v6711_v8  ;;  %v6751_v25 = vmax.f32 %v6717_v55, 0.0 }
 0xe46   : > { %v6750_v23 = vmax.f32 %v6712_v5, 0.0 }
 0xe48   : > { %15323 = vmatprep.mubr.msk.f32.mxu1 %vm6773_vm8, %v6750_v23 }
 0xe49   : > { %15324 = vmatmul.mubr.msk.f32.vlgmr.msra.gmra.mxu1 %vm6773_vm8, %v6751_v25 }
 0xe4a   : > { %v15300_v12 = vpop.f32.mrf.mxu0 }
 0xe4b   : > { %v6727_v21 = vadd.f32 %v15300_v12, %v14310_v44 }
 0xe4c   : > { %v6721_v26 = vpop.f32.mrf.mxu0 }
 0xe4d   : > { %v6722_v10 = vadd.f32 %v14310_v44, %v6721_v26  ;;  %v6753_v29 = vmax.f32 %v6727_v21, 0.0 }
 0xe4e   : > { %v15303_v28 = vpop.f32.mrf.mxu0 }
 0xe4f   : > { %v6752_v30 = vmax.f32 %v6722_v10, 0.0  ;;  %v6737_v31 = vadd.f32 %v15303_v28, %v14310_v44 }
 0xe50   : > { %v6731_v27 = vpop.f32.mrf.mxu0 }
 0xe51   : > { %v6732_v32 = vadd.f32 %v14310_v44, %v6731_v27  ;;  %15326 = vmatprep.mubr.msk.f32.mxu1 %vm6773_vm8, %v6752_v30  ;;  %v6755_v13 = vmax.f32 %v6737_v31, 0.0 }
 0xe52   : > { %v15306_v48 = vpop.f32.mrf.mxu0  ;;  %15327 = vmatmul.mubr.msk.f32.gmra.mxu1 %vm6773_vm8, %v6753_v29 }
 0xe53   : > { %v6754_v57 = vmax.f32 %v6732_v32, 0.0  ;;  %v6747_v33 = vadd.f32 %v15306_v48, %v14310_v44 }
 0xe54   : > { %v6741_v43 = vpop.f32.mrf.mxu0 }
 0xe55   : > { %v6742_v6 = vadd.f32 %v14310_v44, %v6741_v43  ;;  %15329 = vmatprep.mubr.msk.f32.mxu1 %vm6773_vm8, %v6754_v57  ;;  %v6757_v24 = vmax.f32 %v6747_v33, 0.0 }
 0xe56   : > { %15330 = vmatmul.mubr.msk.f32.gmra.mxu1 %vm6773_vm8, %v6755_v13 }
 0xe57   : > { %v6756_v9 = vmax.f32 %v6742_v6, 0.0 }
 0xe59   : > { %15332 = vmatprep.mubr.msk.f32.mxu1 %vm6773_vm8, %v6756_v9 }
 0xe5a   : > { %15333 = vmatmul.mubr.msk.f32.gmra.mxu1 %vm6773_vm8, %v6757_v24 }
 0xe5b   : > { %15357 = vmatprep.mubr.msk.f32.mxu1 %vm16250_vm3, %v16249_v38 }
 0xf09   : > { %v15325_v45 = vpop.f32.mrf.mxu1 }
 0xf0a   : > { %v6870_v39 = vadd.f32 %v15325_v45, %v14319_v40 }
 0xf0b   : > { %v6864_v53 = vpop.f32.mrf.mxu1 }
 0xf0c   : > { %v6904_v2 = vadd.f32 %v6870_v39, %v17438_v51  ;;  %v6865_v18 = vadd.f32 %v14319_v40, %v6864_v53 }
 0xf0e   : > { %v6903_v0 = vadd.f32 %v6865_v18, %v17436_v4  ;;  %v6916_v1 = vsel %vm785_vm2, %v6904_v2, 0.0 }
 0xf0f   : > { %6917 = vadd.xlane.f32.xlu0 %v6916_v1 }
 0xf10   : > { %v6913_v62 = vsel %vm785_vm2, %v6903_v0, 0.0 }
 0xf11   : > { %6914 = vadd.xlane.f32.xlu1 %v6913_v62 }
 0xf12   : > { %v15328_v60 = vpop.f32.mrf.mxu1 }
 0xf13   : > { %v6880_v35 = vadd.f32 %v15328_v60, %v14319_v40 }
 0xf14   : > { %v6874_v41 = vpop.f32.mrf.mxu1 }
 0xf15   : > { %v6906_v61 = vadd.f32 %v6880_v35, %v17454_v63  ;;  %v6875_v47 = vadd.f32 %v14319_v40, %v6874_v41  ;;  %v14333_v35 = vld [vmem:[%s19029_s23 + $0x38] sm:$0xff]  ;;  %v14332_v41 = vld [vmem:[%s19029_s23 + $0x30] sm:$0xff] }
 0xf16   : > { %v15331_v7 = vpop.f32.mrf.mxu1  ;;  %15335 = vmatprep.subr.mxu0 %v14333_v35 }
 0xf17   : > { %v6905_v59 = vadd.f32 %v6875_v47, %v17445_v34  ;;  %v6890_v58 = vadd.f32 %v15331_v7, %v14319_v40  ;;  %v6922_v51 = vsel %vm785_vm2, %v6906_v61, 0.0  ;;  %15336 = vmatpush3.msra.mxu0 %v14333_v35  ;;  %v14330_v47 = vld [vmem:[%s19029_s23 + $0x20] sm:$0xff] }
 0xf18   : > { %6923 = vadd.xlane.f32.xlu0 %v6922_v51  ;;  %v6884_v4 = vpop.f32.mrf.mxu1  ;;  %15337 = vmatprep.subr.mxu0 %v14332_v41 }
 0xf19   : > { %v6908_v22 = vadd.f32 %v6890_v58, %v17464_v15  ;;  %v6885_v36 = vadd.f32 %v14319_v40, %v6884_v4  ;;  %v6919_v42 = vsel %vm785_vm2, %v6905_v59, 0.0  ;;  %15338 = vmatpush3.msra.mxu0 %v14332_v41 }
 0xf1a   : > { %6920 = vadd.xlane.f32.xlu1 %v6919_v42  ;;  %v15334_v46 = vpop.f32.mrf.mxu1 }
 0xf1b   : > { %v6907_v11 = vadd.f32 %v6885_v36, %v17451_v52  ;;  %v6900_v16 = vadd.f32 %v15334_v46, %v14319_v40  ;;  %v6928_v63 = vsel %vm785_vm2, %v6908_v22, 0.0 }
 0xf1c   : > { %6929 = vadd.xlane.f32.xlu0 %v6928_v63  ;;  %v6894_v50 = vpop.f32.mrf.mxu1 }
 0xf1d   : > { %v6910_v34 = vadd.f32 %v6900_v16, %v17470_v14  ;;  %v6895_v49 = vadd.f32 %v14319_v40, %v6894_v50  ;;  %v6925_v3 = vsel %vm785_vm2, %v6907_v11, 0.0 }
 0xf1e   : > { %6926 = vadd.xlane.f32.xlu1 %v6925_v3 }
 0xf1f   : > { %v6909_v15 = vadd.f32 %v6895_v49, %v17461_v56  ;;  %v6934_v20 = vsel %vm785_vm2, %v6910_v34, 0.0 }
 0xf20   : > { %6935 = vadd.xlane.f32.xlu0 %v6934_v20 }
 0xf21   : > { %v6931_v37 = vsel %vm785_vm2, %v6909_v15, 0.0 }
 0xf22   : > { %6932 = vadd.xlane.f32.xlu1 %v6931_v37 }
 0xf98   : > { %v6918_v52 = vpop.xlane.xlu0 %6917 }
 0xf99   : > { %v6938_v17 = vmul.f32 0.03125, %v6918_v52 }
 0xf9a   : > { %v6915_v19 = vpop.xlane.xlu1 %6914 }
 0xf9b   : > { %v17519_v44 = vsub.f32 %v6904_v2, %v6938_v17  ;;  %v6937_v54 = vmul.f32 0.03125, %v6915_v19  ;;  %v14328_v19 = vld [vmem:[%s18992_s13] ss:$0 sm:$0xff] }
 0xf9d   : > { %v17521_v55 = vsub.f32 %v6903_v0, %v6937_v54  ;;  %v6954_v14 = vmul.f32 %v17519_v44, %v17519_v44 }
 0xf9f   : > { %v6964_v8 = vsel %vm785_vm2, %v6954_v14, 0.0  ;;  %v6953_v56 = vmul.f32 %v17521_v55, %v17521_v55 }
 0xfa0   : > { %6965 = vadd.xlane.f32.xlu0 %v6964_v8 }
 0xfa1   : > { %v6924_v5 = vpop.xlane.xlu0 %6923  ;;  %v6961_v23 = vsel %vm785_vm2, %v6953_v56, 0.0 }
 0xfa2   : > { %v6940_v25 = vmul.f32 0.03125, %v6924_v5  ;;  %6962 = vadd.xlane.f32.xlu1 %v6961_v23 }
 0xfa3   : > { %v6921_v12 = vpop.xlane.xlu1 %6920 }
 0xfa4   : > { %v17529_v21 = vsub.f32 %v6906_v61, %v6940_v25  ;;  %v6939_v26 = vmul.f32 0.03125, %v6921_v12  ;;  %v14331_v61 = vld [vmem:[%s19029_s23 + $0x28] sm:$0xff] }
 0xfa5   : > { %v6930_v10 = vpop.xlane.xlu0 %6929  ;;  %15339 = vmatprep.subr.mxu0 %v14331_v61 }
 0xfa6   : > { %v17531_v28 = vsub.f32 %v6905_v59, %v6939_v26  ;;  %v6942_v30 = vmul.f32 0.03125, %v6930_v10  ;;  %v6956_v29 = vmul.f32 %v17529_v21, %v17529_v21  ;;  %15340 = vmatpush3.msra.mxu0 %v14331_v61  ;;  %v14329_v26 = vld [vmem:[%s18993_s14] ss:$0 sm:$0xff] }
 0xfa7   : > { %v6927_v31 = vpop.xlane.xlu1 %6926  ;;  %15341 = vmatprep.subr.mxu0 %v14330_v47 }
 0xfa8   : > { %v17535_v27 = vsub.f32 %v6908_v22, %v6942_v30  ;;  %v6941_v32 = vmul.f32 0.03125, %v6927_v31  ;;  %v6970_v48 = vsel %vm785_vm2, %v6956_v29, 0.0  ;;  %v6955_v57 = vmul.f32 %v17531_v28, %v17531_v28  ;;  %15342 = vmatpush3.msra.mxu0 %v14330_v47 }
 0xfa9   : > { %6971 = vadd.xlane.f32.xlu0 %v6970_v48  ;;  %v6936_v13 = vpop.xlane.xlu0 %6935  ;;  %15360 = vmatprep.subr.mxu0 %v16249_v38 }
 0xfaa   : > { %v17540_v33 = vsub.f32 %v6907_v11, %v6941_v32  ;;  %v6944_v43 = vmul.f32 0.03125, %v6936_v13  ;;  %v6967_v6 = vsel %vm785_vm2, %v6955_v57, 0.0  ;;  %v6958_v9 = vmul.f32 %v17535_v27, %v17535_v27 }
 0xfab   : > { %6968 = vadd.xlane.f32.xlu1 %v6967_v6  ;;  %v6933_v24 = vpop.xlane.xlu1 %6932 }
 0xfac   : > { %v17545_v40 = vsub.f32 %v6910_v34, %v6944_v43  ;;  %v6943_v45 = vmul.f32 0.03125, %v6933_v24  ;;  %v6976_v39 = vsel %vm785_vm2, %v6958_v9, 0.0  ;;  %v6957_v53 = vmul.f32 %v17540_v33, %v17540_v33 }
 0xfad   : > { %6977 = vadd.xlane.f32.xlu0 %v6976_v39 }
 0xfae   : > { %v17550_v2 = vsub.f32 %v6909_v15, %v6943_v45  ;;  %v6973_v18 = vsel %vm785_vm2, %v6957_v53, 0.0  ;;  %v6960_v0 = vmul.f32 %v17545_v40, %v17545_v40 }
 0xfaf   : > { %6974 = vadd.xlane.f32.xlu1 %v6973_v18 }
 0xfb0   : > { %v6982_v1 = vsel %vm785_vm2, %v6960_v0, 0.0  ;;  %v6959_v62 = vmul.f32 %v17550_v2, %v17550_v2 }
 0xfb1   : > { %6983 = vadd.xlane.f32.xlu0 %v6982_v1 }
 0xfb2   : > { %v6979_v60 = vsel %vm785_vm2, %v6959_v62, 0.0 }
 0xfb3   : > { %6980 = vadd.xlane.f32.xlu1 %v6979_v60 }
0x1029   : > { %v6966_v7 = vpop.xlane.xlu0 %6965 }
0x102a   : > { %v6986_v59 = vmul.f32 0.03125, %v6966_v7 }
0x102b   : > { %v6963_v58 = vpop.xlane.xlu1 %6962 }
0x102c   : > { %v6994_v51 = vadd.f32 1e-05, %v6986_v59  ;;  %v6985_v4 = vmul.f32 0.03125, %v6963_v58 }
0x102e   : > { %16012 = vrsqrt.f32 %v6994_v51  ;;  %v6993_v22 = vadd.f32 1e-05, %v6985_v4 }
0x1030   : > { %16014 = vrsqrt.f32 %v6993_v22 }
0x1032   : > { %v6972_v36 = vpop.xlane.xlu0 %6971 }
0x1033   : > { %v6988_v42 = vmul.f32 0.03125, %v6972_v36 }
0x1034   : > { %v6969_v46 = vpop.xlane.xlu1 %6968 }
0x1035   : > { %v6996_v11 = vadd.f32 1e-05, %v6988_v42  ;;  %v6987_v16 = vmul.f32 0.03125, %v6969_v46 }
0x1036   : > { %v6978_v63 = vpop.xlane.xlu0 %6977 }
0x1037   : > { %16016 = vrsqrt.f32 %v6996_v11  ;;  %v6995_v50 = vadd.f32 1e-05, %v6987_v16  ;;  %v6990_v34 = vmul.f32 0.03125, %v6978_v63 }
0x1038   : > { %v6975_v49 = vpop.xlane.xlu1 %6974 }
0x1039   : > { %16018 = vrsqrt.f32 %v6995_v50  ;;  %v6998_v3 = vadd.f32 1e-05, %v6990_v34  ;;  %v6989_v15 = vmul.f32 0.03125, %v6975_v49 }
0x103a   : > { %v6984_v20 = vpop.xlane.xlu0 %6983 }
0x103b   : > { %v16013_v37 = vpop.eup %16012  ;;  %16020 = vrsqrt.f32 %v6998_v3  ;;  %v6997_v52 = vadd.f32 1e-05, %v6989_v15  ;;  %v6992_v17 = vmul.f32 0.03125, %v6984_v20 }
0x103c   : > { %v7010_v54 = vmul.f32 %v16013_v37, %v17519_v44  ;;  %v6981_v14 = vpop.xlane.xlu1 %6980 }
0x103d   : > { %v16015_v8 = vpop.eup %16014  ;;  %16022 = vrsqrt.f32 %v6997_v52  ;;  %v7000_v56 = vadd.f32 1e-05, %v6992_v17  ;;  %v6991_v5 = vmul.f32 0.03125, %v6981_v14 }
0x103e   : > { %v7009_v23 = vmul.f32 %v16015_v8, %v17521_v55  ;;  %v7024_v25 = vmul.f32 %v14328_v19, %v7010_v54 }
0x103f   : > { %16024 = vrsqrt.f32 %v7000_v56  ;;  %v6999_v12 = vadd.f32 1e-05, %v6991_v5 }
0x1040   : > { %v7023_v10 = vmul.f32 %v14328_v19, %v7009_v23  ;;  %v17582_v29 = vadd.f32 %v14329_v26, %v7024_v25 }
0x1041   : > { %16026 = vrsqrt.f32 %v6999_v12 }
0x1042   : > { %v17580_v30 = vadd.f32 %v14329_v26, %v7023_v10 }
0x1044   : > { %v16017_v44 = vpop.eup %16016  ;;  %15343 = vmatprep.mubr.msk.f32.mxu0 %vm785_vm2, %v17580_v30 }
0x1045   : > { %15344 = vmatmul.mubr.msk.f32.vlgmr.msra.gmra.mxu0 %vm785_vm2, %v17582_v29  ;;  %v7012_v55 = vmul.f32 %v16017_v44, %v17529_v21 }
0x1046   : > { %v16019_v31 = vpop.eup %16018 }
0x1047   : > { %v7011_v32 = vmul.f32 %v16019_v31, %v17531_v28  ;;  %v7026_v57 = vmul.f32 %v14328_v19, %v7012_v55 }
0x1048   : > { %v16021_v48 = vpop.eup %16020 }
0x1049   : > { %v7025_v13 = vmul.f32 %v14328_v19, %v7011_v32  ;;  %v7014_v43 = vmul.f32 %v16021_v48, %v17535_v27  ;;  %v17594_v39 = vadd.f32 %v14329_v26, %v7026_v57 }
0x104a   : > { %v16023_v6 = vpop.eup %16022 }
0x104b   : > { %v17591_v9 = vadd.f32 %v14329_v26, %v7025_v13  ;;  %v7013_v24 = vmul.f32 %v16023_v6, %v17540_v33  ;;  %v7028_v53 = vmul.f32 %v14328_v19, %v7014_v43 }
0x104c   : > { %v16025_v45 = vpop.eup %16024 }
0x104d   : > { %15346 = vmatprep.mubr.msk.f32.mxu0 %vm785_vm2, %v17591_v9  ;;  %v7027_v21 = vmul.f32 %v14328_v19, %v7013_v24  ;;  %v7016_v28 = vmul.f32 %v16025_v45, %v17545_v40  ;;  %v17604_v1 = vadd.f32 %v14329_v26, %v7028_v53 }
0x104e   : > { %v16027_v18 = vpop.eup %16026  ;;  %15347 = vmatmul.mubr.msk.f32.gmra.mxu0 %vm785_vm2, %v17594_v39 }
0x104f   : > { %v17601_v27 = vadd.f32 %v14329_v26, %v7027_v21  ;;  %v7015_v0 = vmul.f32 %v16027_v18, %v17550_v2  ;;  %v7030_v33 = vmul.f32 %v14328_v19, %v7016_v28  ;;  %v14335_v2 = vld [vmem:[%s18983_s4 + $0x1] ss:$0 sm:$0xff] }
0x1051   : > { %15349 = vmatprep.mubr.msk.f32.mxu0 %vm785_vm2, %v17601_v27  ;;  %v7029_v62 = vmul.f32 %v14328_v19, %v7015_v0  ;;  %v17612_v40 = vadd.f32 %v14329_v26, %v7030_v33 }
0x1052   : > { %15350 = vmatmul.mubr.msk.f32.gmra.mxu0 %vm785_vm2, %v17604_v1 }
0x1053   : > { %v17610_v60 = vadd.f32 %v14329_v26, %v7029_v62 }
0x1055   : > { %15352 = vmatprep.mubr.msk.f32.mxu0 %vm785_vm2, %v17610_v60 }
0x1056   : > { %15353 = vmatmul.mubr.msk.f32.gmra.mxu0 %vm785_vm2, %v17612_v40 }
0x1057   : > { %15362 = vmatprep.mubr.msk.f32.mxu0 %vm16250_vm3, %v16249_v38 }
0x1105   : > { %v15345_v35 = vpop.f32.mrf.mxu0 }
0x1106   : > { %v17623_v41 = vadd.f32 %v15345_v35, %v14335_v2 }
0x1107   : > { %v7148_v61 = vpop.f32.mrf.mxu0 }
0x1108   : > { %v17625_v47 = vadd.f32 %v14335_v2, %v7148_v61  ;;  %7265 = vrot.lane.b32.xlu0 %v17623_v41, %s16251_s2 }
0x110a   : > { %7188 = vrot.lane.b32.xlu1 %v17625_v47, %s16251_s2 }
0x110e   : > { %v15348_v7 = vpop.f32.mrf.mxu0 }
0x110f   : > { %v17635_v22 = vadd.f32 %v15348_v7, %v14335_v2 }
0x1110   : > { %v7158_v59 = vpop.f32.mrf.mxu0 }
0x1111   : > { %v17631_v58 = vadd.f32 %v14335_v2, %v7158_v59 }
0x1112   : > { %v15351_v51 = vpop.f32.mrf.mxu0 }
0x1113   : > { %7342 = vrot.lane.b32.xlu1 %v17631_v58, %s16251_s2  ;;  %v17643_v11 = vadd.f32 %v15351_v51, %v14335_v2 }
0x1114   : > { %v7168_v4 = vpop.f32.mrf.mxu0 }
0x1115   : > { %v17637_v36 = vadd.f32 %v14335_v2, %v7168_v4 }
0x1116   : > { %v15354_v42 = vpop.f32.mrf.mxu0 }
0x1117   : > { %7419 = vrot.lane.b32.xlu1 %v17635_v22, %s16251_s2  ;;  %7496 = vrot.lane.b32.xlu0 %v17637_v36, %s16251_s2  ;;  %v17651_v63 = vadd.f32 %v15354_v42, %v14335_v2 }
0x1118   : > { %v7178_v46 = vpop.f32.mrf.mxu0 }
0x1119   : > { %v17645_v16 = vadd.f32 %v14335_v2, %v7178_v46 }
0x111b   : > { %7573 = vrot.lane.b32.xlu1 %v17643_v11, %s16251_s2  ;;  %7650 = vrot.lane.b32.xlu0 %v17645_v16, %s16251_s2 }
0x111f   : > { %7727 = vrot.lane.b32.xlu1 %v17651_v63, %s16251_s2  ;;  %s19033_s2 = smov 56  }
0x117a   : > { %v7266_v50 = vpop.permute.xlu0 %7265 }
0x117b   : > { %15361 = vmatpush3.xpose.msk.msra.mxu0 %vm918_vm4, %v7266_v50 }
0x117c   : > { %v7189_v34 = vpop.permute.xlu1 %7188  ;;  %15370 = vmatprep.subr.mxu0 %v16249_v38 }
0x117d   : > { %15356 = vmatpush3.xpose.msk.msra.mxu1 %vm918_vm4, %v7189_v34 }
0x117e   : > { %15363 = vmatmul.mubr.msk.f32.vlgmr.msra.gmra.mxu0 %vm918_vm4, %v17623_v41  ;;  %15365 = vmatprep.subr.mxu1 %v16249_v38 }
0x117f   : > { %15372 = vmatprep.mubr.msk.f32.mxu0 %vm16250_vm3, %v16249_v38 }
0x1180   : > { %15358 = vmatmul.mubr.msk.f32.vlgmr.msra.gmra.mxu1 %vm918_vm4, %v17625_v47 }
0x1181   : > { %15367 = vmatprep.mubr.msk.f32.mxu1 %vm16250_vm3, %v16249_v38 }
0x1185   : > { %v7343_v49 = vpop.permute.xlu1 %7342 }
0x1186   : > { %15366 = vmatpush3.xpose.msk.msra.mxu1 %vm918_vm4, %v7343_v49 }
0x1187   : > { %15375 = vmatprep.subr.mxu1 %v16249_v38 }
0x1189   : > { %15368 = vmatmul.mubr.msk.f32.vlgmr.msra.gmra.mxu1 %vm918_vm4, %v17631_v58  ;;  %v7420_v3 = vpop.permute.xlu1 %7419  ;;  %v7497_v15 = vpop.permute.xlu0 %7496 }
0x118a   : > { %15371 = vmatpush3.xpose.msk.msra.mxu0 %vm918_vm4, %v7420_v3  ;;  %15376 = vmatpush3.xpose.msk.msra.mxu1 %vm918_vm4, %v7497_v15 }
0x118b   : > { %15377 = vmatprep.mubr.msk.f32.mxu1 %vm16250_vm3, %v16249_v38  ;;  %15380 = vmatprep.subr.mxu0 %v16249_v38 }
0x118c   : > { %15385 = vmatprep.subr.mxu1 %v16249_v38 }
0x118d   : > { %v7574_v20 = vpop.permute.xlu1 %7573  ;;  %15373 = vmatmul.mubr.msk.f32.vlgmr.msra.gmra.mxu0 %vm918_vm4, %v17635_v22  ;;  %15378 = vmatmul.mubr.msk.f32.vlgmr.msra.gmra.mxu1 %vm918_vm4, %v17637_v36  ;;  %v7651_v37 = vpop.permute.xlu0 %7650 }
0x118e   : > { %15381 = vmatpush3.xpose.msk.msra.mxu0 %vm918_vm4, %v7574_v20  ;;  %15386 = vmatpush3.xpose.msk.msra.mxu1 %vm918_vm4, %v7651_v37 }
0x118f   : > { %15382 = vmatprep.mubr.msk.f32.mxu0 %vm16250_vm3, %v16249_v38  ;;  %15387 = vmatprep.mubr.msk.f32.mxu1 %vm16250_vm3, %v16249_v38 }
0x1190   : > { %15390 = vmatprep.subr.mxu0 %v16249_v38  ;;  %15395 = vmatprep.subr.mxu1 %v16249_v38 }
0x1191   : > { %v7728_v52 = vpop.permute.xlu1 %7727  ;;  %15383 = vmatmul.mubr.msk.f32.vlgmr.msra.gmra.mxu0 %vm918_vm4, %v17643_v11  ;;  %15388 = vmatmul.mubr.msk.f32.vlgmr.msra.gmra.mxu1 %vm918_vm4, %v17645_v16 }
0x1192   : > { %15391 = vmatpush3.xpose.msk.msra.mxu0 %vm918_vm4, %v7728_v52  ;;  %15392 = vmatprep.mubr.msk.f32.mxu0 %vm16250_vm3, %v16249_v38 }
0x1193   : > { %15400 = vmatprep.subr.mxu0 %v16249_v38  ;;  %15397 = vmatprep.mubr.msk.f32.mxu1 %vm16250_vm3, %v16249_v38 }
0x1195   : > { %15393 = vmatmul.mubr.msk.f32.vlgmr.msra.gmra.mxu0 %vm918_vm4, %v17651_v63 }
0x1196   : > { %15402 = vmatprep.mubr.msk.f32.mxu0 %vm16250_vm3, %v16249_v38 }
0x123e   : > { %v7337_v17 = vpop.f32.mrf.mxu0 }
0x123f   : > { %v7806_v19 = vsel %vm918_vm4, %v7337_v17, -inf }
0x1240   : > { %v17704_v54 = vpop.f32.mrf.mxu1  ;;  %7807 = vmax.xlane.f32.xlu1 %v7806_v19  ;;  %v15364_v14 = vpop.f32.mrf.mxu0 }
0x1241   : > { %v7803_v8 = vsel %vm918_vm4, %v17704_v54, -inf }
0x1242   : > { %v15359_v56 = vpop.f32.mrf.mxu1  ;;  %7804 = vmax.xlane.f32.xlu0 %v7803_v8 }
0x1249   : > { %v17708_v5 = vpop.f32.mrf.mxu1 }
0x124a   : > { %v7809_v23 = vsel %vm918_vm4, %v17708_v5, -inf }
0x124b   : > { %v15369_v25 = vpop.f32.mrf.mxu1  ;;  %7810 = vmax.xlane.f32.xlu0 %v7809_v23 }
0x124d   : > { %v7491_v12 = vpop.f32.mrf.mxu0  ;;  %v17712_v26 = vpop.f32.mrf.mxu1 }
0x124e   : > { %v7812_v10 = vsel %vm918_vm4, %v7491_v12, -inf  ;;  %v7815_v45 = vsel %vm918_vm4, %v17712_v26, -inf }
0x124f   : > { %7813 = vmax.xlane.f32.xlu0 %v7812_v10  ;;  %v15374_v44 = vpop.f32.mrf.mxu0  ;;  %v15379_v55 = vpop.f32.mrf.mxu1 }
0x1251   : > { %v7645_v31 = vpop.f32.mrf.mxu0  ;;  %v17715_v32 = vpop.f32.mrf.mxu1  ;;  %7891 = vrot.lane.b32.xlu1 %v17625_v47, %s16252_s24 }
0x1252   : > { %v7818_v48 = vsel %vm918_vm4, %v7645_v31, -inf  ;;  %v7821_v53 = vsel %vm918_vm4, %v17715_v32, -inf }
0x1253   : > { %7819 = vmax.xlane.f32.xlu0 %v7818_v48  ;;  %v15384_v57 = vpop.f32.mrf.mxu0  ;;  %v15389_v13 = vpop.f32.mrf.mxu1 }
0x1255   : > { %v7799_v43 = vpop.f32.mrf.mxu0 }
0x1256   : > { %v7824_v6 = vsel %vm918_vm4, %v7799_v43, -inf }
0x1257   : > { %7825 = vmax.xlane.f32.xlu0 %v7824_v6  ;;  %v15394_v24 = vpop.f32.mrf.mxu0 }
0x126d   : > { %7967 = vrot.lane.b32.xlu0 %v17623_v41, %s16252_s24 }
0x1271   : > { %8195 = vrot.lane.b32.xlu0 %v17637_v36, %s16252_s24 }
0x1275   : > { %8347 = vrot.lane.b32.xlu0 %v17645_v16, %s16252_s24  ;;  %7816 = vmax.xlane.f32.xlu1 %v7815_v45 }
0x1279   : > { %8509 = vrot.lane.b32.xlu0 %v17625_v47, %s16253_s25 }
0x127d   : > { %8507 = vrot.lane.b32.xlu0 %v17625_v47, %s16254_s3 }
0x1281   : > { %8665 = vrot.lane.b32.xlu0 %v17631_v58, %s16253_s25 }
0x1285   : > { %8663 = vrot.lane.b32.xlu0 %v17631_v58, %s16254_s3 }
0x1286   : > { %8043 = vrot.lane.b32.xlu1 %v17631_v58, %s16252_s24 }
0x12aa   : > { %7822 = vmax.xlane.f32.xlu1 %v7821_v53 }
0x12bb   : > { %8119 = vrot.lane.b32.xlu1 %v17635_v22, %s16252_s24 }
0x12bf   : > { %8271 = vrot.lane.b32.xlu1 %v17643_v11, %s16252_s24 }
0x12c3   : > { %8423 = vrot.lane.b32.xlu1 %v17651_v63, %s16252_s24  ;;  %s19034_s24 = smov 80  }
0x12c7   : > { %8587 = vrot.lane.b32.xlu1 %v17623_v41, %s16253_s25 }
0x12c9   : > { %v7808_v21 = vpop.xlane.xlu1 %7807 }
0x12ca   : > { %v7828_v28 = vsub.f32 %v7337_v17, %v7808_v21 }
0x12cb   : > { %8585 = vrot.lane.b32.xlu1 %v17623_v41, %s16254_s3  ;;  %v7805_v33 = vpop.xlane.xlu0 %7804 }
0x12cc   : > { %v7837_v18 = vmul.f32 1.442695, %v7828_v28  ;;  %v7827_v42 = vsub.f32 %v17704_v54, %v7805_v33 }
0x12cd   : > { %v7892_v0 = vpop.permute.xlu1 %7891 }
0x12ce   : > { %16028 = vpow2.f32 %v7837_v18  ;;  %15396 = vmatpush3.msra.mxu1 %v7892_v0  ;;  %v7835_v49 = vmul.f32 1.442695, %v7827_v42 }
0x12cf   : > { %8743 = vrot.lane.b32.xlu1 %v17635_v22, %s16253_s25  ;;  %15405 = vmatprep.subr.mxu1 %v16249_v38 }
0x12d3   : > { %8741 = vrot.lane.b32.xlu1 %v17635_v22, %s16254_s3 }
0x12d4   : > { %v7811_v62 = vpop.xlane.xlu0 %7810 }
0x12d5   : > { %v7829_v3 = vsub.f32 %v17708_v5, %v7811_v62 }
0x12d7   : > { %v7839_v37 = vmul.f32 1.442695, %v7829_v3 }
0x12d8   : > { %v7814_v2 = vpop.xlane.xlu0 %7813 }
0x12d9   : > { %v7830_v35 = vsub.f32 %v7491_v12, %v7814_v2 }
0x12db   : > { %v17756_v61 = vpop.eup %16028  ;;  %v7841_v7 = vmul.f32 1.442695, %v7830_v35 }
0x12dc   : > { %v7820_v59 = vpop.xlane.xlu0 %7819  ;;  %v7854_v51 = vsel %vm918_vm4, %v17756_v61, 0.0 }
0x12dd   : > { %16030 = vpow2.f32 %v7841_v7  ;;  %v7832_v4 = vsub.f32 %v7645_v31, %v7820_v59  ;;  %7855 = vadd.xlane.f32.xlu0 %v7854_v51 }
0x12df   : > { %v7845_v46 = vmul.f32 1.442695, %v7832_v4 }
0x12e0   : > { %v7826_v50 = vpop.xlane.xlu0 %7825 }
0x12e1   : > { %16032 = vpow2.f32 %v7845_v46  ;;  %v7834_v34 = vsub.f32 %v7799_v43, %v7826_v50 }
0x12e3   : > { %v7849_v15 = vmul.f32 1.442695, %v7834_v34 }
0x12e4   : > { %v7968_v20 = vpop.permute.xlu0 %7967 }
0x12e5   : > { %16034 = vpow2.f32 %v7849_v15  ;;  %15401 = vmatpush3.msra.mxu0 %v7968_v20 }
0x12e6   : > { %16036 = vpow2.f32 %v7835_v49  ;;  %15410 = vmatprep.subr.mxu0 %v16249_v38 }
0x12e7   : > { %16038 = vpow2.f32 %v7839_v37 }
0x12e8   : > { %v17799_v43 = vpop.permute.xlu0 %8195 }
0x12ea   : > { %v17763_v52 = vpop.eup %16030 }
0x12eb   : > { %v7860_v17 = vsel %vm918_vm4, %v17763_v52, 0.0 }
0x12ec   : > { %7861 = vadd.xlane.f32.xlu0 %v7860_v17  ;;  %v17805_v45 = vpop.permute.xlu0 %8347 }
0x12ee   : > { %v17767_v19 = vpop.eup %16032 }
0x12ef   : > { %v7866_v54 = vsel %vm918_vm4, %v17767_v19, 0.0 }
0x12f0   : > { %7867 = vadd.xlane.f32.xlu0 %v7866_v54  ;;  %v17807_v53 = vpop.permute.xlu0 %8509 }
0x12f2   : > { %v17771_v14 = vpop.eup %16034 }
0x12f3   : > { %v17773_v8 = vpop.eup %16036  ;;  %v7872_v56 = vsel %vm918_vm4, %v17771_v14, 0.0 }
0x12f4   : > { %7873 = vadd.xlane.f32.xlu0 %v7872_v56  ;;  %v7851_v5 = vsel %vm918_vm4, %v17773_v8, 0.0  ;;  %v17779_v23 = vpop.eup %16038  ;;  %v17809_v21 = vpop.permute.xlu0 %8507 }
0x12f5   : > { %v7857_v25 = vsel %vm918_vm4, %v17779_v23, 0.0 }
0x12f7   : > { %7852 = vadd.xlane.f32.xlu1 %v7851_v5 }
0x12fb   : > { %7858 = vadd.xlane.f32.xlu1 %v7857_v25 }
0x12fe   : > { %v7817_v12 = vpop.xlane.xlu1 %7816 }
0x12ff   : > { %v7831_v10 = vsub.f32 %v17712_v26, %v7817_v12 }
0x1301   : > { %v7843_v44 = vmul.f32 1.442695, %v7831_v10 }
0x1302   : > { %v17796_v26 = vpop.permute.xlu1 %8043 }
0x1303   : > { %16040 = vpow2.f32 %v7843_v44 }
0x130a   : > { %8821 = vrot.lane.b32.xlu0 %v17637_v36, %s16253_s25 }
0x130e   : > { %8819 = vrot.lane.b32.xlu0 %v17637_v36, %s16254_s3 }
0x1310   : > { %v17788_v55 = vpop.eup %16040 }
0x1311   : > { %v7863_v31 = vsel %vm918_vm4, %v17788_v55, 0.0 }
0x1312   : > { %8977 = vrot.lane.b32.xlu0 %v17645_v16, %s16253_s25  ;;  %7864 = vadd.xlane.f32.xlu1 %v7863_v31 }
0x1316   : > { %8975 = vrot.lane.b32.xlu0 %v17645_v16, %s16254_s3 }
0x1333   : > { %v7823_v48 = vpop.xlane.xlu1 %7822 }
0x1334   : > { %v7833_v57 = vsub.f32 %v17715_v32, %v7823_v48  ;;  %v17813_v32 = vpop.permute.xlu0 %8665 }
0x1336   : > { %v7847_v13 = vmul.f32 1.442695, %v7833_v57 }
0x1337   : > { %v8120_v28 = vpop.permute.xlu1 %8119 }
0x1338   : > { %16042 = vpow2.f32 %v7847_v13  ;;  %v17819_v0 = vpop.permute.xlu0 %8663 }
0x133b   : > { %v8272_v18 = vpop.permute.xlu1 %8271 }
0x133f   : > { %v8424_v33 = vpop.permute.xlu1 %8423 }
0x1343   : > { %v8588_v2 = vpop.permute.xlu1 %8587 }
0x1345   : > { %v17801_v6 = vpop.eup %16042 }
0x1346   : > { %v7869_v24 = vsel %vm918_vm4, %v17801_v6, 0.0 }
0x1347   : > { %7870 = vadd.xlane.f32.xlu1 %v7869_v24  ;;  %v8586_v35 = vpop.permute.xlu1 %8585 }
0x134b   : > { %v8744_v4 = vpop.permute.xlu1 %8743 }
0x134f   : > { %v8742_v46 = vpop.permute.xlu1 %8741 }
0x1358   : > { %8899 = vrot.lane.b32.xlu1 %v17643_v11, %s16253_s25 }
0x135c   : > { %8897 = vrot.lane.b32.xlu1 %v17643_v11, %s16254_s3 }
0x1360   : > { %9055 = vrot.lane.b32.xlu1 %v17651_v63, %s16253_s25  ;;  %s19035_s25 = smov 112  }
0x1364   : > { %9053 = vrot.lane.b32.xlu1 %v17651_v63, %s16254_s3  ;;  %s19036_s3 = smov 48  }
0x1366   : > { %v7856_v62 = vpop.xlane.xlu0 %7855 }
0x1367   : > { %16044 = vrcp.f32 %v7856_v62 }
0x1374   : > { %v16045_v7 = vpop.eup %16044 }
0x1375   : > { %v7862_v59 = vpop.xlane.xlu0 %7861  ;;  %v7878_v51 = vmul.f32 %v16045_v7, %v17756_v61 }
0x1376   : > { %16046 = vrcp.f32 %v7862_v59 }
0x1377   : > { %15403 = vmatmul.mubr.msk.f32.vlgmr.msra.gmra.mxu0 %vm918_vm4, %v7878_v51 }
0x1378   : > { %15411 = vmatpush3.msra.mxu0 %v8120_v28  ;;  %15412 = vmatprep.mubr.msk.f32.mxu0 %vm16250_vm3, %v16249_v38 }
0x1379   : > { %v7868_v42 = vpop.xlane.xlu0 %7867  ;;  %15420 = vmatprep.subr.mxu0 %v16249_v38 }
0x137a   : > { %16048 = vrcp.f32 %v7868_v42 }
0x137d   : > { %v7874_v50 = vpop.xlane.xlu0 %7873 }
0x137e   : > { %16050 = vrcp.f32 %v7874_v50 }
0x1380   : > { %v7853_v34 = vpop.xlane.xlu1 %7852 }
0x1381   : > { %16052 = vrcp.f32 %v7853_v34 }
0x1383   : > { %v16047_v49 = vpop.eup %16046 }
0x1384   : > { %v7859_v3 = vpop.xlane.xlu1 %7858  ;;  %v7882_v61 = vmul.f32 %v16047_v49, %v17763_v52 }
0x1385   : > { %16054 = vrcp.f32 %v7859_v3 }
0x1386   : > { %15413 = vmatmul.mubr.msk.f32.vlgmr.msra.gmra.mxu0 %vm918_vm4, %v7882_v61 }
0x1387   : > { %v16049_v15 = vpop.eup %16048  ;;  %15421 = vmatpush3.msra.mxu0 %v8272_v18  ;;  %15422 = vmatprep.mubr.msk.f32.mxu0 %vm16250_vm3, %v16249_v38 }
0x1388   : > { %15430 = vmatprep.subr.mxu0 %v16249_v38  ;;  %v7886_v20 = vmul.f32 %v16049_v15, %v17767_v19 }
0x138a   : > { %15423 = vmatmul.mubr.msk.f32.vlgmr.msra.gmra.mxu0 %vm918_vm4, %v7886_v20 }
0x138b   : > { %v16051_v37 = vpop.eup %16050  ;;  %15431 = vmatpush3.msra.mxu0 %v8424_v33  ;;  %15432 = vmatprep.mubr.msk.f32.mxu0 %vm16250_vm3, %v16249_v38 }
0x138c   : > { %15440 = vmatprep.subr.mxu0 %v16249_v38  ;;  %v7890_v52 = vmul.f32 %v16051_v37, %v17771_v14 }
0x138e   : > { %v16053_v17 = vpop.eup %16052  ;;  %15433 = vmatmul.mubr.msk.f32.vlgmr.msra.gmra.mxu0 %vm918_vm4, %v7890_v52 }
0x138f   : > { %15441 = vmatpush3.xpose.msk.msra.mxu0 %vm918_vm4, %v8588_v2  ;;  %15442 = vmatprep.mubr.msk.f32.mxu0 %vm16250_vm3, %v16249_v38  ;;  %v7876_v19 = vmul.f32 %v16053_v17, %v17773_v8 }
0x1390   : > { %15450 = vmatprep.subr.mxu0 %v16249_v38 }
0x1391   : > { %15398 = vmatmul.mubr.msk.f32.vlgmr.msra.gmra.mxu1 %vm918_vm4, %v7876_v19 }
0x1392   : > { %v16055_v54 = vpop.eup %16054  ;;  %15443 = vmatmul.mubr.msk.f32.vlgmr.msra.gmra.mxu0 %vm918_vm4, %v8586_v35  ;;  %15406 = vmatpush3.msra.mxu1 %v17796_v26 }
0x1393   : > { %15451 = vmatpush3.xpose.msk.msra.mxu0 %vm918_vm4, %v8744_v4  ;;  %15452 = vmatprep.mubr.msk.f32.mxu0 %vm16250_vm3, %v16249_v38  ;;  %v7880_v14 = vmul.f32 %v16055_v54, %v17779_v23 }
0x1394   : > { %15407 = vmatprep.mubr.msk.f32.mxu1 %vm16250_vm3, %v16249_v38  ;;  %15415 = vmatprep.subr.mxu1 %v16249_v38 }
0x1395   : > { %15408 = vmatmul.mubr.msk.f32.vlgmr.msra.gmra.mxu1 %vm918_vm4, %v7880_v14  ;;  %15460 = vmatprep.subr.mxu0 %v16249_v38 }
0x1396   : > { %15453 = vmatmul.mubr.msk.f32.vlgmr.msra.gmra.mxu0 %vm918_vm4, %v8742_v46  ;;  %15416 = vmatpush3.msra.mxu1 %v17799_v43 }
0x1397   : > { %15417 = vmatprep.mubr.msk.f32.mxu1 %vm16250_vm3, %v16249_v38  ;;  %15425 = vmatprep.subr.mxu1 %v16249_v38 }
0x1398   : > { %15462 = vmatprep.mubr.msk.f32.mxu0 %vm16250_vm3, %v16249_v38 }
0x139b   : > { %v7865_v8 = vpop.xlane.xlu1 %7864 }
0x139c   : > { %16056 = vrcp.f32 %v7865_v8 }
0x13a9   : > { %v16057_v56 = vpop.eup %16056 }
0x13aa   : > { %v7884_v5 = vmul.f32 %v16057_v56, %v17788_v55  ;;  %v8822_v55 = vpop.permute.xlu0 %8821 }
0x13ac   : > { %15418 = vmatmul.mubr.msk.f32.vlgmr.msra.gmra.mxu1 %vm918_vm4, %v7884_v5 }
0x13ad   : > { %15426 = vmatpush3.msra.mxu1 %v17805_v45  ;;  %15427 = vmatprep.mubr.msk.f32.mxu1 %vm16250_vm3, %v16249_v38 }
0x13ae   : > { %15435 = vmatprep.subr.mxu1 %v16249_v38  ;;  %v8820_v48 = vpop.permute.xlu0 %8819 }
0x13b2   : > { %v8978_v57 = vpop.permute.xlu0 %8977 }
0x13b6   : > { %v8976_v13 = vpop.permute.xlu0 %8975 }
0x13d0   : > { %v7871_v23 = vpop.xlane.xlu1 %7870 }
0x13d1   : > { %16058 = vrcp.f32 %v7871_v23 }
0x13d4   : > { %v8900_v25 = vpop.permute.xlu1 %8899 }
0x13d5   : > { %15461 = vmatpush3.xpose.msk.msra.mxu0 %vm918_vm4, %v8900_v25 }
0x13d6   : > { %15470 = vmatprep.subr.mxu0 %v16249_v38 }
0x13d8   : > { %v8898_v12 = vpop.permute.xlu1 %8897 }
0x13d9   : > { %15463 = vmatmul.mubr.msk.f32.vlgmr.msra.gmra.mxu0 %vm918_vm4, %v8898_v12 }
0x13da   : > { %15472 = vmatprep.mubr.msk.f32.mxu0 %vm16250_vm3, %v16249_v38 }
0x13dc   : > { %v9056_v10 = vpop.permute.xlu1 %9055 }
0x13dd   : > { %15471 = vmatpush3.xpose.msk.msra.mxu0 %vm918_vm4, %v9056_v10 }
0x13de   : > { %v16059_v44 = vpop.eup %16058  ;;  %15480 = vmatprep.subr.mxu0 %v16249_v38 }
0x13df   : > { %v7888_v31 = vmul.f32 %v16059_v44, %v17801_v6 }
0x13e0   : > { %v9054_v26 = vpop.permute.xlu1 %9053 }
0x13e1   : > { %15428 = vmatmul.mubr.msk.f32.vlgmr.msra.gmra.mxu1 %vm918_vm4, %v7888_v31  ;;  %15473 = vmatmul.mubr.msk.f32.vlgmr.msra.gmra.mxu0 %vm918_vm4, %v9054_v26 }
0x13e2   : > { %15436 = vmatpush3.xpose.msk.msra.mxu1 %vm918_vm4, %v17807_v53  ;;  %15437 = vmatprep.mubr.msk.f32.mxu1 %vm16250_vm3, %v16249_v38 }
0x13e3   : > { %15445 = vmatprep.subr.mxu1 %v16249_v38  ;;  %15482 = vmatprep.mubr.msk.f32.mxu0 %vm16250_vm3, %v16249_v38 }
0x13e5   : > { %15438 = vmatmul.mubr.msk.f32.vlgmr.msra.gmra.mxu1 %vm918_vm4, %v17809_v21 }
0x13e6   : > { %15446 = vmatpush3.xpose.msk.msra.mxu1 %vm918_vm4, %v17813_v32  ;;  %15447 = vmatprep.mubr.msk.f32.mxu1 %vm16250_vm3, %v16249_v38 }
0x13e7   : > { %15455 = vmatprep.subr.mxu1 %v16249_v38 }
0x13e9   : > { %15448 = vmatmul.mubr.msk.f32.vlgmr.msra.gmra.mxu1 %vm918_vm4, %v17819_v0 }
0x13ea   : > { %15456 = vmatpush3.xpose.msk.msra.mxu1 %vm918_vm4, %v8822_v55  ;;  %15457 = vmatprep.mubr.msk.f32.mxu1 %vm16250_vm3, %v16249_v38 }
0x13eb   : > { %15465 = vmatprep.subr.mxu1 %v16249_v38 }
0x13ed   : > { %15458 = vmatmul.mubr.msk.f32.vlgmr.msra.gmra.mxu1 %vm918_vm4, %v8820_v48 }
0x13ee   : > { %15466 = vmatpush3.xpose.msk.msra.mxu1 %vm918_vm4, %v8978_v57  ;;  %15467 = vmatprep.mubr.msk.f32.mxu1 %vm16250_vm3, %v16249_v38 }
0x13ef   : > { %15475 = vmatprep.subr.mxu1 %v16249_v38 }
0x13f1   : > { %15468 = vmatmul.mubr.msk.f32.vlgmr.msra.gmra.mxu1 %vm918_vm4, %v8976_v13 }
0x13f2   : > { %15477 = vmatprep.mubr.msk.f32.mxu1 %vm16250_vm3, %v16249_v38 }
0x1437   : > { %v8039_v43 = vpop.f32.mrf.mxu0 }
0x1438   : > { %8500 = vst.msk [vmem:[#allocation2 + $0x8] sm:$0xff] %vm918_vm4, %v8039_v43 }
0x1439   : > { %v15404_v6 = vpop.f32.mrf.mxu0 }
0x1446   : > { %v8191_v24 = vpop.f32.mrf.mxu0 }
0x1447   : > { %8502 = vst.msk [vmem:[#allocation2 + $0x18] sm:$0xff] %vm918_vm4, %v8191_v24 }
0x1448   : > { %v15414_v45 = vpop.f32.mrf.mxu0 }
0x144a   : > { %v8343_v53 = vpop.f32.mrf.mxu0 }
0x144b   : > { %8504 = vst.msk [vmem:[#allocation2 + $0x28] sm:$0xff] %vm918_vm4, %v8343_v53 }
0x144c   : > { %v15424_v21 = vpop.f32.mrf.mxu0 }
0x144e   : > { %v8495_v28 = vpop.f32.mrf.mxu0 }
0x144f   : > { %8506 = vst.msk [vmem:[#allocation2 + $0x38] sm:$0xff] %vm918_vm4, %v8495_v28 }
0x1450   : > { %v15434_v32 = vpop.f32.mrf.mxu0 }
0x1451   : > { %v7963_v18 = vpop.f32.mrf.mxu1 }
0x1452   : > { %v8659_v0 = vpop.f32.mrf.mxu0  ;;  %8499 = vst.msk [vmem:[#allocation2] sm:$0xff] %vm918_vm4, %v7963_v18 }
0x1453   : > { %v9134_v33 = vsel %vm918_vm4, %v8659_v0, -inf  ;;  %v15399_v62 = vpop.f32.mrf.mxu1 }
0x1454   : > { %9135 = vmax.xlane.f32.xlu1 %v9134_v33  ;;  %v15444_v2 = vpop.f32.mrf.mxu0 }
0x1455   : > { %v8115_v35 = vpop.f32.mrf.mxu1 }
0x1456   : > { %v17914_v7 = vpop.f32.mrf.mxu0  ;;  %8501 = vst.msk [vmem:[#allocation2 + $0x10] sm:$0xff] %vm918_vm4, %v8115_v35 }
0x1457   : > { %v15409_v59 = vpop.f32.mrf.mxu1  ;;  %v9140_v14 = vsel %vm918_vm4, %v17914_v7, -inf }
0x1458   : > { %v15454_v51 = vpop.f32.mrf.mxu0 }
0x1465   : > { %9219 = vrot.lane.b32.xlu1 %v17625_v47, %s19033_s2 }
0x146c   : > { %v8267_v4 = vpop.f32.mrf.mxu1 }
0x146d   : > { %8503 = vst.msk [vmem:[#allocation2 + $0x20] sm:$0xff] %vm918_vm4, %v8267_v4 }
0x146e   : > { %v15419_v42 = vpop.f32.mrf.mxu1 }
0x1499   : > { %v17920_v46 = vpop.f32.mrf.mxu0 }
0x149a   : > { %v9146_v23 = vsel %vm918_vm4, %v17920_v46, -inf }
0x149b   : > { %v15464_v50 = vpop.f32.mrf.mxu0 }
0x14a1   : > { %v8419_v34 = vpop.f32.mrf.mxu1  ;;  %v17922_v49 = vpop.f32.mrf.mxu0 }
0x14a2   : > { %8505 = vst.msk [vmem:[#allocation2 + $0x30] sm:$0xff] %vm918_vm4, %v8419_v34  ;;  %v9152_v12 = vsel %vm918_vm4, %v17922_v49, -inf }
0x14a3   : > { %v15429_v3 = vpop.f32.mrf.mxu1  ;;  %v15474_v61 = vpop.f32.mrf.mxu0 }
0x14a5   : > { %v8581_v15 = vpop.f32.mrf.mxu1 }
0x14a6   : > { %v9131_v20 = vsel %vm918_vm4, %v8581_v15, -inf }
0x14a7   : > { %9132 = vmax.xlane.f32.xlu0 %v9131_v20  ;;  %v15439_v37 = vpop.f32.mrf.mxu1 }
0x14a9   : > { %v8737_v52 = vpop.f32.mrf.mxu1 }
0x14aa   : > { %v9137_v17 = vsel %vm918_vm4, %v8737_v52, -inf }
0x14ab   : > { %9138 = vmax.xlane.f32.xlu0 %v9137_v17  ;;  %v15449_v19 = vpop.f32.mrf.mxu1 }
0x14ad   : > { %v8893_v54 = vpop.f32.mrf.mxu1 }
0x14ae   : > { %v9143_v8 = vsel %vm918_vm4, %v8893_v54, -inf }
0x14af   : > { %9141 = vmax.xlane.f32.xlu0 %v9140_v14  ;;  %9144 = vmax.xlane.f32.xlu1 %v9143_v8  ;;  %v15459_v56 = vpop.f32.mrf.mxu1 }
0x14b1   : > { %v17930_v5 = vpop.f32.mrf.mxu1 }
0x14b2   : > { %v9149_v55 = vsel %vm918_vm4, %v17930_v5, -inf }
0x14b3   : > { %9147 = vmax.xlane.f32.xlu0 %v9146_v23  ;;  %v15469_v25 = vpop.f32.mrf.mxu1 }
0x14b7   : > { %9153 = vmax.xlane.f32.xlu0 %v9152_v12 }
0x14c0   : > { %9371 = vrot.lane.b32.xlu1 %v17631_v58, %s19033_s2 }
0x14cd   : > { %9295 = vrot.lane.b32.xlu0 %v17623_v41, %s19033_s2 }
0x14d1   : > { %9523 = vrot.lane.b32.xlu0 %v17637_v36, %s19033_s2 }
0x14d5   : > { %9675 = vrot.lane.b32.xlu0 %v17645_v16, %s19033_s2 }
0x14d9   : > { %9869 = vrot.lane.b32.xlu0 %v17625_v47, %s19034_s24 }
0x14dd   : > { %v9136_v10 = vpop.xlane.xlu1 %9135  ;;  %9867 = vrot.lane.b32.xlu0 %v17625_v47, %s19035_s25 }
0x14de   : > { %v9156_v31 = vsub.f32 %v8659_v0, %v9136_v10 }
0x14e0   : > { %v9165_v26 = vmul.f32 1.442695, %v9156_v31 }
0x14e1   : > { %v9220_v44 = vpop.permute.xlu1 %9219  ;;  %10025 = vrot.lane.b32.xlu0 %v17631_v58, %s19034_s24 }
0x14e2   : > { %15476 = vmatpush3.msra.mxu1 %v9220_v44  ;;  %16060 = vpow2.f32 %v9165_v26 }
0x14e3   : > { %15485 = vmatprep.subr.mxu1 %v16249_v38 }
0x14e4   : > { %9150 = vmax.xlane.f32.xlu1 %v9149_v55 }
0x14e5   : > { %10023 = vrot.lane.b32.xlu0 %v17631_v58, %s19035_s25 }
0x14ef   : > { %v17961_v48 = vpop.eup %16060 }
0x14f0   : > { %v9182_v57 = vsel %vm918_vm4, %v17961_v48, 0.0 }
0x14f5   : > { %9447 = vrot.lane.b32.xlu1 %v17635_v22, %s19033_s2 }
0x14f9   : > { %9599 = vrot.lane.b32.xlu1 %v17643_v11, %s19033_s2 }
0x14fd   : > { %9751 = vrot.lane.b32.xlu1 %v17651_v63, %s19033_s2 }
0x1501   : > { %9947 = vrot.lane.b32.xlu1 %v17623_v41, %s19034_s24 }
0x1504   : > { %9183 = vadd.xlane.f32.xlu0 %v9182_v57 }
0x1505   : > { %9945 = vrot.lane.b32.xlu1 %v17623_v41, %s19035_s25 }
0x1509   : > { %10103 = vrot.lane.b32.xlu1 %v17635_v22, %s19034_s24 }
0x150d   : > { %10101 = vrot.lane.b32.xlu1 %v17635_v22, %s19035_s25 }
0x1530   : > { %v9133_v13 = vpop.xlane.xlu0 %9132 }
0x1531   : > { %v9155_v43 = vsub.f32 %v8581_v15, %v9133_v13 }
0x1533   : > { %v9163_v6 = vmul.f32 1.442695, %v9155_v43 }
0x1534   : > { %v9139_v24 = vpop.xlane.xlu0 %9138 }
0x1535   : > { %16062 = vpow2.f32 %v9163_v6  ;;  %v9157_v45 = vsub.f32 %v8737_v52, %v9139_v24 }
0x1537   : > { %v9167_v53 = vmul.f32 1.442695, %v9157_v45 }
0x1538   : > { %v9145_v21 = vpop.xlane.xlu1 %9144  ;;  %v9142_v28 = vpop.xlane.xlu0 %9141 }
0x1539   : > { %16064 = vpow2.f32 %v9167_v53  ;;  %v9159_v32 = vsub.f32 %v8893_v54, %v9145_v21  ;;  %v9158_v18 = vsub.f32 %v17914_v7, %v9142_v28 }
0x153b   : > { %v9171_v0 = vmul.f32 1.442695, %v9159_v32  ;;  %v9169_v33 = vmul.f32 1.442695, %v9158_v18 }
0x153c   : > { %v9148_v62 = vpop.xlane.xlu0 %9147  ;;  %v9372_v19 = vpop.permute.xlu1 %9371 }
0x153d   : > { %16066 = vpow2.f32 %v9171_v0  ;;  %v9160_v2 = vsub.f32 %v17920_v46, %v9148_v62 }
0x153e   : > { %16068 = vpow2.f32 %v9169_v33 }
0x153f   : > { %v9173_v35 = vmul.f32 1.442695, %v9160_v2 }
0x1540   : > { %v9154_v59 = vpop.xlane.xlu0 %9153 }
0x1541   : > { %16070 = vpow2.f32 %v9173_v35  ;;  %v9162_v51 = vsub.f32 %v17922_v49, %v9154_v59 }
0x1542   : > { %v17976_v4 = vpop.eup %16062 }
0x1543   : > { %v9177_v42 = vmul.f32 1.442695, %v9162_v51  ;;  %v9179_v50 = vsel %vm918_vm4, %v17976_v4, 0.0 }
0x1544   : > { %9180 = vadd.xlane.f32.xlu1 %v9179_v50  ;;  %v9296_v7 = vpop.permute.xlu0 %9295 }
0x1545   : > { %16072 = vpow2.f32 %v9177_v42  ;;  %15481 = vmatpush3.msra.mxu0 %v9296_v7 }
0x1546   : > { %v17980_v34 = vpop.eup %16064  ;;  %15490 = vmatprep.subr.mxu0 %v16249_v38 }
0x1547   : > { %v9185_v46 = vsel %vm918_vm4, %v17980_v34, 0.0 }
0x1548   : > { %9186 = vadd.xlane.f32.xlu1 %v9185_v46  ;;  %v9524_v54 = vpop.permute.xlu0 %9523 }
0x154a   : > { %v17985_v3 = vpop.eup %16066 }
0x154b   : > { %v17987_v49 = vpop.eup %16068  ;;  %v9191_v61 = vsel %vm918_vm4, %v17985_v3, 0.0 }
0x154c   : > { %9192 = vadd.xlane.f32.xlu1 %v9191_v61  ;;  %v9188_v15 = vsel %vm918_vm4, %v17987_v49, 0.0  ;;  %v9676_v23 = vpop.permute.xlu0 %9675 }
0x154d   : > { %9189 = vadd.xlane.f32.xlu0 %v9188_v15 }
0x154e   : > { %v17993_v20 = vpop.eup %16070 }
0x154f   : > { %v9194_v37 = vsel %vm918_vm4, %v17993_v20, 0.0 }
0x1550   : > { %v18008_v25 = vpop.permute.xlu0 %9869 }
0x1551   : > { %9195 = vadd.xlane.f32.xlu0 %v9194_v37 }
0x1552   : > { %v17997_v52 = vpop.eup %16072 }
0x1553   : > { %v9200_v17 = vsel %vm918_vm4, %v17997_v52, 0.0 }
0x1554   : > { %v18012_v12 = vpop.permute.xlu0 %9867 }
0x1555   : > { %9201 = vadd.xlane.f32.xlu0 %v9200_v17 }
0x1558   : > { %v18018_v44 = vpop.permute.xlu0 %10025 }
0x155c   : > { %v18020_v55 = vpop.permute.xlu0 %10023 }
0x156b   : > { %10181 = vrot.lane.b32.xlu0 %v17637_v36, %s19034_s24 }
0x156d   : > { %v9151_v14 = vpop.xlane.xlu1 %9150 }
0x156e   : > { %v9161_v8 = vsub.f32 %v17930_v5, %v9151_v14 }
0x156f   : > { %10179 = vrot.lane.b32.xlu0 %v17637_v36, %s19035_s25 }
0x1570   : > { %v9175_v56 = vmul.f32 1.442695, %v9161_v8 }
0x1571   : > { %v9448_v13 = vpop.permute.xlu1 %9447 }
0x1572   : > { %16074 = vpow2.f32 %v9175_v56 }
0x1573   : > { %10337 = vrot.lane.b32.xlu0 %v17645_v16, %s19034_s24 }
0x1575   : > { %v9600_v43 = vpop.permute.xlu1 %9599 }
0x1577   : > { %10335 = vrot.lane.b32.xlu0 %v17645_v16, %s19035_s25 }
0x1579   : > { %v9752_v6 = vpop.permute.xlu1 %9751 }
0x157d   : > { %v9948_v24 = vpop.permute.xlu1 %9947 }
0x157f   : > { %v18014_v10 = vpop.eup %16074 }
0x1580   : > { %v9197_v5 = vsel %vm918_vm4, %v18014_v10, 0.0 }
0x1581   : > { %9198 = vadd.xlane.f32.xlu1 %v9197_v5  ;;  %v9946_v45 = vpop.permute.xlu1 %9945 }
0x1585   : > { %v10104_v53 = vpop.permute.xlu1 %10103 }
0x1589   : > { %v10102_v21 = vpop.permute.xlu1 %10101 }
0x158d   : > { %v9184_v31 = vpop.xlane.xlu0 %9183 }
0x158e   : > { %16076 = vrcp.f32 %v9184_v31 }
0x1592   : > { %10259 = vrot.lane.b32.xlu1 %v17643_v11, %s19034_s24 }
0x1596   : > { %10257 = vrot.lane.b32.xlu1 %v17643_v11, %s19035_s25 }
0x159a   : > { %10415 = vrot.lane.b32.xlu1 %v17651_v63, %s19034_s24  ;;  %s615_s24 = scalar_lea.vmem %s18998_s19, %s14183_s22 }
0x159b   : > { %v16077_v26 = vpop.eup %16076 }
0x159c   : > { %v9206_v57 = vmul.f32 %v16077_v26, %v17961_v48 }
0x159e   : > { %10413 = vrot.lane.b32.xlu1 %v17651_v63, %s19035_s25  ;;  %15483 = vmatmul.mubr.msk.f32.vlgmr.msra.gmra.mxu0 %vm918_vm4, %v9206_v57 }
0x159f   : > { %15491 = vmatpush3.msra.mxu0 %v9448_v13  ;;  %15492 = vmatprep.mubr.msk.f32.mxu0 %vm16250_vm3, %v16249_v38 }
0x15a0   : > { %15500 = vmatprep.subr.mxu0 %v16249_v38 }
0x15cd   : > { %v9181_v28 = vpop.xlane.xlu1 %9180 }
0x15ce   : > { %16078 = vrcp.f32 %v9181_v28 }
0x15d1   : > { %v9187_v48 = vpop.xlane.xlu1 %9186 }
0x15d2   : > { %16080 = vrcp.f32 %v9187_v48 }
0x15d5   : > { %v9193_v32 = vpop.xlane.xlu1 %9192 }
0x15d6   : > { %16082 = vrcp.f32 %v9193_v32  ;;  %v9190_v18 = vpop.xlane.xlu0 %9189 }
0x15d7   : > { %16084 = vrcp.f32 %v9190_v18 }
0x15da   : > { %v9196_v0 = vpop.xlane.xlu0 %9195 }
0x15db   : > { %v16079_v33 = vpop.eup %16078  ;;  %16086 = vrcp.f32 %v9196_v0 }
0x15dc   : > { %v9204_v62 = vmul.f32 %v16079_v33, %v17976_v4 }
0x15de   : > { %v9202_v2 = vpop.xlane.xlu0 %9201  ;;  %15478 = vmatmul.mubr.msk.f32.vlgmr.msra.gmra.mxu1 %vm918_vm4, %v9204_v62 }
0x15df   : > { %v16081_v35 = vpop.eup %16080  ;;  %16088 = vrcp.f32 %v9202_v2  ;;  %15486 = vmatpush3.msra.mxu1 %v9372_v19  ;;  %15487 = vmatprep.mubr.msk.f32.mxu1 %vm16250_vm3, %v16249_v38 }
0x15e0   : > { %v9208_v59 = vmul.f32 %v16081_v35, %v17980_v34  ;;  %15495 = vmatprep.subr.mxu1 %v16249_v38 }
0x15e2   : > { %15488 = vmatmul.mubr.msk.f32.vlgmr.msra.gmra.mxu1 %vm918_vm4, %v9208_v59 }
0x15e3   : > { %v16083_v51 = vpop.eup %16082  ;;  %15496 = vmatpush3.msra.mxu1 %v9524_v54  ;;  %15497 = vmatprep.mubr.msk.f32.mxu1 %vm16250_vm3, %v16249_v38 }
0x15e4   : > { %v16085_v4 = vpop.eup %16084  ;;  %v9212_v42 = vmul.f32 %v16083_v51, %v17985_v3  ;;  %15505 = vmatprep.subr.mxu1 %v16249_v38 }
0x15e5   : > { %v9210_v50 = vmul.f32 %v16085_v4, %v17987_v49 }
0x15e6   : > { %15498 = vmatmul.mubr.msk.f32.vlgmr.msra.gmra.mxu1 %vm918_vm4, %v9212_v42 }
0x15e7   : > { %15493 = vmatmul.mubr.msk.f32.vlgmr.msra.gmra.mxu0 %vm918_vm4, %v9210_v50  ;;  %15506 = vmatpush3.msra.mxu1 %v9676_v23 }
0x15e8   : > { %v16087_v7 = vpop.eup %16086  ;;  %15501 = vmatpush3.msra.mxu0 %v9600_v43  ;;  %15502 = vmatprep.mubr.msk.f32.mxu0 %vm16250_vm3, %v16249_v38 }
0x15e9   : > { %v9214_v34 = vmul.f32 %v16087_v7, %v17993_v20  ;;  %15510 = vmatprep.subr.mxu0 %v16249_v38  ;;  %15507 = vmatprep.mubr.msk.f32.mxu1 %vm16250_vm3, %v16249_v38 }
0x15ea   : > { %15515 = vmatprep.subr.mxu1 %v16249_v38 }
0x15eb   : > { %15503 = vmatmul.mubr.msk.f32.vlgmr.msra.gmra.mxu0 %vm918_vm4, %v9214_v34 }
0x15ec   : > { %v16089_v46 = vpop.eup %16088  ;;  %15511 = vmatpush3.msra.mxu0 %v9752_v6  ;;  %15512 = vmatprep.mubr.msk.f32.mxu0 %vm16250_vm3, %v16249_v38 }
0x15ed   : > { %v9218_v3 = vmul.f32 %v16089_v46, %v17997_v52  ;;  %15520 = vmatprep.subr.mxu0 %v16249_v38  ;;  %v10182_v52 = vpop.permute.xlu0 %10181 }
0x15ef   : > { %15513 = vmatmul.mubr.msk.f32.vlgmr.msra.gmra.mxu0 %vm918_vm4, %v9218_v3 }
0x15f0   : > { %15521 = vmatpush3.xpose.msk.msra.mxu0 %vm918_vm4, %v9948_v24  ;;  %15522 = vmatprep.mubr.msk.f32.mxu0 %vm16250_vm3, %v16249_v38 }
0x15f1   : > { %15530 = vmatprep.subr.mxu0 %v16249_v38  ;;  %v10180_v54 = vpop.permute.xlu0 %10179 }
0x15f3   : > { %15523 = vmatmul.mubr.msk.f32.vlgmr.msra.gmra.mxu0 %vm918_vm4, %v9946_v45 }
0x15f4   : > { %15531 = vmatpush3.xpose.msk.msra.mxu0 %vm918_vm4, %v10104_v53  ;;  %15532 = vmatprep.mubr.msk.f32.mxu0 %vm16250_vm3, %v16249_v38 }
0x15f5   : > { %15540 = vmatprep.subr.mxu0 %v16249_v38  ;;  %v10338_v14 = vpop.permute.xlu0 %10337 }
0x15f7   : > { %15533 = vmatmul.mubr.msk.f32.vlgmr.msra.gmra.mxu0 %vm918_vm4, %v10102_v21 }
0x15f8   : > { %15542 = vmatprep.mubr.msk.f32.mxu0 %vm16250_vm3, %v16249_v38 }
0x15f9   : > { %v10336_v8 = vpop.permute.xlu0 %10335 }
0x160a   : > { %v9199_v49 = vpop.xlane.xlu1 %9198 }
0x160b   : > { %16090 = vrcp.f32 %v9199_v49 }
0x160e   : > { %v10260_v61 = vpop.permute.xlu1 %10259 }
0x160f   : > { %15541 = vmatpush3.xpose.msk.msra.mxu0 %vm918_vm4, %v10260_v61 }
0x1610   : > { %15550 = vmatprep.subr.mxu0 %v16249_v38 }
0x1612   : > { %v10258_v15 = vpop.permute.xlu1 %10257 }
0x1613   : > { %15543 = vmatmul.mubr.msk.f32.vlgmr.msra.gmra.mxu0 %vm918_vm4, %v10258_v15 }
0x1614   : > { %15552 = vmatprep.mubr.msk.f32.mxu0 %vm16250_vm3, %v16249_v38 }
0x1616   : > { %v10416_v20 = vpop.permute.xlu1 %10415 }
0x1617   : > { %15551 = vmatpush3.xpose.msk.msra.mxu0 %vm918_vm4, %v10416_v20 }
0x1618   : > { %v16091_v37 = vpop.eup %16090  ;;  %15560 = vmatprep.subr.mxu0 %v16249_v38 }
0x1619   : > { %v9216_v17 = vmul.f32 %v16091_v37, %v18014_v10 }
0x161a   : > { %v10414_v19 = vpop.permute.xlu1 %10413 }
0x161b   : > { %15508 = vmatmul.mubr.msk.f32.vlgmr.msra.gmra.mxu1 %vm918_vm4, %v9216_v17  ;;  %15553 = vmatmul.mubr.msk.f32.vlgmr.msra.gmra.mxu0 %vm918_vm4, %v10414_v19 }
0x161c   : > { %15516 = vmatpush3.xpose.msk.msra.mxu1 %vm918_vm4, %v18008_v25  ;;  %15517 = vmatprep.mubr.msk.f32.mxu1 %vm16250_vm3, %v16249_v38 }
0x161d   : > { %15525 = vmatprep.subr.mxu1 %v16249_v38  ;;  %15562 = vmatprep.mubr.msk.f32.mxu0 %vm16250_vm3, %v16249_v38 }
0x161f   : > { %15518 = vmatmul.mubr.msk.f32.vlgmr.msra.gmra.mxu1 %vm918_vm4, %v18012_v12 }
0x1620   : > { %15526 = vmatpush3.xpose.msk.msra.mxu1 %vm918_vm4, %v18018_v44  ;;  %15527 = vmatprep.mubr.msk.f32.mxu1 %vm16250_vm3, %v16249_v38 }
0x1621   : > { %15535 = vmatprep.subr.mxu1 %v16249_v38 }
0x1623   : > { %15528 = vmatmul.mubr.msk.f32.vlgmr.msra.gmra.mxu1 %vm918_vm4, %v18020_v55 }
0x1624   : > { %15536 = vmatpush3.xpose.msk.msra.mxu1 %vm918_vm4, %v10182_v52  ;;  %15537 = vmatprep.mubr.msk.f32.mxu1 %vm16250_vm3, %v16249_v38 }
0x1625   : > { %15545 = vmatprep.subr.mxu1 %v16249_v38 }
0x1627   : > { %15538 = vmatmul.mubr.msk.f32.vlgmr.msra.gmra.mxu1 %vm918_vm4, %v10180_v54 }
0x1628   : > { %15546 = vmatpush3.xpose.msk.msra.mxu1 %vm918_vm4, %v10338_v14  ;;  %15547 = vmatprep.mubr.msk.f32.mxu1 %vm16250_vm3, %v16249_v38 }
0x1629   : > { %15555 = vmatprep.subr.mxu1 %v16249_v38 }
0x162b   : > { %15548 = vmatmul.mubr.msk.f32.vlgmr.msra.gmra.mxu1 %vm918_vm4, %v10336_v8 }
0x162c   : > { %15557 = vmatprep.mubr.msk.f32.mxu1 %vm16250_vm3, %v16249_v38 }
0x165e   : > { %v18112_v56 = vpop.f32.mrf.mxu0 }
0x1660   : > { %v15484_v23 = vpop.f32.mrf.mxu0 }
0x169e   : > { %v18114_v25 = vpop.f32.mrf.mxu1 }
0x16a0   : > { %v15479_v12 = vpop.f32.mrf.mxu1 }
0x16a2   : > { %v18116_v10 = vpop.f32.mrf.mxu1 }
0x16a4   : > { %v15489_v5 = vpop.f32.mrf.mxu1 }
0x16a6   : > { %v18118_v44 = vpop.f32.mrf.mxu1 }
0x16a7   : > { %v18120_v55 = vpop.f32.mrf.mxu0 }
0x16a8   : > { %v15499_v31 = vpop.f32.mrf.mxu1 }
0x16a9   : > { %v15494_v26 = vpop.f32.mrf.mxu0 }
0x16ab   : > { %v18122_v57 = vpop.f32.mrf.mxu0 }
0x16ad   : > { %v15504_v13 = vpop.f32.mrf.mxu0 }
0x16af   : > { %v18124_v43 = vpop.f32.mrf.mxu0 }
0x16b1   : > { %v15514_v6 = vpop.f32.mrf.mxu0 }
0x16b3   : > { %v10019_v24 = vpop.f32.mrf.mxu0 }
0x16b4   : > { %v10494_v45 = vsel %vm918_vm4, %v10019_v24, -inf }
0x16b5   : > { %10495 = vmax.xlane.f32.xlu1 %v10494_v45  ;;  %v15524_v53 = vpop.f32.mrf.mxu0 }
0x16b7   : > { %v10175_v21 = vpop.f32.mrf.mxu0 }
0x16b8   : > { %v10500_v7 = vsel %vm918_vm4, %v10175_v21, -inf }
0x16b9   : > { %v15534_v28 = vpop.f32.mrf.mxu0 }
0x16d3   : > { %v18127_v48 = vpop.f32.mrf.mxu0 }
0x16d4   : > { %v10506_v49 = vsel %vm918_vm4, %v18127_v48, -inf }
0x16d5   : > { %v15544_v32 = vpop.f32.mrf.mxu0 }
0x16db   : > { %v18129_v18 = vpop.f32.mrf.mxu1  ;;  %v18131_v0 = vpop.f32.mrf.mxu0 }
0x16dc   : > { %v10512_v20 = vsel %vm918_vm4, %v18131_v0, -inf }
0x16dd   : > { %v15509_v33 = vpop.f32.mrf.mxu1  ;;  %v15554_v62 = vpop.f32.mrf.mxu0 }
0x16df   : > { %v9941_v2 = vpop.f32.mrf.mxu1 }
0x16e0   : > { %v10491_v35 = vsel %vm918_vm4, %v9941_v2, -inf }
0x16e1   : > { %10492 = vmax.xlane.f32.xlu0 %v10491_v35  ;;  %v15519_v59 = vpop.f32.mrf.mxu1 }
0x16e3   : > { %v10097_v51 = vpop.f32.mrf.mxu1 }
0x16e4   : > { %v10497_v4 = vsel %vm918_vm4, %v10097_v51, -inf }
0x16e5   : > { %10498 = vmax.xlane.f32.xlu0 %v10497_v4  ;;  %v15529_v42 = vpop.f32.mrf.mxu1 }
0x16e7   : > { %v10253_v50 = vpop.f32.mrf.mxu1 }
0x16e8   : > { %v10503_v34 = vsel %vm918_vm4, %v10253_v50, -inf }
0x16e9   : > { %10501 = vmax.xlane.f32.xlu0 %v10500_v7  ;;  %10504 = vmax.xlane.f32.xlu1 %v10503_v34  ;;  %v15539_v46 = vpop.f32.mrf.mxu1 }
0x16eb   : > { %v10409_v3 = vpop.f32.mrf.mxu1 }
0x16ec   : > { %v10509_v61 = vsel %vm918_vm4, %v10409_v3, -inf }
0x16ed   : > { %10507 = vmax.xlane.f32.xlu0 %v10506_v49  ;;  %10510 = vmax.xlane.f32.xlu1 %v10509_v61  ;;  %v15549_v15 = vpop.f32.mrf.mxu1 }
0x16f1   : > { %10513 = vmax.xlane.f32.xlu0 %v10512_v20 }
0x16fe   : > { %10579 = vrot.lane.b32.xlu1 %v17625_v47, %s19036_s3 }
0x1702   : > { %10731 = vrot.lane.b32.xlu1 %v17631_v58, %s19036_s3 }
0x1706   : > { %10807 = vrot.lane.b32.xlu1 %v17635_v22, %s19036_s3 }
0x1707   : > { %10655 = vrot.lane.b32.xlu0 %v17623_v41, %s19036_s3 }
0x170a   : > { %10959 = vrot.lane.b32.xlu1 %v17643_v11, %s19036_s3 }
0x170b   : > { %10883 = vrot.lane.b32.xlu0 %v17637_v36, %s19036_s3 }
0x170e   : > { %11111 = vrot.lane.b32.xlu1 %v17651_v63, %s19036_s3 }
0x170f   : > { %11035 = vrot.lane.b32.xlu0 %v17645_v16, %s19036_s3 }
0x1712   : > { %11307 = vrot.lane.b32.xlu1 %v17623_v41, %s19037_s26 }
0x1713   : > { %11229 = vrot.lane.b32.xlu0 %v17625_v47, %s19037_s26 }
0x173e   : > { %v10496_v37 = vpop.xlane.xlu1 %10495 }
0x173f   : > { %v10516_v52 = vsub.f32 %v10019_v24, %v10496_v37 }
0x1741   : > { %v10525_v17 = vmul.f32 1.442695, %v10516_v52 }
0x1743   : > { %16092 = vpow2.f32 %v10525_v17 }
0x1750   : > { %v18162_v19 = vpop.eup %16092 }
0x1751   : > { %v10542_v54 = vsel %vm918_vm4, %v18162_v19, 0.0 }
0x1752   : > { %10543 = vadd.xlane.f32.xlu0 %v10542_v54 }
0x176a   : > { %v10493_v14 = vpop.xlane.xlu0 %10492 }
0x176b   : > { %v10515_v8 = vsub.f32 %v9941_v2, %v10493_v14 }
0x176d   : > { %v10523_v23 = vmul.f32 1.442695, %v10515_v8 }
0x176e   : > { %v10499_v12 = vpop.xlane.xlu0 %10498 }
0x176f   : > { %16094 = vpow2.f32 %v10523_v23  ;;  %v10517_v5 = vsub.f32 %v10097_v51, %v10499_v12 }
0x1771   : > { %v10527_v31 = vmul.f32 1.442695, %v10517_v5 }
0x1772   : > { %v10505_v26 = vpop.xlane.xlu1 %10504  ;;  %v10502_v13 = vpop.xlane.xlu0 %10501 }
0x1773   : > { %16096 = vpow2.f32 %v10527_v31  ;;  %v10519_v6 = vsub.f32 %v10253_v50, %v10505_v26  ;;  %v10518_v24 = vsub.f32 %v10175_v21, %v10502_v13 }
0x1775   : > { %v10531_v45 = vmul.f32 1.442695, %v10519_v6  ;;  %v10529_v53 = vmul.f32 1.442695, %v10518_v24 }
0x1776   : > { %v10511_v28 = vpop.xlane.xlu1 %10510  ;;  %v10508_v32 = vpop.xlane.xlu0 %10507 }
0x1777   : > { %16098 = vpow2.f32 %v10531_v45  ;;  %v10521_v33 = vsub.f32 %v10409_v3, %v10511_v28  ;;  %v10520_v62 = vsub.f32 %v18127_v48, %v10508_v32 }
0x1778   : > { %16100 = vpow2.f32 %v10529_v53 }
0x1779   : > { %v10535_v2 = vmul.f32 1.442695, %v10521_v33  ;;  %v10533_v35 = vmul.f32 1.442695, %v10520_v62 }
0x177a   : > { %v10580_v59 = vpop.permute.xlu1 %10579  ;;  %v10514_v4 = vpop.xlane.xlu0 %10513 }
0x177b   : > { %16102 = vpow2.f32 %v10535_v2  ;;  %v10522_v51 = vsub.f32 %v18131_v0, %v10514_v4  ;;  %15556 = vmatpush3.msra.mxu1 %v10580_v59 }
0x177c   : > { %v18168_v42 = vpop.eup %16094  ;;  %16104 = vpow2.f32 %v10533_v35  ;;  %15565 = vmatprep.subr.mxu1 %v16249_v38 }
0x177d   : > { %v10537_v21 = vmul.f32 1.442695, %v10522_v51  ;;  %v10539_v50 = vsel %vm918_vm4, %v18168_v42, 0.0 }
0x177e   : > { %10540 = vadd.xlane.f32.xlu1 %v10539_v50  ;;  %v10656_v48 = vpop.permute.xlu0 %10655  ;;  %v10732_v12 = vpop.permute.xlu1 %10731 }
0x177f   : > { %16106 = vpow2.f32 %v10537_v21  ;;  %15561 = vmatpush3.msra.mxu0 %v10656_v48 }
0x1780   : > { %v18173_v7 = vpop.eup %16096  ;;  %15570 = vmatprep.subr.mxu0 %v16249_v38 }
0x1781   : > { %v10545_v0 = vsel %vm918_vm4, %v18173_v7, 0.0 }
0x1782   : > { %10546 = vadd.xlane.f32.xlu1 %v10545_v0  ;;  %v10884_v54 = vpop.permute.xlu0 %10883  ;;  %v10808_v26 = vpop.permute.xlu1 %10807 }
0x1784   : > { %v18178_v34 = vpop.eup %16098 }
0x1785   : > { %v18180_v46 = vpop.eup %16100  ;;  %v10551_v3 = vsel %vm918_vm4, %v18178_v34, 0.0 }
0x1786   : > { %10552 = vadd.xlane.f32.xlu1 %v10551_v3  ;;  %v10548_v49 = vsel %vm918_vm4, %v18180_v46, 0.0  ;;  %v11036_v14 = vpop.permute.xlu0 %11035 }
0x1787   : > { %10549 = vadd.xlane.f32.xlu0 %v10548_v49 }
0x1788   : > { %v18186_v61 = vpop.eup %16102 }
0x1789   : > { %v18188_v15 = vpop.eup %16104  ;;  %v10557_v20 = vsel %vm918_vm4, %v18186_v61, 0.0 }
0x178a   : > { %10558 = vadd.xlane.f32.xlu1 %v10557_v20  ;;  %v10554_v37 = vsel %vm918_vm4, %v18188_v15, 0.0  ;;  %v18228_v8 = vpop.permute.xlu0 %11229 }
0x178b   : > { %10555 = vadd.xlane.f32.xlu0 %v10554_v37 }
0x178c   : > { %v18194_v52 = vpop.eup %16106 }
0x178d   : > { %v10560_v17 = vsel %vm918_vm4, %v18194_v52, 0.0 }
0x178f   : > { %10561 = vadd.xlane.f32.xlu0 %v10560_v17 }
0x179b   : > { %11305 = vrot.lane.b32.xlu1 %v17623_v41, %s19038_s27 }
0x179f   : > { %11463 = vrot.lane.b32.xlu1 %v17635_v22, %s19037_s26 }
0x17a3   : > { %11461 = vrot.lane.b32.xlu1 %v17635_v22, %s19038_s27 }
0x17a5   : > { %11227 = vrot.lane.b32.xlu0 %v17625_v47, %s19038_s27 }
0x17a7   : > { %11619 = vrot.lane.b32.xlu1 %v17643_v11, %s19037_s26 }
0x17a9   : > { %11385 = vrot.lane.b32.xlu0 %v17631_v58, %s19037_s26 }
0x17ab   : > { %11617 = vrot.lane.b32.xlu1 %v17643_v11, %s19038_s27 }
0x17ad   : > { %11383 = vrot.lane.b32.xlu0 %v17631_v58, %s19038_s27 }
0x17af   : > { %11775 = vrot.lane.b32.xlu1 %v17651_v63, %s19037_s26 }
0x17b1   : > { %11541 = vrot.lane.b32.xlu0 %v17637_v36, %s19037_s26 }
0x17b3   : > { %11773 = vrot.lane.b32.xlu1 %v17651_v63, %s19038_s27 }
0x17b5   : > { %11539 = vrot.lane.b32.xlu0 %v17637_v36, %s19038_s27 }
0x17b7   : > { %11939 = vrot.lane.b32.xlu1 %v17625_v47, %s19039_s21  ;;  %v10960_v47 = vpop.permute.xlu1 %10959 }
0x17b9   : > { %11697 = vrot.lane.b32.xlu0 %v17645_v16, %s19037_s26 }
0x17bb   : > { %v11112_v13 = vpop.permute.xlu1 %11111 }
0x17bd   : > { %11695 = vrot.lane.b32.xlu0 %v17645_v16, %s19038_s27  ;;  %s19042_s27 = smov 24  }
0x17bf   : > { %v18235_v6 = vpop.permute.xlu1 %11307 }
0x17db   : > { %v10544_v23 = vpop.xlane.xlu0 %10543 }
0x17dc   : > { %16108 = vrcp.f32 %v10544_v23 }
0x17e9   : > { %v16109_v5 = vpop.eup %16108 }
0x17ea   : > { %v10566_v31 = vmul.f32 %v16109_v5, %v18162_v19 }
0x17ec   : > { %15563 = vmatmul.mubr.msk.f32.vlgmr.msra.gmra.mxu0 %vm918_vm4, %v10566_v31 }
0x17ed   : > { %15571 = vmatpush3.msra.mxu0 %v10808_v26  ;;  %15572 = vmatprep.mubr.msk.f32.mxu0 %vm16250_vm3, %v16249_v38 }
0x17ee   : > { %15580 = vmatprep.subr.mxu0 %v16249_v38 }
0x1807   : > { %v10541_v24 = vpop.xlane.xlu1 %10540 }
0x1808   : > { %16110 = vrcp.f32 %v10541_v24 }
0x180b   : > { %v10547_v45 = vpop.xlane.xlu1 %10546 }
0x180c   : > { %16112 = vrcp.f32 %v10547_v45 }
0x180f   : > { %v10553_v53 = vpop.xlane.xlu1 %10552 }
0x1810   : > { %16114 = vrcp.f32 %v10553_v53  ;;  %v10550_v19 = vpop.xlane.xlu0 %10549 }
0x1811   : > { %16116 = vrcp.f32 %v10550_v19 }
0x1813   : > { %v10559_v28 = vpop.xlane.xlu1 %10558 }
0x1814   : > { %16118 = vrcp.f32 %v10559_v28  ;;  %v10556_v32 = vpop.xlane.xlu0 %10555 }
0x1815   : > { %v16111_v33 = vpop.eup %16110  ;;  %16120 = vrcp.f32 %v10556_v32 }
0x1816   : > { %v10564_v62 = vmul.f32 %v16111_v33, %v18168_v42 }
0x1817   : > { %v11306_v2 = vpop.permute.xlu1 %11305 }
0x1818   : > { %v10562_v35 = vpop.xlane.xlu0 %10561  ;;  %15558 = vmatmul.mubr.msk.f32.vlgmr.msra.gmra.mxu1 %vm918_vm4, %v10564_v62 }
0x1819   : > { %v16113_v59 = vpop.eup %16112  ;;  %16122 = vrcp.f32 %v10562_v35  ;;  %15566 = vmatpush3.msra.mxu1 %v10732_v12  ;;  %15567 = vmatprep.mubr.msk.f32.mxu1 %vm16250_vm3, %v16249_v38 }
0x181a   : > { %v10568_v4 = vmul.f32 %v16113_v59, %v18173_v7  ;;  %15575 = vmatprep.subr.mxu1 %v16249_v38 }
0x181b   : > { %v11464_v51 = vpop.permute.xlu1 %11463 }
0x181c   : > { %v11228_v21 = vpop.permute.xlu0 %11227  ;;  %15568 = vmatmul.mubr.msk.f32.vlgmr.msra.gmra.mxu1 %vm918_vm4, %v10568_v4 }
0x181d   : > { %v16115_v50 = vpop.eup %16114  ;;  %15576 = vmatpush3.msra.mxu1 %v10884_v54  ;;  %15577 = vmatprep.mubr.msk.f32.mxu1 %vm16250_vm3, %v16249_v38 }
0x181e   : > { %v16117_v42 = vpop.eup %16116  ;;  %v10572_v48 = vmul.f32 %v16115_v50, %v18178_v34  ;;  %15585 = vmatprep.subr.mxu1 %v16249_v38 }
0x181f   : > { %v10570_v0 = vmul.f32 %v16117_v42, %v18180_v46  ;;  %v11462_v3 = vpop.permute.xlu1 %11461 }
0x1820   : > { %v11386_v7 = vpop.permute.xlu0 %11385  ;;  %15578 = vmatmul.mubr.msk.f32.vlgmr.msra.gmra.mxu1 %vm918_vm4, %v10572_v48 }
0x1821   : > { %v16119_v49 = vpop.eup %16118  ;;  %15573 = vmatmul.mubr.msk.f32.vlgmr.msra.gmra.mxu0 %vm918_vm4, %v10570_v0  ;;  %15586 = vmatpush3.msra.mxu1 %v11036_v14 }
0x1822   : > { %v16121_v20 = vpop.eup %16120  ;;  %v10576_v37 = vmul.f32 %v16119_v49, %v18186_v61  ;;  %15581 = vmatpush3.msra.mxu0 %v10960_v47  ;;  %15582 = vmatprep.mubr.msk.f32.mxu0 %vm16250_vm3, %v16249_v38 }
0x1823   : > { %v10574_v34 = vmul.f32 %v16121_v20, %v18188_v15  ;;  %v11620_v17 = vpop.permute.xlu1 %11619  ;;  %15587 = vmatprep.mubr.msk.f32.mxu1 %vm16250_vm3, %v16249_v38  ;;  %15590 = vmatprep.subr.mxu0 %v16249_v38 }
0x1824   : > { %15595 = vmatprep.subr.mxu1 %v16249_v38  ;;  %v11384_v46 = vpop.permute.xlu0 %11383  ;;  %15588 = vmatmul.mubr.msk.f32.vlgmr.msra.gmra.mxu1 %vm918_vm4, %v10576_v37 }
0x1825   : > { %15583 = vmatmul.mubr.msk.f32.vlgmr.msra.gmra.mxu0 %vm918_vm4, %v10574_v34  ;;  %15596 = vmatpush3.xpose.msk.msra.mxu1 %vm918_vm4, %v18228_v8 }
0x1826   : > { %v16123_v61 = vpop.eup %16122  ;;  %15591 = vmatpush3.msra.mxu0 %v11112_v13  ;;  %15592 = vmatprep.mubr.msk.f32.mxu0 %vm16250_vm3, %v16249_v38 }
0x1827   : > { %v10578_v15 = vmul.f32 %v16123_v61, %v18194_v52  ;;  %v11618_v54 = vpop.permute.xlu1 %11617  ;;  %15597 = vmatprep.mubr.msk.f32.mxu1 %vm16250_vm3, %v16249_v38  ;;  %15600 = vmatprep.subr.mxu0 %v16249_v38 }
0x1828   : > { %15605 = vmatprep.subr.mxu1 %v16249_v38  ;;  %v11542_v14 = vpop.permute.xlu0 %11541  ;;  %15598 = vmatmul.mubr.msk.f32.vlgmr.msra.gmra.mxu1 %vm918_vm4, %v11228_v21 }
0x1829   : > { %15593 = vmatmul.mubr.msk.f32.vlgmr.msra.gmra.mxu0 %vm918_vm4, %v10578_v15  ;;  %15606 = vmatpush3.xpose.msk.msra.mxu1 %vm918_vm4, %v11386_v7 }
0x182a   : > { %15601 = vmatpush3.xpose.msk.msra.mxu0 %vm918_vm4, %v18235_v6  ;;  %15602 = vmatprep.mubr.msk.f32.mxu0 %vm16250_vm3, %v16249_v38 }
0x182b   : > { %v11776_v52 = vpop.permute.xlu1 %11775  ;;  %15607 = vmatprep.mubr.msk.f32.mxu1 %vm16250_vm3, %v16249_v38  ;;  %15610 = vmatprep.subr.mxu0 %v16249_v38 }
0x182c   : > { %15615 = vmatprep.subr.mxu1 %v16249_v38  ;;  %v11540_v8 = vpop.permute.xlu0 %11539  ;;  %15608 = vmatmul.mubr.msk.f32.vlgmr.msra.gmra.mxu1 %vm918_vm4, %v11384_v46 }
0x182d   : > { %15603 = vmatmul.mubr.msk.f32.vlgmr.msra.gmra.mxu0 %vm918_vm4, %v11306_v2  ;;  %15616 = vmatpush3.xpose.msk.msra.mxu1 %vm918_vm4, %v11542_v14 }
0x182e   : > { %15611 = vmatpush3.xpose.msk.msra.mxu0 %vm918_vm4, %v11464_v51  ;;  %15612 = vmatprep.mubr.msk.f32.mxu0 %vm16250_vm3, %v16249_v38 }
0x182f   : > { %v11774_v23 = vpop.permute.xlu1 %11773  ;;  %15617 = vmatprep.mubr.msk.f32.mxu1 %vm16250_vm3, %v16249_v38  ;;  %15620 = vmatprep.subr.mxu0 %v16249_v38 }
0x1830   : > { %15625 = vmatprep.subr.mxu1 %v16249_v38  ;;  %v11698_v12 = vpop.permute.xlu0 %11697  ;;  %15618 = vmatmul.mubr.msk.f32.vlgmr.msra.gmra.mxu1 %vm918_vm4, %v11540_v8 }
0x1831   : > { %15613 = vmatmul.mubr.msk.f32.vlgmr.msra.gmra.mxu0 %vm918_vm4, %v11462_v3  ;;  %15626 = vmatpush3.xpose.msk.msra.mxu1 %vm918_vm4, %v11698_v12 }
0x1832   : > { %15621 = vmatpush3.xpose.msk.msra.mxu0 %vm918_vm4, %v11620_v17  ;;  %15622 = vmatprep.mubr.msk.f32.mxu0 %vm16250_vm3, %v16249_v38 }
0x1833   : > { %v11940_v5 = vpop.permute.xlu1 %11939  ;;  %15627 = vmatprep.mubr.msk.f32.mxu1 %vm16250_vm3, %v16249_v38  ;;  %15630 = vmatprep.subr.mxu0 %v16249_v38 }
0x1834   : > { %15635 = vmatprep.subr.mxu1 %v16249_v38  ;;  %v11696_v31 = vpop.permute.xlu0 %11695 }
0x1835   : > { %15623 = vmatmul.mubr.msk.f32.vlgmr.msra.gmra.mxu0 %vm918_vm4, %v11618_v54  ;;  %15628 = vmatmul.mubr.msk.f32.vlgmr.msra.gmra.mxu1 %vm918_vm4, %v11696_v31 }
0x1836   : > { %15631 = vmatpush3.xpose.msk.msra.mxu0 %vm918_vm4, %v11776_v52  ;;  %15636 = vmatpush3.msra.mxu1 %v11940_v5 }
0x1837   : > { %15632 = vmatprep.mubr.msk.f32.mxu0 %vm16250_vm3, %v16249_v38  ;;  %15640 = vmatprep.subr.mxu0 %v16249_v38 }
0x1838   : > { %15637 = vmatprep.mubr.msk.f32.mxu1 %vm16250_vm3, %v16249_v38  ;;  %15645 = vmatprep.subr.mxu1 %v16249_v38 }
0x1839   : > { %15633 = vmatmul.mubr.msk.f32.vlgmr.msra.gmra.mxu0 %vm918_vm4, %v11774_v23 }
0x183a   : > { %15642 = vmatprep.mubr.msk.f32.mxu0 %vm16250_vm3, %v16249_v38 }
0x18ac   : > { %v18313_v26 = vpop.f32.mrf.mxu0 }
0x18ae   : > { %v15564_v47 = vpop.f32.mrf.mxu0 }
0x18d8   : > { %v18315_v13 = vpop.f32.mrf.mxu1 }
0x18da   : > { %v15559_v6 = vpop.f32.mrf.mxu1 }
0x18dc   : > { %v18317_v24 = vpop.f32.mrf.mxu1 }
0x18de   : > { %v15569_v45 = vpop.f32.mrf.mxu1 }
0x18e0   : > { %v18319_v53 = vpop.f32.mrf.mxu1 }
0x18e1   : > { %v18321_v19 = vpop.f32.mrf.mxu0 }
0x18e2   : > { %v15579_v28 = vpop.f32.mrf.mxu1 }
0x18e3   : > { %v15574_v32 = vpop.f32.mrf.mxu0 }
0x18e4   : > { %v18323_v33 = vpop.f32.mrf.mxu1 }
0x18e5   : > { %v18325_v62 = vpop.f32.mrf.mxu0 }
0x18e6   : > { %v15589_v2 = vpop.f32.mrf.mxu1 }
0x18e7   : > { %v15584_v35 = vpop.f32.mrf.mxu0 }
0x18e8   : > { %v11301_v59 = vpop.f32.mrf.mxu1 }
0x18e9   : > { %v18327_v4 = vpop.f32.mrf.mxu0  ;;  %v11851_v51 = vsel %vm918_vm4, %v11301_v59, -inf }
0x18ea   : > { %11852 = vmax.xlane.f32.xlu0 %v11851_v51  ;;  %v15599_v21 = vpop.f32.mrf.mxu1 }
0x18eb   : > { %v15594_v50 = vpop.f32.mrf.mxu0 }
0x18ec   : > { %v18330_v42 = vpop.f32.mrf.mxu1 }
0x18ed   : > { %v11379_v48 = vpop.f32.mrf.mxu0  ;;  %v11857_v54 = vsel %vm918_vm4, %v18330_v42, -inf }
0x18ee   : > { %v11854_v0 = vsel %vm918_vm4, %v11379_v48, -inf  ;;  %v15609_v3 = vpop.f32.mrf.mxu1 }
0x18ef   : > { %11855 = vmax.xlane.f32.xlu1 %v11854_v0  ;;  %v15604_v7 = vpop.f32.mrf.mxu0 }
0x18f0   : > { %v11613_v49 = vpop.f32.mrf.mxu1 }
0x18f1   : > { %v11535_v20 = vpop.f32.mrf.mxu0  ;;  %v11863_v37 = vsel %vm918_vm4, %v11613_v49, -inf }
0x18f2   : > { %v11860_v34 = vsel %vm918_vm4, %v11535_v20, -inf  ;;  %v15619_v17 = vpop.f32.mrf.mxu1 }
0x18f3   : > { %v15614_v46 = vpop.f32.mrf.mxu0  ;;  %11861 = vmax.xlane.f32.xlu0 %v11860_v34  ;;  %11864 = vmax.xlane.f32.xlu1 %v11863_v37 }
0x18f5   : > { %v11691_v61 = vpop.f32.mrf.mxu0  ;;  %v11769_v15 = vpop.f32.mrf.mxu1 }
0x18f6   : > { %v11869_v14 = vsel %vm918_vm4, %v11769_v15, -inf  ;;  %v11866_v12 = vsel %vm918_vm4, %v11691_v61, -inf }
0x18f7   : > { %v15624_v52 = vpop.f32.mrf.mxu0  ;;  %11858 = vmax.xlane.f32.xlu0 %v11857_v54  ;;  %11870 = vmax.xlane.f32.xlu1 %v11869_v14  ;;  %v15629_v8 = vpop.f32.mrf.mxu1 }
0x18f9   : > { %v11847_v23 = vpop.f32.mrf.mxu0 }
0x18fa   : > { %v11872_v31 = vsel %vm918_vm4, %v11847_v23, -inf }
0x18fb   : > { %v15634_v5 = vpop.f32.mrf.mxu0  ;;  %11867 = vmax.xlane.f32.xlu0 %v11866_v12 }
0x18ff   : > { %11873 = vmax.xlane.f32.xlu0 %v11872_v31 }
0x1908   : > { %12091 = vrot.lane.b32.xlu1 %v17631_v58, %s19039_s21 }
0x1915   : > { %12015 = vrot.lane.b32.xlu0 %v17623_v41, %s19039_s21 }
0x1973   : > { %v11853_v47 = vpop.xlane.xlu0 %11852 }
0x1974   : > { %v11875_v6 = vsub.f32 %v11301_v59, %v11853_v47 }
0x1976   : > { %v11883_v45 = vmul.f32 1.442695, %v11875_v6 }
0x1978   : > { %16124 = vpow2.f32 %v11883_v45  ;;  %v11856_v28 = vpop.xlane.xlu1 %11855 }
0x1979   : > { %v11876_v32 = vsub.f32 %v11379_v48, %v11856_v28 }
0x197b   : > { %v11885_v2 = vmul.f32 1.442695, %v11876_v32 }
0x197c   : > { %v11862_v35 = vpop.xlane.xlu0 %11861  ;;  %v11865_v34 = vpop.xlane.xlu1 %11864 }
0x197d   : > { %16126 = vpow2.f32 %v11885_v2  ;;  %v11878_v51 = vsub.f32 %v11535_v20, %v11862_v35  ;;  %v11879_v46 = vsub.f32 %v11613_v49, %v11865_v34 }
0x197f   : > { %v11889_v21 = vmul.f32 1.442695, %v11878_v51  ;;  %v11891_v8 = vmul.f32 1.442695, %v11879_v46 }
0x1980   : > { %v11859_v50 = vpop.xlane.xlu0 %11858  ;;  %v11871_v14 = vpop.xlane.xlu1 %11870 }
0x1981   : > { %16128 = vpow2.f32 %v11889_v21  ;;  %v11877_v17 = vsub.f32 %v18330_v42, %v11859_v50  ;;  %v11881_v12 = vsub.f32 %v11769_v15, %v11871_v14 }
0x1983   : > { %v11887_v54 = vmul.f32 1.442695, %v11877_v17 }
0x1984   : > { %v11868_v0 = vpop.xlane.xlu0 %11867 }
0x1985   : > { %v18344_v3 = vpop.eup %16124  ;;  %v11880_v52 = vsub.f32 %v11691_v61, %v11868_v0  ;;  %16130 = vpow2.f32 %v11887_v54 }
0x1986   : > { %v11899_v58 = vsel %vm918_vm4, %v18344_v3, 0.0  ;;  %16132 = vpow2.f32 %v11891_v8 }
0x1987   : > { %11900 = vadd.xlane.f32.xlu1 %v11899_v58  ;;  %v11893_v5 = vmul.f32 1.442695, %v11880_v52 }
0x1988   : > { %v11874_v41 = vpop.xlane.xlu0 %11873 }
0x1989   : > { %v11882_v31 = vsub.f32 %v11847_v23, %v11874_v41  ;;  %16134 = vpow2.f32 %v11893_v5 }
0x198a   : > { %v18348_v59 = vpop.eup %16126 }
0x198b   : > { %v11902_v48 = vsel %vm918_vm4, %v18348_v59, 0.0  ;;  %v11897_v47 = vmul.f32 1.442695, %v11882_v31 }
0x198c   : > { %11903 = vadd.xlane.f32.xlu0 %v11902_v48  ;;  %v12016_v7 = vpop.permute.xlu0 %12015 }
0x198d   : > { %15641 = vmatpush3.msra.mxu0 %v12016_v7 }
0x198e   : > { %15650 = vmatprep.subr.mxu0 %v16249_v38  ;;  %v18353_v20 = vpop.eup %16128 }
0x198f   : > { %v11908_v37 = vsel %vm918_vm4, %v18353_v20, 0.0 }
0x1990   : > { %11909 = vadd.xlane.f32.xlu0 %v11908_v37 }
0x1998   : > { %12243 = vrot.lane.b32.xlu1 %v17637_v36, %s19039_s21  ;;  %v11895_v36 = vmul.f32 1.442695, %v11881_v12 }
0x199a   : > { %16136 = vpow2.f32 %v11895_v36 }
0x199b   : > { %16138 = vpow2.f32 %v11897_v47 }
0x199c   : > { %12319 = vrot.lane.b32.xlu1 %v17643_v11, %s19039_s21  ;;  %v18364_v11 = vpop.eup %16130 }
0x199d   : > { %v18368_v42 = vpop.eup %16132 }
0x199e   : > { %v18370_v49 = vpop.eup %16134  ;;  %v11911_v61 = vsel %vm918_vm4, %v18368_v42, 0.0 }
0x199f   : > { %v11914_v23 = vsel %vm918_vm4, %v18370_v49, 0.0 }
0x19a6   : > { %12167 = vrot.lane.b32.xlu0 %v17635_v22, %s19039_s21  ;;  %v11905_v22 = vsel %vm918_vm4, %v18364_v11, 0.0 }
0x19a7   : > { %v18374_v15 = vpop.eup %16136 }
0x19a8   : > { %v18378_v6 = vpop.eup %16138  ;;  %v11917_v45 = vsel %vm918_vm4, %v18374_v15, 0.0 }
0x19a9   : > { %v11920_v28 = vsel %vm918_vm4, %v18378_v6, 0.0 }
0x19c0   : > { %11906 = vadd.xlane.f32.xlu1 %v11905_v22  ;;  %v14443_v22 = vld [vmem:[%s18984_s5 + $0x38] sm:$0xff] }
0x19c4   : > { %11912 = vadd.xlane.f32.xlu1 %v11911_v61  ;;  %v14440_v61 = vld [vmem:[%s18984_s5 + $0x20] sm:$0xff] }
0x19c5   : > { %11915 = vadd.xlane.f32.xlu0 %v11914_v23 }
0x19c8   : > { %11918 = vadd.xlane.f32.xlu1 %v11917_v45 }
0x19c9   : > { %11921 = vadd.xlane.f32.xlu0 %v11920_v28 }
0x19d9   : > { %12471 = vrot.lane.b32.xlu1 %v17651_v63, %s19039_s21  ;;  %v12092_v63 = vpop.permute.xlu1 %12091 }
0x19dd   : > { %9837 = vrot.lane.b32.xlu1 %v18112_v56, %s19040_s28 }
0x19df   : > { %12395 = vrot.lane.b32.xlu0 %v17645_v16, %s19039_s21 }
0x19e1   : > { %11197 = vrot.lane.b32.xlu1 %v18313_v26, %s19041_s29 }
0x19e3   : > { %9835 = vrot.lane.b32.xlu0 %v18114_v25, %s19040_s28 }
0x19e5   : > { %9841 = vrot.lane.b32.xlu1 %v18120_v55, %s19040_s28 }
0x19e7   : > { %11195 = vrot.lane.b32.xlu0 %v18315_v13, %s19041_s29 }
0x19eb   : > { %9839 = vrot.lane.b32.xlu0 %v18116_v10, %s19040_s28 }
0x1a10   : > { %v11901_v56 = vpop.xlane.xlu1 %11900 }
0x1a11   : > { %16140 = vrcp.f32 %v11901_v56 }
0x1a14   : > { %v12244_v55 = vpop.permute.xlu1 %12243 }
0x1a15   : > { %v11904_v32 = vpop.xlane.xlu0 %11903 }
0x1a16   : > { %16142 = vrcp.f32 %v11904_v32 }
0x1a18   : > { %v12320_v21 = vpop.permute.xlu1 %12319 }
0x1a19   : > { %v11910_v16 = vpop.xlane.xlu0 %11909 }
0x1a1a   : > { %16144 = vrcp.f32 %v11910_v16 }
0x1a1d   : > { %v12168_v13 = vpop.permute.xlu0 %12167 }
0x1a1e   : > { %v16141_v26 = vpop.eup %16140 }
0x1a1f   : > { %v11924_v2 = vmul.f32 %v16141_v26, %v18344_v3 }
0x1a21   : > { %15638 = vmatmul.mubr.msk.f32.vlgmr.msra.gmra.mxu1 %vm918_vm4, %v11924_v2 }
0x1a22   : > { %15646 = vmatpush3.msra.mxu1 %v12092_v63  ;;  %15647 = vmatprep.mubr.msk.f32.mxu1 %vm16250_vm3, %v16249_v38 }
0x1a23   : > { %v16143_v25 = vpop.eup %16142  ;;  %15655 = vmatprep.subr.mxu1 %v16249_v38 }
0x1a24   : > { %v11926_v10 = vmul.f32 %v16143_v25, %v18348_v59 }
0x1a26   : > { %15643 = vmatmul.mubr.msk.f32.vlgmr.msra.gmra.mxu0 %vm918_vm4, %v11926_v10 }
0x1a27   : > { %15651 = vmatpush3.msra.mxu0 %v12168_v13  ;;  %15652 = vmatprep.mubr.msk.f32.mxu0 %vm16250_vm3, %v16249_v38  ;;  %v16145_v35 = vpop.eup %16144 }
0x1a28   : > { %15660 = vmatprep.subr.mxu0 %v16249_v38  ;;  %v11930_v51 = vmul.f32 %v16145_v35, %v18353_v20 }
0x1a2a   : > { %15653 = vmatmul.mubr.msk.f32.vlgmr.msra.gmra.mxu0 %vm918_vm4, %v11930_v51 }
0x1a2b   : > { %15661 = vmatpush3.msra.mxu0 %v12320_v21  ;;  %15662 = vmatprep.mubr.msk.f32.mxu0 %vm16250_vm3, %v16249_v38 }
0x1a2c   : > { %15670 = vmatprep.subr.mxu0 %v16249_v38 }
0x1a49   : > { %v11907_v50 = vpop.xlane.xlu1 %11906 }
0x1a4a   : > { %16146 = vrcp.f32 %v11907_v50 }
0x1a4d   : > { %v11913_v0 = vpop.xlane.xlu1 %11912 }
0x1a4e   : > { %16148 = vrcp.f32 %v11913_v0  ;;  %v11916_v3 = vpop.xlane.xlu0 %11915 }
0x1a4f   : > { %16150 = vrcp.f32 %v11916_v3 }
0x1a51   : > { %v11919_v58 = vpop.xlane.xlu1 %11918 }
0x1a52   : > { %16152 = vrcp.f32 %v11919_v58  ;;  %v11922_v41 = vpop.xlane.xlu0 %11921 }
0x1a53   : > { %16154 = vrcp.f32 %v11922_v41 }
0x1a55   : > { %v12472_v59 = vpop.permute.xlu1 %12471 }
0x1a56   : > { %v12396_v7 = vpop.permute.xlu0 %12395 }
0x1a57   : > { %v16147_v48 = vpop.eup %16146 }
0x1a58   : > { %v11928_v20 = vmul.f32 %v16147_v48, %v18364_v11 }
0x1a59   : > { %v9838_v37 = vpop.permute.xlu1 %9837 }
0x1a5a   : > { %9860 = vst.msk [vmem:[#allocation2 + $0x8] sm:$0xff] %vm3588_vm5, %v9838_v37  ;;  %15648 = vmatmul.mubr.msk.f32.vlgmr.msra.gmra.mxu1 %vm918_vm4, %v11928_v20  ;;  %v9836_v17 = vpop.permute.xlu0 %9835 }
0x1a5b   : > { %v16149_v34 = vpop.eup %16148  ;;  %15656 = vmatpush3.msra.mxu1 %v12244_v55  ;;  %15657 = vmatprep.mubr.msk.f32.mxu1 %vm16250_vm3, %v16249_v38  ;;  %9859 = vst.msk [vmem:[#allocation2] sm:$0xff] %vm3588_vm5, %v9836_v17 }
0x1a5c   : > { %v11932_v46 = vmul.f32 %v16149_v34, %v18368_v42  ;;  %15665 = vmatprep.subr.mxu1 %v16249_v38  ;;  %v16151_v54 = vpop.eup %16150  ;;  %v14442_v42 = vld [vmem:[%s18984_s5 + $0x30] sm:$0xff] }
0x1a5d   : > { %v11198_v14 = vpop.permute.xlu1 %11197  ;;  %v11934_v52 = vmul.f32 %v16151_v54, %v18370_v49  ;;  %v14441_v49 = vld [vmem:[%s18984_s5 + $0x28] sm:$0xff] }
0x1a5e   : > { %11220 = vst.msk [vmem:[#allocation2 + $0x8] sm:$0xff] %vm4949_vm6, %v11198_v14  ;;  %15658 = vmatmul.mubr.msk.f32.vlgmr.msra.gmra.mxu1 %vm918_vm4, %v11932_v46  ;;  %v11196_v12 = vpop.permute.xlu0 %11195  ;;  %v14445_v14 = vld [vmem:[%s18985_s6 + $0x1] ss:$0 sm:$0xff] }
0x1a5f   : > { %v16153_v8 = vpop.eup %16152  ;;  %15666 = vmatpush3.msra.mxu1 %v12396_v7  ;;  %15667 = vmatprep.mubr.msk.f32.mxu1 %vm16250_vm3, %v16249_v38  ;;  %11219 = vst.msk [vmem:[#allocation2] sm:$0xff] %vm4949_vm6, %v11196_v12 }
0x1a60   : > { %v11936_v5 = vmul.f32 %v16153_v8, %v18374_v15  ;;  %15663 = vmatmul.mubr.msk.f32.vlgmr.msra.gmra.mxu0 %vm918_vm4, %v11934_v52  ;;  %v16155_v31 = vpop.eup %16154  ;;  %15675 = vmatprep.subr.mxu1 %v14443_v22 }
0x1a61   : > { %15671 = vmatpush3.msra.mxu0 %v12472_v59  ;;  %v9842_v36 = vpop.permute.xlu1 %9841  ;;  %15672 = vmatprep.mubr.msk.f32.mxu0 %vm16250_vm3, %v16249_v38  ;;  %v11938_v47 = vmul.f32 %v16155_v31, %v18378_v6 }
0x1a62   : > { %9862 = vst.msk [vmem:[#allocation2 + $0x18] sm:$0xff] %vm3588_vm5, %v9842_v36  ;;  %15668 = vmatmul.mubr.msk.f32.vlgmr.msra.gmra.mxu1 %vm918_vm4, %v11936_v5  ;;  %v9840_v11 = vpop.permute.xlu0 %9839 }
0x1a63   : > { %9861 = vst.msk [vmem:[#allocation2 + $0x10] sm:$0xff] %vm3588_vm5, %v9840_v11  ;;  %15676 = vmatpush3.msra.mxu1 %v14443_v22 }
0x1a64   : > { %15673 = vmatmul.mubr.msk.f32.vlgmr.msra.gmra.mxu0 %vm918_vm4, %v11938_v47  ;;  %15677 = vmatprep.subr.mxu1 %v14442_v42 }
0x1a65   : > { %15678 = vmatpush3.msra.mxu1 %v14442_v42 }
0x1a66   : > { %15679 = vmatprep.subr.mxu1 %v14441_v49 }
0x1a67   : > { %15680 = vmatpush3.msra.mxu1 %v14441_v49 }
0x1a68   : > { %15681 = vmatprep.subr.mxu1 %v14440_v61 }
0x1a69   : > { %15682 = vmatpush3.msra.mxu1 %v14440_v61 }
0x1ae1   : > { %v12011_v15 = vpop.f32.mrf.mxu1 }
0x1ae2   : > { %12555 = vrot.lane.b32.xlu0 %v12011_v15, %s19042_s27 }
0x1ae3   : > { %v15639_v23 = vpop.f32.mrf.mxu1 }
0x1ae6   : > { %v12087_v6 = vpop.f32.mrf.mxu0  ;;  %11199 = vrot.lane.b32.xlu0 %v18317_v24, %s19041_s29 }
0x1ae7   : > { %12557 = vrot.lane.b32.xlu1 %v12087_v6, %s19042_s27 }
0x1ae8   : > { %v15644_v45 = vpop.f32.mrf.mxu0 }
0x1aea   : > { %9843 = vrot.lane.b32.xlu0 %v18118_v44, %s19040_s28  ;;  %v12239_v28 = vpop.f32.mrf.mxu0 }
0x1aeb   : > { %11201 = vrot.lane.b32.xlu1 %v18321_v19, %s19041_s29 }
0x1aec   : > { %v15654_v63 = vpop.f32.mrf.mxu0 }
0x1aee   : > { %11203 = vrot.lane.b32.xlu0 %v18319_v53, %s19041_s29 }
0x1aef   : > { %9845 = vrot.lane.b32.xlu1 %v18122_v57, %s19040_s28 }
0x1af3   : > { %11205 = vrot.lane.b32.xlu1 %v18325_v62, %s19041_s29 }
0x1af7   : > { %12561 = vrot.lane.b32.xlu1 %v12239_v28, %s19042_s27 }
0x1afb   : > { %9849 = vrot.lane.b32.xlu1 %v18124_v43, %s19040_s28 }
0x1b1a   : > { %v12163_v44 = vpop.f32.mrf.mxu1 }
0x1b1b   : > { %12559 = vrot.lane.b32.xlu0 %v12163_v44, %s19042_s27 }
0x1b1c   : > { %v15649_v24 = vpop.f32.mrf.mxu1 }
0x1b1e   : > { %v12315_v19 = vpop.f32.mrf.mxu1 }
0x1b1f   : > { %9847 = vrot.lane.b32.xlu0 %v18129_v18, %s19040_s28 }
0x1b20   : > { %v12391_v53 = vpop.f32.mrf.mxu0  ;;  %v15659_v56 = vpop.f32.mrf.mxu1 }
0x1b21   : > { %12565 = vrot.lane.b32.xlu1 %v12391_v53, %s19042_s27 }
0x1b22   : > { %v15664_v57 = vpop.f32.mrf.mxu0  ;;  %v12467_v32 = vpop.f32.mrf.mxu1 }
0x1b23   : > { %12563 = vrot.lane.b32.xlu0 %v12315_v19, %s19042_s27 }
0x1b24   : > { %v12543_v62 = vpop.f32.mrf.mxu0  ;;  %v15669_v16 = vpop.f32.mrf.mxu1 }
0x1b25   : > { %11209 = vrot.lane.b32.xlu1 %v18327_v4, %s19041_s29 }
0x1b26   : > { %v15674_v43 = vpop.f32.mrf.mxu0 }
0x1b27   : > { %11207 = vrot.lane.b32.xlu0 %v18323_v33, %s19041_s29 }
0x1b29   : > { %12569 = vrot.lane.b32.xlu1 %v12543_v62, %s19042_s27 }
0x1b2b   : > { %12567 = vrot.lane.b32.xlu0 %v12467_v32, %s19042_s27 }
0x1b54   : > { %v12556_v18 = vpop.permute.xlu0 %12555 }
0x1b55   : > { %12579 = vst.msk [vmem:[#allocation2] sm:$0xff] %vm6310_vm7, %v12556_v18 }
0x1b58   : > { %v11200_v26 = vpop.permute.xlu0 %11199 }
0x1b59   : > { %v12558_v2 = vpop.permute.xlu1 %12557  ;;  %11221 = vst.msk [vmem:[#allocation2 + $0x10] sm:$0xff] %vm4949_vm6, %v11200_v26 }
0x1b5a   : > { %12580 = vst.msk [vmem:[#allocation2 + $0x8] sm:$0xff] %vm6310_vm7, %v12558_v2 }
0x1b5c   : > { %v9844_v25 = vpop.permute.xlu0 %9843  ;;  %v12587_v10 = vld [vmem:[#allocation2] sm:$0xff] }
0x1b5d   : > { %v11202_v4 = vpop.permute.xlu1 %11201  ;;  %9863 = vst.msk [vmem:[#allocation2 + $0x20] sm:$0xff] %vm3588_vm5, %v9844_v25  ;;  %15683 = vmatprep.mubr.msk.f32.mxu1 %vm785_vm2, %v12587_v10 }
0x1b5e   : > { %11222 = vst.msk [vmem:[#allocation2 + $0x18] sm:$0xff] %vm4949_vm6, %v11202_v4 }
0x1b60   : > { %v11204_v33 = vpop.permute.xlu0 %11203 }
0x1b61   : > { %v9846_v55 = vpop.permute.xlu1 %9845  ;;  %11223 = vst.msk [vmem:[#allocation2 + $0x20] sm:$0xff] %vm4949_vm6, %v11204_v33  ;;  %v12588_v13 = vld [vmem:[#allocation2 + $0x8] sm:$0xff]  ;;  %v12885_v33 = vld [vmem:[#allocation3 + $0x38] sm:$0xff] }
0x1b62   : > { %9864 = vst.msk [vmem:[#allocation2 + $0x28] sm:$0xff] %vm3588_vm5, %v9846_v55  ;;  %15684 = vmatmul.mubr.msk.f32.vlgmr.msra.gmra.mxu1 %vm785_vm2, %v12588_v13  ;;  %v12884_v55 = vld [vmem:[#allocation3 + $0x30] sm:$0xff]  ;;  %15695 = vmatprep.subr.mxu0 %v12885_v33  ;;  %v12883_v13 = vld [vmem:[#allocation3 + $0x28] sm:$0xff] }
0x1b63   : > { %15696 = vmatpush3.msra.mxu0 %v12885_v33 }
0x1b64   : > { %15697 = vmatprep.subr.mxu0 %v12884_v55 }
0x1b65   : > { %v11206_v35 = vpop.permute.xlu1 %11205  ;;  %15698 = vmatpush3.msra.mxu0 %v12884_v55 }
0x1b66   : > { %11224 = vst.msk [vmem:[#allocation2 + $0x28] sm:$0xff] %vm4949_vm6, %v11206_v35  ;;  %v12882_v35 = vld [vmem:[#allocation3 + $0x20] sm:$0xff]  ;;  %15699 = vmatprep.subr.mxu0 %v12883_v13 }
0x1b67   : > { %15700 = vmatpush3.msra.mxu0 %v12883_v13 }
0x1b68   : > { %15701 = vmatprep.subr.mxu0 %v12882_v35 }
0x1b69   : > { %v12562_v51 = vpop.permute.xlu1 %12561  ;;  %15702 = vmatpush3.msra.mxu0 %v12882_v35 }
0x1b6a   : > { %12582 = vst.msk [vmem:[#allocation2 + $0x18] sm:$0xff] %vm6310_vm7, %v12562_v51  ;;  %15743 = vmatprep.subr.mxu0 %v16249_v38 }
0x1b6d   : > { %v9850_v21 = vpop.permute.xlu1 %9849 }
0x1b6e   : > { %9866 = vst.msk [vmem:[#allocation2 + $0x38] sm:$0xff] %vm3588_vm5, %v9850_v21 }
0x1b71   : > { %v12590_v59 = vld [vmem:[#allocation2 + $0x18] sm:$0xff] }
0x1b8d   : > { %v12560_v50 = vpop.permute.xlu0 %12559 }
0x1b8e   : > { %12581 = vst.msk [vmem:[#allocation2 + $0x10] sm:$0xff] %vm6310_vm7, %v12560_v50 }
0x1b91   : > { %v9848_v0 = vpop.permute.xlu0 %9847 }
0x1b92   : > { %9865 = vst.msk [vmem:[#allocation2 + $0x30] sm:$0xff] %vm3588_vm5, %v9848_v0 }
0x1b93   : > { %v12566_v3 = vpop.permute.xlu1 %12565 }
0x1b94   : > { %12584 = vst.msk [vmem:[#allocation2 + $0x28] sm:$0xff] %vm6310_vm7, %v12566_v3 }
0x1b95   : > { %v12564_v58 = vpop.permute.xlu0 %12563  ;;  %v12589_v41 = vld [vmem:[#allocation2 + $0x10] sm:$0xff] }
0x1b96   : > { %12583 = vst.msk [vmem:[#allocation2 + $0x20] sm:$0xff] %vm6310_vm7, %v12564_v58  ;;  %15686 = vmatprep.mubr.msk.f32.mxu1 %vm785_vm2, %v12589_v41 }
0x1b97   : > { %v11210_v48 = vpop.permute.xlu1 %11209  ;;  %15687 = vmatmul.mubr.msk.f32.gmra.mxu1 %vm785_vm2, %v12590_v59 }
0x1b98   : > { %11226 = vst.msk [vmem:[#allocation2 + $0x38] sm:$0xff] %vm4949_vm6, %v11210_v48 }
0x1b99   : > { %v11208_v7 = vpop.permute.xlu0 %11207 }
0x1b9a   : > { %11225 = vst.msk [vmem:[#allocation2 + $0x30] sm:$0xff] %vm4949_vm6, %v11208_v7 }
0x1b9b   : > { %v12570_v20 = vpop.permute.xlu1 %12569  ;;  %v12592_v17 = vld [vmem:[#allocation2 + $0x28] sm:$0xff] }
0x1b9c   : > { %12586 = vst.msk [vmem:[#allocation2 + $0x38] sm:$0xff] %vm6310_vm7, %v12570_v20 }
0x1b9d   : > { %v12568_v37 = vpop.permute.xlu0 %12567  ;;  %v12591_v34 = vld [vmem:[#allocation2 + $0x20] sm:$0xff] }
0x1b9e   : > { %12585 = vst.msk [vmem:[#allocation2 + $0x30] sm:$0xff] %vm6310_vm7, %v12568_v37  ;;  %15689 = vmatprep.mubr.msk.f32.mxu1 %vm785_vm2, %v12591_v34 }
0x1b9f   : > { %15690 = vmatmul.mubr.msk.f32.gmra.mxu1 %vm785_vm2, %v12592_v17 }
0x1ba3   : > { %v12594_v54 = vld [vmem:[#allocation2 + $0x38] sm:$0xff] }
0x1ba5   : > { %v12593_v46 = vld [vmem:[#allocation2 + $0x30] sm:$0xff] }
0x1ba6   : > { %15692 = vmatprep.mubr.msk.f32.mxu1 %vm785_vm2, %v12593_v46 }
0x1ba7   : > { %15693 = vmatmul.mubr.msk.f32.gmra.mxu1 %vm785_vm2, %v12594_v54 }
0x1c22   : > { %v15685_v52 = vpop.f32.mrf.mxu1 }
0x1c23   : > { %v12704_v8 = vadd.f32 %v15685_v52, %v14445_v14 }
0x1c24   : > { %v12698_v12 = vpop.f32.mrf.mxu1 }
0x1c25   : > { %v12738_v5 = vadd.f32 %v12704_v8, %v17582_v29  ;;  %v12699_v31 = vadd.f32 %v14445_v14, %v12698_v12 }
0x1c27   : > { %v12737_v36 = vadd.f32 %v12699_v31, %v17580_v30  ;;  %v12752_v47 = vsel %vm785_vm2, %v12738_v5, 0.0 }
0x1c28   : > { %12753 = vadd.xlane.f32.xlu1 %v12752_v47 }
0x1c29   : > { %v12749_v11 = vsel %vm785_vm2, %v12737_v36, 0.0 }
0x1c2a   : > { %12750 = vadd.xlane.f32.xlu0 %v12749_v11 }
0x1c57   : > { %v15688_v22 = vpop.f32.mrf.mxu1 }
0x1c58   : > { %v12714_v49 = vadd.f32 %v15688_v22, %v14445_v14 }
0x1c59   : > { %v12708_v42 = vpop.f32.mrf.mxu1 }
0x1c5a   : > { %v12709_v61 = vadd.f32 %v14445_v14, %v12708_v42  ;;  %v12740_v23 = vadd.f32 %v12714_v49, %v17594_v39 }
0x1c5c   : > { %v12739_v15 = vadd.f32 %v12709_v61, %v17591_v9  ;;  %v12758_v44 = vsel %vm785_vm2, %v12740_v23, 0.0 }
0x1c5e   : > { %v12755_v6 = vsel %vm785_vm2, %v12739_v15, 0.0 }
0x1c5f   : > { %12756 = vadd.xlane.f32.xlu0 %v12755_v6  ;;  %v15691_v29 = vpop.f32.mrf.mxu1  ;;  %v14474_v6 = vld [vmem:[%s18988_s9 + $0x70] sm:$0xff] }
0x1c60   : > { %v12724_v45 = vadd.f32 %v15691_v29, %v14445_v14  ;;  %v14473_v29 = vld [vmem:[%s18988_s9 + $0x68] sm:$0xff] }
0x1c61   : > { %v12718_v30 = vpop.f32.mrf.mxu1 }
0x1c62   : > { %v12742_v28 = vadd.f32 %v12724_v45, %v17604_v1  ;;  %v12719_v63 = vadd.f32 %v14445_v14, %v12718_v30  ;;  %v14472_v45 = vld [vmem:[%s18988_s9 + $0x60] sm:$0xff] }
0x1c63   : > { %12759 = vadd.xlane.f32.xlu0 %v12758_v44 }
0x1c64   : > { %v12741_v24 = vadd.f32 %v12719_v63, %v17601_v27  ;;  %v12764_v19 = vsel %vm785_vm2, %v12742_v28, 0.0 }
0x1c66   : > { %v12761_v9 = vsel %vm785_vm2, %v12741_v24, 0.0 }
0x1c67   : > { %12765 = vadd.xlane.f32.xlu0 %v12764_v19  ;;  %12762 = vadd.xlane.f32.xlu1 %v12761_v9  ;;  %v15694_v39 = vpop.f32.mrf.mxu1 }
0x1c68   : > { %v12734_v53 = vadd.f32 %v15694_v39, %v14445_v14  ;;  %v14456_v39 = vld [vmem:[%s18990_s11 + $0x1] ss:$0 sm:$0xff] }
0x1c69   : > { %v12728_v56 = vpop.f32.mrf.mxu1 }
0x1c6a   : > { %v12744_v57 = vadd.f32 %v12734_v53, %v17612_v40  ;;  %v12729_v32 = vadd.f32 %v14445_v14, %v12728_v56 }
0x1c6c   : > { %v12743_v1 = vadd.f32 %v12729_v32, %v17610_v60  ;;  %v12770_v62 = vsel %vm785_vm2, %v12744_v57, 0.0 }
0x1c6d   : > { %12771 = vadd.xlane.f32.xlu0 %v12770_v62 }
0x1c6e   : > { %v12767_v16 = vsel %vm785_vm2, %v12743_v1, 0.0 }
0x1c6f   : > { %12768 = vadd.xlane.f32.xlu1 %v12767_v16 }
0x1cb1   : > { %v12754_v27 = vpop.xlane.xlu1 %12753 }
0x1cb2   : > { %v12774_v43 = vmul.f32 0.03125, %v12754_v27 }
0x1cb3   : > { %v12751_v18 = vpop.xlane.xlu0 %12750 }
0x1cb4   : > { %v18523_v26 = vsub.f32 %v12738_v5, %v12774_v43  ;;  %v12773_v2 = vmul.f32 0.03125, %v12751_v18 }
0x1cb6   : > { %v18525_v25 = vsub.f32 %v12737_v36, %v12773_v2  ;;  %v12790_v40 = vmul.f32 %v18523_v26, %v18523_v26 }
0x1cb8   : > { %v12800_v10 = vsel %vm785_vm2, %v12790_v40, 0.0  ;;  %v12789_v60 = vmul.f32 %v18525_v25, %v18525_v25 }
0x1cb9   : > { %12801 = vadd.xlane.f32.xlu0 %v12800_v10 }
0x1cba   : > { %v12797_v4 = vsel %vm785_vm2, %v12789_v60, 0.0 }
0x1cbb   : > { %12798 = vadd.xlane.f32.xlu1 %v12797_v4 }
0x1ce8   : > { %v12757_v51 = vpop.xlane.xlu0 %12756 }
0x1ce9   : > { %v12775_v21 = vmul.f32 0.03125, %v12757_v51 }
0x1ceb   : > { %v18534_v50 = vsub.f32 %v12739_v15, %v12775_v21 }
0x1cec   : > { %v12760_v0 = vpop.xlane.xlu0 %12759 }
0x1ced   : > { %v12776_v3 = vmul.f32 0.03125, %v12760_v0  ;;  %v12791_v58 = vmul.f32 %v18534_v50, %v18534_v50 }
0x1cef   : > { %v18538_v41 = vsub.f32 %v12740_v23, %v12776_v3  ;;  %v12803_v59 = vsel %vm785_vm2, %v12791_v58, 0.0  ;;  %v14475_v23 = vld [vmem:[%s18988_s9 + $0x78] sm:$0xff] }
0x1cf0   : > { %v12763_v48 = vpop.xlane.xlu1 %12762  ;;  %12804 = vadd.xlane.f32.xlu1 %v12803_v59  ;;  %v12766_v7 = vpop.xlane.xlu0 %12765  ;;  %15715 = vmatprep.subr.mxu1 %v14475_v23 }
0x1cf1   : > { %v12777_v20 = vmul.f32 0.03125, %v12763_v48  ;;  %v12778_v37 = vmul.f32 0.03125, %v12766_v7  ;;  %v12792_v34 = vmul.f32 %v18538_v41, %v18538_v41  ;;  %15716 = vmatpush3.msra.mxu1 %v14475_v23 }
0x1cf2   : > { %15717 = vmatprep.subr.mxu1 %v14474_v6 }
0x1cf3   : > { %v18543_v17 = vsub.f32 %v12741_v24, %v12777_v20  ;;  %v18545_v46 = vsub.f32 %v12742_v28, %v12778_v37  ;;  %v12806_v54 = vsel %vm785_vm2, %v12792_v34, 0.0  ;;  %15718 = vmatpush3.msra.mxu1 %v14474_v6 }
0x1cf4   : > { %12807 = vadd.xlane.f32.xlu0 %v12806_v54  ;;  %15719 = vmatprep.subr.mxu1 %v14473_v29 }
0x1cf5   : > { %v12793_v14 = vmul.f32 %v18543_v17, %v18543_v17  ;;  %v12794_v52 = vmul.f32 %v18545_v46, %v18545_v46  ;;  %15720 = vmatpush3.msra.mxu1 %v14473_v29  ;;  %v14468_v29 = vld [vmem:[%s18988_s9 + $0x40] sm:$0xff] }
0x1cf6   : > { %v12772_v8 = vpop.xlane.xlu0 %12771  ;;  %15721 = vmatprep.subr.mxu1 %v14472_v45 }
0x1cf7   : > { %v12780_v12 = vmul.f32 0.03125, %v12772_v8  ;;  %v12809_v5 = vsel %vm785_vm2, %v12793_v14, 0.0  ;;  %v12812_v31 = vsel %vm785_vm2, %v12794_v52, 0.0  ;;  %15722 = vmatpush3.msra.mxu1 %v14472_v45  ;;  %v14459_v45 = vld [vmem:[%s18987_s8 + $0x1] ss:$0 sm:$0xff] }
0x1cf8   : > { %v12769_v36 = vpop.xlane.xlu1 %12768  ;;  %12810 = vadd.xlane.f32.xlu1 %v12809_v5  ;;  %12813 = vadd.xlane.f32.xlu0 %v12812_v31 }
0x1cf9   : > { %v18554_v47 = vsub.f32 %v12744_v57, %v12780_v12  ;;  %v12779_v11 = vmul.f32 0.03125, %v12769_v36 }
0x1cfb   : > { %v18556_v22 = vsub.f32 %v12743_v1, %v12779_v11  ;;  %v12796_v42 = vmul.f32 %v18554_v47, %v18554_v47  ;;  %v14457_v1 = vld [vmem:[%s18991_s12 + $0x1] ss:$0 sm:$0xff] }
0x1cfd   : > { %v12818_v49 = vsel %vm785_vm2, %v12796_v42, 0.0  ;;  %v12795_v61 = vmul.f32 %v18556_v22, %v18556_v22 }
0x1cfe   : > { %12819 = vadd.xlane.f32.xlu0 %v12818_v49 }
0x1cff   : > { %v12815_v15 = vsel %vm785_vm2, %v12795_v61, 0.0 }
0x1d00   : > { %12816 = vadd.xlane.f32.xlu1 %v12815_v15  ;;  %v14471_v15 = vld [vmem:[%s18988_s9 + $0x58] sm:$0xff] }
0x1d01   : > { %15723 = vmatprep.subr.mxu1 %v14471_v15 }
0x1d02   : > { %15724 = vmatpush3.msra.mxu1 %v14471_v15 }
0x1d42   : > { %v12802_v30 = vpop.xlane.xlu0 %12801 }
0x1d43   : > { %v12822_v28 = vmul.f32 0.03125, %v12802_v30 }
0x1d44   : > { %v12799_v63 = vpop.xlane.xlu1 %12798 }
0x1d45   : > { %v12830_v44 = vadd.f32 1e-05, %v12822_v28  ;;  %v12821_v24 = vmul.f32 0.03125, %v12799_v63 }
0x1d47   : > { %16156 = vrsqrt.f32 %v12830_v44  ;;  %v12829_v19 = vadd.f32 1e-05, %v12821_v24 }
0x1d49   : > { %16158 = vrsqrt.f32 %v12829_v19 }
0x1d54   : > { %v16157_v9 = vpop.eup %16156 }
0x1d55   : > { %v12846_v53 = vmul.f32 %v16157_v9, %v18523_v26 }
0x1d56   : > { %v16159_v56 = vpop.eup %16158 }
0x1d57   : > { %v12845_v57 = vmul.f32 %v16159_v56, %v18525_v25  ;;  %v12860_v32 = vmul.f32 %v14456_v39, %v12846_v53 }
0x1d59   : > { %v12859_v62 = vmul.f32 %v14456_v39, %v12845_v57  ;;  %v18586_v27 = vadd.f32 %v14457_v1, %v12860_v32 }
0x1d5b   : > { %v18584_v16 = vadd.f32 %v14457_v1, %v12859_v62 }
0x1d5d   : > { %15703 = vmatprep.mubr.msk.f32.mxu0 %vm785_vm2, %v18584_v16 }
0x1d5e   : > { %15704 = vmatmul.mubr.msk.f32.vlgmr.msra.gmra.mxu0 %vm785_vm2, %v18586_v27 }
0x1d79   : > { %v12805_v43 = vpop.xlane.xlu1 %12804 }
0x1d7a   : > { %v12823_v18 = vmul.f32 0.03125, %v12805_v43 }
0x1d7c   : > { %v12831_v26 = vadd.f32 1e-05, %v12823_v18 }
0x1d7d   : > { %v12808_v2 = vpop.xlane.xlu0 %12807 }
0x1d7e   : > { %16160 = vrsqrt.f32 %v12831_v26  ;;  %v12824_v25 = vmul.f32 0.03125, %v12808_v2 }
0x1d80   : > { %v12832_v40 = vadd.f32 1e-05, %v12824_v25 }
0x1d81   : > { %v12811_v10 = vpop.xlane.xlu1 %12810  ;;  %v12814_v60 = vpop.xlane.xlu0 %12813 }
0x1d82   : > { %16162 = vrsqrt.f32 %v12832_v40  ;;  %v12825_v4 = vmul.f32 0.03125, %v12811_v10  ;;  %v12826_v33 = vmul.f32 0.03125, %v12814_v60 }
0x1d84   : > { %v12833_v55 = vadd.f32 1e-05, %v12825_v4  ;;  %v12834_v13 = vadd.f32 1e-05, %v12826_v33 }
0x1d86   : > { %16164 = vrsqrt.f32 %v12833_v55  ;;  %v14477_v55 = vld [vmem:[%s18989_s10 + $0x1] ss:$0 sm:$0xff] }
0x1d87   : > { %16166 = vrsqrt.f32 %v12834_v13  ;;  %v12820_v35 = vpop.xlane.xlu0 %12819 }
0x1d88   : > { %v12828_v51 = vmul.f32 0.03125, %v12820_v35 }
0x1d89   : > { %v12817_v21 = vpop.xlane.xlu1 %12816 }
0x1d8a   : > { %v12836_v0 = vadd.f32 1e-05, %v12828_v51  ;;  %v12827_v3 = vmul.f32 0.03125, %v12817_v21 }
0x1d8b   : > { %v16161_v58 = vpop.eup %16160 }
0x1d8c   : > { %16168 = vrsqrt.f32 %v12836_v0  ;;  %v12835_v59 = vadd.f32 1e-05, %v12827_v3  ;;  %v12847_v48 = vmul.f32 %v16161_v58, %v18534_v50 }
0x1d8e   : > { %16170 = vrsqrt.f32 %v12835_v59  ;;  %v12861_v7 = vmul.f32 %v14456_v39, %v12847_v48 }
0x1d8f   : > { %v16163_v20 = vpop.eup %16162 }
0x1d90   : > { %v12848_v37 = vmul.f32 %v16163_v20, %v18538_v41  ;;  %v18594_v34 = vadd.f32 %v14457_v1, %v12861_v7 }
0x1d92   : > { %15706 = vmatprep.mubr.msk.f32.mxu0 %vm785_vm2, %v18594_v34  ;;  %v12862_v54 = vmul.f32 %v14456_v39, %v12848_v37 }
0x1d93   : > { %v16165_v14 = vpop.eup %16164 }
0x1d94   : > { %v16167_v52 = vpop.eup %16166  ;;  %v18598_v8 = vadd.f32 %v14457_v1, %v12862_v54  ;;  %v12849_v12 = vmul.f32 %v16165_v14, %v18543_v17 }
0x1d95   : > { %v12850_v5 = vmul.f32 %v16167_v52, %v18545_v46 }
0x1d96   : > { %15707 = vmatmul.mubr.msk.f32.gmra.mxu0 %vm785_vm2, %v18598_v8  ;;  %v12863_v50 = vmul.f32 %v14456_v39, %v12849_v12 }
0x1d97   : > { %v12864_v31 = vmul.f32 %v14456_v39, %v12850_v5 }
0x1d98   : > { %v18604_v41 = vadd.f32 %v14457_v1, %v12863_v50 }
0x1d99   : > { %v16169_v36 = vpop.eup %16168  ;;  %v18606_v11 = vadd.f32 %v14457_v1, %v12864_v31 }
0x1d9a   : > { %v12852_v42 = vmul.f32 %v16169_v36, %v18554_v47  ;;  %15709 = vmatprep.mubr.msk.f32.mxu0 %vm785_vm2, %v18604_v41  ;;  %v14470_v47 = vld [vmem:[%s18988_s9 + $0x50] sm:$0xff] }
0x1d9b   : > { %v16171_v49 = vpop.eup %16170  ;;  %15710 = vmatmul.mubr.msk.f32.gmra.mxu0 %vm785_vm2, %v18606_v11  ;;  %15725 = vmatprep.subr.mxu1 %v14470_v47 }
0x1d9c   : > { %v12851_v17 = vmul.f32 %v16171_v49, %v18556_v22  ;;  %v12866_v46 = vmul.f32 %v14456_v39, %v12852_v42  ;;  %15726 = vmatpush3.msra.mxu1 %v14470_v47  ;;  %v14469_v22 = vld [vmem:[%s18988_s9 + $0x48] sm:$0xff] }
0x1d9d   : > { %15727 = vmatprep.subr.mxu1 %v14469_v22 }
0x1d9e   : > { %v12865_v61 = vmul.f32 %v14456_v39, %v12851_v17  ;;  %v18619_v6 = vadd.f32 %v14457_v1, %v12866_v46  ;;  %15728 = vmatpush3.msra.mxu1 %v14469_v22 }
0x1d9f   : > { %15729 = vmatprep.subr.mxu1 %v14468_v29 }
0x1da0   : > { %v18617_v23 = vadd.f32 %v14457_v1, %v12865_v61  ;;  %15730 = vmatpush3.msra.mxu1 %v14468_v29 }
0x1da1   : > { %15765 = vmatprep.subr.mxu1 %v16249_v38 }
0x1da2   : > { %15712 = vmatprep.mubr.msk.f32.mxu0 %vm785_vm2, %v18617_v23 }
0x1da3   : > { %15713 = vmatmul.mubr.msk.f32.gmra.mxu0 %vm785_vm2, %v18619_v6 }
0x1da4   : > { %15751 = vmatprep.mubr.msk.f32.mxu0 %vm16250_vm3, %v16249_v38 }
0x1e1e   : > { %v15705_v30 = vpop.f32.mrf.mxu0 }
0x1e1f   : > { %v12990_v28 = vadd.f32 %v15705_v30, %v14459_v45 }
0x1e20   : > { %v12984_v63 = vpop.f32.mrf.mxu0 }
0x1e21   : > { %v12985_v44 = vadd.f32 %v14459_v45, %v12984_v63  ;;  %v13024_v19 = vmax.f32 %v12990_v28, 0.0 }
0x1e23   : > { %v13023_v24 = vmax.f32 %v12985_v44, 0.0 }
0x1e25   : > { %15731 = vmatprep.mubr.msk.f32.mxu1 %vm6773_vm8, %v13023_v24 }
0x1e26   : > { %15732 = vmatmul.mubr.msk.f32.vlgmr.msra.gmra.mxu1 %vm6773_vm8, %v13024_v19 }
0x1e56   : > { %v15708_v9 = vpop.f32.mrf.mxu0 }
0x1e57   : > { %v13000_v39 = vadd.f32 %v15708_v9, %v14459_v45 }
0x1e58   : > { %v12994_v53 = vpop.f32.mrf.mxu0 }
0x1e59   : > { %v12995_v56 = vadd.f32 %v14459_v45, %v12994_v53  ;;  %v13026_v1 = vmax.f32 %v13000_v39, 0.0 }
0x1e5b   : > { %v13025_v57 = vmax.f32 %v12995_v56, 0.0  ;;  %v15711_v32 = vpop.f32.mrf.mxu0 }
0x1e5c   : > { %v13010_v62 = vadd.f32 %v15711_v32, %v14459_v45 }
0x1e5d   : > { %v13004_v43 = vpop.f32.mrf.mxu0  ;;  %15734 = vmatprep.mubr.msk.f32.mxu1 %vm6773_vm8, %v13025_v57 }
0x1e5e   : > { %v13005_v18 = vadd.f32 %v14459_v45, %v13004_v43  ;;  %15735 = vmatmul.mubr.msk.f32.gmra.mxu1 %vm6773_vm8, %v13026_v1  ;;  %v13028_v2 = vmax.f32 %v13010_v62, 0.0 }
0x1e60   : > { %v13027_v26 = vmax.f32 %v13005_v18, 0.0 }
0x1e62   : > { %15737 = vmatprep.mubr.msk.f32.mxu1 %vm6773_vm8, %v13027_v26 }
0x1e63   : > { %v15714_v25 = vpop.f32.mrf.mxu0  ;;  %15738 = vmatmul.mubr.msk.f32.gmra.mxu1 %vm6773_vm8, %v13028_v2 }
0x1e64   : > { %v13020_v40 = vadd.f32 %v15714_v25, %v14459_v45 }
0x1e65   : > { %v13014_v10 = vpop.f32.mrf.mxu0 }
0x1e66   : > { %v13015_v60 = vadd.f32 %v14459_v45, %v13014_v10  ;;  %v13030_v33 = vmax.f32 %v13020_v40, 0.0 }
0x1e68   : > { %v13029_v4 = vmax.f32 %v13015_v60, 0.0 }
0x1e6a   : > { %15740 = vmatprep.mubr.msk.f32.mxu1 %vm6773_vm8, %v13029_v4 }
0x1e6b   : > { %15741 = vmatmul.mubr.msk.f32.gmra.mxu1 %vm6773_vm8, %v13030_v33 }
0x1e6c   : > { %15773 = vmatprep.mubr.msk.f32.mxu1 %vm16250_vm3, %v16249_v38 }
0x1ee6   : > { %v15733_v13 = vpop.f32.mrf.mxu1 }
0x1ee7   : > { %v13144_v35 = vadd.f32 %v15733_v13, %v14477_v55 }
0x1ee8   : > { %v13138_v51 = vpop.f32.mrf.mxu1 }
0x1ee9   : > { %v13178_v21 = vadd.f32 %v13144_v35, %v18586_v27  ;;  %v13139_v0 = vadd.f32 %v14477_v55, %v13138_v51 }
0x1eeb   : > { %v13177_v3 = vadd.f32 %v13139_v0, %v18584_v16  ;;  %v13192_v58 = vsel %vm785_vm2, %v13178_v21, 0.0 }
0x1eec   : > { %13193 = vadd.xlane.f32.xlu0 %v13192_v58 }
0x1eed   : > { %v13189_v59 = vsel %vm785_vm2, %v13177_v3, 0.0 }
0x1eee   : > { %13190 = vadd.xlane.f32.xlu1 %v13189_v59 }
0x1f1e   : > { %v15736_v48 = vpop.f32.mrf.mxu1 }
0x1f1f   : > { %v13154_v7 = vadd.f32 %v15736_v48, %v14477_v55 }
0x1f20   : > { %v13148_v20 = vpop.f32.mrf.mxu1 }
0x1f21   : > { %v13180_v37 = vadd.f32 %v13154_v7, %v18598_v8  ;;  %v13149_v54 = vadd.f32 %v14477_v55, %v13148_v20 }
0x1f23   : > { %v13179_v14 = vadd.f32 %v13149_v54, %v18594_v34  ;;  %v15739_v52 = vpop.f32.mrf.mxu1  ;;  %v13198_v27 = vsel %vm785_vm2, %v13180_v37, 0.0 }
0x1f24   : > { %v13164_v12 = vadd.f32 %v15739_v52, %v14477_v55  ;;  %13199 = vadd.xlane.f32.xlu0 %v13198_v27 }
0x1f25   : > { %v13158_v16 = vpop.f32.mrf.mxu1  ;;  %v13195_v5 = vsel %vm785_vm2, %v13179_v14, 0.0 }
0x1f26   : > { %v13182_v50 = vadd.f32 %v13164_v12, %v18606_v11  ;;  %v13159_v31 = vadd.f32 %v14477_v55, %v13158_v16  ;;  %13196 = vadd.xlane.f32.xlu1 %v13195_v5  ;;  %v18704_v12 = vld [vmem:[%s18992_s13 + $0x1] ss:$0 sm:$0xff] }
0x1f28   : > { %v13181_v36 = vadd.f32 %v13159_v31, %v18604_v41  ;;  %v13204_v42 = vsel %vm785_vm2, %v13182_v50, 0.0 }
0x1f29   : > { %13205 = vadd.xlane.f32.xlu0 %v13204_v42 }
0x1f2a   : > { %v13201_v8 = vsel %vm785_vm2, %v13181_v36, 0.0 }
0x1f2b   : > { %13202 = vadd.xlane.f32.xlu1 %v13201_v8  ;;  %v15742_v34 = vpop.f32.mrf.mxu1 }
0x1f2c   : > { %v13174_v49 = vadd.f32 %v15742_v34, %v14477_v55 }
0x1f2d   : > { %v13168_v17 = vpop.f32.mrf.mxu1 }
0x1f2e   : > { %v13184_v46 = vadd.f32 %v13174_v49, %v18619_v6  ;;  %v13169_v61 = vadd.f32 %v14477_v55, %v13168_v17 }
0x1f30   : > { %v13183_v15 = vadd.f32 %v13169_v61, %v18617_v23  ;;  %v13210_v11 = vsel %vm785_vm2, %v13184_v46, 0.0 }
0x1f31   : > { %13211 = vadd.xlane.f32.xlu0 %v13210_v11 }
0x1f32   : > { %v13207_v47 = vsel %vm785_vm2, %v13183_v15, 0.0 }
0x1f33   : > { %13208 = vadd.xlane.f32.xlu1 %v13207_v47 }
0x1f75   : > { %v13194_v41 = vpop.xlane.xlu0 %13193 }
0x1f76   : > { %v13214_v22 = vmul.f32 0.03125, %v13194_v41 }
0x1f77   : > { %v13191_v29 = vpop.xlane.xlu1 %13190 }
0x1f78   : > { %v13222_v45 = vsub.f32 %v13178_v21, %v13214_v22  ;;  %v13213_v30 = vmul.f32 0.03125, %v13191_v29 }
0x1f7a   : > { %v13221_v28 = vsub.f32 %v13177_v3, %v13213_v30  ;;  %v13230_v63 = vmul.f32 %v13222_v45, %v13222_v45 }
0x1f7c   : > { %v13240_v44 = vsel %vm785_vm2, %v13230_v63, 0.0  ;;  %v13229_v24 = vmul.f32 %v13221_v28, %v13221_v28 }
0x1f7d   : > { %13241 = vadd.xlane.f32.xlu0 %v13240_v44 }
0x1f7e   : > { %v13237_v6 = vsel %vm785_vm2, %v13229_v24, 0.0 }
0x1f7f   : > { %13238 = vadd.xlane.f32.xlu1 %v13237_v6 }
0x1fad   : > { %v13200_v23 = vpop.xlane.xlu0 %13199 }
0x1fae   : > { %v13216_v19 = vmul.f32 0.03125, %v13200_v23 }
0x1faf   : > { %v13197_v9 = vpop.xlane.xlu1 %13196 }
0x1fb0   : > { %v18671_v39 = vsub.f32 %v13180_v37, %v13216_v19  ;;  %v13215_v53 = vmul.f32 0.03125, %v13197_v9 }
0x1fb2   : > { %v18673_v56 = vsub.f32 %v13179_v14, %v13215_v53  ;;  %v13206_v57 = vpop.xlane.xlu0 %13205  ;;  %v13232_v32 = vmul.f32 %v18671_v39, %v18671_v39 }
0x1fb3   : > { %v13218_v1 = vmul.f32 0.03125, %v13206_v57 }
0x1fb4   : > { %v13203_v62 = vpop.xlane.xlu1 %13202  ;;  %v13246_v43 = vsel %vm785_vm2, %v13232_v32, 0.0  ;;  %v13231_v18 = vmul.f32 %v18673_v56, %v18673_v56 }
0x1fb5   : > { %v18680_v26 = vsub.f32 %v13182_v50, %v13218_v1  ;;  %v13217_v2 = vmul.f32 0.03125, %v13203_v62  ;;  %13247 = vadd.xlane.f32.xlu0 %v13246_v43  ;;  %v18709_v50 = vld [vmem:[%s18993_s14 + $0x1] ss:$0 sm:$0xff] }
0x1fb6   : > { %v13243_v25 = vsel %vm785_vm2, %v13231_v18, 0.0 }
0x1fb7   : > { %v18683_v40 = vsub.f32 %v13181_v36, %v13217_v2  ;;  %13244 = vadd.xlane.f32.xlu1 %v13243_v25  ;;  %v13234_v10 = vmul.f32 %v18680_v26, %v18680_v26 }
0x1fb9   : > { %v13252_v60 = vsel %vm785_vm2, %v13234_v10, 0.0  ;;  %v13233_v4 = vmul.f32 %v18683_v40, %v18683_v40 }
0x1fba   : > { %13253 = vadd.xlane.f32.xlu0 %v13252_v60  ;;  %v13212_v33 = vpop.xlane.xlu0 %13211 }
0x1fbb   : > { %v13220_v55 = vmul.f32 0.03125, %v13212_v33  ;;  %v13249_v13 = vsel %vm785_vm2, %v13233_v4, 0.0 }
0x1fbc   : > { %13250 = vadd.xlane.f32.xlu1 %v13249_v13  ;;  %v13209_v35 = vpop.xlane.xlu1 %13208 }
0x1fbd   : > { %v18691_v51 = vsub.f32 %v13184_v46, %v13220_v55  ;;  %v13219_v21 = vmul.f32 0.03125, %v13209_v35 }
0x1fbf   : > { %v18693_v0 = vsub.f32 %v13183_v15, %v13219_v21  ;;  %v13236_v3 = vmul.f32 %v18691_v51, %v18691_v51 }
0x1fc1   : > { %v13258_v58 = vsel %vm785_vm2, %v13236_v3, 0.0  ;;  %v13235_v59 = vmul.f32 %v18693_v0, %v18693_v0 }
0x1fc2   : > { %13259 = vadd.xlane.f32.xlu0 %v13258_v58 }
0x1fc3   : > { %v13255_v48 = vsel %vm785_vm2, %v13235_v59, 0.0 }
0x1fc4   : > { %13256 = vadd.xlane.f32.xlu1 %v13255_v48 }
0x2006   : > { %v13242_v7 = vpop.xlane.xlu0 %13241 }
0x2007   : > { %v13262_v20 = vmul.f32 0.03125, %v13242_v7 }
0x2008   : > { %v13239_v37 = vpop.xlane.xlu1 %13238 }
0x2009   : > { %v13270_v54 = vadd.f32 1e-05, %v13262_v20  ;;  %v13261_v14 = vmul.f32 0.03125, %v13239_v37 }
0x200b   : > { %16172 = vrsqrt.f32 %v13270_v54  ;;  %v13269_v52 = vadd.f32 1e-05, %v13261_v14 }
0x200d   : > { %16174 = vrsqrt.f32 %v13269_v52 }
0x2018   : > { %v16173_v27 = vpop.eup %16172 }
0x2019   : > { %v13286_v16 = vmul.f32 %v16173_v27, %v13222_v45 }
0x201a   : > { %v16175_v5 = vpop.eup %16174 }
0x201b   : > { %v13300_v31 = vmul.f32 %v18704_v12, %v13286_v16  ;;  %v13285_v36 = vmul.f32 %v16175_v5, %v13221_v28 }
0x201d   : > { %v18713_v42 = vadd.f32 %v18709_v50, %v13300_v31  ;;  %v13299_v8 = vmul.f32 %v18704_v12, %v13285_v36 }
0x201f   : > { %v13326_v34 = vsel %vm785_vm2, %v18713_v42, 0.0  ;;  %v18719_v49 = vadd.f32 %v18709_v50, %v13299_v8  ;;  %v13465_v8 = vld [vmem:[%s18996_s17 + $0x10] sm:$0xff] }
0x2020   : > { %13327 = vadd.xlane.f32.xlu0 %v13326_v34  ;;  %v13464_v34 = vld [vmem:[%s18996_s17 + $0x8] sm:$0xff] }
0x2021   : > { %v13323_v17 = vsel %vm785_vm2, %v18719_v49, 0.0 }
0x2022   : > { %13324 = vadd.xlane.f32.xlu1 %v13323_v17 }
0x203e   : > { %v13248_v46 = vpop.xlane.xlu0 %13247 }
0x203f   : > { %v13264_v61 = vmul.f32 0.03125, %v13248_v46 }
0x2040   : > { %v13245_v15 = vpop.xlane.xlu1 %13244 }
0x2041   : > { %v13272_v11 = vadd.f32 1e-05, %v13264_v61  ;;  %v13263_v47 = vmul.f32 0.03125, %v13245_v15 }
0x2043   : > { %16176 = vrsqrt.f32 %v13272_v11  ;;  %v13271_v41 = vadd.f32 1e-05, %v13263_v47  ;;  %v13254_v22 = vpop.xlane.xlu0 %13253 }
0x2044   : > { %v13266_v29 = vmul.f32 0.03125, %v13254_v22 }
0x2045   : > { %16178 = vrsqrt.f32 %v13271_v41  ;;  %v13251_v45 = vpop.xlane.xlu1 %13250 }
0x2046   : > { %v13274_v30 = vadd.f32 1e-05, %v13266_v29  ;;  %v13265_v28 = vmul.f32 0.03125, %v13251_v45 }
0x2048   : > { %16180 = vrsqrt.f32 %v13274_v30  ;;  %v13273_v63 = vadd.f32 1e-05, %v13265_v28 }
0x204a   : > { %16182 = vrsqrt.f32 %v13273_v63 }
0x204b   : > { %v13260_v44 = vpop.xlane.xlu0 %13259 }
0x204c   : > { %v13268_v24 = vmul.f32 0.03125, %v13260_v44 }
0x204d   : > { %v13257_v6 = vpop.xlane.xlu1 %13256 }
0x204e   : > { %v13276_v23 = vadd.f32 1e-05, %v13268_v24  ;;  %v13267_v19 = vmul.f32 0.03125, %v13257_v6 }
0x2050   : > { %v16177_v9 = vpop.eup %16176  ;;  %16184 = vrsqrt.f32 %v13276_v23  ;;  %v13275_v53 = vadd.f32 1e-05, %v13267_v19 }
0x2051   : > { %v13288_v57 = vmul.f32 %v16177_v9, %v18671_v39 }
0x2052   : > { %v16179_v32 = vpop.eup %16178  ;;  %16186 = vrsqrt.f32 %v13275_v53 }
0x2053   : > { %v13302_v1 = vmul.f32 %v18704_v12, %v13288_v57  ;;  %v13287_v62 = vmul.f32 %v16179_v32, %v18673_v56 }
0x2055   : > { %v16181_v43 = vpop.eup %16180  ;;  %v13316_v18 = vadd.f32 %v18709_v50, %v13302_v1  ;;  %v13301_v2 = vmul.f32 %v18704_v12, %v13287_v62 }
0x2056   : > { %v13290_v25 = vmul.f32 %v16181_v43, %v18680_v26 }
0x2057   : > { %v16183_v10 = vpop.eup %16182  ;;  %v13332_v60 = vsel %vm785_vm2, %v13316_v18, 0.0  ;;  %v13315_v4 = vadd.f32 %v18709_v50, %v13301_v2 }
0x2058   : > { %13333 = vadd.xlane.f32.xlu0 %v13332_v60  ;;  %v13304_v39 = vmul.f32 %v18704_v12, %v13290_v25  ;;  %v13289_v33 = vmul.f32 %v16183_v10, %v18683_v40 }
0x2059   : > { %v13329_v55 = vsel %vm785_vm2, %v13315_v4, 0.0 }
0x205a   : > { %13330 = vadd.xlane.f32.xlu1 %v13329_v55  ;;  %v13318_v56 = vadd.f32 %v18709_v50, %v13304_v39  ;;  %v13303_v13 = vmul.f32 %v18704_v12, %v13289_v33  ;;  %v13473_v39 = vld [vmem:[%s18996_s17 + $0x50] sm:$0xff]  ;;  %v13472_v33 = vld [vmem:[%s18996_s17 + $0x48] sm:$0xff]  ;;  %v13471_v55 = vld [vmem:[%s18996_s17 + $0x40] sm:$0xff] }
0x205c   : > { %v13338_v35 = vsel %vm785_vm2, %v13318_v56, 0.0  ;;  %v13317_v26 = vadd.f32 %v18709_v50, %v13303_v13 }
0x205d   : > { %v16185_v21 = vpop.eup %16184  ;;  %13339 = vadd.xlane.f32.xlu0 %v13338_v35 }
0x205e   : > { %v13335_v3 = vsel %vm785_vm2, %v13317_v26, 0.0  ;;  %v13292_v58 = vmul.f32 %v16185_v21, %v18691_v51 }
0x205f   : > { %v16187_v59 = vpop.eup %16186  ;;  %13336 = vadd.xlane.f32.xlu1 %v13335_v3 }
0x2060   : > { %v13306_v40 = vmul.f32 %v18704_v12, %v13292_v58  ;;  %v13291_v48 = vmul.f32 %v16187_v59, %v18693_v0 }
0x2062   : > { %v13320_v7 = vadd.f32 %v18709_v50, %v13306_v40  ;;  %v13305_v20 = vmul.f32 %v18704_v12, %v13291_v48  ;;  %v18825_v48 = vld [vmem:[%s18994_s15] ss:$0 sm:$0xff] }
0x2064   : > { %v13344_v37 = vsel %vm785_vm2, %v13320_v7, 0.0  ;;  %v13319_v54 = vadd.f32 %v18709_v50, %v13305_v20 }
0x2065   : > { %13345 = vadd.xlane.f32.xlu0 %v13344_v37  ;;  %v18832_v37 = vld [vmem:[%s18995_s16] ss:$0 sm:$0xff] }
0x2066   : > { %v13341_v14 = vsel %vm785_vm2, %v13319_v54, 0.0 }
0x2067   : > { %13342 = vadd.xlane.f32.xlu1 %v13341_v14 }
0x20a9   : > { %v13328_v52 = vpop.xlane.xlu0 %13327 }
0x20aa   : > { %v13348_v51 = vmul.f32 0.03125, %v13328_v52 }
0x20ab   : > { %v13325_v27 = vpop.xlane.xlu1 %13324 }
0x20ac   : > { %v18748_v16 = vsub.f32 %v18713_v42, %v13348_v51  ;;  %v13347_v5 = vmul.f32 0.03125, %v13325_v27  ;;  %v13466_v42 = vld [vmem:[%s18996_s17 + $0x18] sm:$0xff]  ;;  %v13469_v27 = vld [vmem:[%s18996_s17 + $0x30] sm:$0xff] }
0x20ad   : > { %15744 = vmatpush3.msra.mxu0 %v13466_v42  ;;  %v13470_v51 = vld [vmem:[%s18996_s17 + $0x38] sm:$0xff]  ;;  %v13475_v42 = vld [vmem:[%s18996_s17 + $0x60] sm:$0xff] }
0x20ae   : > { %v18751_v0 = vsub.f32 %v18719_v49, %v13347_v5  ;;  %v13364_v12 = vmul.f32 %v18748_v16, %v18748_v16  ;;  %15745 = vmatprep.subr.mxu0 %v16249_v38  ;;  %v13463_v49 = vld [vmem:[%s18996_s17] sm:$0xff] }
0x20af   : > { %15746 = vmatpush3.msra.mxu0 %v13465_v8 }
0x20b0   : > { %v13374_v31 = vsel %vm785_vm2, %v13364_v12, 0.0  ;;  %v13363_v50 = vmul.f32 %v18751_v0, %v18751_v0  ;;  %15747 = vmatprep.subr.mxu0 %v16249_v38 }
0x20b1   : > { %13375 = vadd.xlane.f32.xlu0 %v13374_v31  ;;  %15748 = vmatpush3.msra.mxu0 %v13464_v34  ;;  %v13478_v31 = vld [vmem:[%s18996_s17 + $0x78] sm:$0xff] }
0x20b2   : > { %v13371_v36 = vsel %vm785_vm2, %v13363_v50, 0.0  ;;  %15749 = vmatprep.subr.mxu0 %v16249_v38  ;;  %v13477_v50 = vld [vmem:[%s18996_s17 + $0x70] sm:$0xff] }
0x20b3   : > { %13372 = vadd.xlane.f32.xlu1 %v13371_v36  ;;  %15750 = vmatpush3.msra.mxu0 %v13463_v49  ;;  %v13476_v36 = vld [vmem:[%s18996_s17 + $0x68] sm:$0xff] }
0x20b4   : > { %15754 = vmatprep.subr.mxu0 %v16249_v38 }
0x20e1   : > { %v13334_v17 = vpop.xlane.xlu0 %13333 }
0x20e2   : > { %v13350_v46 = vmul.f32 0.03125, %v13334_v17 }
0x20e3   : > { %v13331_v61 = vpop.xlane.xlu1 %13330 }
0x20e4   : > { %v18775_v15 = vsub.f32 %v13316_v18, %v13350_v46  ;;  %v13349_v11 = vmul.f32 0.03125, %v13331_v61 }
0x20e6   : > { %v18777_v47 = vsub.f32 %v13315_v4, %v13349_v11  ;;  %v13340_v41 = vpop.xlane.xlu0 %13339  ;;  %v13366_v22 = vmul.f32 %v18775_v15, %v18775_v15  ;;  %v13474_v4 = vld [vmem:[%s18996_s17 + $0x58] sm:$0xff] }
0x20e7   : > { %v13352_v29 = vmul.f32 0.03125, %v13340_v41  ;;  %15766 = vmatpush3.msra.mxu1 %v13474_v4 }
0x20e8   : > { %v13337_v45 = vpop.xlane.xlu1 %13336  ;;  %v13380_v30 = vsel %vm785_vm2, %v13366_v22, 0.0  ;;  %v13365_v28 = vmul.f32 %v18777_v47, %v18777_v47  ;;  %15767 = vmatprep.subr.mxu1 %v16249_v38 }
0x20e9   : > { %v18784_v63 = vsub.f32 %v13318_v56, %v13352_v29  ;;  %v13351_v44 = vmul.f32 0.03125, %v13337_v45  ;;  %13381 = vadd.xlane.f32.xlu0 %v13380_v30  ;;  %15768 = vmatpush3.msra.mxu1 %v13473_v39 }
0x20ea   : > { %v13377_v24 = vsel %vm785_vm2, %v13365_v28, 0.0  ;;  %15769 = vmatprep.subr.mxu1 %v16249_v38 }
0x20eb   : > { %v18787_v6 = vsub.f32 %v13317_v26, %v13351_v44  ;;  %13378 = vadd.xlane.f32.xlu1 %v13377_v24  ;;  %v13368_v23 = vmul.f32 %v18784_v63, %v18784_v63  ;;  %15770 = vmatpush3.msra.mxu1 %v13472_v33 }
0x20ec   : > { %15771 = vmatprep.subr.mxu1 %v16249_v38 }
0x20ed   : > { %v13386_v19 = vsel %vm785_vm2, %v13368_v23, 0.0  ;;  %v13367_v9 = vmul.f32 %v18787_v6, %v18787_v6  ;;  %15772 = vmatpush3.msra.mxu1 %v13471_v55 }
0x20ee   : > { %13387 = vadd.xlane.f32.xlu0 %v13386_v19  ;;  %v13346_v53 = vpop.xlane.xlu0 %13345  ;;  %15787 = vmatprep.subr.mxu1 %v16249_v38 }
0x20ef   : > { %v13354_v57 = vmul.f32 0.03125, %v13346_v53  ;;  %v13383_v32 = vsel %vm785_vm2, %v13367_v9, 0.0 }
0x20f0   : > { %13384 = vadd.xlane.f32.xlu1 %v13383_v32  ;;  %v13343_v1 = vpop.xlane.xlu1 %13342 }
0x20f1   : > { %v18795_v62 = vsub.f32 %v13320_v7, %v13354_v57  ;;  %v13353_v43 = vmul.f32 0.03125, %v13343_v1 }
0x20f3   : > { %v18797_v18 = vsub.f32 %v13319_v54, %v13353_v43  ;;  %v13370_v2 = vmul.f32 %v18795_v62, %v18795_v62 }
0x20f5   : > { %v13392_v25 = vsel %vm785_vm2, %v13370_v2, 0.0  ;;  %v13369_v10 = vmul.f32 %v18797_v18, %v18797_v18 }
0x20f6   : > { %13393 = vadd.xlane.f32.xlu0 %v13392_v25 }
0x20f7   : > { %v13389_v60 = vsel %vm785_vm2, %v13369_v10, 0.0 }
0x20f8   : > { %13390 = vadd.xlane.f32.xlu1 %v13389_v60 }
0x213a   : > { %v13376_v56 = vpop.xlane.xlu0 %13375 }
0x213b   : > { %v13396_v13 = vmul.f32 0.03125, %v13376_v56 }
0x213c   : > { %v13373_v35 = vpop.xlane.xlu1 %13372 }
0x213d   : > { %v13404_v26 = vadd.f32 1e-05, %v13396_v13  ;;  %v13395_v21 = vmul.f32 0.03125, %v13373_v35  ;;  %v13482_v13 = vld [vmem:[%s18996_s17 + $0x98] sm:$0xff] }
0x213f   : > { %v13403_v3 = vadd.f32 1e-05, %v13395_v21  ;;  %16188 = vrsqrt.f32 %v13404_v26  ;;  %v13484_v26 = vld [vmem:[%s18996_s17 + $0xa8] sm:$0xff] }
0x2141   : > { %16190 = vrsqrt.f32 %v13403_v3 }
0x214c   : > { %v16189_v58 = vpop.eup %16188 }
0x214d   : > { %v13420_v7 = vmul.f32 %v16189_v58, %v18748_v16  ;;  %v13468_v16 = vld [vmem:[%s18996_s17 + $0x28] sm:$0xff] }
0x214e   : > { %v16191_v59 = vpop.eup %16190  ;;  %v13480_v58 = vld [vmem:[%s18996_s17 + $0x88] sm:$0xff] }
0x214f   : > { %v13419_v40 = vmul.f32 %v16191_v59, %v18751_v0  ;;  %v13434_v14 = vmul.f32 %v18825_v48, %v13420_v7  ;;  %v13467_v0 = vld [vmem:[%s18996_s17 + $0x20] sm:$0xff] }
0x2150   : > { %v13483_v59 = vld [vmem:[%s18996_s17 + $0xa0] sm:$0xff] }
0x2151   : > { %v13433_v20 = vmul.f32 %v18825_v48, %v13419_v40  ;;  %v13448_v5 = vadd.f32 %v18832_v37, %v13434_v14  ;;  %v13479_v14 = vld [vmem:[%s18996_s17 + $0x80] sm:$0xff] }
0x2153   : > { %v13447_v54 = vadd.f32 %v18832_v37, %v13433_v20  ;;  %v13456_v12 = vmax.f32 %v13448_v5, 0.0  ;;  %v13493_v5 = vld [vmem:[%s18996_s17 + $0xf0] sm:$0xff] }
0x2155   : > { %v13455_v52 = vmax.f32 %v13447_v54, 0.0 }
0x2157   : > { %15752 = vmatmul.mubr.msk.f32.vlgmr.msra.gmra.mxu0 %vm785_vm2, %v13455_v52 }
0x2158   : > { %15755 = vmatpush3.msra.mxu0 %v13470_v51  ;;  %15762 = vmatprep.mubr.msk.f32.mxu0 %vm16250_vm3, %v16249_v38 }
0x2159   : > { %15756 = vmatprep.subr.mxu0 %v16249_v38 }
0x215a   : > { %15757 = vmatpush3.msra.mxu0 %v13469_v27 }
0x215b   : > { %15758 = vmatprep.subr.mxu0 %v16249_v38 }
0x215c   : > { %15759 = vmatpush3.msra.mxu0 %v13468_v16 }
0x215d   : > { %15760 = vmatprep.subr.mxu0 %v16249_v38 }
0x215e   : > { %15761 = vmatpush3.msra.mxu0 %v13467_v0  ;;  %v13489_v0 = vld [vmem:[%s18996_s17 + $0xd0] sm:$0xff] }
0x215f   : > { %15763 = vmatmul.mubr.msk.f32.vlgmr.msra.gmra.mxu0 %vm785_vm2, %v13456_v12  ;;  %15776 = vmatprep.subr.mxu0 %v16249_v38 }
0x2160   : > { %15777 = vmatpush3.msra.mxu0 %v13478_v31  ;;  %15784 = vmatprep.mubr.msk.f32.mxu0 %vm16250_vm3, %v16249_v38  ;;  %v13488_v31 = vld [vmem:[%s18996_s17 + $0xc8] sm:$0xff] }
0x2161   : > { %15778 = vmatprep.subr.mxu0 %v16249_v38 }
0x2162   : > { %15779 = vmatpush3.msra.mxu0 %v13477_v50  ;;  %v13491_v50 = vld [vmem:[%s18996_s17 + $0xe0] sm:$0xff] }
0x2163   : > { %15780 = vmatprep.subr.mxu0 %v16249_v38 }
0x2164   : > { %15781 = vmatpush3.msra.mxu0 %v13476_v36 }
0x2165   : > { %15782 = vmatprep.subr.mxu0 %v16249_v38 }
0x2166   : > { %15783 = vmatpush3.msra.mxu0 %v13475_v42 }
0x2167   : > { %15798 = vmatprep.subr.mxu0 %v16249_v38 }
0x2172   : > { %v13382_v8 = vpop.xlane.xlu0 %13381 }
0x2173   : > { %v13398_v34 = vmul.f32 0.03125, %v13382_v8  ;;  %v13487_v8 = vld [vmem:[%s18996_s17 + $0xc0] sm:$0xff] }
0x2174   : > { %v13379_v49 = vpop.xlane.xlu1 %13378 }
0x2175   : > { %v13406_v17 = vadd.f32 1e-05, %v13398_v34  ;;  %v13397_v46 = vmul.f32 0.03125, %v13379_v49 }
0x2177   : > { %16192 = vrsqrt.f32 %v13406_v17  ;;  %v13405_v61 = vadd.f32 1e-05, %v13397_v46  ;;  %v13388_v11 = vpop.xlane.xlu0 %13387 }
0x2178   : > { %v13400_v41 = vmul.f32 0.03125, %v13388_v11 }
0x2179   : > { %16194 = vrsqrt.f32 %v13405_v61  ;;  %v13385_v22 = vpop.xlane.xlu1 %13384 }
0x217a   : > { %v13408_v29 = vadd.f32 1e-05, %v13400_v41  ;;  %v13399_v45 = vmul.f32 0.03125, %v13385_v22 }
0x217c   : > { %16196 = vrsqrt.f32 %v13408_v29  ;;  %v13407_v30 = vadd.f32 1e-05, %v13399_v45 }
0x217e   : > { %16198 = vrsqrt.f32 %v13407_v30 }
0x217f   : > { %v13394_v28 = vpop.xlane.xlu0 %13393 }
0x2180   : > { %v13402_v44 = vmul.f32 0.03125, %v13394_v28 }
0x2181   : > { %v13391_v24 = vpop.xlane.xlu1 %13390 }
0x2182   : > { %v13410_v23 = vadd.f32 1e-05, %v13402_v44  ;;  %v13401_v19 = vmul.f32 0.03125, %v13391_v24 }
0x2184   : > { %v16193_v9 = vpop.eup %16192  ;;  %16200 = vrsqrt.f32 %v13410_v23  ;;  %v13409_v53 = vadd.f32 1e-05, %v13401_v19 }
0x2185   : > { %v13422_v57 = vmul.f32 %v16193_v9, %v18775_v15  ;;  %v13486_v15 = vld [vmem:[%s18996_s17 + $0xb8] sm:$0xff]  ;;  %v14094_v9 = vlaneseq }
0x2186   : > { %v16195_v32 = vpop.eup %16194  ;;  %16202 = vrsqrt.f32 %v13409_v53 }
0x2187   : > { %v13436_v1 = vmul.f32 %v18825_v48, %v13422_v57  ;;  %v13421_v43 = vmul.f32 %v16195_v32, %v18777_v47 }
0x2189   : > { %v16197_v2 = vpop.eup %16196  ;;  %v13435_v25 = vmul.f32 %v18825_v48, %v13421_v43  ;;  %v13450_v10 = vadd.f32 %v18832_v37, %v13436_v1  ;;  %v14095_v1 = vand.u32 127, %v14094_v9 }
0x218a   : > { %v13424_v60 = vmul.f32 %v16197_v2, %v18784_v63  ;;  %v13485_v63 = vld [vmem:[%s18996_s17 + $0xb0] sm:$0xff] }
0x218b   : > { %v16199_v4 = vpop.eup %16198  ;;  %v13449_v39 = vadd.f32 %v18832_v37, %v13435_v25  ;;  %v13458_v33 = vmax.f32 %v13450_v10, 0.0  ;;  %v14500_v25 = vld [vmem:[%s18997_s18] ss:$0 sm:$0xff]  ;;  %vm14096_vm9 = vcmp.lt.s32.totalorder %v14095_v1, 10 }
0x218c   : > { %v13438_v55 = vmul.f32 %v18825_v48, %v13424_v60  ;;  %v13423_v56 = vmul.f32 %v16199_v4, %v18787_v6  ;;  %v13481_v6 = vld [vmem:[%s18996_s17 + $0x90] sm:$0xff] }
0x218d   : > { %v13457_v47 = vmax.f32 %v13449_v39, 0.0  ;;  %15785 = vmatmul.mubr.msk.f32.vlgmr.msra.gmra.mxu0 %vm785_vm2, %v13458_v33 }
0x218e   : > { %v13437_v35 = vmul.f32 %v18825_v48, %v13423_v56  ;;  %15799 = vmatpush3.msra.mxu0 %v13486_v15  ;;  %15806 = vmatprep.mubr.msk.f32.mxu0 %vm16250_vm3, %v16249_v38  ;;  %v13452_v21 = vadd.f32 %v18832_v37, %v13438_v55 }
0x218f   : > { %15800 = vmatprep.subr.mxu0 %v16249_v38  ;;  %15774 = vmatmul.mubr.msk.f32.vlgmr.msra.gmra.mxu1 %vm785_vm2, %v13457_v47 }
0x2190   : > { %15788 = vmatpush3.msra.mxu1 %v13482_v13  ;;  %15801 = vmatpush3.msra.mxu0 %v13485_v63  ;;  %v13451_v7 = vadd.f32 %v18832_v37, %v13437_v35  ;;  %v13460_v54 = vmax.f32 %v13452_v21, 0.0 }
0x2191   : > { %v16201_v3 = vpop.eup %16200  ;;  %15789 = vmatprep.subr.mxu1 %v16249_v38  ;;  %15802 = vmatprep.subr.mxu0 %v16249_v38 }
0x2192   : > { %v13426_v40 = vmul.f32 %v16201_v3, %v18795_v62  ;;  %15790 = vmatpush3.msra.mxu1 %v13481_v6  ;;  %15803 = vmatpush3.msra.mxu0 %v13484_v26  ;;  %v13494_v62 = vld [vmem:[%s18996_s17 + $0xf8] sm:$0xff]  ;;  %v13459_v27 = vmax.f32 %v13451_v7, 0.0 }
0x2193   : > { %v16203_v20 = vpop.eup %16202  ;;  %15791 = vmatprep.subr.mxu1 %v16249_v38  ;;  %15804 = vmatprep.subr.mxu0 %v16249_v38 }
0x2194   : > { %v13425_v52 = vmul.f32 %v16203_v20, %v18797_v18  ;;  %15792 = vmatpush3.msra.mxu1 %v13480_v58  ;;  %15805 = vmatpush3.msra.mxu0 %v13483_v59  ;;  %v13440_v51 = vmul.f32 %v18825_v48, %v13426_v40  ;;  %v13490_v18 = vld [vmem:[%s18996_s17 + $0xd8] sm:$0xff] }
0x2195   : > { %15793 = vmatprep.subr.mxu1 %v16249_v38  ;;  %15807 = vmatmul.mubr.msk.f32.vlgmr.msra.gmra.mxu0 %vm785_vm2, %v13460_v54 }
0x2196   : > { %15820 = vmatprep.subr.mxu0 %v16249_v38  ;;  %15794 = vmatpush3.msra.mxu1 %v13479_v14  ;;  %v13439_v16 = vmul.f32 %v18825_v48, %v13425_v52  ;;  %v13492_v48 = vld [vmem:[%s18996_s17 + $0xe8] sm:$0xff]  ;;  %v13454_v12 = vadd.f32 %v18832_v37, %v13440_v51 }
0x2197   : > { %15795 = vmatprep.mubr.msk.f32.mxu1 %vm16250_vm3, %v16249_v38  ;;  %15821 = vmatpush3.msra.mxu0 %v13494_v62 }
0x2198   : > { %15796 = vmatmul.mubr.msk.f32.vlgmr.msra.gmra.mxu1 %vm785_vm2, %v13459_v27  ;;  %15809 = vmatprep.subr.mxu1 %v16249_v38  ;;  %v13453_v36 = vadd.f32 %v18832_v37, %v13439_v16  ;;  %v13462_v42 = vmax.f32 %v13454_v12, 0.0 }
0x2199   : > { %15822 = vmatprep.subr.mxu0 %v16249_v38  ;;  %15810 = vmatpush3.msra.mxu1 %v13490_v18 }
0x219a   : > { %15823 = vmatpush3.msra.mxu0 %v13493_v5  ;;  %15811 = vmatprep.subr.mxu1 %v16249_v38  ;;  %v13461_v37 = vmax.f32 %v13453_v36, 0.0 }
0x219b   : > { %15824 = vmatprep.subr.mxu0 %v16249_v38  ;;  %15812 = vmatpush3.msra.mxu1 %v13489_v0 }
0x219c   : > { %15825 = vmatpush3.msra.mxu0 %v13492_v48  ;;  %15813 = vmatprep.subr.mxu1 %v16249_v38 }
0x219d   : > { %15826 = vmatprep.subr.mxu0 %v16249_v38  ;;  %15814 = vmatpush3.msra.mxu1 %v13488_v31 }
0x219e   : > { %15827 = vmatpush3.msra.mxu0 %v13491_v50  ;;  %15828 = vmatprep.mubr.msk.f32.mxu0 %vm16250_vm3, %v16249_v38 }
0x219f   : > { %15815 = vmatprep.subr.mxu1 %v16249_v38  ;;  %15829 = vmatmul.mubr.msk.f32.vlgmr.msra.gmra.mxu0 %vm785_vm2, %v13462_v42 }
0x21a0   : > { %15816 = vmatpush3.msra.mxu1 %v13487_v8  ;;  %15817 = vmatprep.mubr.msk.f32.mxu1 %vm16250_vm3, %v16249_v38 }
0x21a1   : > { %15818 = vmatmul.mubr.msk.f32.vlgmr.msra.gmra.mxu1 %vm785_vm2, %v13461_v37 }
0x2217   : > { %v13564_v34 = vpop.f32.mrf.mxu0 }
0x2219   : > { %v15753_v49 = vpop.f32.mrf.mxu0 }
0x221f   : > { %v13637_v17 = vpop.f32.mrf.mxu0 }
0x2220   : > { %v14079_v29 = vadd.f32 %v13637_v17, %v13564_v34 }
0x2221   : > { %v15764_v46 = vpop.f32.mrf.mxu0 }
0x224d   : > { %v13783_v61 = vpop.f32.mrf.mxu0 }
0x224f   : > { %v13710_v11 = vpop.f32.mrf.mxu1  ;;  %v15786_v41 = vpop.f32.mrf.mxu0 }
0x2250   : > { %v14080_v30 = vadd.f32 %v14079_v29, %v13710_v11 }
0x2251   : > { %v15775_v22 = vpop.f32.mrf.mxu1 }
0x2252   : > { %v14081_v24 = vadd.f32 %v14080_v30, %v13783_v61 }
0x2255   : > { %v13929_v45 = vpop.f32.mrf.mxu0 }
0x2257   : > { %v15808_v28 = vpop.f32.mrf.mxu0 }
0x2258   : > { %v13856_v44 = vpop.f32.mrf.mxu1 }
0x2259   : > { %v14082_v19 = vadd.f32 %v14081_v24, %v13856_v44 }
0x225a   : > { %v15797_v23 = vpop.f32.mrf.mxu1 }
0x225b   : > { %v14083_v53 = vadd.f32 %v14082_v19, %v13929_v45 }
0x225f   : > { %v14075_v38 = vpop.f32.mrf.mxu0 }
0x2261   : > { %v14002_v57 = vpop.f32.mrf.mxu1  ;;  %v15830_v32 = vpop.f32.mrf.mxu0 }
0x2262   : > { %v14084_v43 = vadd.f32 %v14083_v53, %v14002_v57 }
0x2263   : > { %v15819_v2 = vpop.f32.mrf.mxu1 }
0x2264   : > { %v14085_v10 = vadd.f32 %v14084_v43, %v14075_v38 }
0x2266   : > { %v14093_v60 = vadd.f32 %v14500_v25, %v14085_v10 }
0x2268   : > { %v14097_v4 = vsel %vm14096_vm9, %v14093_v60, -1e+30 }
0x2269   : > { %14098 = vmax.xlane.f32.xlu1 %v14097_v4 }
0x22f2   : > { %v14099_v39 = vpop.xlane.xlu1 %14098 }
0x22f3   : > { %v14100_v33 = vsub.f32 %v14097_v4, %v14099_v39 }
0x22f5   : > { %v14101_v15 = vmul.f32 1.442695, %v14100_v33 }
0x22f7   : > { %16204 = vpow2.f32 %v14101_v15 }
0x2304   : > { %v16205_v55 = vpop.eup %16204 }
0x2305   : > { %14103 = vadd.xlane.f32.xlu0 %v16205_v55 }
0x238e   : > { %v14104_v56 = vpop.xlane.xlu0 %14103 }
0x238f   : > { %16206 = vlog2.f32 %v14104_v56 }
0x239c   : > { %v16207_v47 = vpop.eup %16206 }
0x239d   : > { %v14106_v13 = vmul.f32 0.6931472, %v16207_v47 }
0x239f   : > { %v14107_v63 = vsub.f32 %v14100_v33, %v14106_v13 }
0x23a1   : > { %14108 = vst [vmem:[%s615_s24] sm:$0xff] %v14107_v63 }
0x23a2 PF: > { %s30_s0 = sadd.s32 1, %s16244_s0  }
0x23a3   : > { %p27_p1 = scmp.ge.s32.totalorder %s30_s0, 6  }
0x23a5   :  { %29 = sbr.rel (!%p27_p1) target bundleno = 6 (0x6), region = 143 }
0x23aa   :  { %14128 = vsyncpa [#allocation4], 1 }
0x23ab   :  { %14130 = vsyncpa [#allocation4 + $0x1], 1 }

</bundles_post_ra>
